<compile_context>
chip_gen: v7x
topology: tpu7x:2x2x1
jax: 0.10.0
libtpu: 0.0.40
codegen_flags: <defaults>
</compile_context>

<pallas_src>
import functools

import jax
import jax.numpy as jnp
from jax.experimental import pallas as pl
from jax.experimental.pallas import tpu as pltpu

LANE = 128   # lane width: output channels padded to a multiple of this
SUB = 8      # sublane width: contraction channel dims padded to this
COL0 = 8     # sublane-aligned data-column origin inside the halo scratches


def _round_up(n, m):
    return (n + m - 1) // m * m


# ----------------------------------------------------------------------------
# 3-pass bf16 matmul (hi/lo split, f32 MXU accumulation).  ~f32 accuracy at
# half (or fewer) the MXU passes of precision=HIGHEST, and it lowers as plain
# single-pass bf16 dots.
# ----------------------------------------------------------------------------
def _split_bf16(a):
    hi = a.astype(jnp.bfloat16)
    lo = (a - hi.astype(jnp.float32)).astype(jnp.bfloat16)
    return hi, lo


def _dot3(a, b):
    ah, al = _split_bf16(a)
    bh, bl = _split_bf16(b)
    d = lambda u, v: jnp.dot(u, v, preferred_element_type=jnp.float32)
    return d(ah, bh) + (d(ah, bl) + d(al, bh))


# ----------------------------------------------------------------------------
# In-VMEM im2col: dx (column) shifts hoisted out of the tap loop, dy (row)
# shifts are sublane-aligned slices (ky*W is a multiple of 8 when W % 8 == 0).
# ----------------------------------------------------------------------------
def _im2col(padded, H, W, ksize, col0):
    """padded: (H + ksize - 1, Wp, C) value, data columns start at `col0`,
    halo rows/columns are zero.  Returns (H*W, ksize*ksize*C)."""
    HP = padded.shape[0]
    C = padded.shape[-1]
    p = (ksize - 1) // 2
    slabs = [padded[:, col0 - p + kx:col0 - p + kx + W, :].reshape(HP * W, C)
             for kx in range(ksize)]
    cat_x = jnp.concatenate(slabs, axis=-1)                 # (HP*W, ksize*C)
    rows = [cat_x[ky * W:ky * W + H * W, :] for ky in range(ksize)]
    return jnp.concatenate(rows, axis=-1)                   # (HW, ks*ks*C)


# ----------------------------------------------------------------------------
# Fused Pallas kernel: one batch element per grid step, everything in VMEM.
# ----------------------------------------------------------------------------
def _block_kernel(x_ref, w1_ref, s1_ref, b1_ref, w2_ref, s2_ref, b2_ref,
                  caw1_ref, caw2_ref, scw_ref, scs_ref, scb_ref, saw_ref,
                  o_ref, pad2_ref, samap_ref, *, H, W, C_real):
    f32 = jnp.float32
    HW = H * W
    Cip = x_ref.shape[-1]           # conv1 contraction channels (padded to 8)
    Ck = pad2_ref.shape[-1]         # conv2 contraction channels (rnd8(Cout))
    Cp = o_ref.shape[-1]            # lane-dense output channels (rnd128(Cout))
    CO = COL0

    xp = x_ref[...]                                        # (H+2, W+2, Cip)

    # ---- conv1 (3x3, pad 1, no bias) + bn1 + relu: one deep-K MXU dot ------
    cols1 = _im2col(xp, H, W, 3, 1)                        # (HW, 9*Cip)
    out1 = _dot3(cols1, w1_ref[...])                       # (HW, Ck)
    out1 = jnp.maximum(out1 * s1_ref[...] + b1_ref[...], 0.0)

    # ---- conv2 (3x3, pad 1, no bias) + bn2 ---------------------------------
    # Stage out1 in the halo scratch; only border strips are re-zeroed (the
    # interior is fully overwritten every step, so the halo stays zero).
    pad2_ref[0:1] = jnp.zeros((1,) + pad2_ref.shape[1:], f32)
    pad2_ref[H + 1:H + 2] = jnp.zeros((1,) + pad2_ref.shape[1:], f32)
    pad2_ref[:, CO - 1:CO, :] = jnp.zeros((H + 2, 1, Ck), f32)
    pad2_ref[:, CO + W:CO + W + 1, :] = jnp.zeros((H + 2, 1, Ck), f32)
    pad2_ref[1:H + 1, CO:CO + W, :] = out1.reshape(H, W, Ck)

    cols2 = _im2col(pad2_ref[...], H, W, 3, CO)            # (HW, 9*Ck)
    out2 = _dot3(cols2, w2_ref[...]) * s2_ref[...] + b2_ref[...]   # (HW, Cp)

    # ---- channel attention: stacked [avg; max] -> one MLP pass -> gate -----
    pooled = jnp.concatenate([jnp.mean(out2, axis=0, keepdims=True),
                              jnp.max(out2, axis=0, keepdims=True)], axis=0)
    hidden = jnp.maximum(_dot3(pooled, caw1_ref[...]), 0.0)        # (2, Cr)
    sig = jax.nn.sigmoid(_dot3(hidden, caw2_ref[...]))             # (2, Cp)
    x2 = out2 * (sig[0:1, :] + sig[1:2, :])                        # (HW, Cp)

    # ---- spatial attention: mean/max maps + 7x7 conv as one MXU dot --------
    xr = x2[:, :C_real]                        # real (unpadded) channels only
    sa_in = jnp.concatenate([jnp.mean(xr, axis=1, keepdims=True),
                             jnp.max(xr, axis=1, keepdims=True)], axis=-1)
    samap_ref[0:3] = jnp.zeros((3,) + samap_ref.shape[1:], f32)
    samap_ref[H + 3:H + 6] = jnp.zeros((3,) + samap_ref.shape[1:], f32)
    samap_ref[:, CO - 3:CO, :] = jnp.zeros((H + 6, 3, 2), f32)
    samap_ref[:, CO + W:CO + W + 3, :] = jnp.zeros((H + 6, 3, 2), f32)
    samap_ref[3:H + 3, CO:CO + W, :] = sa_in.reshape(H, W, 2)

    cols_sa = _im2col(samap_ref[...], H, W, 7, CO)         # (HW, 98)
    attn = jax.nn.sigmoid(_dot3(cols_sa, saw_ref[...])[:, 0:1])    # (HW, 1)

    # ---- shortcut (1x1 conv + bn): reuse conv1's centre-tap im2col lanes ---
    x_in = cols1[:, 4 * Cip:5 * Cip]                       # == x[y, x, :]
    identity = _dot3(x_in, scw_ref[...]) * scs_ref[...] + scb_ref[...]

    # ---- residual add + final relu (lane-dense full-block store) -----------
    o_ref[...] = jnp.maximum(x2 * attn + identity, 0.0).reshape(H, W, Cp)


# ----------------------------------------------------------------------------
# Wrapper: layout only (NCHW <-> NHWC, channel padding, weight packing).
# ----------------------------------------------------------------------------
def attention_residual_block(x_nchw, P):
    x = jnp.transpose(x_nchw, (0, 2, 3, 1)).astype(jnp.float32)   # NCHW->NHWC
    B, H, W, Cin = x.shape
    Cout = P["conv1_w"].shape[-1]

    Cip = _round_up(Cin, SUB)      # conv1 contraction channels
    Ck = _round_up(Cout, SUB)      # conv2 contraction channels (NOT 128)
    Cp = _round_up(Cout, LANE)     # lane-dense output channels

    xpad = jnp.pad(x, ((0, 0), (1, 1), (1, 1), (0, Cip - Cin)))

    def conv_w(w, ci_to, co_to):   # (kh,kw,ci,co) -> (kh*kw*ci_to, co_to)
        kh, kw, ci, co = w.shape
        w = jnp.pad(w, ((0, 0), (0, 0), (0, ci_to - ci), (0, co_to - co)))
        return w.reshape(kh * kw * ci_to, co_to)

    def chan(v, n):                # (Cout,) -> (1, n)
        return jnp.pad(v, (0, n - v.shape[0])).reshape(1, n)

    w1 = conv_w(P["conv1_w"], Cip, Ck)                            # (9*Cip, Ck)
    w2 = conv_w(P["conv2_w"], Ck, Cp)                             # (9*Ck, Cp)
    scw = conv_w(P["sc_w"], Cip, Cp)                              # (Cip, Cp)
    saw = jnp.pad(P["sa_w"].reshape(7 * 7 * 2, 1), ((0, 0), (0, 7)))  # (98, 8)
    caw1 = jnp.pad(P["ca_w1"], ((0, Cp - Cout), (0, 0)))          # (Cp, Cr)
    caw2 = jnp.pad(P["ca_w2"], ((0, 0), (0, Cp - Cout)))          # (Cr, Cp)

    args = (xpad, w1, chan(P["bn1_scale"], Ck), chan(P["bn1_bias"], Ck),
            w2, chan(P["bn2_scale"], Cp), chan(P["bn2_bias"], Cp),
            caw1, caw2, scw, chan(P["sc_scale"], Cp), chan(P["sc_bias"], Cp),
            saw)

    def full(a):                   # grid-invariant whole-array VMEM block
        n = a.ndim
        return pl.BlockSpec(a.shape, lambda b, n=n: (0,) * n)

    in_specs = [pl.BlockSpec((None, H + 2, W + 2, Cip), lambda b: (b, 0, 0, 0))]
    in_specs += [full(a) for a in args[1:]]

    out = pl.pallas_call(
        functools.partial(_block_kernel, H=H, W=W, C_real=Cout),
        out_shape=jax.ShapeDtypeStruct((B, H, W, Cp), jnp.float32),
        grid=(B,),
        in_specs=in_specs,
        out_specs=pl.BlockSpec((None, H, W, Cp), lambda b: (b, 0, 0, 0)),
        scratch_shapes=[
            pltpu.VMEM((H + 2, W + 2 * COL0, Ck), jnp.float32),   # conv2 halo
            pltpu.VMEM((H + 6, W + 2 * COL0, 2), jnp.float32),    # SA maps
        ],
        compiler_params=pltpu.CompilerParams(
            dimension_semantics=("parallel",),
            vmem_limit_bytes=32 * 1024 * 1024),
    )(*args)

    return jnp.transpose(out[..., :Cout], (0, 3, 1, 2))           # -> NCHW


# ----------------------------------------------------------------------------
# Deterministic parameter init (eval-mode BN folded into scale/bias)
# ----------------------------------------------------------------------------
def _fold_bn(gamma, beta, mean, var, eps=1e-5):
    scale = gamma / jnp.sqrt(var + eps)
    return scale, beta - mean * scale


def init_params(key, in_channels, out_channels):
    reduction = max(out_channels // 16, 4)
    cr = out_channels // reduction
    ks = jax.random.split(key, 9)

    def bn_params(k):
        k1, k2, k3, k4 = jax.random.split(k, 4)
        gamma = 1.0 + 0.1 * jax.random.normal(k1, (out_channels,))
        beta = 0.1 * jax.random.normal(k2, (out_channels,))
        mean = 0.1 * jax.random.normal(k3, (out_channels,))
        var = 0.9 + 0.2 * jax.random.uniform(k4, (out_channels,))
        return _fold_bn(gamma, beta, mean, var)

    bn1_scale, bn1_bias = bn_params(ks[0])
    bn2_scale, bn2_bias = bn_params(ks[1])
    sc_scale, sc_bias = bn_params(ks[2])
    P = dict(
        conv1_w=0.20 * jax.random.normal(ks[3], (3, 3, in_channels, out_channels)),
        conv2_w=0.15 * jax.random.normal(ks[4], (3, 3, out_channels, out_channels)),
        sc_w=0.30 * jax.random.normal(ks[5], (1, 1, in_channels, out_channels)),
        sa_w=0.10 * jax.random.normal(ks[6], (7, 7, 2, 1)),
        ca_w1=0.30 * jax.random.normal(ks[7], (out_channels, cr)),
        ca_w2=0.30 * jax.random.normal(ks[8], (cr, out_channels)),
        bn1_scale=bn1_scale, bn1_bias=bn1_bias,
        bn2_scale=bn2_scale, bn2_bias=bn2_bias,
        sc_scale=sc_scale, sc_bias=sc_bias,
    )
    return jax.tree.map(lambda a: a.astype(jnp.float32), P)


# ----------------------------------------------------------------------------
# Pure-JAX reference (for correctness check)
# ----------------------------------------------------------------------------
def reference(x_nchw, P):
    x = jnp.transpose(x_nchw, (0, 2, 3, 1))
    dn = ("NHWC", "HWIO", "NHWC")

    def conv(v, w, pad):
        return jax.lax.conv_general_dilated(
            v, w, (1, 1), [(pad, pad), (pad, pad)],
            dimension_numbers=dn, precision=jax.lax.Precision.HIGHEST)

    out = conv(x, P["conv1_w"], 1) * P["bn1_scale"] + P["bn1_bias"]
    out = jnp.maximum(out, 0.0)
    out = conv(out, P["conv2_w"], 1) * P["bn2_scale"] + P["bn2_bias"]

    avgp = jnp.mean(out, axis=(1, 2), keepdims=True)
    maxp = jnp.max(out, axis=(1, 2), keepdims=True)

    def ca(v):
        h = jnp.maximum(
            jnp.einsum("bijc,cr->bijr", v, P["ca_w1"],
                       precision=jax.lax.Precision.HIGHEST), 0.0)
        return jax.nn.sigmoid(
            jnp.einsum("bijr,rc->bijc", h, P["ca_w2"],
                       precision=jax.lax.Precision.HIGHEST))

    out = out * (ca(avgp) + ca(maxp))
    cm = jnp.mean(out, axis=-1, keepdims=True)
    cx = jnp.max(out, axis=-1, keepdims=True)
    attn = jax.nn.sigmoid(conv(jnp.concatenate([cm, cx], axis=-1), P["sa_w"], 3))
    out = out * attn
    identity = conv(x, P["sc_w"], 0) * P["sc_scale"] + P["sc_bias"]
    out = jnp.maximum(out + identity, 0.0)
    return jnp.transpose(out, (0, 3, 1, 2))


if __name__ == "__main__":
    B, Cin, Cout, H, W = 2, 4, 8, 16, 16
    key = jax.random.PRNGKey(0)
    kx, kp = jax.random.split(key)
    x = jax.random.normal(kx, (B, Cin, H, W), dtype=jnp.float32)  # NCHW input
    P = init_params(kp, Cin, Cout)

    fwd = jax.jit(attention_residual_block)
    y = fwd(x, P)
    jax.block_until_ready(y)

    y_ref = reference(x, P)
    err = float(jnp.max(jnp.abs(y - y_ref)))
    assert y.shape == (B, Cout, H, W), y.shape
    assert err < 5e-3, f"max abs error {err}"
    print("KERNEL_OK")
</pallas_src>

<mosaic_0001>
module attributes {stable_mosaic.version = 11 : i64} {
  func.func @_block_kernel(%arg0: i32, %arg1: memref<1x18x18x8xf32, #tpu.memory_space<vmem>>, %arg2: memref<72x8xf32, #tpu.memory_space<vmem>>, %arg3: memref<1x8xf32, #tpu.memory_space<vmem>>, %arg4: memref<1x8xf32, #tpu.memory_space<vmem>>, %arg5: memref<72x128xf32, #tpu.memory_space<vmem>>, %arg6: memref<1x128xf32, #tpu.memory_space<vmem>>, %arg7: memref<1x128xf32, #tpu.memory_space<vmem>>, %arg8: memref<128x2xf32, #tpu.memory_space<vmem>>, %arg9: memref<2x128xf32, #tpu.memory_space<vmem>>, %arg10: memref<8x128xf32, #tpu.memory_space<vmem>>, %arg11: memref<1x128xf32, #tpu.memory_space<vmem>>, %arg12: memref<1x128xf32, #tpu.memory_space<vmem>>, %arg13: memref<98x8xf32, #tpu.memory_space<vmem>>, %arg14: memref<1x16x16x128xf32, #tpu.memory_space<vmem>>, %arg15: memref<18x32x8xf32, #tpu.memory_space<vmem>>, %arg16: memref<22x32x2xf32, #tpu.memory_space<vmem>>) attributes {dimension_semantics = [#tpu.dimension_semantics<parallel>], iteration_bounds = array<i64: 2>, scalar_prefetch = 0 : i64, scratch_operands = 2 : i64, tpu.core_type = #tpu.core_type<tc>, window_params = [{transform_indices = @transform_0, window_bounds = array<i64: 1, 18, 18, 8>}, {pipeline_mode = #tpu.pipeline_mode<synchronous>, transform_indices = @transform_1, window_bounds = array<i64: 72, 8>}, {pipeline_mode = #tpu.pipeline_mode<synchronous>, transform_indices = @transform_2, window_bounds = array<i64: 1, 8>}, {pipeline_mode = #tpu.pipeline_mode<synchronous>, transform_indices = @transform_3, window_bounds = array<i64: 1, 8>}, {pipeline_mode = #tpu.pipeline_mode<synchronous>, transform_indices = @transform_4, window_bounds = array<i64: 72, 128>}, {pipeline_mode = #tpu.pipeline_mode<synchronous>, transform_indices = @transform_5, window_bounds = array<i64: 1, 128>}, {pipeline_mode = #tpu.pipeline_mode<synchronous>, transform_indices = @transform_6, window_bounds = array<i64: 1, 128>}, {pipeline_mode = #tpu.pipeline_mode<synchronous>, transform_indices = @transform_7, window_bounds = array<i64: 128, 2>}, {pipeline_mode = #tpu.pipeline_mode<synchronous>, transform_indices = @transform_8, window_bounds = array<i64: 2, 128>}, {pipeline_mode = #tpu.pipeline_mode<synchronous>, transform_indices = @transform_9, window_bounds = array<i64: 8, 128>}, {pipeline_mode = #tpu.pipeline_mode<synchronous>, transform_indices = @transform_10, window_bounds = array<i64: 1, 128>}, {pipeline_mode = #tpu.pipeline_mode<synchronous>, transform_indices = @transform_11, window_bounds = array<i64: 1, 128>}, {pipeline_mode = #tpu.pipeline_mode<synchronous>, transform_indices = @transform_12, window_bounds = array<i64: 98, 8>}, {transform_indices = @transform_13, window_bounds = array<i64: 1, 16, 16, 128>}]} {
    %c0 = arith.constant 0 : index
    %c0_0 = arith.constant 0 : index
    %c0_1 = arith.constant 0 : index
    %c0_2 = arith.constant 0 : index
    %0 = vector.load %arg1[%c0, %c0_0, %c0_1, %c0_2] : memref<1x18x18x8xf32, #tpu.memory_space<vmem>>, vector<1x18x18x8xf32>
    %1 = vector.shape_cast %0 : vector<1x18x18x8xf32> to vector<18x18x8xf32>
    %2 = vector.extract_strided_slice %1 {offsets = [0, 0, 0], sizes = [18, 16, 8], strides = [1, 1, 1]} : vector<18x18x8xf32> to vector<18x16x8xf32>
    %3 = vector.shape_cast %2 : vector<18x16x8xf32> to vector<288x8xf32>
    %4 = vector.extract_strided_slice %1 {offsets = [0, 1, 0], sizes = [18, 16, 8], strides = [1, 1, 1]} : vector<18x18x8xf32> to vector<18x16x8xf32>
    %5 = vector.shape_cast %4 : vector<18x16x8xf32> to vector<288x8xf32>
    %6 = vector.extract_strided_slice %1 {offsets = [0, 2, 0], sizes = [18, 16, 8], strides = [1, 1, 1]} : vector<18x18x8xf32> to vector<18x16x8xf32>
    %7 = vector.shape_cast %6 : vector<18x16x8xf32> to vector<288x8xf32>
    %8 = tpu.concatenate %3, %5, %7 in 1 : vector<288x8xf32>, vector<288x8xf32>, vector<288x8xf32> -> vector<288x24xf32>
    %9 = vector.extract_strided_slice %8 {offsets = [0, 0], sizes = [256, 24], strides = [1, 1]} : vector<288x24xf32> to vector<256x24xf32>
    %10 = vector.extract_strided_slice %8 {offsets = [16, 0], sizes = [256, 24], strides = [1, 1]} : vector<288x24xf32> to vector<256x24xf32>
    %11 = vector.extract_strided_slice %8 {offsets = [32, 0], sizes = [256, 24], strides = [1, 1]} : vector<288x24xf32> to vector<256x24xf32>
    %12 = tpu.concatenate %9, %10, %11 in 1 : vector<256x24xf32>, vector<256x24xf32>, vector<256x24xf32> -> vector<256x72xf32>
    %c0_3 = arith.constant 0 : index
    %c0_4 = arith.constant 0 : index
    %13 = vector.load %arg2[%c0_3, %c0_4] : memref<72x8xf32, #tpu.memory_space<vmem>>, vector<72x8xf32>
    %14 = arith.truncf %12 : vector<256x72xf32> to vector<256x72xbf16>
    %15 = arith.extf %14 : vector<256x72xbf16> to vector<256x72xf32>
    %16 = arith.subf %12, %15 : vector<256x72xf32>
    %17 = arith.truncf %16 : vector<256x72xf32> to vector<256x72xbf16>
    %18 = arith.truncf %13 : vector<72x8xf32> to vector<72x8xbf16>
    %19 = arith.extf %18 : vector<72x8xbf16> to vector<72x8xf32>
    %20 = arith.subf %13, %19 : vector<72x8xf32>
    %21 = arith.truncf %20 : vector<72x8xf32> to vector<72x8xbf16>
    %cst = arith.constant dense<0.000000e+00> : vector<256x8xf32>
    %22 = tpu.matmul %14, %18, %cst {dimension_numbers = #tpu.dot_dimension_numbers<[1], [0], [0], [1], [0, 0, 1, 1], [], []>} : vector<256x72xbf16>, vector<72x8xbf16>, vector<256x8xf32> -> vector<256x8xf32>
    %cst_5 = arith.constant dense<0.000000e+00> : vector<256x8xf32>
    %23 = tpu.matmul %14, %21, %cst_5 {dimension_numbers = #tpu.dot_dimension_numbers<[1], [0], [0], [1], [0, 0, 1, 1], [], []>} : vector<256x72xbf16>, vector<72x8xbf16>, vector<256x8xf32> -> vector<256x8xf32>
    %cst_6 = arith.constant dense<0.000000e+00> : vector<256x8xf32>
    %24 = tpu.matmul %17, %18, %cst_6 {dimension_numbers = #tpu.dot_dimension_numbers<[1], [0], [0], [1], [0, 0, 1, 1], [], []>} : vector<256x72xbf16>, vector<72x8xbf16>, vector<256x8xf32> -> vector<256x8xf32>
    %25 = arith.addf %23, %24 : vector<256x8xf32>
    %26 = arith.addf %22, %25 : vector<256x8xf32>
    %c0_7 = arith.constant 0 : index
    %c0_8 = arith.constant 0 : index
    %27 = vector.load %arg3[%c0_7, %c0_8] : memref<1x8xf32, #tpu.memory_space<vmem>>, vector<1x8xf32>
    %28 = vector.broadcast %27 : vector<1x8xf32> to vector<256x8xf32>
    %29 = arith.mulf %26, %28 : vector<256x8xf32>
    %c0_9 = arith.constant 0 : index
    %c0_10 = arith.constant 0 : index
    %30 = vector.load %arg4[%c0_9, %c0_10] : memref<1x8xf32, #tpu.memory_space<vmem>>, vector<1x8xf32>
    %31 = vector.broadcast %30 : vector<1x8xf32> to vector<256x8xf32>
    %32 = arith.addf %29, %31 : vector<256x8xf32>
    %cst_11 = arith.constant 0.000000e+00 : f32
    %33 = vector.broadcast %cst_11 : f32 to vector<256x8xf32>
    %34 = arith.maximumf %32, %33 : vector<256x8xf32>
    %cst_12 = arith.constant 0.000000e+00 : f32
    %35 = vector.broadcast %cst_12 : f32 to vector<1x32x8xf32>
    %c0_13 = arith.constant 0 : index
    %c0_14 = arith.constant 0 : index
    %c0_15 = arith.constant 0 : index
    %36 = vector.load %arg15[%c0_13, %c0_14, %c0_15] : memref<18x32x8xf32, #tpu.memory_space<vmem>>, vector<1x32x8xf32>
    tpu.vector_store %arg15[%c0_13, %c0_14, %c0_15], %35 {strides = array<i32>} : memref<18x32x8xf32, #tpu.memory_space<vmem>>, vector<1x32x8xf32>,
    %cst_16 = arith.constant 0.000000e+00 : f32
    %37 = vector.broadcast %cst_16 : f32 to vector<1x32x8xf32>
    %c17 = arith.constant 17 : index
    %c0_17 = arith.constant 0 : index
    %c0_18 = arith.constant 0 : index
    %38 = vector.load %arg15[%c17, %c0_17, %c0_18] : memref<18x32x8xf32, #tpu.memory_space<vmem>>, vector<1x32x8xf32>
    tpu.vector_store %arg15[%c17, %c0_17, %c0_18], %37 {strides = array<i32>} : memref<18x32x8xf32, #tpu.memory_space<vmem>>, vector<1x32x8xf32>,
    %cst_19 = arith.constant 0.000000e+00 : f32
    %39 = vector.broadcast %cst_19 : f32 to vector<18x1x8xf32>
    %c0_20 = arith.constant 0 : index
    %c7 = arith.constant 7 : index
    %c0_21 = arith.constant 0 : index
    %40 = vector.load %arg15[%c0_20, %c7, %c0_21] : memref<18x32x8xf32, #tpu.memory_space<vmem>>, vector<18x1x8xf32>
    tpu.vector_store %arg15[%c0_20, %c7, %c0_21], %39 {strides = array<i32>} : memref<18x32x8xf32, #tpu.memory_space<vmem>>, vector<18x1x8xf32>,
    %cst_22 = arith.constant 0.000000e+00 : f32
    %41 = vector.broadcast %cst_22 : f32 to vector<18x1x8xf32>
    %c0_23 = arith.constant 0 : index
    %c24 = arith.constant 24 : index
    %c0_24 = arith.constant 0 : index
    %42 = vector.load %arg15[%c0_23, %c24, %c0_24] : memref<18x32x8xf32, #tpu.memory_space<vmem>>, vector<18x1x8xf32>
    tpu.vector_store %arg15[%c0_23, %c24, %c0_24], %41 {strides = array<i32>} : memref<18x32x8xf32, #tpu.memory_space<vmem>>, vector<18x1x8xf32>,
    %43 = vector.shape_cast %34 : vector<256x8xf32> to vector<16x16x8xf32>
    %c1 = arith.constant 1 : index
    %c8 = arith.constant 8 : index
    %c0_25 = arith.constant 0 : index
    %44 = vector.load %arg15[%c1, %c8, %c0_25] : memref<18x32x8xf32, #tpu.memory_space<vmem>>, vector<16x16x8xf32>
    tpu.vector_store %arg15[%c1, %c8, %c0_25], %43 {strides = array<i32>} : memref<18x32x8xf32, #tpu.memory_space<vmem>>, vector<16x16x8xf32>,
    %c0_26 = arith.constant 0 : index
    %c0_27 = arith.constant 0 : index
    %c0_28 = arith.constant 0 : index
    %45 = vector.load %arg15[%c0_26, %c0_27, %c0_28] : memref<18x32x8xf32, #tpu.memory_space<vmem>>, vector<18x32x8xf32>
    %46 = vector.extract_strided_slice %45 {offsets = [0, 7, 0], sizes = [18, 16, 8], strides = [1, 1, 1]} : vector<18x32x8xf32> to vector<18x16x8xf32>
    %47 = vector.shape_cast %46 : vector<18x16x8xf32> to vector<288x8xf32>
    %48 = vector.extract_strided_slice %45 {offsets = [0, 8, 0], sizes = [18, 16, 8], strides = [1, 1, 1]} : vector<18x32x8xf32> to vector<18x16x8xf32>
    %49 = vector.shape_cast %48 : vector<18x16x8xf32> to vector<288x8xf32>
    %50 = vector.extract_strided_slice %45 {offsets = [0, 9, 0], sizes = [18, 16, 8], strides = [1, 1, 1]} : vector<18x32x8xf32> to vector<18x16x8xf32>
    %51 = vector.shape_cast %50 : vector<18x16x8xf32> to vector<288x8xf32>
    %52 = tpu.concatenate %47, %49, %51 in 1 : vector<288x8xf32>, vector<288x8xf32>, vector<288x8xf32> -> vector<288x24xf32>
    %53 = vector.extract_strided_slice %52 {offsets = [0, 0], sizes = [256, 24], strides = [1, 1]} : vector<288x24xf32> to vector<256x24xf32>
    %54 = vector.extract_strided_slice %52 {offsets = [16, 0], sizes = [256, 24], strides = [1, 1]} : vector<288x24xf32> to vector<256x24xf32>
    %55 = vector.extract_strided_slice %52 {offsets = [32, 0], sizes = [256, 24], strides = [1, 1]} : vector<288x24xf32> to vector<256x24xf32>
    %56 = tpu.concatenate %53, %54, %55 in 1 : vector<256x24xf32>, vector<256x24xf32>, vector<256x24xf32> -> vector<256x72xf32>
    %c0_29 = arith.constant 0 : index
    %c0_30 = arith.constant 0 : index
    %57 = vector.load %arg5[%c0_29, %c0_30] : memref<72x128xf32, #tpu.memory_space<vmem>>, vector<72x128xf32>
    %58 = arith.truncf %56 : vector<256x72xf32> to vector<256x72xbf16>
    %59 = arith.extf %58 : vector<256x72xbf16> to vector<256x72xf32>
    %60 = arith.subf %56, %59 : vector<256x72xf32>
    %61 = arith.truncf %60 : vector<256x72xf32> to vector<256x72xbf16>
    %62 = arith.truncf %57 : vector<72x128xf32> to vector<72x128xbf16>
    %63 = arith.extf %62 : vector<72x128xbf16> to vector<72x128xf32>
    %64 = arith.subf %57, %63 : vector<72x128xf32>
    %65 = arith.truncf %64 : vector<72x128xf32> to vector<72x128xbf16>
    %cst_31 = arith.constant dense<0.000000e+00> : vector<256x128xf32>
    %66 = tpu.matmul %58, %62, %cst_31 {dimension_numbers = #tpu.dot_dimension_numbers<[1], [0], [0], [1], [0, 0, 1, 1], [], []>} : vector<256x72xbf16>, vector<72x128xbf16>, vector<256x128xf32> -> vector<256x128xf32>
    %cst_32 = arith.constant dense<0.000000e+00> : vector<256x128xf32>
    %67 = tpu.matmul %58, %65, %cst_32 {dimension_numbers = #tpu.dot_dimension_numbers<[1], [0], [0], [1], [0, 0, 1, 1], [], []>} : vector<256x72xbf16>, vector<72x128xbf16>, vector<256x128xf32> -> vector<256x128xf32>
    %cst_33 = arith.constant dense<0.000000e+00> : vector<256x128xf32>
    %68 = tpu.matmul %61, %62, %cst_33 {dimension_numbers = #tpu.dot_dimension_numbers<[1], [0], [0], [1], [0, 0, 1, 1], [], []>} : vector<256x72xbf16>, vector<72x128xbf16>, vector<256x128xf32> -> vector<256x128xf32>
    %69 = arith.addf %67, %68 : vector<256x128xf32>
    %70 = arith.addf %66, %69 : vector<256x128xf32>
    %c0_34 = arith.constant 0 : index
    %c0_35 = arith.constant 0 : index
    %71 = vector.load %arg6[%c0_34, %c0_35] : memref<1x128xf32, #tpu.memory_space<vmem>>, vector<1x128xf32>
    %72 = vector.broadcast %71 : vector<1x128xf32> to vector<256x128xf32>
    %73 = arith.mulf %70, %72 : vector<256x128xf32>
    %c0_36 = arith.constant 0 : index
    %c0_37 = arith.constant 0 : index
    %74 = vector.load %arg7[%c0_36, %c0_37] : memref<1x128xf32, #tpu.memory_space<vmem>>, vector<1x128xf32>
    %75 = vector.broadcast %74 : vector<1x128xf32> to vector<256x128xf32>
    %76 = arith.addf %73, %75 : vector<256x128xf32>
    %cst_38 = arith.constant dense<0.000000e+00> : vector<128xf32>
    %77 = vector.multi_reduction <add>, %76, %cst_38 [0] : vector<256x128xf32> to vector<128xf32>
    %78 = vector.shape_cast %77 : vector<128xf32> to vector<1x128xf32>
    %cst_39 = arith.constant 2.560000e+02 : f32
    %79 = vector.broadcast %cst_39 : f32 to vector<1x128xf32>
    %80 = arith.divf %78, %79 : vector<1x128xf32>
    %cst_40 = arith.constant dense<0xFF800000> : vector<128xf32>
    %81 = vector.multi_reduction <maximumf>, %76, %cst_40 [0] : vector<256x128xf32> to vector<128xf32>
    %82 = vector.shape_cast %81 : vector<128xf32> to vector<1x128xf32>
    %83 = tpu.concatenate %80, %82 in 0 : vector<1x128xf32>, vector<1x128xf32> -> vector<2x128xf32>
    %c0_41 = arith.constant 0 : index
    %c0_42 = arith.constant 0 : index
    %84 = vector.load %arg8[%c0_41, %c0_42] : memref<128x2xf32, #tpu.memory_space<vmem>>, vector<128x2xf32>
    %85 = arith.truncf %83 : vector<2x128xf32> to vector<2x128xbf16>
    %86 = arith.extf %85 : vector<2x128xbf16> to vector<2x128xf32>
    %87 = arith.subf %83, %86 : vector<2x128xf32>
    %88 = arith.truncf %87 : vector<2x128xf32> to vector<2x128xbf16>
    %89 = arith.truncf %84 : vector<128x2xf32> to vector<128x2xbf16>
    %90 = arith.extf %89 : vector<128x2xbf16> to vector<128x2xf32>
    %91 = arith.subf %84, %90 : vector<128x2xf32>
    %92 = arith.truncf %91 : vector<128x2xf32> to vector<128x2xbf16>
    %cst_43 = arith.constant dense<0.000000e+00> : vector<2x2xf32>
    %93 = tpu.matmul %85, %89, %cst_43 {dimension_numbers = #tpu.dot_dimension_numbers<[1], [0], [0], [1], [0, 0, 1, 1], [], []>} : vector<2x128xbf16>, vector<128x2xbf16>, vector<2x2xf32> -> vector<2x2xf32>
    %cst_44 = arith.constant dense<0.000000e+00> : vector<2x2xf32>
    %94 = tpu.matmul %85, %92, %cst_44 {dimension_numbers = #tpu.dot_dimension_numbers<[1], [0], [0], [1], [0, 0, 1, 1], [], []>} : vector<2x128xbf16>, vector<128x2xbf16>, vector<2x2xf32> -> vector<2x2xf32>
    %cst_45 = arith.constant dense<0.000000e+00> : vector<2x2xf32>
    %95 = tpu.matmul %88, %89, %cst_45 {dimension_numbers = #tpu.dot_dimension_numbers<[1], [0], [0], [1], [0, 0, 1, 1], [], []>} : vector<2x128xbf16>, vector<128x2xbf16>, vector<2x2xf32> -> vector<2x2xf32>
    %96 = arith.addf %94, %95 : vector<2x2xf32>
    %97 = arith.addf %93, %96 : vector<2x2xf32>
    %cst_46 = arith.constant 0.000000e+00 : f32
    %98 = vector.broadcast %cst_46 : f32 to vector<2x2xf32>
    %99 = arith.maximumf %97, %98 : vector<2x2xf32>
    %c0_47 = arith.constant 0 : index
    %c0_48 = arith.constant 0 : index
    %100 = vector.load %arg9[%c0_47, %c0_48] : memref<2x128xf32, #tpu.memory_space<vmem>>, vector<2x128xf32>
    %101 = arith.truncf %99 : vector<2x2xf32> to vector<2x2xbf16>
    %102 = arith.extf %101 : vector<2x2xbf16> to vector<2x2xf32>
    %103 = arith.subf %99, %102 : vector<2x2xf32>
    %104 = arith.truncf %103 : vector<2x2xf32> to vector<2x2xbf16>
    %105 = arith.truncf %100 : vector<2x128xf32> to vector<2x128xbf16>
    %106 = arith.extf %105 : vector<2x128xbf16> to vector<2x128xf32>
    %107 = arith.subf %100, %106 : vector<2x128xf32>
    %108 = arith.truncf %107 : vector<2x128xf32> to vector<2x128xbf16>
    %cst_49 = arith.constant dense<0.000000e+00> : vector<2x128xf32>
    %109 = tpu.matmul %101, %105, %cst_49 {dimension_numbers = #tpu.dot_dimension_numbers<[1], [0], [0], [1], [0, 0, 1, 1], [], []>} : vector<2x2xbf16>, vector<2x128xbf16>, vector<2x128xf32> -> vector<2x128xf32>
    %cst_50 = arith.constant dense<0.000000e+00> : vector<2x128xf32>
    %110 = tpu.matmul %101, %108, %cst_50 {dimension_numbers = #tpu.dot_dimension_numbers<[1], [0], [0], [1], [0, 0, 1, 1], [], []>} : vector<2x2xbf16>, vector<2x128xbf16>, vector<2x128xf32> -> vector<2x128xf32>
    %cst_51 = arith.constant dense<0.000000e+00> : vector<2x128xf32>
    %111 = tpu.matmul %104, %105, %cst_51 {dimension_numbers = #tpu.dot_dimension_numbers<[1], [0], [0], [1], [0, 0, 1, 1], [], []>} : vector<2x2xbf16>, vector<2x128xbf16>, vector<2x128xf32> -> vector<2x128xf32>
    %112 = arith.addf %110, %111 : vector<2x128xf32>
    %113 = arith.addf %109, %112 : vector<2x128xf32>
    %114 = arith.negf %113 : vector<2x128xf32>
    %115 = math.exp %114 : vector<2x128xf32>
    %cst_52 = arith.constant 1.000000e+00 : f32
    %116 = vector.broadcast %cst_52 : f32 to vector<2x128xf32>
    %117 = arith.addf %116, %115 : vector<2x128xf32>
    %118 = arith.divf %116, %117 : vector<2x128xf32>
    %119 = vector.extract_strided_slice %118 {offsets = [0, 0], sizes = [1, 128], strides = [1, 1]} : vector<2x128xf32> to vector<1x128xf32>
    %120 = vector.extract_strided_slice %118 {offsets = [1, 0], sizes = [1, 128], strides = [1, 1]} : vector<2x128xf32> to vector<1x128xf32>
    %121 = arith.addf %119, %120 : vector<1x128xf32>
    %122 = vector.broadcast %121 : vector<1x128xf32> to vector<256x128xf32>
    %123 = arith.mulf %76, %122 : vector<256x128xf32>
    %124 = vector.extract_strided_slice %123 {offsets = [0, 0], sizes = [256, 8], strides = [1, 1]} : vector<256x128xf32> to vector<256x8xf32>
    %cst_53 = arith.constant dense<0.000000e+00> : vector<256xf32>
    %125 = vector.multi_reduction <add>, %124, %cst_53 [1] : vector<256x8xf32> to vector<256xf32>
    %126 = vector.shape_cast %125 : vector<256xf32> to vector<256x1xf32>
    %cst_54 = arith.constant 8.000000e+00 : f32
    %127 = vector.broadcast %cst_54 : f32 to vector<256x1xf32>
    %128 = arith.divf %126, %127 : vector<256x1xf32>
    %cst_55 = arith.constant dense<0xFF800000> : vector<256xf32>
    %129 = vector.multi_reduction <maximumf>, %124, %cst_55 [1] : vector<256x8xf32> to vector<256xf32>
    %130 = vector.shape_cast %129 : vector<256xf32> to vector<256x1xf32>
    %131 = tpu.concatenate %128, %130 in 1 : vector<256x1xf32>, vector<256x1xf32> -> vector<256x2xf32>
    %cst_56 = arith.constant 0.000000e+00 : f32
    %132 = vector.broadcast %cst_56 : f32 to vector<3x32x2xf32>
    %c0_57 = arith.constant 0 : index
    %c0_58 = arith.constant 0 : index
    %c0_59 = arith.constant 0 : index
    %133 = vector.load %arg16[%c0_57, %c0_58, %c0_59] : memref<22x32x2xf32, #tpu.memory_space<vmem>>, vector<3x32x2xf32>
    tpu.vector_store %arg16[%c0_57, %c0_58, %c0_59], %132 {strides = array<i32>} : memref<22x32x2xf32, #tpu.memory_space<vmem>>, vector<3x32x2xf32>,
    %cst_60 = arith.constant 0.000000e+00 : f32
    %134 = vector.broadcast %cst_60 : f32 to vector<3x32x2xf32>
    %c19 = arith.constant 19 : index
    %c0_61 = arith.constant 0 : index
    %c0_62 = arith.constant 0 : index
    %135 = vector.load %arg16[%c19, %c0_61, %c0_62] : memref<22x32x2xf32, #tpu.memory_space<vmem>>, vector<3x32x2xf32>
    tpu.vector_store %arg16[%c19, %c0_61, %c0_62], %134 {strides = array<i32>} : memref<22x32x2xf32, #tpu.memory_space<vmem>>, vector<3x32x2xf32>,
    %cst_63 = arith.constant 0.000000e+00 : f32
    %136 = vector.broadcast %cst_63 : f32 to vector<22x3x2xf32>
    %c0_64 = arith.constant 0 : index
    %c5 = arith.constant 5 : index
    %c0_65 = arith.constant 0 : index
    %137 = vector.load %arg16[%c0_64, %c5, %c0_65] : memref<22x32x2xf32, #tpu.memory_space<vmem>>, vector<22x3x2xf32>
    tpu.vector_store %arg16[%c0_64, %c5, %c0_65], %136 {strides = array<i32>} : memref<22x32x2xf32, #tpu.memory_space<vmem>>, vector<22x3x2xf32>,
    %cst_66 = arith.constant 0.000000e+00 : f32
    %138 = vector.broadcast %cst_66 : f32 to vector<22x3x2xf32>
    %c0_67 = arith.constant 0 : index
    %c24_68 = arith.constant 24 : index
    %c0_69 = arith.constant 0 : index
    %139 = vector.load %arg16[%c0_67, %c24_68, %c0_69] : memref<22x32x2xf32, #tpu.memory_space<vmem>>, vector<22x3x2xf32>
    tpu.vector_store %arg16[%c0_67, %c24_68, %c0_69], %138 {strides = array<i32>} : memref<22x32x2xf32, #tpu.memory_space<vmem>>, vector<22x3x2xf32>,
    %140 = vector.shape_cast %131 : vector<256x2xf32> to vector<16x16x2xf32>
    %c3 = arith.constant 3 : index
    %c8_70 = arith.constant 8 : index
    %c0_71 = arith.constant 0 : index
    %141 = vector.load %arg16[%c3, %c8_70, %c0_71] : memref<22x32x2xf32, #tpu.memory_space<vmem>>, vector<16x16x2xf32>
    tpu.vector_store %arg16[%c3, %c8_70, %c0_71], %140 {strides = array<i32>} : memref<22x32x2xf32, #tpu.memory_space<vmem>>, vector<16x16x2xf32>,
    %c0_72 = arith.constant 0 : index
    %c0_73 = arith.constant 0 : index
    %c0_74 = arith.constant 0 : index
    %142 = vector.load %arg16[%c0_72, %c0_73, %c0_74] : memref<22x32x2xf32, #tpu.memory_space<vmem>>, vector<22x32x2xf32>
    %143 = vector.extract_strided_slice %142 {offsets = [0, 5, 0], sizes = [22, 16, 2], strides = [1, 1, 1]} : vector<22x32x2xf32> to vector<22x16x2xf32>
    %144 = vector.shape_cast %143 : vector<22x16x2xf32> to vector<352x2xf32>
    %145 = vector.extract_strided_slice %142 {offsets = [0, 6, 0], sizes = [22, 16, 2], strides = [1, 1, 1]} : vector<22x32x2xf32> to vector<22x16x2xf32>
    %146 = vector.shape_cast %145 : vector<22x16x2xf32> to vector<352x2xf32>
    %147 = vector.extract_strided_slice %142 {offsets = [0, 7, 0], sizes = [22, 16, 2], strides = [1, 1, 1]} : vector<22x32x2xf32> to vector<22x16x2xf32>
    %148 = vector.shape_cast %147 : vector<22x16x2xf32> to vector<352x2xf32>
    %149 = vector.extract_strided_slice %142 {offsets = [0, 8, 0], sizes = [22, 16, 2], strides = [1, 1, 1]} : vector<22x32x2xf32> to vector<22x16x2xf32>
    %150 = vector.shape_cast %149 : vector<22x16x2xf32> to vector<352x2xf32>
    %151 = vector.extract_strided_slice %142 {offsets = [0, 9, 0], sizes = [22, 16, 2], strides = [1, 1, 1]} : vector<22x32x2xf32> to vector<22x16x2xf32>
    %152 = vector.shape_cast %151 : vector<22x16x2xf32> to vector<352x2xf32>
    %153 = vector.extract_strided_slice %142 {offsets = [0, 10, 0], sizes = [22, 16, 2], strides = [1, 1, 1]} : vector<22x32x2xf32> to vector<22x16x2xf32>
    %154 = vector.shape_cast %153 : vector<22x16x2xf32> to vector<352x2xf32>
    %155 = vector.extract_strided_slice %142 {offsets = [0, 11, 0], sizes = [22, 16, 2], strides = [1, 1, 1]} : vector<22x32x2xf32> to vector<22x16x2xf32>
    %156 = vector.shape_cast %155 : vector<22x16x2xf32> to vector<352x2xf32>
    %157 = tpu.concatenate %144, %146, %148, %150, %152, %154, %156 in 1 : vector<352x2xf32>, vector<352x2xf32>, vector<352x2xf32>, vector<352x2xf32>, vector<352x2xf32>, vector<352x2xf32>, vector<352x2xf32> -> vector<352x14xf32>
    %158 = vector.extract_strided_slice %157 {offsets = [0, 0], sizes = [256, 14], strides = [1, 1]} : vector<352x14xf32> to vector<256x14xf32>
    %159 = vector.extract_strided_slice %157 {offsets = [16, 0], sizes = [256, 14], strides = [1, 1]} : vector<352x14xf32> to vector<256x14xf32>
    %160 = vector.extract_strided_slice %157 {offsets = [32, 0], sizes = [256, 14], strides = [1, 1]} : vector<352x14xf32> to vector<256x14xf32>
    %161 = vector.extract_strided_slice %157 {offsets = [48, 0], sizes = [256, 14], strides = [1, 1]} : vector<352x14xf32> to vector<256x14xf32>
    %162 = vector.extract_strided_slice %157 {offsets = [64, 0], sizes = [256, 14], strides = [1, 1]} : vector<352x14xf32> to vector<256x14xf32>
    %163 = vector.extract_strided_slice %157 {offsets = [80, 0], sizes = [256, 14], strides = [1, 1]} : vector<352x14xf32> to vector<256x14xf32>
    %164 = vector.extract_strided_slice %157 {offsets = [96, 0], sizes = [256, 14], strides = [1, 1]} : vector<352x14xf32> to vector<256x14xf32>
    %165 = tpu.concatenate %158, %159, %160, %161, %162, %163, %164 in 1 : vector<256x14xf32>, vector<256x14xf32>, vector<256x14xf32>, vector<256x14xf32>, vector<256x14xf32>, vector<256x14xf32>, vector<256x14xf32> -> vector<256x98xf32>
    %c0_75 = arith.constant 0 : index
    %c0_76 = arith.constant 0 : index
    %166 = vector.load %arg13[%c0_75, %c0_76] : memref<98x8xf32, #tpu.memory_space<vmem>>, vector<98x8xf32>
    %167 = arith.truncf %165 : vector<256x98xf32> to vector<256x98xbf16>
    %168 = arith.extf %167 : vector<256x98xbf16> to vector<256x98xf32>
    %169 = arith.subf %165, %168 : vector<256x98xf32>
    %170 = arith.truncf %169 : vector<256x98xf32> to vector<256x98xbf16>
    %171 = arith.truncf %166 : vector<98x8xf32> to vector<98x8xbf16>
    %172 = arith.extf %171 : vector<98x8xbf16> to vector<98x8xf32>
    %173 = arith.subf %166, %172 : vector<98x8xf32>
    %174 = arith.truncf %173 : vector<98x8xf32> to vector<98x8xbf16>
    %cst_77 = arith.constant dense<0.000000e+00> : vector<256x8xf32>
    %175 = tpu.matmul %167, %171, %cst_77 {dimension_numbers = #tpu.dot_dimension_numbers<[1], [0], [0], [1], [0, 0, 1, 1], [], []>} : vector<256x98xbf16>, vector<98x8xbf16>, vector<256x8xf32> -> vector<256x8xf32>
    %cst_78 = arith.constant dense<0.000000e+00> : vector<256x8xf32>
    %176 = tpu.matmul %167, %174, %cst_78 {dimension_numbers = #tpu.dot_dimension_numbers<[1], [0], [0], [1], [0, 0, 1, 1], [], []>} : vector<256x98xbf16>, vector<98x8xbf16>, vector<256x8xf32> -> vector<256x8xf32>
    %cst_79 = arith.constant dense<0.000000e+00> : vector<256x8xf32>
    %177 = tpu.matmul %170, %171, %cst_79 {dimension_numbers = #tpu.dot_dimension_numbers<[1], [0], [0], [1], [0, 0, 1, 1], [], []>} : vector<256x98xbf16>, vector<98x8xbf16>, vector<256x8xf32> -> vector<256x8xf32>
    %178 = arith.addf %176, %177 : vector<256x8xf32>
    %179 = arith.addf %175, %178 : vector<256x8xf32>
    %180 = vector.extract_strided_slice %179 {offsets = [0, 0], sizes = [256, 1], strides = [1, 1]} : vector<256x8xf32> to vector<256x1xf32>
    %181 = arith.negf %180 : vector<256x1xf32>
    %182 = math.exp %181 : vector<256x1xf32>
    %cst_80 = arith.constant 1.000000e+00 : f32
    %183 = vector.broadcast %cst_80 : f32 to vector<256x1xf32>
    %184 = arith.addf %183, %182 : vector<256x1xf32>
    %185 = arith.divf %183, %184 : vector<256x1xf32>
    %186 = vector.extract_strided_slice %12 {offsets = [0, 32], sizes = [256, 8], strides = [1, 1]} : vector<256x72xf32> to vector<256x8xf32>
    %c0_81 = arith.constant 0 : index
    %c0_82 = arith.constant 0 : index
    %187 = vector.load %arg10[%c0_81, %c0_82] : memref<8x128xf32, #tpu.memory_space<vmem>>, vector<8x128xf32>
    %188 = arith.truncf %186 : vector<256x8xf32> to vector<256x8xbf16>
    %189 = arith.extf %188 : vector<256x8xbf16> to vector<256x8xf32>
    %190 = arith.subf %186, %189 : vector<256x8xf32>
    %191 = arith.truncf %190 : vector<256x8xf32> to vector<256x8xbf16>
    %192 = arith.truncf %187 : vector<8x128xf32> to vector<8x128xbf16>
    %193 = arith.extf %192 : vector<8x128xbf16> to vector<8x128xf32>
    %194 = arith.subf %187, %193 : vector<8x128xf32>
    %195 = arith.truncf %194 : vector<8x128xf32> to vector<8x128xbf16>
    %cst_83 = arith.constant dense<0.000000e+00> : vector<256x128xf32>
    %196 = tpu.matmul %188, %192, %cst_83 {dimension_numbers = #tpu.dot_dimension_numbers<[1], [0], [0], [1], [0, 0, 1, 1], [], []>} : vector<256x8xbf16>, vector<8x128xbf16>, vector<256x128xf32> -> vector<256x128xf32>
    %cst_84 = arith.constant dense<0.000000e+00> : vector<256x128xf32>
    %197 = tpu.matmul %188, %195, %cst_84 {dimension_numbers = #tpu.dot_dimension_numbers<[1], [0], [0], [1], [0, 0, 1, 1], [], []>} : vector<256x8xbf16>, vector<8x128xbf16>, vector<256x128xf32> -> vector<256x128xf32>
    %cst_85 = arith.constant dense<0.000000e+00> : vector<256x128xf32>
    %198 = tpu.matmul %191, %192, %cst_85 {dimension_numbers = #tpu.dot_dimension_numbers<[1], [0], [0], [1], [0, 0, 1, 1], [], []>} : vector<256x8xbf16>, vector<8x128xbf16>, vector<256x128xf32> -> vector<256x128xf32>
    %199 = arith.addf %197, %198 : vector<256x128xf32>
    %200 = arith.addf %196, %199 : vector<256x128xf32>
    %c0_86 = arith.constant 0 : index
    %c0_87 = arith.constant 0 : index
    %201 = vector.load %arg11[%c0_86, %c0_87] : memref<1x128xf32, #tpu.memory_space<vmem>>, vector<1x128xf32>
    %202 = vector.broadcast %201 : vector<1x128xf32> to vector<256x128xf32>
    %203 = arith.mulf %200, %202 : vector<256x128xf32>
    %c0_88 = arith.constant 0 : index
    %c0_89 = arith.constant 0 : index
    %204 = vector.load %arg12[%c0_88, %c0_89] : memref<1x128xf32, #tpu.memory_space<vmem>>, vector<1x128xf32>
    %205 = vector.broadcast %204 : vector<1x128xf32> to vector<256x128xf32>
    %206 = arith.addf %203, %205 : vector<256x128xf32>
    %207 = vector.broadcast %185 : vector<256x1xf32> to vector<256x128xf32>
    %208 = arith.mulf %123, %207 : vector<256x128xf32>
    %209 = arith.addf %208, %206 : vector<256x128xf32>
    %cst_90 = arith.constant 0.000000e+00 : f32
    %210 = vector.broadcast %cst_90 : f32 to vector<256x128xf32>
    %211 = arith.maximumf %209, %210 : vector<256x128xf32>
    %212 = vector.shape_cast %211 : vector<256x128xf32> to vector<16x16x128xf32>
    %c0_91 = arith.constant 0 : index
    %c0_92 = arith.constant 0 : index
    %c0_93 = arith.constant 0 : index
    %c0_94 = arith.constant 0 : index
    %213 = vector.load %arg14[%c0_91, %c0_92, %c0_93, %c0_94] : memref<1x16x16x128xf32, #tpu.memory_space<vmem>>, vector<1x16x16x128xf32>
    %214 = vector.shape_cast %213 : vector<1x16x16x128xf32> to vector<16x16x128xf32>
    %215 = vector.shape_cast %212 : vector<16x16x128xf32> to vector<1x16x16x128xf32>
    tpu.vector_store %arg14[%c0_91, %c0_92, %c0_93, %c0_94], %215 {strides = array<i32>} : memref<1x16x16x128xf32, #tpu.memory_space<vmem>>, vector<1x16x16x128xf32>,
    return
  }
  func.func @transform_0(%arg0: i32) -> (i32, i32, i32, i32) {
    %c0_i32 = arith.constant 0 : i32
    %c0_i32_0 = arith.constant 0 : i32
    %c0_i32_1 = arith.constant 0 : i32
    %c0_i32_2 = arith.constant 0 : i32
    return %arg0, %c0_i32, %c0_i32_0, %c0_i32_1 : i32, i32, i32, i32
  }
  func.func @transform_1(%arg0: i32) -> (i32, i32) {
    %c0_i32 = arith.constant 0 : i32
    %c0_i32_0 = arith.constant 0 : i32
    %c0_i32_1 = arith.constant 0 : i32
    return %c0_i32, %c0_i32_0 : i32, i32
  }
  func.func @transform_2(%arg0: i32) -> (i32, i32) {
    %c0_i32 = arith.constant 0 : i32
    %c0_i32_0 = arith.constant 0 : i32
    %c0_i32_1 = arith.constant 0 : i32
    return %c0_i32, %c0_i32_0 : i32, i32
  }
  func.func @transform_3(%arg0: i32) -> (i32, i32) {
    %c0_i32 = arith.constant 0 : i32
    %c0_i32_0 = arith.constant 0 : i32
    %c0_i32_1 = arith.constant 0 : i32
    return %c0_i32, %c0_i32_0 : i32, i32
  }
  func.func @transform_4(%arg0: i32) -> (i32, i32) {
    %c0_i32 = arith.constant 0 : i32
    %c0_i32_0 = arith.constant 0 : i32
    %c0_i32_1 = arith.constant 0 : i32
    return %c0_i32, %c0_i32_0 : i32, i32
  }
  func.func @transform_5(%arg0: i32) -> (i32, i32) {
    %c0_i32 = arith.constant 0 : i32
    %c0_i32_0 = arith.constant 0 : i32
    %c0_i32_1 = arith.constant 0 : i32
    return %c0_i32, %c0_i32_0 : i32, i32
  }
  func.func @transform_6(%arg0: i32) -> (i32, i32) {
    %c0_i32 = arith.constant 0 : i32
    %c0_i32_0 = arith.constant 0 : i32
    %c0_i32_1 = arith.constant 0 : i32
    return %c0_i32, %c0_i32_0 : i32, i32
  }
  func.func @transform_7(%arg0: i32) -> (i32, i32) {
    %c0_i32 = arith.constant 0 : i32
    %c0_i32_0 = arith.constant 0 : i32
    %c0_i32_1 = arith.constant 0 : i32
    return %c0_i32, %c0_i32_0 : i32, i32
  }
  func.func @transform_8(%arg0: i32) -> (i32, i32) {
    %c0_i32 = arith.constant 0 : i32
    %c0_i32_0 = arith.constant 0 : i32
    %c0_i32_1 = arith.constant 0 : i32
    return %c0_i32, %c0_i32_0 : i32, i32
  }
  func.func @transform_9(%arg0: i32) -> (i32, i32) {
    %c0_i32 = arith.constant 0 : i32
    %c0_i32_0 = arith.constant 0 : i32
    %c0_i32_1 = arith.constant 0 : i32
    return %c0_i32, %c0_i32_0 : i32, i32
  }
  func.func @transform_10(%arg0: i32) -> (i32, i32) {
    %c0_i32 = arith.constant 0 : i32
    %c0_i32_0 = arith.constant 0 : i32
    %c0_i32_1 = arith.constant 0 : i32
    return %c0_i32, %c0_i32_0 : i32, i32
  }
  func.func @transform_11(%arg0: i32) -> (i32, i32) {
    %c0_i32 = arith.constant 0 : i32
    %c0_i32_0 = arith.constant 0 : i32
    %c0_i32_1 = arith.constant 0 : i32
    return %c0_i32, %c0_i32_0 : i32, i32
  }
  func.func @transform_12(%arg0: i32) -> (i32, i32) {
    %c0_i32 = arith.constant 0 : i32
    %c0_i32_0 = arith.constant 0 : i32
    %c0_i32_1 = arith.constant 0 : i32
    return %c0_i32, %c0_i32_0 : i32, i32
  }
  func.func @transform_13(%arg0: i32) -> (i32, i32, i32, i32) {
    %c0_i32 = arith.constant 0 : i32
    %c0_i32_0 = arith.constant 0 : i32
    %c0_i32_1 = arith.constant 0 : i32
    %c0_i32_2 = arith.constant 0 : i32
    return %arg0, %c0_i32, %c0_i32_0, %c0_i32_1 : i32, i32, i32, i32
  }
}

</mosaic_0001>

<bundles_post_ra>
// kernel: attention_residual_block.1
= control target key start
LH: loop header
LB: loop body
LE: loop exit
PB: predicated region body
PF: predicated region fallthrough
CT: control target
= control target key end

     0   :  { %s11252_s25 = smov 0   ;;  %s18429_s0 = inlined_call_operand.vmem [shape: f32[2,18,18,8], index: 0, kind: input, shape index: {}]   ;;  %s18430_s1 = inlined_call_operand.vmem [shape: f32[72,8], index: 1, kind: input, shape index: {}]   ;;  %s18431_s2 = inlined_call_operand.vmem [shape: f32[1,8], index: 2, kind: input, shape index: {}]   ;;  %s18432_s3 = inlined_call_operand.vmem [shape: f32[1,8], index: 3, kind: input, shape index: {}]   ;;  %s18433_s4 = inlined_call_operand.vmem [shape: f32[72,128], index: 4, kind: input, shape index: {}]   ;;  %s18434_s5 = inlined_call_operand.vmem [shape: f32[1,128], index: 5, kind: input, shape index: {}]   ;;  %s18435_s6 = inlined_call_operand.vmem [shape: f32[1,128], index: 6, kind: input, shape index: {}]   ;;  %s18436_s7 = inlined_call_operand.vmem [shape: f32[128,2], index: 7, kind: input, shape index: {}]   ;;  %s18437_s8 = inlined_call_operand.vmem [shape: f32[2,128], index: 8, kind: input, shape index: {}]   ;;  %s18438_s9 = inlined_call_operand.vmem [shape: f32[8,128], index: 9, kind: input, shape index: {}]   ;;  %s18439_s10 = inlined_call_operand.vmem [shape: f32[1,128], index: 10, kind: input, shape index: {}]   ;;  %s18440_s11 = inlined_call_operand.vmem [shape: f32[1,128], index: 11, kind: input, shape index: {}]   ;;  %s18441_s12 = inlined_call_operand.vmem [shape: f32[98,8], index: 12, kind: input, shape index: {}]   ;;  %s18442_s13 = inlined_call_operand.vmem [shape: f32[2,16,16,128], index: 13, kind: output, shape index: {}]  }
   0x1 LB: > { %s9566_s26 = sadd.s32 4294967295, %s11161_s25   ;;  %p9570_p0 = scmp.ge.s32.totalorder %s11161_s25, 1  ;;  %s11161_s25 = sphi %s11252_s25, %s23_s25  }
   0x2   : > { %p387_p1 = scmp.lt.s32.totalorder %s11161_s25, 3 }
   0x4   : > { %p388_p2 = pnand %p9570_p0, %p387_p1 }
   0x6   : > { %391 = sbr.rel (%p388_p2) target bundleno = 3612 (0xe1c), region = 72 }
   0xd   : > { %p431_p3 = scmp.lt.s32.totalorder %s9566_s26, 1  ;;  %vm550_vm0 = vcmask 1046528   ;;  %s11163_s14 = smov 8   ;;  %vm641_vm1 = vcmask 1045504   ;;  %vm948_vm2 = vcmask 64512   ;;  %vm985_vm3 = vcmask 130048  }
   0xe   : > { %s11164_s15 = smov 16   ;;  %s11165_s19 = smov 24   ;;  %vm1496_vm4 = vcmask 1043456   ;;  %vm1248_vm5 = vcmask 195584   ;;  %vm1281_vm6 = vcmask 392192   ;;  %vm1447_vm7 = vcmask 588800  }
   0xf   : > { %s19397_s26 = smov (!%p431_p3, %s9566_s26), 1  ;;  %s11166_s22 = smov 48   ;;  %vm2153_vm8 = vcmask 57344   ;;  %vm2349_vm9 = vcmask 1040384   ;;  %vm4233_vm10 = vcmask 15360   ;;  %vm4695_vm11 = vcmask 10240  }
  0x10   : > { %s10938_s27 = smul.u32 432, %s19397_s26  ;;  %vm5082_vm12 = vcmask 1041408   ;;  %vm11169_vm13 = vmmov 0   ;;  %s11170_s24 = smov 4   ;;  %vm5545_vm14 = vcmask 1044480   ;;  %vm4927_vm15 = vcmask 1042432  }
  0x11   : > { %s11171_s28 = smov 6   ;;  %s11173_s18 = smov 12  }
  0x12   : > { %s11266_s30 = scalar_lea.vmem %s18429_s0, %s10938_s27  ;;  %s11168_s27 = smov 2  }
  0x13   : > { %v11269_v0 = vld [vmem:[%s11266_s30 + $0x30] sm:$0xff]  ;;  %v11272_v1 = vld [vmem:[%s11266_s30 + $0x38] sm:$0xff]  ;;  %v11280_v5 = vld [vmem:[%s11266_s30 + $0x20] sm:$0xff]  ;;  %s11176_s23 = smov 84   ;;  %s11177_s29 = smov 56  }
  0x14   : > { %v11275_v2 = vld [vmem:[%s11266_s30 + $0x18] sm:$0xff]  ;;  %v561_v3 = vrot.slane %v11269_v0, 1  ;;  %v562_v4 = vrot.slane %v11272_v1, 1  ;;  %v450_v7 = vld [vmem:[%s11266_s30 + $0x40] sm:$0x3]  ;;  %v557_v8 = vrot.slane %v11280_v5, 1 }
  0x15   : > { %v556_v6 = vrot.slane %v11275_v2, 1  ;;  %v564_v9 = vrot.slane %v450_v7, 1  ;;  %v447_v10 = vld [vmem:[%s11266_s30 + $0x28] sm:$0x3]  ;;  %v648_v15 = vrot.slane %v11280_v5, 2  ;;  %v647_v18 = vrot.slane %v11275_v2, 2 }
  0x16   : > { %v563_v11 = vsel %vm550_vm0, %v561_v3, %v562_v4  ;;  %v559_v12 = vrot.slane %v447_v10, 1  ;;  %v650_v16 = vrot.slane %v447_v10, 2  ;;  %v11295_v19 = vld [vmem:[%s11266_s30 + $0x50] sm:$0xff]  ;;  %v453_v20 = vld [vmem:[%s11266_s30 + $0x58] sm:$0x3]  ;;  %v11299_v21 = vld [vmem:[%s11266_s30 + $0x48] sm:$0xff] }
  0x17   : > { %740 = vrot.lane.b32.xlu1 %v563_v11, %s11163_s14  ;;  %v558_v13 = vsel %vm550_vm0, %v556_v6, %v557_v8  ;;  %v565_v14 = vsel %vm550_vm0, %v562_v4, %v564_v9  ;;  %v567_v23 = vrot.slane %v11295_v19, 1  ;;  %v569_v24 = vrot.slane %v453_v20, 1  ;;  %v11320_v37 = vld [vmem:[%s11266_s30 + $0x68] sm:$0xff]  ;;  %v456_v38 = vld [vmem:[%s11266_s30 + $0x70] sm:$0x3]  ;;  %v11324_v39 = vld [vmem:[%s11266_s30 + $0x60] sm:$0xff] }
  0x18   : > { %736 = vrot.lane.b32.xlu0 %v558_v13, %s11163_s14  ;;  %v560_v17 = vsel %vm550_vm0, %v557_v8, %v559_v12  ;;  %v651_v22 = vsel %vm641_vm1, %v648_v15, %v650_v16  ;;  %v649_v25 = vsel %vm641_vm1, %v647_v18, %v648_v15  ;;  %v566_v26 = vrot.slane %v11299_v21, 1  ;;  %v11333_v45 = vld [vmem:[%s11266_s30 + $0x80] sm:$0xff]  ;;  %v459_v46 = vld [vmem:[%s11266_s30 + $0x88] sm:$0x3]  ;;  %v11337_v47 = vld [vmem:[%s11266_s30 + $0x78] sm:$0xff] }
  0x19   : > { %v570_v27 = vsel %vm550_vm0, %v567_v23, %v569_v24  ;;  %v653_v28 = vrot.slane %v11272_v1, 2  ;;  %v655_v29 = vrot.slane %v450_v7, 2  ;;  %v652_v31 = vrot.slane %v11269_v0, 2  ;;  %v11358_v63 = vld [vmem:[%s11266_s30 + $0x98] sm:$0xff]  ;;  %v462_v3 = vld [vmem:[%s11266_s30 + $0xa0] sm:$0x3] }
  0x1a   : > { %v568_v30 = vsel %vm550_vm0, %v566_v26, %v567_v23  ;;  %v658_v33 = vrot.slane %v11295_v19, 2  ;;  %v660_v34 = vrot.slane %v453_v20, 2  ;;  %v657_v36 = vrot.slane %v11299_v21, 2  ;;  %v11362_v4 = vld [vmem:[%s11266_s30 + $0x90] sm:$0xff]  ;;  %v465_v12 = vld [vmem:[%s11266_s30 + $0xb8] sm:$0x3] }
  0x1b   : > { %742 = vrot.lane.b32.xlu1 %v565_v14, %s11163_s14  ;;  %v656_v32 = vsel %vm641_vm1, %v653_v28, %v655_v29  ;;  %v654_v35 = vsel %vm641_vm1, %v652_v31, %v653_v28  ;;  %v572_v41 = vrot.slane %v11320_v37, 1  ;;  %v574_v42 = vrot.slane %v456_v38, 1  ;;  %v11371_v11 = vld [vmem:[%s11266_s30 + $0xb0] sm:$0xff]  ;;  %v11375_v13 = vld [vmem:[%s11266_s30 + $0xa8] sm:$0xff] }
  0x1c   : > { %738 = vrot.lane.b32.xlu0 %v560_v17, %s11163_s14  ;;  %v661_v40 = vsel %vm641_vm1, %v658_v33, %v660_v34  ;;  %v659_v43 = vsel %vm641_vm1, %v657_v36, %v658_v33  ;;  %v571_v44 = vrot.slane %v11324_v39, 1  ;;  %v577_v49 = vrot.slane %v11333_v45, 1  ;;  %v11396_v31 = vld [vmem:[%s11266_s30 + $0xc8] sm:$0xff]  ;;  %v11400_v33 = vld [vmem:[%s11266_s30 + $0xc0] sm:$0xff] }
  0x1d   : > { %v575_v48 = vsel %vm550_vm0, %v572_v41, %v574_v42  ;;  %v579_v50 = vrot.slane %v459_v46, 1  ;;  %v576_v52 = vrot.slane %v11337_v47, 1  ;;  %v663_v54 = vrot.slane %v11320_v37, 2  ;;  %v471_v42 = vld [vmem:[%s11266_s30 + $0xe8] sm:$0x3] }
  0x1e   : > { %v573_v51 = vsel %vm550_vm0, %v571_v44, %v572_v41  ;;  %v665_v55 = vrot.slane %v456_v38, 2  ;;  %v662_v57 = vrot.slane %v11324_v39, 2  ;;  %v668_v59 = vrot.slane %v11333_v45, 2  ;;  %v11409_v41 = vld [vmem:[%s11266_s30 + $0xe0] sm:$0xff] }
  0x1f   : > { %846 = vrot.lane.b32.xlu1 %v651_v22, %s11164_s15  ;;  %v580_v53 = vsel %vm550_vm0, %v577_v49, %v579_v50  ;;  %v578_v56 = vsel %vm550_vm0, %v576_v52, %v577_v49  ;;  %v670_v60 = vrot.slane %v459_v46, 2  ;;  %v667_v62 = vrot.slane %v11337_v47, 2 }
  0x20   : > { %844 = vrot.lane.b32.xlu0 %v649_v25, %s11164_s15  ;;  %v666_v58 = vsel %vm641_vm1, %v663_v54, %v665_v55  ;;  %v664_v61 = vsel %vm641_vm1, %v662_v57, %v663_v54  ;;  %v582_v7 = vrot.slane %v11358_v63, 1  ;;  %v584_v8 = vrot.slane %v462_v3, 1 }
  0x21   : > { %v671_v6 = vsel %vm641_vm1, %v668_v59, %v670_v60  ;;  %v669_v9 = vsel %vm641_vm1, %v667_v62, %v668_v59  ;;  %v581_v10 = vrot.slane %v11362_v4, 1  ;;  %v587_v15 = vrot.slane %v11371_v11, 1  ;;  %v474_v62 = vld [vmem:[%s11266_s30 + $0x100] sm:$0x3] }
  0x22   : > { %v585_v14 = vsel %vm550_vm0, %v582_v7, %v584_v8  ;;  %v589_v16 = vrot.slane %v465_v12, 1  ;;  %v586_v18 = vrot.slane %v11375_v13, 1  ;;  %v673_v22 = vrot.slane %v11358_v63, 2 }
  0x23   : > { %746 = vrot.lane.b32.xlu1 %v570_v27, %s11163_s14  ;;  %v583_v17 = vsel %vm550_vm0, %v581_v10, %v582_v7  ;;  %v675_v23 = vrot.slane %v462_v3, 2  ;;  %v672_v25 = vrot.slane %v11362_v4, 2  ;;  %v678_v27 = vrot.slane %v11371_v11, 2  ;;  %v11438_v3 = vld [vmem:[%s11266_s30 + $0xf0] sm:$0xff] }
  0x24   : > { %744 = vrot.lane.b32.xlu0 %v568_v30, %s11163_s14  ;;  %v590_v20 = vsel %vm550_vm0, %v587_v15, %v589_v16  ;;  %v588_v24 = vsel %vm550_vm0, %v586_v18, %v587_v15  ;;  %v680_v28 = vrot.slane %v465_v12, 2  ;;  %v677_v30 = vrot.slane %v11375_v13, 2  ;;  %v11447_v12 = vld [vmem:[%s11266_s30 + $0x110] sm:$0xff]  ;;  %v11451_v15 = vld [vmem:[%s11266_s30 + $0x108] sm:$0xff] }
  0x25   : > { %v676_v26 = vsel %vm641_vm1, %v673_v22, %v675_v23  ;;  %v674_v29 = vsel %vm641_vm1, %v672_v25, %v673_v22  ;;  %v597_v46 = vrot.slane %v11409_v41, 1  ;;  %v683_v52 = vrot.slane %v11396_v31, 2 }
  0x26   : > { %v681_v34 = vsel %vm641_vm1, %v678_v27, %v680_v28  ;;  %v679_v38 = vsel %vm641_vm1, %v677_v30, %v678_v27  ;;  %v682_v55 = vrot.slane %v11400_v33, 2  ;;  %v688_v57 = vrot.slane %v11409_v41, 2 }
  0x27   : > { %850 = vrot.lane.b32.xlu1 %v656_v32, %s11164_s15  ;;  %v468_v32 = vld [vmem:[%s11266_s30 + $0xd0] sm:$0x3]  ;;  %v604_v8 = vrot.slane %v474_v62, 1  ;;  %v601_v10 = vrot.slane %v11438_v3, 1  ;;  %v606_v22 = vrot.slane %v11451_v15, 1  ;;  %v695_v25 = vrot.slane %v474_v62, 2 }
  0x28   : > { %848 = vrot.lane.b32.xlu0 %v654_v35, %s11164_s15  ;;  %v592_v35 = vrot.slane %v11396_v31, 1  ;;  %v594_v36 = vrot.slane %v468_v32, 1  ;;  %v684_v59 = vsel %vm641_vm1, %v682_v55, %v683_v52  ;;  %v692_v27 = vrot.slane %v11438_v3, 2 }
  0x2a   : > { %v595_v44 = vsel %vm550_vm0, %v592_v35, %v594_v36  ;;  %v480_v36 = vld [vmem:[%s11266_s30 + $0x130] sm:$0x3] }
  0x2b   : > { %854 = vrot.lane.b32.xlu1 %v661_v40, %s11164_s15  ;;  %v591_v40 = vrot.slane %v11400_v33, 1 }
  0x2c   : > { %852 = vrot.lane.b32.xlu0 %v659_v43, %s11164_s15  ;;  %v11413_v43 = vld [vmem:[%s11266_s30 + $0xd8] sm:$0xff] }
  0x2d   : > { %v593_v49 = vsel %vm550_vm0, %v591_v40, %v592_v35  ;;  %v596_v50 = vrot.slane %v11413_v43, 1  ;;  %v687_v60 = vrot.slane %v11413_v43, 2  ;;  %v11472_v35 = vld [vmem:[%s11266_s30 + $0x128] sm:$0xff] }
  0x2f   : > { %750 = vrot.lane.b32.xlu1 %v575_v48, %s11163_s14  ;;  %v599_v48 = vrot.slane %v471_v42, 1  ;;  %v598_v54 = vsel %vm550_vm0, %v596_v50, %v597_v46  ;;  %v483_v50 = vld [vmem:[%s11266_s30 + $0x148] sm:$0x3] }
  0x30   : > { %748 = vrot.lane.b32.xlu0 %v573_v51, %s11163_s14 }
  0x31   : > { %v600_v51 = vsel %vm550_vm0, %v597_v46, %v599_v48 }
  0x33   : > { %754 = vrot.lane.b32.xlu1 %v580_v53, %s11163_s14  ;;  %v685_v53 = vrot.slane %v468_v32, 2 }
  0x34   : > { %752 = vrot.lane.b32.xlu0 %v578_v56, %s11163_s14 }
  0x35   : > { %v686_v56 = vsel %vm641_vm1, %v683_v52, %v685_v53 }
  0x37   : > { %858 = vrot.lane.b32.xlu1 %v666_v58, %s11164_s15  ;;  %v690_v58 = vrot.slane %v471_v42, 2  ;;  %v612_v42 = vrot.slane %v11472_v35, 1 }
  0x38   : > { %856 = vrot.lane.b32.xlu0 %v664_v61, %s11164_s15  ;;  %v11434_v61 = vld [vmem:[%s11266_s30 + $0xf8] sm:$0xff] }
  0x39   : > { %v602_v7 = vrot.slane %v11434_v61, 1 }
  0x3b   : > { %862 = vrot.lane.b32.xlu1 %v671_v6, %s11164_s15  ;;  %v691_v6 = vsel %vm641_vm1, %v688_v57, %v690_v58  ;;  %v605_v16 = vsel %vm550_vm0, %v602_v7, %v604_v8  ;;  %v703_v58 = vrot.slane %v11472_v35, 2  ;;  %v710_v8 = vrot.slane %v483_v50, 2 }
  0x3c   : > { %860 = vrot.lane.b32.xlu0 %v669_v9, %s11164_s15  ;;  %v689_v9 = vsel %vm641_vm1, %v687_v60, %v688_v57 }
  0x3f   : > { %758 = vrot.lane.b32.xlu1 %v585_v14, %s11163_s14  ;;  %v477_v14 = vld [vmem:[%s11266_s30 + $0x118] sm:$0x3] }
  0x40   : > { %756 = vrot.lane.b32.xlu0 %v583_v17, %s11163_s14  ;;  %v607_v17 = vrot.slane %v11447_v12, 1  ;;  %v609_v18 = vrot.slane %v477_v14, 1  ;;  %v700_v30 = vrot.slane %v477_v14, 2  ;;  %v11510_v14 = vld [vmem:[%s11266_s30 + $0x158] sm:$0xff] }
  0x42   : > { %v610_v23 = vsel %vm550_vm0, %v607_v17, %v609_v18 }
  0x43   : > { %762 = vrot.lane.b32.xlu1 %v590_v20, %s11163_s14  ;;  %v603_v20 = vsel %vm550_vm0, %v601_v10, %v602_v7 }
  0x44   : > { %760 = vrot.lane.b32.xlu0 %v588_v24, %s11163_s14  ;;  %v693_v24 = vrot.slane %v11434_v61, 2 }
  0x46   : > { %v696_v28 = vsel %vm641_vm1, %v693_v24, %v695_v25  ;;  %v694_v32 = vsel %vm641_vm1, %v692_v27, %v693_v24  ;;  %v11523_v25 = vld [vmem:[%s11266_s30 + $0x170] sm:$0xff]  ;;  %v11527_v27 = vld [vmem:[%s11266_s30 + $0x168] sm:$0xff] }
  0x47   : > { %866 = vrot.lane.b32.xlu1 %v676_v26, %s11164_s15  ;;  %v608_v26 = vsel %vm550_vm0, %v606_v22, %v607_v17  ;;  %v11514_v17 = vld [vmem:[%s11266_s30 + $0x150] sm:$0xff] }
  0x48   : > { %864 = vrot.lane.b32.xlu0 %v674_v29, %s11164_s15  ;;  %v698_v29 = vrot.slane %v11447_v12, 2  ;;  %v621_v24 = vrot.slane %v11514_v17, 1 }
  0x4a   : > { %v701_v40 = vsel %vm641_vm1, %v698_v29, %v700_v30 }
  0x4b   : > { %870 = vrot.lane.b32.xlu1 %v681_v34, %s11164_s15  ;;  %v697_v34 = vrot.slane %v11451_v15, 2 }
  0x4c   : > { %868 = vrot.lane.b32.xlu0 %v679_v38, %s11164_s15  ;;  %v11476_v38 = vld [vmem:[%s11266_s30 + $0x120] sm:$0xff] }
  0x4d   : > { %v699_v46 = vsel %vm641_vm1, %v697_v34, %v698_v29  ;;  %v611_v48 = vrot.slane %v11476_v38, 1  ;;  %v702_v62 = vrot.slane %v11476_v38, 2  ;;  %v627_v29 = vrot.slane %v11523_v25, 1 }
  0x4e   : > { %v626_v34 = vrot.slane %v11527_v27, 1 }
  0x4f   : > { %766 = vrot.lane.b32.xlu1 %v595_v44, %s11163_s14  ;;  %v614_v44 = vrot.slane %v480_v36, 1  ;;  %v613_v55 = vsel %vm550_vm0, %v611_v48, %v612_v42 }
  0x50   : > { %764 = vrot.lane.b32.xlu0 %v593_v49, %s11163_s14  ;;  %v11485_v49 = vld [vmem:[%s11266_s30 + $0x140] sm:$0xff] }
  0x51   : > { %v615_v52 = vsel %vm550_vm0, %v612_v42, %v614_v44  ;;  %v617_v53 = vrot.slane %v11485_v49, 1  ;;  %v708_v7 = vrot.slane %v11485_v49, 2  ;;  %v628_v44 = vsel %vm550_vm0, %v626_v34, %v627_v29 }
  0x53   : > { %770 = vrot.lane.b32.xlu1 %v600_v51, %s11163_s14  ;;  %v11489_v51 = vld [vmem:[%s11266_s30 + $0x138] sm:$0xff]  ;;  %v711_v18 = vsel %vm641_vm1, %v708_v7, %v710_v8  ;;  %v11563_v8 = vld [vmem:[%s11266_s30 + $0x8] sm:$0xff] }
  0x54   : > { %768 = vrot.lane.b32.xlu0 %v598_v54, %s11163_s14  ;;  %v619_v54 = vrot.slane %v483_v50, 1  ;;  %v707_v10 = vrot.slane %v11489_v51, 2  ;;  %v718_v50 = vrot.slane %v11523_v25, 2 }
  0x56   : > { %v620_v57 = vsel %vm550_vm0, %v617_v53, %v619_v54  ;;  %v717_v54 = vrot.slane %v11527_v27, 2 }
  0x57   : > { %874 = vrot.lane.b32.xlu1 %v686_v56, %s11164_s15  ;;  %v616_v56 = vrot.slane %v11489_v51, 1 }
  0x58   : > { %872 = vrot.lane.b32.xlu0 %v684_v59, %s11164_s15  ;;  %v705_v59 = vrot.slane %v480_v36, 2 }
  0x59   : > { %v618_v60 = vsel %vm550_vm0, %v616_v56, %v617_v53  ;;  %v492_v56 = vld [vmem:[%s11266_s30 + $0x190] sm:$0x3] }
  0x5b   : > { %878 = vrot.lane.b32.xlu1 %v691_v6, %s11164_s15  ;;  %v706_v6 = vsel %vm641_vm1, %v703_v58, %v705_v59 }
  0x5c   : > { %876 = vrot.lane.b32.xlu0 %v689_v9, %s11164_s15  ;;  %v704_v9 = vsel %vm641_vm1, %v702_v62, %v703_v58 }
  0x5f   : > { %774 = vrot.lane.b32.xlu1 %v605_v16, %s11163_s14  ;;  %v486_v16 = vld [vmem:[%s11266_s30 + $0x160] sm:$0x3] }
  0x60   : > { %772 = vrot.lane.b32.xlu0 %v603_v20, %s11163_s14  ;;  %v622_v20 = vrot.slane %v11510_v14, 1  ;;  %v624_v22 = vrot.slane %v486_v16, 1  ;;  %v715_v42 = vrot.slane %v486_v16, 2  ;;  %v11569_v16 = vld [vmem:[%s11266_s30] sm:$0xff] }
  0x63   : > { %778 = vrot.lane.b32.xlu1 %v610_v23, %s11163_s14  ;;  %v709_v23 = vsel %vm641_vm1, %v707_v10, %v708_v7 }
  0x64   : > { %776 = vrot.lane.b32.xlu0 %v608_v26, %s11163_s14  ;;  %v489_v26 = vld [vmem:[%s11266_s30 + $0x178] sm:$0x3] }
  0x65   : > { %v629_v30 = vrot.slane %v489_v26, 1 }
  0x67   : > { %882 = vrot.lane.b32.xlu1 %v696_v28, %s11164_s15  ;;  %v625_v28 = vsel %vm550_vm0, %v622_v20, %v624_v22  ;;  %v630_v36 = vsel %vm550_vm0, %v627_v29, %v629_v30  ;;  %v495_v29 = vld [vmem:[%s11266_s30 + $0x1a8] sm:$0x3] }
  0x68   : > { %880 = vrot.lane.b32.xlu0 %v694_v32, %s11164_s15  ;;  %v623_v32 = vsel %vm550_vm0, %v621_v24, %v622_v20  ;;  %v552_v20 = vrot.slane %v11563_v8, 1 }
  0x6b   : > { %886 = vrot.lane.b32.xlu1 %v701_v40, %s11164_s15  ;;  %v713_v40 = vrot.slane %v11510_v14, 2 }
  0x6c   : > { %884 = vrot.lane.b32.xlu0 %v699_v46, %s11164_s15  ;;  %v712_v46 = vrot.slane %v11514_v17, 2 }
  0x6d   : > { %v716_v48 = vsel %vm641_vm1, %v713_v40, %v715_v42 }
  0x6e   : > { %v714_v53 = vsel %vm641_vm1, %v712_v46, %v713_v40  ;;  %v639_v40 = vrot.slane %v495_v29, 1 }
  0x6f   : > { %782 = vrot.lane.b32.xlu1 %v615_v52, %s11163_s14  ;;  %v720_v52 = vrot.slane %v489_v26, 2  ;;  %v551_v26 = vrot.slane %v11569_v16, 1 }
  0x70   : > { %780 = vrot.lane.b32.xlu0 %v613_v55, %s11163_s14  ;;  %v11548_v55 = vld [vmem:[%s11266_s30 + $0x188] sm:$0xff] }
  0x71   : > { %v721_v58 = vsel %vm641_vm1, %v718_v50, %v720_v52  ;;  %v632_v59 = vrot.slane %v11548_v55, 1  ;;  %v723_v52 = vrot.slane %v11548_v55, 2 }
  0x73   : > { %786 = vrot.lane.b32.xlu1 %v620_v57, %s11163_s14  ;;  %v11552_v57 = vld [vmem:[%s11266_s30 + $0x180] sm:$0xff] }
  0x74   : > { %784 = vrot.lane.b32.xlu0 %v618_v60, %s11163_s14  ;;  %v634_v60 = vrot.slane %v492_v56, 1  ;;  %v631_v7 = vrot.slane %v11552_v57, 1 }
  0x76   : > { %v633_v24 = vsel %vm550_vm0, %v631_v7, %v632_v59  ;;  %v643_v7 = vrot.slane %v11563_v8, 2 }
  0x77   : > { %890 = vrot.lane.b32.xlu1 %v706_v6, %s11164_s15  ;;  %v719_v6 = vsel %vm641_vm1, %v717_v54, %v718_v50 }
  0x78   : > { %888 = vrot.lane.b32.xlu0 %v704_v9, %s11164_s15  ;;  %v444_v9 = vld [vmem:[%s11266_s30 + $0x10] sm:$0x3] }
  0x79   : > { %v554_v22 = vrot.slane %v444_v9, 1 }
  0x7b   : > { %894 = vrot.lane.b32.xlu1 %v711_v18, %s11164_s15  ;;  %v635_v18 = vsel %vm550_vm0, %v632_v59, %v634_v60  ;;  %v555_v34 = vsel %vm550_vm0, %v552_v20, %v554_v22  ;;  %v722_v59 = vrot.slane %v11552_v57, 2  ;;  %v642_v22 = vrot.slane %v11569_v16, 2 }
  0x7c   : > { %892 = vrot.lane.b32.xlu0 %v709_v23, %s11164_s15 }
  0x7f   : > { %790 = vrot.lane.b32.xlu1 %v625_v28, %s11163_s14  ;;  %v11580_v28 = vld [vmem:[%s11266_s30 + $0x1a0] sm:$0xff] }
  0x80   : > { %788 = vrot.lane.b32.xlu0 %v623_v32, %s11163_s14  ;;  %v11586_v32 = vld [vmem:[%s11266_s30 + $0x198] sm:$0xff]  ;;  %s11178_s30 = smov 70  }
  0x81   : > { %v636_v46 = vrot.slane %v11586_v32, 1 }
  0x83   : > { %794 = vrot.lane.b32.xlu1 %v630_v36, %s11163_s14  ;;  %v637_v36 = vrot.slane %v11580_v28, 1 }
  0x84   : > { %792 = vrot.lane.b32.xlu0 %v628_v44, %s11163_s14  ;;  %v553_v44 = vsel %vm550_vm0, %v551_v26, %v552_v20  ;;  %v11622_v26 = vld [vmem:[%s18430_s1 + $0x8] sm:$0xff] }
  0x85   : > { %v640_v50 = vsel %vm550_vm0, %v637_v36, %v639_v40  ;;  %v728_v40 = vrot.slane %v11580_v28, 2 }
  0x87   : > { %898 = vrot.lane.b32.xlu1 %v716_v48, %s11164_s15 }
  0x88   : > { %896 = vrot.lane.b32.xlu0 %v714_v53, %s11164_s15  ;;  %v725_v53 = vrot.slane %v492_v56, 2  ;;  %v724_v56 = vsel %vm641_vm1, %v722_v59, %v723_v52 }
  0x89   : > { %v11558_v62 = vpop.permute.xlu1 %740 }
  0x8a   : > { %v11566_v10 = vpop.permute.xlu0 %736 }
  0x8b   : > { %902 = vrot.lane.b32.xlu1 %v721_v58, %s11164_s15  ;;  %v638_v58 = vsel %vm550_vm0, %v636_v46, %v637_v36 }
  0x8c   : > { %900 = vrot.lane.b32.xlu0 %v719_v6, %s11164_s15  ;;  %v726_v6 = vsel %vm641_vm1, %v723_v52, %v725_v53  ;;  %v727_v52 = vrot.slane %v11586_v32, 2  ;;  %v11641_v53 = vld [vmem:[%s18430_s1 + $0x10] sm:$0xff] }
  0x8d   : > { %v11575_v23 = vpop.permute.xlu1 %742 }
  0x8e   : > { %v11583_v30 = vpop.permute.xlu0 %738 }
  0x8f   : > { %798 = vrot.lane.b32.xlu1 %v635_v18, %s11163_s14  ;;  %v645_v18 = vrot.slane %v444_v9, 2 }
  0x90   : > { %796 = vrot.lane.b32.xlu0 %v633_v24, %s11163_s14  ;;  %v11617_v24 = vld [vmem:[%s18430_s1] sm:$0xff] }
  0x91   : > { %v11592_v42 = vpop.permute.xlu1 %846  ;;  %v11626_v36 = vpack.c.bf16 %v11622_v26, %v11617_v24  ;;  %v646_v9 = vsel %vm641_vm1, %v643_v7, %v645_v18  ;;  %v729_v18 = vsel %vm641_vm1, %v727_v52, %v728_v40  ;;  %v11682_v52 = vld [vmem:[%s18430_s1 + $0x30] sm:$0xff] }
  0x92   : > { %v11596_v48 = vpop.permute.xlu0 %844 }
  0x93   : > { %734 = vrot.lane.b32.xlu1 %v555_v34, %s11163_s14  ;;  %10090 = vmatprep.subr.bf16.mxu0 %v11626_v36 }
  0x94   : > { %732 = vrot.lane.b32.xlu0 %v553_v44, %s11163_s14  ;;  %v730_v44 = vrot.slane %v495_v29, 2  ;;  %10091 = vmatpush3.bf16.msra.mxu0 %v11626_v36 }
  0x95   : > { %v11602_v54 = vpop.permute.xlu1 %746 }
  0x96   : > { %v11606_v60 = vpop.permute.xlu0 %744 }
  0x97   : > { %802 = vrot.lane.b32.xlu1 %v640_v50, %s11163_s14  ;;  %v644_v50 = vsel %vm641_vm1, %v642_v22, %v643_v7  ;;  %v11666_v22 = vld [vmem:[%s18430_s1 + $0x28] sm:$0xff] }
  0x98   : > { %800 = vrot.lane.b32.xlu0 %v638_v58, %s11163_s14  ;;  %v11646_v58 = vld [vmem:[%s18430_s1 + $0x18] sm:$0xff]  ;;  %18628 = vst [vmem:[#allocation5_spill] sm:$0xff] %v11666_v22 }
  0x99   : > { %v851_v20 = vpop.permute.xlu1 %850  ;;  %v11650_v59 = vpack.c.bf16 %v11646_v58, %v11641_v53 }
  0x9a   : > { %v849_v34 = vpop.permute.xlu0 %848 }
  0x9b   : > { %906 = vrot.lane.b32.xlu1 %v726_v6, %s11164_s15  ;;  %v731_v6 = vsel %vm641_vm1, %v728_v40, %v730_v44  ;;  %10092 = vmatprep.subr.bf16.mxu0 %v11650_v59  ;;  %v952_v40 = vsel %vm948_vm2, %v11280_v5, %v11583_v30 }
  0x9c   : > { %904 = vrot.lane.b32.xlu0 %v724_v56, %s11164_s15  ;;  %10093 = vmatpush3.bf16.msra.mxu0 %v11650_v59  ;;  %v11661_v56 = vld [vmem:[%s18430_s1 + $0x20] sm:$0xff]  ;;  %v11694_v5 = vsel %vm985_vm3, %v952_v40, %v11592_v42 }
  0x9d   : > { %v11633_v46 = vpop.permute.xlu1 %854  ;;  %18627 = vst [vmem:[#allocation4_spill] sm:$0xff] %v11661_v56  ;;  %v11670_v44 = vpack.c.bf16 %v11666_v22, %v11661_v56  ;;  %v11716_v42 = vld [vmem:[%s18430_s1 + $0x40] sm:$0xff] }
  0x9e   : > { %v853_v29 = vpop.permute.xlu0 %852  ;;  %18630 = vst [vmem:[#allocation7_spill] sm:$0xff] %v11716_v42 }
  0x9f   : > { %842 = vrot.lane.b32.xlu1 %v646_v9, %s11164_s15  ;;  %10094 = vmatprep.subr.bf16.mxu0 %v11670_v44 }
  0xa0   : > { %840 = vrot.lane.b32.xlu0 %v644_v50, %s11164_s15  ;;  %10095 = vmatpush3.bf16.msra.mxu0 %v11670_v44 }
  0xa1   : > { %v751_v7 = vpop.permute.xlu1 %750 }
  0xa2   : > { %v749_v9 = vpop.permute.xlu0 %748 }
  0xa3   : > { %910 = vrot.lane.b32.xlu1 %v731_v6, %s11164_s15  ;;  %v11687_v6 = vld [vmem:[%s18430_s1 + $0x38] sm:$0xff] }
  0xa4   : > { %908 = vrot.lane.b32.xlu0 %v729_v18, %s11164_s15  ;;  %18629 = vst [vmem:[#allocation6_spill] sm:$0xff] %v11687_v6  ;;  %v951_v18 = vsel %vm948_vm2, %v11275_v2, %v11566_v10  ;;  %v11698_v30 = vpack.c.bf16 %v11687_v6, %v11682_v52  ;;  %v954_v2 = vsel %vm948_vm2, %v11272_v1, %v11575_v23 }
  0xa5   : > { %v755_v50 = vpop.permute.xlu1 %754  ;;  %v11704_v56 = vsel %vm985_vm3, %v951_v18, %v11596_v48  ;;  %v953_v48 = vsel %vm948_vm2, %v11269_v0, %v11558_v62  ;;  %v11722_v18 = vsel %vm985_vm3, %v954_v2, %v851_v20  ;;  %v11726_v6 = vpack.c.bf16 %v11716_v42, %v11716_v42 }
  0xa6   : > { %v753_v22 = vpop.permute.xlu0 %752  ;;  %10096 = vmatprep.subr.bf16.mxu0 %v11698_v30  ;;  %v11731_v1 = vsel %vm985_vm3, %v953_v48, %v849_v34  ;;  %v956_v20 = vsel %vm948_vm2, %v11295_v19, %v11602_v54  ;;  %v955_v2 = vsel %vm948_vm2, %v11299_v21, %v11606_v60  ;;  %v958_v21 = vsel %vm948_vm2, %v11320_v37, %v751_v7 }
  0xa7   : > { %1056 = vrot.lane.b32.xlu1 %v11694_v5, %s11165_s19  ;;  %10097 = vmatpush3.bf16.msra.mxu0 %v11698_v30  ;;  %v11739_v0 = vsel %vm1496_vm4, %v11726_v6, 0  ;;  %v11759_v42 = vsel %vm985_vm3, %v955_v2, %v853_v29  ;;  %v960_v37 = vsel %vm948_vm2, %v11333_v45, %v755_v50  ;;  %v959_v7 = vsel %vm948_vm2, %v11337_v47, %v753_v22 }
  0xa8   : > { %1054 = vrot.lane.b32.xlu0 %v11704_v56, %s11165_s19  ;;  %10926 = vmatprep.subr.msk.bf16.mxu0 %vm1496_vm4, %v11726_v6  ;;  %18631 = vst [vmem:[#allocation8_spill] sm:$0xff] %v11739_v0  ;;  %18633 = vst [vmem:[#allocation10_spill] sm:$0xff] %v11759_v42 }
  0xa9   : > { %v859_v10 = vpop.permute.xlu1 %858 }
  0xaa   : > { %v857_v40 = vpop.permute.xlu0 %856 }
  0xab   : > { %1060 = vrot.lane.b32.xlu1 %v11722_v18, %s11165_s19  ;;  %10099 = vmatpush3.bf16.msra.mxu0 %v11739_v0  ;;  %v11754_v0 = vsel %vm985_vm3, %v956_v20, %v11633_v46  ;;  %v957_v46 = vsel %vm948_vm2, %v11324_v39, %v749_v9  ;;  %v11772_v20 = vsel %vm985_vm3, %v958_v21, %v859_v10 }
  0xac   : > { %1058 = vrot.lane.b32.xlu0 %v11731_v1, %s11165_s19  ;;  %18632 = vst [vmem:[#allocation9_spill] sm:$0xff] %v11754_v0  ;;  %v11777_v2 = vsel %vm985_vm3, %v957_v46, %v857_v40 }
  0xad   : > { %v863_v62 = vpop.permute.xlu1 %862 }
  0xae   : > { %v861_v23 = vpop.permute.xlu0 %860  ;;  %v11790_v10 = vsel %vm985_vm3, %v960_v37, %v863_v62 }
  0xaf   : > { %1154 = vrot.lane.b32.xlu1 %v11722_v18, %s11166_s22  ;;  %v11795_v40 = vsel %vm985_vm3, %v959_v7, %v861_v23 }
  0xb0   : > { %1152 = vrot.lane.b32.xlu0 %v11731_v1, %s11166_s22 }
  0xb1   : > { %v759_v34 = vpop.permute.xlu1 %758 }
  0xb2   : > { %v757_v48 = vpop.permute.xlu0 %756  ;;  %v962_v45 = vsel %vm948_vm2, %v11358_v63, %v759_v34 }
  0xb3   : > { %1158 = vrot.lane.b32.xlu1 %v11754_v0, %s11166_s22  ;;  %v961_v22 = vsel %vm948_vm2, %v11362_v4, %v757_v48 }
  0xb4   : > { %1156 = vrot.lane.b32.xlu0 %v11759_v42, %s11166_s22 }
  0xb5   : > { %v763_v19 = vpop.permute.xlu1 %762 }
  0xb6   : > { %v761_v54 = vpop.permute.xlu0 %760  ;;  %v964_v63 = vsel %vm948_vm2, %v11371_v11, %v763_v19 }
  0xb7   : > { %1064 = vrot.lane.b32.xlu1 %v11754_v0, %s11165_s19  ;;  %v963_v34 = vsel %vm948_vm2, %v11375_v13, %v761_v54 }
  0xb8   : > { %1062 = vrot.lane.b32.xlu0 %v11759_v42, %s11165_s19 }
  0xb9   : > { %v867_v60 = vpop.permute.xlu1 %866 }
  0xba   : > { %v865_v29 = vpop.permute.xlu0 %864  ;;  %v11808_v62 = vsel %vm985_vm3, %v962_v45, %v867_v60 }
  0xbb   : > { %1068 = vrot.lane.b32.xlu1 %v11772_v20, %s11165_s19  ;;  %v11813_v23 = vsel %vm985_vm3, %v961_v22, %v865_v29 }
  0xbc   : > { %1066 = vrot.lane.b32.xlu0 %v11777_v2, %s11165_s19 }
  0xbd   : > { %v871_v42 = vpop.permute.xlu1 %870 }
  0xbe   : > { %v869_v0 = vpop.permute.xlu0 %868  ;;  %v11826_v60 = vsel %vm985_vm3, %v964_v63, %v871_v42 }
  0xbf   : > { %1162 = vrot.lane.b32.xlu1 %v11772_v20, %s11166_s22  ;;  %v11831_v29 = vsel %vm985_vm3, %v963_v34, %v869_v0 }
  0xc0   : > { %1160 = vrot.lane.b32.xlu0 %v11777_v2, %s11166_s22 }
  0xc1   : > { %v767_v39 = vpop.permute.xlu1 %766 }
  0xc2   : > { %v765_v9 = vpop.permute.xlu0 %764  ;;  %v966_v11 = vsel %vm948_vm2, %v11396_v31, %v767_v39 }
  0xc3   : > { %1166 = vrot.lane.b32.xlu1 %v11790_v10, %s11166_s22  ;;  %v965_v42 = vsel %vm948_vm2, %v11400_v33, %v765_v9 }
  0xc4   : > { %1164 = vrot.lane.b32.xlu0 %v11795_v40, %s11166_s22 }
  0xc5   : > { %v771_v21 = vpop.permute.xlu1 %770 }
  0xc6   : > { %v769_v46 = vpop.permute.xlu0 %768  ;;  %v968_v31 = vsel %vm948_vm2, %v11409_v41, %v771_v21 }
  0xc7   : > { %1072 = vrot.lane.b32.xlu1 %v11790_v10, %s11165_s19  ;;  %v967_v39 = vsel %vm948_vm2, %v11413_v43, %v769_v46 }
  0xc8   : > { %1070 = vrot.lane.b32.xlu0 %v11795_v40, %s11165_s19 }
  0xc9   : > { %v875_v47 = vpop.permute.xlu1 %874 }
  0xca   : > { %v873_v50 = vpop.permute.xlu0 %872  ;;  %v11844_v0 = vsel %vm985_vm3, %v966_v11, %v875_v47 }
  0xcb   : > { %1076 = vrot.lane.b32.xlu1 %v11808_v62, %s11165_s19  ;;  %v11847_v54 = vsel %vm985_vm3, %v965_v42, %v873_v50 }
  0xcc   : > { %1074 = vrot.lane.b32.xlu0 %v11813_v23, %s11165_s19 }
  0xcd   : > { %v879_v37 = vpop.permute.xlu1 %878 }
  0xce   : > { %v877_v7 = vpop.permute.xlu0 %876  ;;  %v11862_v9 = vsel %vm985_vm3, %v968_v31, %v879_v37 }
  0xcf   : > { %1170 = vrot.lane.b32.xlu1 %v11808_v62, %s11166_s22  ;;  %18634 = vst [vmem:[#allocation11_spill] sm:$0xff] %v11862_v9  ;;  %v11865_v50 = vsel %vm985_vm3, %v967_v39, %v877_v7 }
  0xd0   : > { %1168 = vrot.lane.b32.xlu0 %v11813_v23, %s11166_s22  ;;  %18635 = vst [vmem:[#allocation12_spill] sm:$0xff] %v11865_v50 }
  0xd1   : > { %v775_v4 = vpop.permute.xlu1 %774 }
  0xd2   : > { %v773_v48 = vpop.permute.xlu0 %772  ;;  %v970_v41 = vsel %vm948_vm2, %v11434_v61, %v775_v4  ;;  %v1424_v61 = vunpack.c.l.bf16 %v11626_v36  ;;  %v1425_v4 = vunpack.c.h.bf16 %v11626_v36 }
  0xd3   : > { %1174 = vrot.lane.b32.xlu1 %v11826_v60, %s11166_s22  ;;  %v969_v21 = vsel %vm948_vm2, %v11438_v3, %v773_v48 }
  0xd4   : > { %1172 = vrot.lane.b32.xlu0 %v11831_v29, %s11166_s22  ;;  %v1433_v3 = vsub.f32 %v11617_v24, %v1424_v61  ;;  %v1434_v48 = vsub.f32 %v11622_v26, %v1425_v4 }
  0xd5   : > { %v779_v45 = vpop.permute.xlu1 %778 }
  0xd6   : > { %v777_v22 = vpop.permute.xlu0 %776 }
  0xd7   : > { %1080 = vrot.lane.b32.xlu1 %v11826_v60, %s11165_s19 }
  0xd8   : > { %1078 = vrot.lane.b32.xlu0 %v11831_v29, %s11165_s19 }
  0xd9   : > { %v883_v13 = vpop.permute.xlu1 %882 }
  0xda   : > { %v881_v19 = vpop.permute.xlu0 %880  ;;  %v11880_v46 = vsel %vm985_vm3, %v970_v41, %v883_v13  ;;  %v972_v13 = vsel %vm948_vm2, %v11447_v12, %v779_v45  ;;  %v971_v41 = vsel %vm948_vm2, %v11451_v15, %v777_v22 }
  0xdb   : > { %1084 = vrot.lane.b32.xlu1 %v11844_v0, %s11165_s19  ;;  %18636 = vst [vmem:[#allocation13_spill] sm:$0xff] %v11880_v46  ;;  %v11883_v7 = vsel %vm985_vm3, %v969_v21, %v881_v19 }
  0xdc   : > { %1082 = vrot.lane.b32.xlu0 %v11847_v54, %s11165_s19 }
  0xdd   : > { %v887_v63 = vpop.permute.xlu1 %886 }
  0xde   : > { %v885_v34 = vpop.permute.xlu0 %884  ;;  %v11902_v21 = vsel %vm985_vm3, %v972_v13, %v887_v63 }
  0xdf   : > { %1178 = vrot.lane.b32.xlu1 %v11844_v0, %s11166_s22 }
  0xe0   : > { %1176 = vrot.lane.b32.xlu0 %v11847_v54, %s11166_s22 }
  0xe1   : > { %v783_v33 = vpop.permute.xlu1 %782 }
  0xe2   : > { %v781_v47 = vpop.permute.xlu0 %780  ;;  %v974_v15 = vsel %vm948_vm2, %v11472_v35, %v783_v33 }
  0xe3   : > { %1182 = vrot.lane.b32.xlu1 %v11862_v9, %s11166_s22  ;;  %v973_v45 = vsel %vm948_vm2, %v11476_v38, %v781_v47 }
  0xe4   : > { %1180 = vrot.lane.b32.xlu0 %v11865_v50, %s11166_s22 }
  0xe5   : > { %v787_v11 = vpop.permute.xlu1 %786 }
  0xe6   : > { %v785_v42 = vpop.permute.xlu0 %784  ;;  %v976_v35 = vsel %vm948_vm2, %v11485_v49, %v787_v11 }
  0xe7   : > { %1088 = vrot.lane.b32.xlu1 %v11862_v9, %s11165_s19  ;;  %v11904_v9 = vpack.c.bf16 %v1434_v48, %v1433_v3  ;;  %v975_v33 = vsel %vm948_vm2, %v11489_v51, %v785_v42 }
  0xe8   : > { %1086 = vrot.lane.b32.xlu0 %v11865_v50, %s11165_s19 }
  0xe9   : > { %v891_v43 = vpop.permute.xlu1 %890  ;;  %10132 = vmatprep.subr.bf16.mxu0 %v11904_v9 }
  0xea   : > { %v889_v37 = vpop.permute.xlu0 %888  ;;  %v11923_v22 = vsel %vm985_vm3, %v974_v15, %v891_v43 }
  0xeb   : > { %1092 = vrot.lane.b32.xlu1 %v11880_v46, %s11165_s19 }
  0xec   : > { %1090 = vrot.lane.b32.xlu0 %v11883_v7, %s11165_s19 }
  0xed   : > { %v895_v31 = vpop.permute.xlu1 %894 }
  0xee   : > { %v893_v39 = vpop.permute.xlu0 %892  ;;  %v11941_v47 = vsel %vm985_vm3, %v976_v35, %v895_v31 }
  0xef   : > { %1186 = vrot.lane.b32.xlu1 %v11880_v46, %s11166_s22  ;;  %v11907_v46 = vsel %vm985_vm3, %v971_v41, %v885_v34  ;;  %v11926_v34 = vsel %vm985_vm3, %v973_v45, %v889_v37  ;;  %v11944_v37 = vsel %vm985_vm3, %v975_v33, %v893_v39 }
  0xf0   : > { %1184 = vrot.lane.b32.xlu0 %v11883_v7, %s11166_s22 }
  0xf1   : > { %v791_v19 = vpop.permute.xlu1 %790 }
  0xf2   : > { %v789_v50 = vpop.permute.xlu0 %788  ;;  %v978_v49 = vsel %vm948_vm2, %v11510_v14, %v791_v19 }
  0xf3   : > { %1190 = vrot.lane.b32.xlu1 %v11902_v21, %s11166_s22  ;;  %v977_v11 = vsel %vm948_vm2, %v11514_v17, %v789_v50 }
  0xf4   : > { %1188 = vrot.lane.b32.xlu0 %v11907_v46, %s11166_s22 }
  0xf5   : > { %v795_v12 = vpop.permute.xlu1 %794 }
  0xf6   : > { %v793_v24 = vpop.permute.xlu0 %792  ;;  %v980_v14 = vsel %vm948_vm2, %v11523_v25, %v795_v12 }
  0xf7   : > { %1096 = vrot.lane.b32.xlu1 %v11902_v21, %s11165_s19  ;;  %v979_v50 = vsel %vm948_vm2, %v11527_v27, %v793_v24 }
  0xf8   : > { %1094 = vrot.lane.b32.xlu0 %v11907_v46, %s11165_s19 }
  0xf9   : > { %v899_v26 = vpop.permute.xlu1 %898 }
  0xfa   : > { %v897_v63 = vpop.permute.xlu0 %896  ;;  %v11959_v42 = vsel %vm985_vm3, %v978_v49, %v899_v26 }
  0xfb   : > { %1100 = vrot.lane.b32.xlu1 %v11923_v22, %s11165_s19  ;;  %v11962_v39 = vsel %vm985_vm3, %v977_v11, %v897_v63 }
  0xfc   : > { %1098 = vrot.lane.b32.xlu0 %v11926_v34, %s11165_s19 }
  0xfd   : > { %v903_v61 = vpop.permute.xlu1 %902 }
  0xfe   : > { %v901_v4 = vpop.permute.xlu0 %900  ;;  %v11977_v19 = vsel %vm985_vm3, %v980_v14, %v903_v61 }
  0xff   : > { %1194 = vrot.lane.b32.xlu1 %v11923_v22, %s11166_s22  ;;  %v11980_v26 = vsel %vm985_vm3, %v979_v50, %v901_v4  ;;  %v1427_v50 = vunpack.c.h.bf16 %v11650_v59 }
 0x100   : > { %1192 = vrot.lane.b32.xlu0 %v11926_v34, %s11166_s22 }
 0x101   : > { %v799_v38 = vpop.permute.xlu1 %798 }
 0x102   : > { %v797_v43 = vpop.permute.xlu0 %796  ;;  %v982_v25 = vsel %vm948_vm2, %v11548_v55, %v799_v38 }
 0x103   : > { %1198 = vrot.lane.b32.xlu1 %v11941_v47, %s11166_s22  ;;  %v981_v12 = vsel %vm948_vm2, %v11552_v57, %v797_v43 }
 0x104   : > { %1196 = vrot.lane.b32.xlu0 %v11944_v37, %s11166_s22 }
 0x105   : > { %v735_v3 = vpop.permute.xlu1 %734 }
 0x106   : > { %v733_v48 = vpop.permute.xlu0 %732  ;;  %v950_v49 = vsel %vm948_vm2, %v11563_v8, %v735_v3 }
 0x107   : > { %1104 = vrot.lane.b32.xlu1 %v11941_v47, %s11165_s19  ;;  %v949_v55 = vsel %vm948_vm2, %v11569_v16, %v733_v48 }
 0x108   : > { %1102 = vrot.lane.b32.xlu0 %v11944_v37, %s11165_s19 }
 0x109   : > { %v803_v51 = vpop.permute.xlu1 %802 }
 0x10a   : > { %v801_v31 = vpop.permute.xlu0 %800  ;;  %v984_v38 = vsel %vm948_vm2, %v11580_v28, %v803_v51 }
 0x10b   : > { %1108 = vrot.lane.b32.xlu1 %v11959_v42, %s11165_s19  ;;  %v983_v8 = vsel %vm948_vm2, %v11586_v32, %v801_v31  ;;  %v1426_v31 = vunpack.c.l.bf16 %v11650_v59 }
 0x10c   : > { %1106 = vrot.lane.b32.xlu0 %v11962_v39, %s11165_s19 }
 0x10d   : > { %v907_v13 = vpop.permute.xlu1 %906 }
 0x10e   : > { %v905_v41 = vpop.permute.xlu0 %904  ;;  %v1019_v24 = vsel %vm985_vm3, %v982_v25, %v907_v13 }
 0x10f   : > { %1202 = vrot.lane.b32.xlu1 %v11959_v42, %s11166_s22  ;;  %v1018_v4 = vsel %vm985_vm3, %v981_v12, %v905_v41 }
 0x110   : > { %1200 = vrot.lane.b32.xlu0 %v11962_v39, %s11166_s22 }
 0x111   : > { %v843_v17 = vpop.permute.xlu1 %842 }
 0x112   : > { %v841_v15 = vpop.permute.xlu0 %840  ;;  %v987_v57 = vsel %vm985_vm3, %v950_v49, %v843_v17  ;;  %v1436_v49 = vsub.f32 %v11646_v58, %v1427_v50  ;;  %v1431_v58 = vunpack.c.h.bf16 %v11698_v30 }
 0x113   : > { %1206 = vrot.lane.b32.xlu1 %v11977_v19, %s11166_s22  ;;  %v986_v43 = vsel %vm985_vm3, %v949_v55, %v841_v15 }
 0x114   : > { %1204 = vrot.lane.b32.xlu0 %v11980_v26, %s11166_s22 }
 0x115   : > { %v911_v45 = vpop.permute.xlu1 %910 }
 0x116   : > { %v909_v63 = vpop.permute.xlu0 %908  ;;  %v1021_v3 = vsel %vm985_vm3, %v984_v38, %v911_v45 }
 0x117   : > { %1112 = vrot.lane.b32.xlu1 %v11977_v19, %s11165_s19  ;;  %v1020_v14 = vsel %vm985_vm3, %v983_v8, %v909_v63 }
 0x118   : > { %1110 = vrot.lane.b32.xlu0 %v11980_v26, %s11165_s19 }
 0x119   : > { %v1057_v27 = vpop.permute.xlu1 %1056 }
 0x11a   : > { %v1055_v61 = vpop.permute.xlu0 %1054  ;;  %v1250_v11 = vsel %vm1248_vm5, %v987_v57, %v1057_v27 }
 0x11b   : > { %1116 = vrot.lane.b32.xlu1 %v1019_v24, %s11165_s19  ;;  %v1249_v41 = vsel %vm1248_vm5, %v986_v43, %v1055_v61  ;;  %v1429_v43 = vunpack.c.h.bf16 %v11670_v44 }
 0x11c   : > { %1114 = vrot.lane.b32.xlu0 %v1018_v4, %s11165_s19 }
 0x11d   : > { %v1061_v35 = vpop.permute.xlu1 %1060 }
 0x11e   : > { %v1059_v33 = vpop.permute.xlu0 %1058  ;;  %v1252_v32 = vsel %vm1248_vm5, %v11694_v5, %v1061_v35  ;;  %v1435_v35 = vsub.f32 %v11641_v53, %v1426_v31  ;;  %v1430_v53 = vunpack.c.l.bf16 %v11698_v30 }
 0x11f   : > { %1210 = vrot.lane.b32.xlu1 %v1019_v24, %s11166_s22  ;;  %v1251_v15 = vsel %vm1248_vm5, %v11704_v56, %v1059_v33  ;;  %v1428_v56 = vunpack.c.l.bf16 %v11670_v44 }
 0x120   : > { %1208 = vrot.lane.b32.xlu0 %v1018_v4, %s11166_s22  ;;  %v1439_v50 = vsub.f32 %v11682_v52, %v1430_v53 }
 0x121   : > { %v1155_v13 = vpop.permute.xlu1 %1154 }
 0x122   : > { %v1283_v16 = vsel %vm1281_vm6, %v1250_v11, %v1155_v13  ;;  %v1153_v48 = vpop.permute.xlu0 %1152 }
 0x123   : > { %v1282_v17 = vsel %vm1281_vm6, %v1249_v41, %v1153_v48  ;;  %1214 = vrot.lane.b32.xlu1 %v1021_v3, %s11166_s22  ;;  %v18641_v48 = vld [vmem:[#allocation4_spill] sm:$0xff] }
 0x124   : > { %v12017_v28 = vpack.c.bf16 %v1283_v16, %v1282_v17  ;;  %1212 = vrot.lane.b32.xlu0 %v1020_v14, %s11166_s22  ;;  %v1437_v14 = vsub.f32 %v18641_v48, %v1428_v56 }
 0x125   : > { %v1159_v51 = vpop.permute.xlu1 %1158 }
 0x126   : > { %18637 = vst [vmem:[#allocation14_spill] sm:$0xff] %v12017_v28  ;;  %v1339_v45 = vunpack.c.l.bf16 %v12017_v28  ;;  %v1285_v63 = vsel %vm1281_vm6, %v1252_v32, %v1159_v51  ;;  %v1157_v25 = vpop.permute.xlu0 %1156  ;;  %v1340_v27 = vunpack.c.h.bf16 %v12017_v28 }
 0x127   : > { %v1284_v12 = vsel %vm1281_vm6, %v1251_v15, %v1157_v25  ;;  %v18643_v15 = vld [vmem:[#allocation6_spill] sm:$0xff] }
 0x128   : > { %v1371_v24 = vsub.f32 %v1282_v17, %v1339_v45  ;;  %v12030_v61 = vpack.c.bf16 %v1285_v63, %v1284_v12  ;;  %v1372_v5 = vsub.f32 %v1283_v16, %v1340_v27  ;;  %v1443_v16 = vpack.c.bf16 %v1436_v49, %v1435_v35  ;;  %v18642_v17 = vld [vmem:[#allocation5_spill] sm:$0xff]  ;;  %v18646_v49 = vld [vmem:[#allocation7_spill] sm:$0xff] }
 0x129   : > { %v1065_v4 = vpop.permute.xlu1 %1064  ;;  %v1438_v32 = vsub.f32 %v18642_v17, %v1429_v43  ;;  %v1440_v45 = vsub.f32 %v18643_v15, %v1431_v58 }
 0x12a   : > { %18638 = vst [vmem:[#allocation15_spill] sm:$0xff] %v12030_v61  ;;  %v1341_v33 = vunpack.c.l.bf16 %v12030_v61  ;;  %v1342_v55 = vunpack.c.h.bf16 %v12030_v61  ;;  %v1063_v57 = vpop.permute.xlu0 %1062  ;;  %v12037_v38 = vpack.c.bf16 %v1372_v5, %v1371_v24  ;;  %v1254_v51 = vsel %vm1248_vm5, %v11722_v18, %v1065_v4  ;;  %v18645_v4 = vld [vmem:[#allocation9_spill] sm:$0xff] }
 0x12b   : > { %v1253_v25 = vsel %vm1248_vm5, %v11731_v1, %v1063_v57  ;;  %v1444_v24 = vpack.c.bf16 %v1438_v32, %v1437_v14  ;;  %v1445_v35 = vpack.c.bf16 %v1440_v45, %v1439_v50 }
 0x12c   : > { %18639 = vst [vmem:[#allocation16_spill] sm:$0xff] %v12037_v38  ;;  %v1373_v11 = vsub.f32 %v1284_v12, %v1341_v33  ;;  %v1374_v13 = vsub.f32 %v1285_v63, %v1342_v55  ;;  %10100 = vmatprep.mubr.msk.bf16.mxu0 %vm1447_vm7, %v12037_v38  ;;  %v1432_v63 = vunpack.c.l.bf16 %v11726_v6  ;;  %v18647_v33 = vld [vmem:[#allocation10_spill] sm:$0xff] }
 0x12d   : > { %v1069_v8 = vpop.permute.xlu1 %1068 }
 0x12e   : > { %v12044_v3 = vpack.c.bf16 %v1374_v13, %v1373_v11  ;;  %v1067_v41 = vpop.permute.xlu0 %1066  ;;  %v1441_v56 = vsub.f32 %v18646_v49, %v1432_v63 }
 0x12f   : > { %v1255_v1 = vsel %vm1248_vm5, %v18647_v33, %v1067_v41 }
 0x130   : > { %18640 = vst [vmem:[#allocation17_spill] sm:$0xff] %v12044_v3  ;;  %10101 = vmatmul.mubr.msk.bf16.vlgmr.msra.gmra.mrb[0].mxu0 %vm1447_vm7, %v12044_v3  ;;  %v1446_v32 = vpack.c.bf16 %v1441_v56, %v1441_v56 }
 0x131   : > { %v1163_v31 = vpop.permute.xlu1 %1162  ;;  %10133 = vmatpush3.bf16.msra.mxu0 %v11904_v9  ;;  %v1256_v9 = vsel %vm1248_vm5, %v18645_v4, %v1069_v8 }
 0x132   : > { %v1287_v27 = vsel %vm1281_vm6, %v1254_v51, %v1163_v31  ;;  %v1161_v12 = vpop.permute.xlu0 %1160  ;;  %10134 = vmatprep.subr.bf16.mxu0 %v1443_v16  ;;  %v1710_v63 = vsel %vm1496_vm4, %v1446_v32, 0 }
 0x133   : > { %v1286_v5 = vsel %vm1281_vm6, %v1253_v25, %v1161_v12 }
 0x134   : > { %v12060_v18 = vpack.c.bf16 %v1287_v27, %v1286_v5 }
 0x135   : > { %v1167_v52 = vpop.permute.xlu1 %1166  ;;  %10135 = vmatpush3.bf16.msra.mxu0 %v1443_v16 }
 0x136   : > { %18644 = vst [vmem:[#allocation4_spill] sm:$0xff] %v12060_v18  ;;  %v1343_v55 = vunpack.c.l.bf16 %v12060_v18  ;;  %v1344_v57 = vunpack.c.h.bf16 %v12060_v18  ;;  %v1289_v43 = vsel %vm1281_vm6, %v1256_v9, %v1167_v52  ;;  %v1165_v11 = vpop.permute.xlu0 %1164  ;;  %10136 = vmatprep.subr.bf16.mxu0 %v1444_v24 }
 0x137   : > { %v1288_v13 = vsel %vm1281_vm6, %v1255_v1, %v1165_v11 }
 0x138   : > { %v1375_v53 = vsub.f32 %v1286_v5, %v1343_v55  ;;  %v1376_v8 = vsub.f32 %v1287_v27, %v1344_v57  ;;  %v12071_v58 = vpack.c.bf16 %v1289_v43, %v1288_v13 }
 0x139   : > { %v1073_v16 = vpop.permute.xlu1 %1072  ;;  %10137 = vmatpush3.bf16.msra.mxu0 %v1444_v24 }
 0x13a   : > { %18648 = vst [vmem:[#allocation5_spill] sm:$0xff] %v12071_v58  ;;  %v12073_v48 = vpack.c.bf16 %v1376_v8, %v1375_v53  ;;  %v1345_v41 = vunpack.c.l.bf16 %v12071_v58  ;;  %v1346_v14 = vunpack.c.h.bf16 %v12071_v58  ;;  %v1071_v17 = vpop.permute.xlu0 %1070  ;;  %10138 = vmatprep.subr.bf16.mxu0 %v1445_v35  ;;  %v1258_v25 = vsel %vm1248_vm5, %v11772_v20, %v1073_v16 }
 0x13b   : > { %v1257_v12 = vsel %vm1248_vm5, %v11777_v2, %v1071_v17 }
 0x13c   : > { %18649 = vst [vmem:[#allocation6_spill] sm:$0xff] %v12073_v48  ;;  %v1377_v51 = vsub.f32 %v1288_v13, %v1345_v41  ;;  %v1378_v31 = vsub.f32 %v1289_v43, %v1346_v14  ;;  %10104 = vmatprep.mubr.msk.bf16.mxu0 %vm1447_vm7, %v12073_v48 }
 0x13d   : > { %v1077_v50 = vpop.permute.xlu1 %1076  ;;  %10139 = vmatpush3.bf16.msra.mxu0 %v1445_v35 }
 0x13e   : > { %v12079_v15 = vpack.c.bf16 %v1378_v31, %v1377_v51  ;;  %v1075_v45 = vpop.permute.xlu0 %1074  ;;  %10927 = vmatprep.subr.msk.bf16.mxu0 %vm1496_vm4, %v1446_v32  ;;  %v1260_v52 = vsel %vm1248_vm5, %v11790_v10, %v1077_v50 }
 0x13f   : > { %v1259_v20 = vsel %vm1248_vm5, %v11795_v40, %v1075_v45 }
 0x140   : > { %18650 = vst [vmem:[#allocation9_spill] sm:$0xff] %v12079_v15  ;;  %10105 = vmatmul.mubr.msk.bf16.gmra.mrb[4].mxu0 %vm1447_vm7, %v12079_v15 }
 0x141   : > { %v1171_v27 = vpop.permute.xlu1 %1170  ;;  %10141 = vmatpush3.bf16.msra.mxu0 %v1710_v63 }
 0x142   : > { %v1291_v24 = vsel %vm1281_vm6, %v1258_v25, %v1171_v27  ;;  %v1169_v5 = vpop.permute.xlu0 %1168  ;;  %10174 = vmatprep.subr.bf16.mxu0 %v11626_v36 }
 0x143   : > { %v1290_v4 = vsel %vm1281_vm6, %v1257_v12, %v1169_v5 }
 0x144   : > { %v12092_v9 = vpack.c.bf16 %v1291_v24, %v1290_v4 }
 0x145   : > { %v1175_v35 = vpop.permute.xlu1 %1174 }
 0x146   : > { %18651 = vst [vmem:[#allocation7_spill] sm:$0xff] %v12092_v9  ;;  %v1347_v49 = vunpack.c.l.bf16 %v12092_v9  ;;  %v1348_v2 = vunpack.c.h.bf16 %v12092_v9  ;;  %v1293_v56 = vsel %vm1281_vm6, %v1260_v52, %v1175_v35  ;;  %v1173_v33 = vpop.permute.xlu0 %1172 }
 0x147   : > { %v1292_v1 = vsel %vm1281_vm6, %v1259_v20, %v1173_v33 }
 0x148   : > { %v1379_v55 = vsub.f32 %v1290_v4, %v1347_v49  ;;  %v1380_v57 = vsub.f32 %v1291_v24, %v1348_v2  ;;  %v12102_v43 = vpack.c.bf16 %v1293_v56, %v1292_v1 }
 0x149   : > { %v1081_v11 = vpop.permute.xlu1 %1080 }
 0x14a   : > { %18652 = vst [vmem:[#allocation10_spill] sm:$0xff] %v12102_v43  ;;  %v12104_v13 = vpack.c.bf16 %v1380_v57, %v1379_v55  ;;  %v1349_v10 = vunpack.c.l.bf16 %v12102_v43  ;;  %v1350_v40 = vunpack.c.h.bf16 %v12102_v43  ;;  %v1079_v53 = vpop.permute.xlu0 %1078  ;;  %v1262_v32 = vsel %vm1248_vm5, %v11808_v62, %v1081_v11 }
 0x14b   : > { %v1261_v31 = vsel %vm1248_vm5, %v11813_v23, %v1079_v53 }
 0x14c   : > { %18653 = vst [vmem:[#allocation18_spill] sm:$0xff] %v12104_v13  ;;  %v1381_v8 = vsub.f32 %v1292_v1, %v1349_v10  ;;  %v1382_v16 = vsub.f32 %v1293_v56, %v1350_v40  ;;  %10108 = vmatprep.mubr.msk.bf16.mxu0 %vm1447_vm7, %v12104_v13 }
 0x14d   : > { %v1085_v41 = vpop.permute.xlu1 %1084 }
 0x14e   : > { %v12110_v14 = vpack.c.bf16 %v1382_v16, %v1381_v8  ;;  %v1083_v17 = vpop.permute.xlu0 %1082  ;;  %v1264_v27 = vsel %vm1248_vm5, %v11826_v60, %v1085_v41 }
 0x14f   : > { %v1263_v24 = vsel %vm1248_vm5, %v11831_v29, %v1083_v17 }
 0x150   : > { %18654 = vst [vmem:[#allocation19_spill] sm:$0xff] %v12110_v14  ;;  %10109 = vmatmul.mubr.msk.bf16.gmra.mrb[8].mxu0 %vm1447_vm7, %v12110_v14 }
 0x151   : > { %v1179_v51 = vpop.permute.xlu1 %1178 }
 0x152   : > { %v1295_v50 = vsel %vm1281_vm6, %v1262_v32, %v1179_v51  ;;  %v1177_v45 = vpop.permute.xlu0 %1176  ;;  %v18660_v51 = vld [vmem:[#allocation11_spill] sm:$0xff] }
 0x153   : > { %v1294_v63 = vsel %vm1281_vm6, %v1261_v31, %v1177_v45  ;;  %v18661_v45 = vld [vmem:[#allocation12_spill] sm:$0xff] }
 0x154   : > { %v12120_v25 = vpack.c.bf16 %v1295_v50, %v1294_v63 }
 0x155   : > { %v1183_v12 = vpop.permute.xlu1 %1182 }
 0x156   : > { %18655 = vst [vmem:[#allocation20_spill] sm:$0xff] %v12120_v25  ;;  %v1351_v62 = vunpack.c.l.bf16 %v12120_v25  ;;  %v1352_v5 = vunpack.c.h.bf16 %v12120_v25  ;;  %v1297_v23 = vsel %vm1281_vm6, %v1264_v27, %v1183_v12  ;;  %v1181_v4 = vpop.permute.xlu0 %1180 }
 0x157   : > { %v1296_v52 = vsel %vm1281_vm6, %v1263_v24, %v1181_v4 }
 0x158   : > { %v1383_v35 = vsub.f32 %v1294_v63, %v1351_v62  ;;  %v1384_v20 = vsub.f32 %v1295_v50, %v1352_v5  ;;  %v12130_v49 = vpack.c.bf16 %v1297_v23, %v1296_v52 }
 0x159   : > { %v1089_v2 = vpop.permute.xlu1 %1088 }
 0x15a   : > { %18656 = vst [vmem:[#allocation21_spill] sm:$0xff] %v12130_v49  ;;  %v12132_v56 = vpack.c.bf16 %v1384_v20, %v1383_v35  ;;  %v1353_v60 = vunpack.c.l.bf16 %v12130_v49  ;;  %v1354_v29 = vunpack.c.h.bf16 %v12130_v49  ;;  %v1087_v33 = vpop.permute.xlu0 %1086  ;;  %v1266_v40 = vsel %vm1248_vm5, %v11844_v0, %v1089_v2 }
 0x15b   : > { %v1265_v8 = vsel %vm1248_vm5, %v11847_v54, %v1087_v33 }
 0x15c   : > { %18657 = vst [vmem:[#allocation22_spill] sm:$0xff] %v12132_v56  ;;  %v1385_v1 = vsub.f32 %v1296_v52, %v1353_v60  ;;  %v1386_v55 = vsub.f32 %v1297_v23, %v1354_v29  ;;  %10112 = vmatprep.mubr.msk.bf16.mxu0 %vm1447_vm7, %v12132_v56 }
 0x15d   : > { %v1093_v57 = vpop.permute.xlu1 %1092 }
 0x15e   : > { %v12138_v11 = vpack.c.bf16 %v1386_v55, %v1385_v1  ;;  %v1091_v10 = vpop.permute.xlu0 %1090  ;;  %v1268_v31 = vsel %vm1248_vm5, %v18660_v51, %v1093_v57  ;;  %v18665_v57 = vld [vmem:[#allocation13_spill] sm:$0xff] }
 0x15f   : > { %v1267_v63 = vsel %vm1248_vm5, %v18661_v45, %v1091_v10 }
 0x160   : > { %18658 = vst [vmem:[#allocation23_spill] sm:$0xff] %v12138_v11  ;;  %10113 = vmatmul.mubr.msk.bf16.gmra.mrb[12].mxu0 %vm1447_vm7, %v12138_v11 }
 0x161   : > { %v1187_v53 = vpop.permute.xlu1 %1186 }
 0x162   : > { %v1299_v16 = vsel %vm1281_vm6, %v1266_v40, %v1187_v53  ;;  %v1185_v41 = vpop.permute.xlu0 %1184 }
 0x163   : > { %v1298_v17 = vsel %vm1281_vm6, %v1265_v8, %v1185_v41 }
 0x164   : > { %v12148_v32 = vpack.c.bf16 %v1299_v16, %v1298_v17 }
 0x165   : > { %v1191_v50 = vpop.permute.xlu1 %1190 }
 0x166   : > { %18659 = vst [vmem:[#allocation24_spill] sm:$0xff] %v12148_v32  ;;  %v1355_v0 = vunpack.c.l.bf16 %v12148_v32  ;;  %v1356_v27 = vunpack.c.h.bf16 %v12148_v32  ;;  %v1301_v54 = vsel %vm1281_vm6, %v1268_v31, %v1191_v50  ;;  %v1189_v12 = vpop.permute.xlu0 %1188 }
 0x167   : > { %v1300_v24 = vsel %vm1281_vm6, %v1267_v63, %v1189_v12 }
 0x168   : > { %v1387_v62 = vsub.f32 %v1298_v17, %v1355_v0  ;;  %v1388_v5 = vsub.f32 %v1299_v16, %v1356_v27  ;;  %v12158_v23 = vpack.c.bf16 %v1301_v54, %v1300_v24 }
 0x169   : > { %v1097_v4 = vpop.permute.xlu1 %1096 }
 0x16a   : > { %18662 = vst [vmem:[#allocation11_spill] sm:$0xff] %v12158_v23  ;;  %v12160_v52 = vpack.c.bf16 %v1388_v5, %v1387_v62  ;;  %v1357_v35 = vunpack.c.l.bf16 %v12158_v23  ;;  %v1358_v20 = vunpack.c.h.bf16 %v12158_v23  ;;  %v1095_v2 = vpop.permute.xlu0 %1094  ;;  %v1270_v10 = vsel %vm1248_vm5, %v18665_v57, %v1097_v4 }
 0x16b   : > { %v1269_v53 = vsel %vm1248_vm5, %v11883_v7, %v1095_v2 }
 0x16c   : > { %18663 = vst [vmem:[#allocation12_spill] sm:$0xff] %v12160_v52  ;;  %v1389_v60 = vsub.f32 %v1300_v24, %v1357_v35  ;;  %v1390_v29 = vsub.f32 %v1301_v54, %v1358_v20  ;;  %10116 = vmatprep.mubr.msk.bf16.mxu0 %vm1447_vm7, %v12160_v52 }
 0x16d   : > { %v1101_v33 = vpop.permute.xlu1 %1100 }
 0x16e   : > { %v12166_v1 = vpack.c.bf16 %v1390_v29, %v1389_v60  ;;  %v1099_v55 = vpop.permute.xlu0 %1098  ;;  %v1272_v51 = vsel %vm1248_vm5, %v11902_v21, %v1101_v33 }
 0x16f   : > { %v1271_v50 = vsel %vm1248_vm5, %v11907_v46, %v1099_v55 }
 0x170   : > { %18664 = vst [vmem:[#allocation25_spill] sm:$0xff] %v12166_v1  ;;  %10117 = vmatmul.mubr.msk.bf16.gmra.mrb[16].mxu0 %vm1447_vm7, %v12166_v1 }
 0x171   : > { %v1195_v40 = vpop.permute.xlu1 %1194 }
 0x172   : > { %v1303_v8 = vsel %vm1281_vm6, %v1270_v10, %v1195_v40  ;;  %v1193_v16 = vpop.permute.xlu0 %1192 }
 0x173   : > { %v1302_v41 = vsel %vm1281_vm6, %v1269_v53, %v1193_v16 }
 0x174   : > { %v12176_v17 = vpack.c.bf16 %v1303_v8, %v1302_v41 }
 0x175   : > { %v1199_v31 = vpop.permute.xlu1 %1198 }
 0x176   : > { %18666 = vst [vmem:[#allocation13_spill] sm:$0xff] %v12176_v17  ;;  %v1359_v45 = vunpack.c.l.bf16 %v12176_v17  ;;  %v1360_v63 = vunpack.c.h.bf16 %v12176_v17  ;;  %v1305_v7 = vsel %vm1281_vm6, %v1272_v51, %v1199_v31  ;;  %v1197_v0 = vpop.permute.xlu0 %1196 }
 0x177   : > { %v1304_v27 = vsel %vm1281_vm6, %v1271_v50, %v1197_v0 }
 0x178   : > { %v1391_v54 = vsub.f32 %v1302_v41, %v1359_v45  ;;  %v1392_v12 = vsub.f32 %v1303_v8, %v1360_v63  ;;  %v12186_v24 = vpack.c.bf16 %v1305_v7, %v1304_v27 }
 0x179   : > { %v1105_v62 = vpop.permute.xlu1 %1104 }
 0x17a   : > { %18667 = vst [vmem:[#allocation26_spill] sm:$0xff] %v12186_v24  ;;  %v12188_v5 = vpack.c.bf16 %v1392_v12, %v1391_v54  ;;  %v1361_v21 = vunpack.c.l.bf16 %v12186_v24  ;;  %v1362_v46 = vunpack.c.h.bf16 %v12186_v24  ;;  %v1103_v4 = vpop.permute.xlu0 %1102  ;;  %v1274_v33 = vsel %vm1248_vm5, %v11923_v22, %v1105_v62 }
 0x17b   : > { %v1273_v57 = vsel %vm1248_vm5, %v11926_v34, %v1103_v4 }
 0x17c   : > { %18668 = vst [vmem:[#allocation27_spill] sm:$0xff] %v12188_v5  ;;  %v1393_v35 = vsub.f32 %v1304_v27, %v1361_v21  ;;  %v1394_v20 = vsub.f32 %v1305_v7, %v1362_v46  ;;  %10120 = vmatprep.mubr.msk.bf16.mxu0 %vm1447_vm7, %v12188_v5 }
 0x17d   : > { %v1109_v2 = vpop.permute.xlu1 %1108 }
 0x17e   : > { %v12194_v60 = vpack.c.bf16 %v1394_v20, %v1393_v35  ;;  %v1107_v29 = vpop.permute.xlu0 %1106  ;;  %v1276_v16 = vsel %vm1248_vm5, %v11941_v47, %v1109_v2 }
 0x17f   : > { %v1275_v51 = vsel %vm1248_vm5, %v11944_v37, %v1107_v29 }
 0x180   : > { %18669 = vst [vmem:[#allocation28_spill] sm:$0xff] %v12194_v60  ;;  %10121 = vmatmul.mubr.msk.bf16.gmra.mrb[20].mxu0 %vm1447_vm7, %v12194_v60 }
 0x181   : > { %v1203_v55 = vpop.permute.xlu1 %1202 }
 0x182   : > { %v1307_v10 = vsel %vm1281_vm6, %v1274_v33, %v1203_v55  ;;  %v1201_v40 = vpop.permute.xlu0 %1200 }
 0x183   : > { %v1306_v53 = vsel %vm1281_vm6, %v1273_v57, %v1201_v40 }
 0x184   : > { %v12204_v8 = vpack.c.bf16 %v1307_v10, %v1306_v53 }
 0x185   : > { %v1207_v41 = vpop.permute.xlu1 %1206 }
 0x186   : > { %18670 = vst [vmem:[#allocation29_spill] sm:$0xff] %v12204_v8  ;;  %v1363_v22 = vunpack.c.l.bf16 %v12204_v8  ;;  %v1364_v31 = vunpack.c.h.bf16 %v12204_v8  ;;  %v1309_v34 = vsel %vm1281_vm6, %v1276_v16, %v1207_v41  ;;  %v1205_v50 = vpop.permute.xlu0 %1204 }
 0x187   : > { %v1308_v45 = vsel %vm1281_vm6, %v1275_v51, %v1205_v50 }
 0x188   : > { %v1395_v63 = vsub.f32 %v1306_v53, %v1363_v22  ;;  %v1396_v7 = vsub.f32 %v1307_v10, %v1364_v31  ;;  %v12214_v0 = vpack.c.bf16 %v1309_v34, %v1308_v45 }
 0x189   : > { %v1113_v27 = vpop.permute.xlu1 %1112 }
 0x18a   : > { %18671 = vst [vmem:[#allocation30_spill] sm:$0xff] %v12214_v0  ;;  %v12216_v54 = vpack.c.bf16 %v1396_v7, %v1395_v63  ;;  %v1365_v47 = vunpack.c.l.bf16 %v12214_v0  ;;  %v1366_v37 = vunpack.c.h.bf16 %v12214_v0  ;;  %v1111_v12 = vpop.permute.xlu0 %1110  ;;  %v1278_v20 = vsel %vm1248_vm5, %v11959_v42, %v1113_v27 }
 0x18b   : > { %v1277_v29 = vsel %vm1248_vm5, %v11962_v39, %v1111_v12 }
 0x18c   : > { %18672 = vst [vmem:[#allocation31_spill] sm:$0xff] %v12216_v54  ;;  %v1397_v62 = vsub.f32 %v1308_v45, %v1365_v47  ;;  %v1398_v21 = vsub.f32 %v1309_v34, %v1366_v37  ;;  %10124 = vmatprep.mubr.msk.bf16.mxu0 %vm1447_vm7, %v12216_v54  ;;  %v18453_v47 = vmov 0.0  }
 0x18d   : > { %v1117_v46 = vpop.permute.xlu1 %1116  ;;  %2146 = vst.msk [vmem:[#allocation2 + $0x10] sm:$0xff] %vm948_vm2, %v18453_v47  ;;  %2144 = vst.msk [vmem:[#allocation2] sm:$0xff] %vm948_vm2, %v18453_v47 }
 0x18e   : > { %v12222_v4 = vpack.c.bf16 %v1398_v21, %v1397_v62  ;;  %v1115_v35 = vpop.permute.xlu0 %1114  ;;  %v1280_v40 = vsel %vm1248_vm5, %v11977_v19, %v1117_v46  ;;  %2145 = vst.msk [vmem:[#allocation2 + $0x8] sm:$0xff] %vm948_vm2, %v18453_v47  ;;  %2147 = vst.msk [vmem:[#allocation2 + $0x18] sm:$0xff] %vm948_vm2, %v18453_v47 }
 0x18f   : > { %v1279_v16 = vsel %vm1248_vm5, %v11980_v26, %v1115_v35  ;;  %2149 = vst.msk [vmem:[#allocation2 + $0x220] sm:$0xff] %vm948_vm2, %v18453_v47  ;;  %2150 = vst.msk [vmem:[#allocation2 + $0x228] sm:$0xff] %vm948_vm2, %v18453_v47 }
 0x190   : > { %18673 = vst [vmem:[#allocation32_spill] sm:$0xff] %v12222_v4  ;;  %10125 = vmatmul.mubr.msk.bf16.gmra.mrb[24].mxu0 %vm1447_vm7, %v12222_v4  ;;  %2151 = vst.msk [vmem:[#allocation2 + $0x230] sm:$0xff] %vm948_vm2, %v18453_v47 }
 0x191   : > { %v1211_v2 = vpop.permute.xlu1 %1210  ;;  %2152 = vst.msk [vmem:[#allocation2 + $0x238] sm:$0xff] %vm948_vm2, %v18453_v47 }
 0x192   : > { %v1311_v33 = vsel %vm1281_vm6, %v1278_v20, %v1211_v2  ;;  %v1209_v55 = vpop.permute.xlu0 %1208  ;;  %2172 = vst.msk [vmem:[#allocation2 + $0x18] sm:$0x1] %vm2153_vm8, %v18453_v47  ;;  %2154 = vst.msk [vmem:[#allocation2 + $0x7] sm:$0x1] %vm2153_vm8, %v18453_v47 }
 0x193   : > { %v1310_v57 = vsel %vm1281_vm6, %v1277_v29, %v1209_v55  ;;  %2155 = vst.msk [vmem:[#allocation2 + $0x27] sm:$0x1] %vm2153_vm8, %v18453_v47  ;;  %2156 = vst.msk [vmem:[#allocation2 + $0x47] sm:$0x1] %vm2153_vm8, %v18453_v47 }
 0x194   : > { %v12232_v10 = vpack.c.bf16 %v1311_v33, %v1310_v57  ;;  %v12274_v37 = vld [vmem:[#allocation2 + $0x10] sm:$0xff]  ;;  %2157 = vst.msk [vmem:[#allocation2 + $0x67] sm:$0x1] %vm2153_vm8, %v18453_v47  ;;  %2158 = vst.msk [vmem:[#allocation2 + $0x87] sm:$0x1] %vm2153_vm8, %v18453_v47 }
 0x195   : > { %v1215_v53 = vpop.permute.xlu1 %1214  ;;  %v12276_v12 = vld [vmem:[#allocation2 + $0x8] sm:$0xff]  ;;  %2586 = vrot.lane.b32.xlu1 %v12274_v37, %s11163_s14  ;;  %2159 = vst.msk [vmem:[#allocation2 + $0xa7] sm:$0x1] %vm2153_vm8, %v18453_v47  ;;  %2160 = vst.msk [vmem:[#allocation2 + $0xc7] sm:$0x1] %vm2153_vm8, %v18453_v47 }
 0x196   : > { %18674 = vst [vmem:[#allocation33_spill] sm:$0xff] %v12232_v10  ;;  %v1367_v42 = vunpack.c.l.bf16 %v12232_v10  ;;  %v1368_v41 = vunpack.c.h.bf16 %v12232_v10  ;;  %v1313_v39 = vsel %vm1281_vm6, %v1280_v40, %v1215_v53  ;;  %v1213_v51 = vpop.permute.xlu0 %1212  ;;  %2584 = vrot.lane.b32.xlu0 %v12276_v12, %s11163_s14  ;;  %v12288_v21 = vld [vmem:[#allocation2 + $0x228] sm:$0xff]  ;;  %2161 = vst.msk [vmem:[#allocation2 + $0xe7] sm:$0x1] %vm2153_vm8, %v18453_v47  ;;  %v2353_v40 = vrot.slane %v12274_v37, 7 }
 0x197   : > { %v1312_v22 = vsel %vm1281_vm6, %v1279_v16, %v1213_v51  ;;  %v12286_v62 = vld [vmem:[#allocation2 + $0x230] sm:$0xff]  ;;  %2162 = vst.msk [vmem:[#allocation2 + $0x107] sm:$0x1] %vm2153_vm8, %v18453_v47  ;;  %2163 = vst.msk [vmem:[#allocation2 + $0x127] sm:$0x1] %vm2153_vm8, %v18453_v47  ;;  %v2579_v35 = vrot.slane %v12288_v21, 1 }
 0x198   : > { %v1399_v31 = vsub.f32 %v1310_v57, %v1367_v42  ;;  %v1400_v34 = vsub.f32 %v1311_v33, %v1368_v41  ;;  %v12242_v50 = vpack.c.bf16 %v1313_v39, %v1312_v22  ;;  %2164 = vst.msk [vmem:[#allocation2 + $0x147] sm:$0x1] %vm2153_vm8, %v18453_v47  ;;  %2165 = vst.msk [vmem:[#allocation2 + $0x167] sm:$0x1] %vm2153_vm8, %v18453_v47  ;;  %v2580_v46 = vrot.slane %v12286_v62, 1 }
 0x199   : > { %2654 = vrot.lane.b32.xlu1 %v12286_v62, %s11163_s14  ;;  %2166 = vst.msk [vmem:[#allocation2 + $0x187] sm:$0x1] %vm2153_vm8, %v18453_v47  ;;  %2167 = vst.msk [vmem:[#allocation2 + $0x1a7] sm:$0x1] %vm2153_vm8, %v18453_v47  ;;  %v18456_v53 = vrot.slane %v12276_v12, 7  ;;  %v2438_v16 = vrot.slane %v12286_v62, 7 }
 0x19a   : > { %18675 = vst [vmem:[#allocation34_spill] sm:$0xff] %v12242_v50  ;;  %v12244_v45 = vpack.c.bf16 %v1400_v34, %v1399_v31  ;;  %v1369_v19 = vunpack.c.l.bf16 %v12242_v50  ;;  %v1370_v63 = vunpack.c.h.bf16 %v12242_v50  ;;  %2652 = vrot.lane.b32.xlu0 %v12288_v21, %s11163_s14  ;;  %2168 = vst.msk [vmem:[#allocation2 + $0x1c7] sm:$0x1] %vm2153_vm8, %v18453_v47  ;;  %v2581_v57 = vsel %vm550_vm0, %v2579_v35, %v2580_v46  ;;  %v12462_v51 = vld [vmem:[%s18431_s2] ss:$0 sm:$0xff] }
 0x19b   : > { %2169 = vst.msk [vmem:[#allocation2 + $0x1e7] sm:$0x1] %vm2153_vm8, %v18453_v47  ;;  %2170 = vst.msk [vmem:[#allocation2 + $0x207] sm:$0x1] %vm2153_vm8, %v18453_v47  ;;  %v18455_v42 = vrot.slane %v12288_v21, 7  ;;  %v12452_v41 = vsel %vm2349_vm9, %v18456_v53, %v2353_v40 }
 0x19c   : > { %18676 = vst [vmem:[#allocation35_spill] sm:$0xff] %v12244_v45  ;;  %v1401_v26 = vsub.f32 %v1312_v22, %v1369_v19  ;;  %v1402_v7 = vsub.f32 %v1313_v39, %v1370_v63  ;;  %10128 = vmatprep.mubr.msk.bf16.mxu0 %vm1447_vm7, %v12244_v45  ;;  %2171 = vst.msk [vmem:[#allocation2 + $0x227] sm:$0x1] %vm2153_vm8, %v18453_v47  ;;  %v12467_v31 = vld [vmem:[%s18432_s3] ss:$0 sm:$0xff] }
 0x19d   : > { %2173 = vst.msk [vmem:[#allocation2 + $0x38] sm:$0x1] %vm2153_vm8, %v18453_v47  ;;  %2174 = vst.msk [vmem:[#allocation2 + $0x58] sm:$0x1] %vm2153_vm8, %v18453_v47  ;;  %v12457_v39 = vsel %vm2349_vm9, %v18455_v42, %v2438_v16 }
 0x19e   : > { %v12250_v27 = vpack.c.bf16 %v1402_v7, %v1401_v26  ;;  %2175 = vst.msk [vmem:[#allocation2 + $0x78] sm:$0x1] %vm2153_vm8, %v18453_v47  ;;  %2176 = vst.msk [vmem:[#allocation2 + $0x98] sm:$0x1] %vm2153_vm8, %v18453_v47 }
 0x19f   : > { %2177 = vst.msk [vmem:[#allocation2 + $0xb8] sm:$0x1] %vm2153_vm8, %v18453_v47  ;;  %2178 = vst.msk [vmem:[#allocation2 + $0xd8] sm:$0x1] %vm2153_vm8, %v18453_v47 }
 0x1a0   : > { %18677 = vst [vmem:[#allocation36_spill] sm:$0xff] %v12250_v27  ;;  %10129 = vmatmul.mubr.msk.bf16.gmra.mrb[28].mxu0 %vm1447_vm7, %v12250_v27  ;;  %2179 = vst.msk [vmem:[#allocation2 + $0xf8] sm:$0x1] %vm2153_vm8, %v18453_v47 }
 0x1a1   : > { %10142 = vmatprep.mubr.msk.bf16.mxu0 %vm1447_vm7, %v12017_v28  ;;  %2180 = vst.msk [vmem:[#allocation2 + $0x118] sm:$0x1] %vm2153_vm8, %v18453_v47  ;;  %2181 = vst.msk [vmem:[#allocation2 + $0x138] sm:$0x1] %vm2153_vm8, %v18453_v47 }
 0x1a2   : > { %2182 = vst.msk [vmem:[#allocation2 + $0x158] sm:$0x1] %vm2153_vm8, %v18453_v47  ;;  %2183 = vst.msk [vmem:[#allocation2 + $0x178] sm:$0x1] %vm2153_vm8, %v18453_v47 }
 0x1a3   : > { %2184 = vst.msk [vmem:[#allocation2 + $0x198] sm:$0x1] %vm2153_vm8, %v18453_v47  ;;  %2185 = vst.msk [vmem:[#allocation2 + $0x1b8] sm:$0x1] %vm2153_vm8, %v18453_v47 }
 0x1a4   : > { %2186 = vst.msk [vmem:[#allocation2 + $0x1d8] sm:$0x1] %vm2153_vm8, %v18453_v47  ;;  %2187 = vst.msk [vmem:[#allocation2 + $0x1f8] sm:$0x1] %vm2153_vm8, %v18453_v47 }
 0x1a5   : > { %2188 = vst.msk [vmem:[#allocation2 + $0x218] sm:$0x1] %vm2153_vm8, %v18453_v47  ;;  %2189 = vst.msk [vmem:[#allocation2 + $0x238] sm:$0x1] %vm2153_vm8, %v18453_v47  ;;  %vm4637_vm8 = vcmask 7168  }
 0x1a8   : > { %10143 = vmatmul.mubr.msk.bf16.vlgmr.msra.gmra.mrb[0].mxu0 %vm1447_vm7, %v12030_v61 }
 0x1a9   : > { %10175 = vmatpush3.bf16.msra.mxu0 %v11626_v36  ;;  %10146 = vmatprep.mubr.msk.bf16.mxu0 %vm1447_vm7, %v12060_v18  ;;  %v18678_v36 = vld [vmem:[#allocation8_spill] sm:$0xff] }
 0x1aa   : > { %10176 = vmatprep.subr.bf16.mxu0 %v11650_v59 }
 0x1ac   : > { %v2294_v29 = vld [vmem:[#allocation2 + $0x238] sm:$0xff] }
 0x1ad   : > { %10177 = vmatpush3.bf16.msra.mxu0 %v11650_v59  ;;  %v2495_v59 = vrot.slane %v12274_v37, 1  ;;  %v2582_v33 = vrot.slane %v2294_v29, 1 }
 0x1ae   : > { %10178 = vmatprep.subr.bf16.mxu0 %v11670_v44 }
 0x1af   : > { %v2583_v55 = vsel %vm550_vm0, %v2580_v46, %v2582_v33 }
 0x1b0   : > { %10147 = vmatmul.mubr.msk.bf16.gmra.mrb[4].mxu0 %vm1447_vm7, %v12071_v58 }
 0x1b1   : > { %10150 = vmatprep.mubr.msk.bf16.mxu0 %vm1447_vm7, %v12092_v9  ;;  %10179 = vmatpush3.bf16.msra.mxu0 %v11670_v44  ;;  %v2494_v44 = vrot.slane %v12276_v12, 1 }
 0x1b2   : > { %10180 = vmatprep.subr.bf16.mxu0 %v11698_v30 }
 0x1b3   : > { %v2496_v2 = vsel %vm550_vm0, %v2494_v44, %v2495_v59 }
 0x1b4   : > { %2692 = vrot.lane.b32.xlu0 %v2496_v2, %s11164_s15 }
 0x1b5   : > { %10181 = vmatpush3.bf16.msra.mxu0 %v11698_v30 }
 0x1b6   : > { %10928 = vmatprep.subr.msk.bf16.mxu0 %vm1496_vm4, %v11726_v6  ;;  %v2226_v6 = vld [vmem:[#allocation2 + $0x18] sm:$0xff] }
 0x1b7   : > { %v2497_v30 = vrot.slane %v2226_v6, 1 }
 0x1b8   : > { %10151 = vmatmul.mubr.msk.bf16.gmra.mrb[8].mxu0 %vm1447_vm7, %v12102_v43  ;;  %2760 = vrot.lane.b32.xlu0 %v2581_v57, %s11164_s15 }
 0x1b9   : > { %10154 = vmatprep.mubr.msk.bf16.mxu0 %vm1447_vm7, %v12120_v25  ;;  %10183 = vmatpush3.bf16.msra.mxu0 %v18678_v36  ;;  %v2498_v20 = vsel %vm550_vm0, %v2495_v59, %v2497_v30 }
 0x1ba   : > { %10362 = vmatprep.subr.bf16.mxu0 %v18453_v47  ;;  %2694 = vrot.lane.b32.xlu1 %v2498_v20, %s11164_s15 }
 0x1be   : > { %2762 = vrot.lane.b32.xlu1 %v2583_v55, %s11164_s15 }
 0x1c0   : > { %10155 = vmatmul.mubr.msk.bf16.gmra.mrb[12].mxu0 %vm1447_vm7, %v12130_v49 }
 0x1c1   : > { %10158 = vmatprep.mubr.msk.bf16.mxu0 %vm1447_vm7, %v12148_v32 }
 0x1c8   : > { %10159 = vmatmul.mubr.msk.bf16.gmra.mrb[16].mxu0 %vm1447_vm7, %v12158_v23 }
 0x1c9   : > { %10162 = vmatprep.mubr.msk.bf16.mxu0 %vm1447_vm7, %v12176_v17 }
 0x1d0   : > { %10163 = vmatmul.mubr.msk.bf16.gmra.mrb[20].mxu0 %vm1447_vm7, %v12186_v24 }
 0x1d1   : > { %10166 = vmatprep.mubr.msk.bf16.mxu0 %vm1447_vm7, %v12204_v8 }
 0x1d8   : > { %10167 = vmatmul.mubr.msk.bf16.gmra.mrb[24].mxu0 %vm1447_vm7, %v12214_v0 }
 0x1d9   : > { %10170 = vmatprep.mubr.msk.bf16.mxu0 %vm1447_vm7, %v12232_v10 }
 0x1e0   : > { %10171 = vmatmul.mubr.msk.bf16.gmra.mrb[28].mxu0 %vm1447_vm7, %v12242_v50 }
 0x1e1   : > { %10184 = vmatprep.mubr.msk.bf16.mxu0 %vm1447_vm7, %v12017_v28 }
 0x1e8   : > { %10185 = vmatmul.mubr.msk.bf16.vlgmr.msra.gmra.mrb[0].mxu0 %vm1447_vm7, %v12030_v61  ;;  %v2246_v61 = vld [vmem:[#allocation2 + $0xb8] sm:$0xff] }
 0x1e9   : > { %10188 = vmatprep.mubr.msk.bf16.mxu0 %vm1447_vm7, %v12060_v18  ;;  %v2522_v28 = vrot.slane %v2246_v61, 1 }
 0x1f0   : > { %10189 = vmatmul.mubr.msk.bf16.gmra.mrb[4].mxu0 %vm1447_vm7, %v12071_v58 }
 0x1f1   : > { %10192 = vmatprep.mubr.msk.bf16.mxu0 %vm1447_vm7, %v12092_v9 }
 0x1f8   : > { %10193 = vmatmul.mubr.msk.bf16.gmra.mrb[8].mxu0 %vm1447_vm7, %v12102_v43 }
 0x1f9   : > { %10196 = vmatprep.mubr.msk.bf16.mxu0 %vm1447_vm7, %v12120_v25 }
 0x200   : > { %10197 = vmatmul.mubr.msk.bf16.gmra.mrb[12].mxu0 %vm1447_vm7, %v12130_v49 }
 0x201   : > { %10200 = vmatprep.mubr.msk.bf16.mxu0 %vm1447_vm7, %v12148_v32 }
 0x208   : > { %10201 = vmatmul.mubr.msk.bf16.gmra.mrb[16].mxu0 %vm1447_vm7, %v12158_v23 }
 0x209   : > { %10204 = vmatprep.mubr.msk.bf16.mxu0 %vm1447_vm7, %v12176_v17 }
 0x210   : > { %10205 = vmatmul.mubr.msk.bf16.gmra.mrb[20].mxu0 %vm1447_vm7, %v12186_v24  ;;  %v2238_v24 = vld [vmem:[#allocation2 + $0x78] sm:$0xff] }
 0x211   : > { %10208 = vmatprep.mubr.msk.bf16.mxu0 %vm1447_vm7, %v12204_v8  ;;  %v2512_v17 = vrot.slane %v2238_v24, 1 }
 0x218   : > { %10209 = vmatmul.mubr.msk.bf16.gmra.mrb[24].mxu0 %vm1447_vm7, %v12214_v0 }
 0x219   : > { %10212 = vmatprep.mubr.msk.bf16.mxu0 %vm1447_vm7, %v12232_v10 }
 0x220   : > { %10213 = vmatmul.mubr.msk.bf16.gmra.mrb[28].mxu0 %vm1447_vm7, %v12242_v50 }
 0x2bb   : > { %v10186_v22 = vpop.f32.mrb[0].mxu0 }
 0x2bc   : > { %v2043_v34 = vmul.f32 %v10186_v22, %v12462_v51  ;;  %v1907_v19 = vpop.f32.mrb[1].mxu0 }
 0x2bd   : > { %v2041_v63 = vmul.f32 %v12462_v51, %v1907_v19  ;;  %v10187_v26 = vpop.f32.mrb[2].mxu0 }
 0x2be   : > { %v2082_v7 = vadd.f32 %v12467_v31, %v2043_v34  ;;  %v2044_v37 = vmul.f32 %v10187_v26, %v12462_v51  ;;  %v1910_v62 = vpop.f32.mrb[3].mxu0 }
 0x2bf   : > { %v2080_v36 = vadd.f32 %v12467_v31, %v2041_v63  ;;  %v2042_v59 = vmul.f32 %v12462_v51, %v1910_v62 }
 0x2c0   : > { %v2114_v44 = vmax.f32 %v2082_v7, 0.0  ;;  %v2083_v6 = vadd.f32 %v12467_v31, %v2044_v37 }
 0x2c1   : > { %v2112_v30 = vmax.f32 %v2080_v36, 0.0  ;;  %v2081_v46 = vadd.f32 %v12467_v31, %v2042_v59 }
 0x2c2   : > { %2193 = vst.msk [vmem:[#allocation2 + $0x48] sm:$0xff] %vm948_vm2, %v2114_v44  ;;  %v2115_v35 = vmax.f32 %v2083_v6, 0.0 }
 0x2c3   : > { %2191 = vst.msk [vmem:[#allocation2 + $0x28] sm:$0xff] %vm948_vm2, %v2112_v30  ;;  %v2113_v20 = vmax.f32 %v2081_v46, 0.0  ;;  %v10190_v2 = vpop.f32.mrb[4].mxu0 }
 0x2c4   : > { %2194 = vst.msk [vmem:[#allocation2 + $0x50] sm:$0xff] %vm948_vm2, %v2115_v35  ;;  %v2047_v29 = vmul.f32 %v10190_v2, %v12462_v51  ;;  %v1923_v33 = vpop.f32.mrb[5].mxu0 }
 0x2c5   : > { %2192 = vst.msk [vmem:[#allocation2 + $0x30] sm:$0xff] %vm948_vm2, %v2113_v20  ;;  %v2045_v55 = vmul.f32 %v12462_v51, %v1923_v33  ;;  %v10191_v57 = vpop.f32.mrb[6].mxu0 }
 0x2c6   : > { %v2086_v40 = vadd.f32 %v12467_v31, %v2047_v29  ;;  %v2048_v16 = vmul.f32 %v10191_v57, %v12462_v51  ;;  %v1926_v22 = vpop.f32.mrb[7].mxu0  ;;  %v2234_v29 = vld [vmem:[#allocation2 + $0x58] sm:$0xff] }
 0x2c7   : > { %v2084_v34 = vadd.f32 %v12467_v31, %v2045_v55  ;;  %v2046_v19 = vmul.f32 %v12462_v51, %v1926_v22 }
 0x2c8   : > { %v2118_v63 = vmax.f32 %v2086_v40, 0.0  ;;  %v2087_v26 = vadd.f32 %v12467_v31, %v2048_v16 }
 0x2c9   : > { %v2116_v7 = vmax.f32 %v2084_v34, 0.0  ;;  %v2085_v37 = vadd.f32 %v12467_v31, %v2046_v19  ;;  %v12489_v62 = vld [vmem:[#allocation2 + $0x48] sm:$0xff] }
 0x2ca   : > { %2197 = vst.msk [vmem:[#allocation2 + $0x88] sm:$0xff] %vm948_vm2, %v2118_v63  ;;  %v2119_v36 = vmax.f32 %v2087_v26, 0.0  ;;  %2592 = vrot.lane.b32.xlu0 %v12489_v62, %s11163_s14  ;;  %v12495_v30 = vld [vmem:[#allocation2 + $0x28] sm:$0xff]  ;;  %v18458_v16 = vrot.slane %v12489_v62, 7  ;;  %v2504_v26 = vrot.slane %v12489_v62, 1 }
 0x2cb   : > { %2195 = vst.msk [vmem:[#allocation2 + $0x68] sm:$0xff] %vm948_vm2, %v2116_v7  ;;  %v2117_v59 = vmax.f32 %v2085_v37, 0.0  ;;  %v10194_v44 = vpop.f32.mrb[8].mxu0  ;;  %v2233_v6 = vld [vmem:[#allocation2 + $0x50] sm:$0xff]  ;;  %v18457_v19 = vrot.slane %v12495_v30, 7 }
 0x2cc   : > { %2198 = vst.msk [vmem:[#allocation2 + $0x90] sm:$0xff] %vm948_vm2, %v2119_v36  ;;  %v2051_v46 = vmul.f32 %v10194_v44, %v12462_v51  ;;  %2594 = vrot.lane.b32.xlu1 %v2233_v6, %s11163_s14  ;;  %v2363_v35 = vrot.slane %v2233_v6, 7  ;;  %v1939_v20 = vpop.f32.mrb[9].mxu0  ;;  %v2229_v2 = vld [vmem:[#allocation2 + $0x30] sm:$0xff]  ;;  %v2505_v33 = vrot.slane %v2233_v6, 1  ;;  %v2507_v36 = vrot.slane %v2234_v29, 1 }
 0x2cd   : > { %2196 = vst.msk [vmem:[#allocation2 + $0x70] sm:$0xff] %vm948_vm2, %v2117_v59  ;;  %v2049_v55 = vmul.f32 %v12462_v51, %v1939_v20  ;;  %v10195_v57 = vpop.f32.mrb[10].mxu0  ;;  %v2358_v40 = vrot.slane %v2229_v2, 7  ;;  %v2230_v59 = vld [vmem:[#allocation2 + $0x38] sm:$0xff]  ;;  %v2500_v29 = vrot.slane %v2229_v2, 1 }
 0x2ce   : > { %v2090_v22 = vadd.f32 %v12467_v31, %v2051_v46  ;;  %v2052_v34 = vmul.f32 %v10195_v57, %v12462_v51  ;;  %2588 = vrot.lane.b32.xlu0 %v12495_v30, %s11163_s14  ;;  %v1942_v63 = vpop.f32.mrb[11].mxu0  ;;  %v12516_v46 = vsel %vm2349_vm9, %v18458_v16, %v2363_v35  ;;  %v2499_v35 = vrot.slane %v12495_v30, 1 }
 0x2cf   : > { %v2088_v7 = vadd.f32 %v12467_v31, %v2049_v55  ;;  %v2050_v37 = vmul.f32 %v12462_v51, %v1942_v63  ;;  %v12521_v20 = vsel %vm2349_vm9, %v18457_v19, %v2358_v40  ;;  %v2502_v63 = vrot.slane %v2230_v59, 1 }
 0x2d0   : > { %v2122_v44 = vmax.f32 %v2090_v22, 0.0  ;;  %v2091_v6 = vadd.f32 %v12467_v31, %v2052_v34  ;;  %2590 = vrot.lane.b32.xlu1 %v2229_v2, %s11163_s14  ;;  %v2506_v22 = vsel %vm550_vm0, %v2504_v26, %v2505_v33  ;;  %v2508_v40 = vsel %vm550_vm0, %v2505_v33, %v2507_v36 }
 0x2d1   : > { %v2120_v55 = vmax.f32 %v2088_v7, 0.0  ;;  %v2089_v57 = vadd.f32 %v12467_v31, %v2050_v37  ;;  %v12530_v7 = vld [vmem:[#allocation2 + $0x88] sm:$0xff]  ;;  %v2503_v19 = vsel %vm550_vm0, %v2500_v29, %v2502_v63 }
 0x2d2   : > { %2201 = vst.msk [vmem:[#allocation2 + $0xc8] sm:$0xff] %vm948_vm2, %v2122_v44  ;;  %v2123_v34 = vmax.f32 %v2091_v6, 0.0  ;;  %2700 = vrot.lane.b32.xlu0 %v2506_v22, %s11164_s15  ;;  %v12534_v2 = vld [vmem:[#allocation2 + $0x68] sm:$0xff] }
 0x2d3   : > { %2199 = vst.msk [vmem:[#allocation2 + $0xa8] sm:$0xff] %vm948_vm2, %v2120_v55  ;;  %v2121_v47 = vmax.f32 %v2089_v57, 0.0  ;;  %v10198_v42 = vpop.f32.mrb[12].mxu0  ;;  %v12532_v37 = vld [vmem:[#allocation2 + $0x90] sm:$0xff]  ;;  %v2501_v55 = vsel %vm550_vm0, %v2499_v35, %v2500_v29  ;;  %v18459_v53 = vrot.slane %v12534_v2, 7 }
 0x2d4   : > { %2202 = vst.msk [vmem:[#allocation2 + $0xd0] sm:$0xff] %vm948_vm2, %v2123_v34  ;;  %v2055_v26 = vmul.f32 %v10198_v42, %v12462_v51  ;;  %2702 = vrot.lane.b32.xlu1 %v2508_v40, %s11164_s15  ;;  %v1955_v59 = vpop.f32.mrb[13].mxu0  ;;  %v2373_v44 = vrot.slane %v12532_v37, 7  ;;  %v12540_v6 = vld [vmem:[#allocation2 + $0x70] sm:$0xff]  ;;  %v18460_v40 = vrot.slane %v12530_v7, 7 }
 0x2d5   : > { %2200 = vst.msk [vmem:[#allocation2 + $0xb0] sm:$0xff] %vm948_vm2, %v2121_v47  ;;  %v2053_v33 = vmul.f32 %v12462_v51, %v1955_v59  ;;  %v10199_v36 = vpop.f32.mrb[14].mxu0  ;;  %v2368_v57 = vrot.slane %v12540_v6, 7 }
 0x2d6   : > { %v2094_v22 = vadd.f32 %v12467_v31, %v2055_v26  ;;  %v2056_v42 = vmul.f32 %v10199_v36, %v12462_v51  ;;  %2696 = vrot.lane.b32.xlu0 %v2501_v55, %s11164_s15  ;;  %v1958_v34 = vpop.f32.mrb[15].mxu0  ;;  %v12559_v26 = vsel %vm2349_vm9, %v18460_v40, %v2373_v44 }
 0x2d7   : > { %v2092_v47 = vadd.f32 %v12467_v31, %v2053_v33  ;;  %v2054_v59 = vmul.f32 %v12462_v51, %v1958_v34  ;;  %v12564_v36 = vsel %vm2349_vm9, %v18459_v53, %v2368_v57  ;;  %v2242_v34 = vld [vmem:[#allocation2 + $0x98] sm:$0xff] }
 0x2d8   : > { %v2126_v35 = vmax.f32 %v2094_v22, 0.0  ;;  %v2095_v16 = vadd.f32 %v12467_v31, %v2056_v42  ;;  %2698 = vrot.lane.b32.xlu1 %v2503_v19, %s11164_s15  ;;  %v2517_v10 = vrot.slane %v2242_v34, 1  ;;  %v2510_v34 = vrot.slane %v12540_v6, 1 }
 0x2d9   : > { %v2124_v33 = vmax.f32 %v2092_v47, 0.0  ;;  %v2093_v55 = vadd.f32 %v12467_v31, %v2054_v59  ;;  %v12571_v44 = vld [vmem:[#allocation2 + $0xc8] sm:$0xff] }
 0x2da   : > { %2205 = vst.msk [vmem:[#allocation2 + $0x108] sm:$0xff] %vm948_vm2, %v2126_v35  ;;  %v2127_v29 = vmax.f32 %v2095_v16, 0.0  ;;  %2600 = vrot.lane.b32.xlu0 %v12530_v7, %s11163_s14  ;;  %v12575_v42 = vld [vmem:[#allocation2 + $0xa8] sm:$0xff]  ;;  %v2515_v35 = vrot.slane %v12532_v37, 1  ;;  %v18468_v50 = vrot.slane %v12571_v44, 7  ;;  %v2513_v32 = vsel %vm550_vm0, %v2510_v34, %v2512_v17 }
 0x2db   : > { %2203 = vst.msk [vmem:[#allocation2 + $0xe8] sm:$0xff] %vm948_vm2, %v2124_v33  ;;  %v2125_v19 = vmax.f32 %v2093_v55, 0.0  ;;  %v10202_v63 = vpop.f32.mrb[16].mxu0  ;;  %v12573_v22 = vld [vmem:[#allocation2 + $0xd0] sm:$0xff]  ;;  %v18469_v0 = vrot.slane %v12575_v42, 7 }
 0x2dc   : > { %2206 = vst.msk [vmem:[#allocation2 + $0x110] sm:$0xff] %vm948_vm2, %v2127_v29  ;;  %v2059_v57 = vmul.f32 %v10202_v63, %v12462_v51  ;;  %2602 = vrot.lane.b32.xlu1 %v12532_v37, %s11163_s14  ;;  %v1971_v16 = vpop.f32.mrb[17].mxu0  ;;  %v2383_v47 = vrot.slane %v12573_v22, 7  ;;  %v12582_v59 = vld [vmem:[#allocation2 + $0xb0] sm:$0xff] }
 0x2dd   : > { %2204 = vst.msk [vmem:[#allocation2 + $0xf0] sm:$0xff] %vm948_vm2, %v2125_v19  ;;  %v2057_v33 = vmul.f32 %v12462_v51, %v1971_v16  ;;  %v10203_v55 = vpop.f32.mrb[18].mxu0  ;;  %v2378_v29 = vrot.slane %v12582_v59, 7  ;;  %v2514_v19 = vrot.slane %v12530_v7, 1 }
 0x2de   : > { %v2098_v63 = vadd.f32 %v12467_v31, %v2059_v57  ;;  %v2060_v53 = vmul.f32 %v10203_v55, %v12462_v51  ;;  %2596 = vrot.lane.b32.xlu0 %v12534_v2, %s11163_s14  ;;  %v1974_v40 = vpop.f32.mrb[19].mxu0  ;;  %v12603_v55 = vsel %vm2349_vm9, %v18468_v50, %v2383_v47  ;;  %v2509_v47 = vrot.slane %v12534_v2, 1 }
 0x2df   : > { %v2096_v37 = vadd.f32 %v12467_v31, %v2057_v33  ;;  %v2058_v16 = vmul.f32 %v12462_v51, %v1974_v40  ;;  %v12608_v23 = vsel %vm2349_vm9, %v18469_v0, %v2378_v29 }
 0x2e0   : > { %v2130_v8 = vmax.f32 %v2098_v63, 0.0  ;;  %v2099_v57 = vadd.f32 %v12467_v31, %v2060_v53  ;;  %2598 = vrot.lane.b32.xlu1 %v12540_v6, %s11163_s14  ;;  %v2516_v53 = vsel %vm550_vm0, %v2514_v19, %v2515_v35 }
 0x2e1   : > { %v2128_v33 = vmax.f32 %v2096_v37, 0.0  ;;  %v2097_v40 = vadd.f32 %v12467_v31, %v2058_v16  ;;  %v2518_v37 = vsel %vm550_vm0, %v2515_v35, %v2517_v10  ;;  %v12618_v0 = vld [vmem:[#allocation2 + $0x108] sm:$0xff] }
 0x2e2   : > { %2209 = vst.msk [vmem:[#allocation2 + $0x148] sm:$0xff] %vm948_vm2, %v2130_v8  ;;  %v2131_v63 = vmax.f32 %v2099_v57, 0.0  ;;  %2708 = vrot.lane.b32.xlu0 %v2516_v53, %s11164_s15  ;;  %v12622_v6 = vld [vmem:[#allocation2 + $0xe8] sm:$0xff] }
 0x2e3   : > { %2207 = vst.msk [vmem:[#allocation2 + $0x128] sm:$0xff] %vm948_vm2, %v2128_v33  ;;  %v2129_v50 = vmax.f32 %v2097_v40, 0.0  ;;  %v10206_v29 = vpop.f32.mrb[20].mxu0  ;;  %v12620_v16 = vld [vmem:[#allocation2 + $0x110] sm:$0xff]  ;;  %v2511_v33 = vsel %vm550_vm0, %v2509_v47, %v2510_v34  ;;  %v18473_v49 = vrot.slane %v12622_v6, 7 }
 0x2e4   : > { %2210 = vst.msk [vmem:[#allocation2 + $0x150] sm:$0xff] %vm948_vm2, %v2131_v63  ;;  %v2063_v8 = vmul.f32 %v10206_v29, %v12462_v51  ;;  %2710 = vrot.lane.b32.xlu1 %v2518_v37, %s11164_s15  ;;  %v1987_v24 = vpop.f32.mrb[21].mxu0  ;;  %v2393_v19 = vrot.slane %v12620_v16, 7  ;;  %v12628_v57 = vld [vmem:[#allocation2 + $0xf0] sm:$0xff]  ;;  %v18474_v37 = vrot.slane %v12618_v0, 7 }
 0x2e5   : > { %2208 = vst.msk [vmem:[#allocation2 + $0x130] sm:$0xff] %vm948_vm2, %v2129_v50  ;;  %v2061_v10 = vmul.f32 %v12462_v51, %v1987_v24  ;;  %v10207_v35 = vpop.f32.mrb[22].mxu0  ;;  %v2388_v40 = vrot.slane %v12628_v57, 7 }
 0x2e6   : > { %v2102_v53 = vadd.f32 %v12467_v31, %v2063_v8  ;;  %v2064_v63 = vmul.f32 %v10207_v35, %v12462_v51  ;;  %2704 = vrot.lane.b32.xlu0 %v2511_v33, %s11164_s15  ;;  %v1990_v29 = vpop.f32.mrb[23].mxu0  ;;  %v12647_v8 = vsel %vm2349_vm9, %v18474_v37, %v2393_v19 }
 0x2e7   : > { %v2100_v50 = vadd.f32 %v12467_v31, %v2061_v10  ;;  %v2062_v24 = vmul.f32 %v12462_v51, %v1990_v29  ;;  %v12652_v35 = vsel %vm2349_vm9, %v18473_v49, %v2388_v40  ;;  %v2250_v29 = vld [vmem:[#allocation2 + $0xd8] sm:$0xff] }
 0x2e8   : > { %v2134_v47 = vmax.f32 %v2102_v53, 0.0  ;;  %v2103_v43 = vadd.f32 %v12467_v31, %v2064_v63  ;;  %2706 = vrot.lane.b32.xlu1 %v2513_v32, %s11164_s15  ;;  %v2527_v9 = vrot.slane %v2250_v29, 1  ;;  %v2520_v29 = vrot.slane %v12582_v59, 1 }
 0x2e9   : > { %v2132_v10 = vmax.f32 %v2100_v50, 0.0  ;;  %v2101_v33 = vadd.f32 %v12467_v31, %v2062_v24  ;;  %v12659_v19 = vld [vmem:[#allocation2 + $0x148] sm:$0xff] }
 0x2ea   : > { %2213 = vst.msk [vmem:[#allocation2 + $0x188] sm:$0xff] %vm948_vm2, %v2134_v47  ;;  %v2135_v17 = vmax.f32 %v2103_v43, 0.0  ;;  %2608 = vrot.lane.b32.xlu0 %v12571_v44, %s11163_s14  ;;  %v12663_v63 = vld [vmem:[#allocation2 + $0x128] sm:$0xff]  ;;  %v2525_v47 = vrot.slane %v12573_v22, 1  ;;  %v18482_v25 = vrot.slane %v12659_v19, 7  ;;  %v2523_v45 = vsel %vm550_vm0, %v2520_v29, %v2522_v28 }
 0x2eb   : > { %2211 = vst.msk [vmem:[#allocation2 + $0x168] sm:$0xff] %vm948_vm2, %v2132_v10  ;;  %v2133_v32 = vmax.f32 %v2101_v33, 0.0  ;;  %v10210_v34 = vpop.f32.mrb[24].mxu0  ;;  %v12661_v53 = vld [vmem:[#allocation2 + $0x150] sm:$0xff]  ;;  %v18483_v58 = vrot.slane %v12663_v63, 7 }
 0x2ec   : > { %2214 = vst.msk [vmem:[#allocation2 + $0x190] sm:$0xff] %vm948_vm2, %v2135_v17  ;;  %v2067_v40 = vmul.f32 %v10210_v34, %v12462_v51  ;;  %2610 = vrot.lane.b32.xlu1 %v12573_v22, %s11163_s14  ;;  %v2003_v43 = vpop.f32.mrb[25].mxu0  ;;  %v2403_v50 = vrot.slane %v12661_v53, 7  ;;  %v12670_v24 = vld [vmem:[#allocation2 + $0x130] sm:$0xff] }
 0x2ed   : > { %2212 = vst.msk [vmem:[#allocation2 + $0x170] sm:$0xff] %vm948_vm2, %v2133_v32  ;;  %v2065_v10 = vmul.f32 %v12462_v51, %v2003_v43  ;;  %v10211_v33 = vpop.f32.mrb[26].mxu0  ;;  %v2398_v17 = vrot.slane %v12670_v24, 7  ;;  %v2524_v32 = vrot.slane %v12571_v44, 1 }
 0x2ee   : > { %v2106_v34 = vadd.f32 %v12467_v31, %v2067_v40  ;;  %v2068_v49 = vmul.f32 %v10211_v33, %v12462_v51  ;;  %2604 = vrot.lane.b32.xlu0 %v12575_v42, %s11163_s14  ;;  %v2006_v37 = vpop.f32.mrb[27].mxu0  ;;  %v12691_v33 = vsel %vm2349_vm9, %v18482_v25, %v2403_v50  ;;  %v2519_v50 = vrot.slane %v12575_v42, 1 }
 0x2ef   : > { %v2104_v22 = vadd.f32 %v12467_v31, %v2065_v10  ;;  %v2066_v43 = vmul.f32 %v12462_v51, %v2006_v37  ;;  %v12696_v27 = vsel %vm2349_vm9, %v18483_v58, %v2398_v17 }
 0x2f0   : > { %v2138_v18 = vmax.f32 %v2106_v34, 0.0  ;;  %v2107_v40 = vadd.f32 %v12467_v31, %v2068_v49  ;;  %2606 = vrot.lane.b32.xlu1 %v12582_v59, %s11163_s14  ;;  %v2526_v49 = vsel %vm550_vm0, %v2524_v32, %v2525_v47 }
 0x2f1   : > { %v2136_v10 = vmax.f32 %v2104_v22, 0.0  ;;  %v2105_v37 = vadd.f32 %v12467_v31, %v2066_v43  ;;  %v2528_v22 = vsel %vm550_vm0, %v2525_v47, %v2527_v9  ;;  %v12706_v58 = vld [vmem:[#allocation2 + $0x188] sm:$0xff] }
 0x2f2   : > { %2217 = vst.msk [vmem:[#allocation2 + $0x1c8] sm:$0xff] %vm948_vm2, %v2138_v18  ;;  %v2139_v34 = vmax.f32 %v2107_v40, 0.0  ;;  %2716 = vrot.lane.b32.xlu0 %v2526_v49, %s11164_s15  ;;  %v12710_v59 = vld [vmem:[#allocation2 + $0x168] sm:$0xff] }
 0x2f3   : > { %2215 = vst.msk [vmem:[#allocation2 + $0x1a8] sm:$0xff] %vm948_vm2, %v2136_v10  ;;  %v2137_v25 = vmax.f32 %v2105_v37, 0.0  ;;  %v10214_v17 = vpop.f32.mrb[28].mxu0  ;;  %v12708_v43 = vld [vmem:[#allocation2 + $0x190] sm:$0xff]  ;;  %v2521_v10 = vsel %vm550_vm0, %v2519_v50, %v2520_v29  ;;  %v18487_v4 = vrot.slane %v12710_v59, 7 }
 0x2f4   : > { %2218 = vst.msk [vmem:[#allocation2 + $0x1d0] sm:$0xff] %vm948_vm2, %v2139_v34  ;;  %v2071_v18 = vmul.f32 %v10214_v17, %v12462_v51  ;;  %2718 = vrot.lane.b32.xlu1 %v2528_v22, %s11164_s15  ;;  %v2019_v61 = vpop.f32.mrb[29].mxu0  ;;  %v2413_v32 = vrot.slane %v12708_v43, 7  ;;  %v12716_v40 = vld [vmem:[#allocation2 + $0x170] sm:$0xff]  ;;  %v18490_v22 = vrot.slane %v12706_v58, 7 }
 0x2f5   : > { %2216 = vst.msk [vmem:[#allocation2 + $0x1b0] sm:$0xff] %vm948_vm2, %v2137_v25  ;;  %v2069_v9 = vmul.f32 %v12462_v51, %v2019_v61  ;;  %v10215_v47 = vpop.f32.mrb[30].mxu0  ;;  %v2408_v37 = vrot.slane %v12716_v40, 7 }
 0x2f6   : > { %v2110_v49 = vadd.f32 %v12467_v31, %v2071_v18  ;;  %v2072_v34 = vmul.f32 %v10215_v47, %v12462_v51  ;;  %2712 = vrot.lane.b32.xlu0 %v2521_v10, %s11164_s15  ;;  %v2022_v17 = vpop.f32.mrb[31].mxu0  ;;  %v12735_v18 = vsel %vm2349_vm9, %v18490_v22, %v2413_v32 }
 0x2f7   : > { %v2108_v25 = vadd.f32 %v12467_v31, %v2069_v9  ;;  %v2070_v61 = vmul.f32 %v12462_v51, %v2022_v17  ;;  %v12740_v47 = vsel %vm2349_vm9, %v18487_v4, %v2408_v37 }
 0x2f8   : > { %v2142_v50 = vmax.f32 %v2110_v49, 0.0  ;;  %v2111_v60 = vadd.f32 %v12467_v31, %v2072_v34  ;;  %2714 = vrot.lane.b32.xlu1 %v2523_v45, %s11164_s15  ;;  %v2535_v34 = vrot.slane %v12620_v16, 1 }
 0x2f9   : > { %v2140_v9 = vmax.f32 %v2108_v25, 0.0  ;;  %v2109_v51 = vadd.f32 %v12467_v31, %v2070_v61  ;;  %v12743_v10 = vld [vmem:[#allocation2 + $0x1c8] sm:$0xff]  ;;  %v2258_v31 = vld [vmem:[#allocation2 + $0x118] sm:$0xff] }
 0x2fa   : > { %2221 = vst.msk [vmem:[#allocation2 + $0x208] sm:$0xff] %vm948_vm2, %v2142_v50  ;;  %v2143_v28 = vmax.f32 %v2111_v60, 0.0  ;;  %2616 = vrot.lane.b32.xlu0 %v12618_v0, %s11163_s14  ;;  %v12748_v45 = vld [vmem:[#allocation2 + $0x1a8] sm:$0xff]  ;;  %v18488_v37 = vrot.slane %v12743_v10, 7  ;;  %v2534_v50 = vrot.slane %v12618_v0, 1 }
 0x2fb   : > { %2219 = vst.msk [vmem:[#allocation2 + $0x1e8] sm:$0xff] %vm948_vm2, %v2140_v9  ;;  %v2141_v29 = vmax.f32 %v2109_v51, 0.0  ;;  %v12751_v32 = vld [vmem:[#allocation2 + $0x1d0] sm:$0xff]  ;;  %v18489_v17 = vrot.slane %v12748_v45, 7  ;;  %v2537_v9 = vrot.slane %v2258_v31, 1  ;;  %v2529_v31 = vrot.slane %v12622_v6, 1 }
 0x2fc   : > { %2222 = vst.msk [vmem:[#allocation2 + $0x210] sm:$0xff] %vm948_vm2, %v2143_v28  ;;  %2618 = vrot.lane.b32.xlu1 %v12620_v16, %s11163_s14  ;;  %v2423_v60 = vrot.slane %v12751_v32, 7  ;;  %v12758_v49 = vld [vmem:[#allocation2 + $0x1b0] sm:$0xff]  ;;  %v2254_v16 = vld [vmem:[#allocation2 + $0xf8] sm:$0xff]  ;;  %v2530_v28 = vrot.slane %v12628_v57, 1 }
 0x2fd   : > { %2220 = vst.msk [vmem:[#allocation2 + $0x1f0] sm:$0xff] %vm948_vm2, %v2141_v29  ;;  %v2418_v25 = vrot.slane %v12758_v49, 7  ;;  %v2536_v29 = vsel %vm550_vm0, %v2534_v50, %v2535_v34 }
 0x2fe   : > { %2612 = vrot.lane.b32.xlu0 %v12622_v6, %s11163_s14  ;;  %v12769_v61 = vsel %vm2349_vm9, %v18488_v37, %v2423_v60  ;;  %v2538_v37 = vsel %vm550_vm0, %v2535_v34, %v2537_v9  ;;  %v2531_v54 = vsel %vm550_vm0, %v2529_v31, %v2530_v28 }
 0x2ff   : > { %v12775_v51 = vsel %vm2349_vm9, %v18489_v17, %v2418_v25  ;;  %v2532_v25 = vrot.slane %v2254_v16, 1  ;;  %v2545_v16 = vrot.slane %v12661_v53, 1 }
 0x300   : > { %2614 = vrot.lane.b32.xlu1 %v12628_v57, %s11163_s14 }
 0x301   : > { %v12781_v4 = vld [vmem:[#allocation2 + $0x208] sm:$0xff] }
 0x302   : > { %2724 = vrot.lane.b32.xlu0 %v2536_v29, %s11164_s15  ;;  %v12784_v60 = vld [vmem:[#allocation2 + $0x1e8] sm:$0xff]  ;;  %v18494_v22 = vrot.slane %v12781_v4, 7 }
 0x303   : > { %v12788_v17 = vld [vmem:[#allocation2 + $0x210] sm:$0xff]  ;;  %v18493_v29 = vrot.slane %v12784_v60, 7  ;;  %v2569_v56 = vrot.slane %v12784_v60, 1 }
 0x304   : > { %2726 = vrot.lane.b32.xlu1 %v2538_v37, %s11164_s15  ;;  %v2433_v57 = vrot.slane %v12788_v17, 7  ;;  %v12793_v50 = vld [vmem:[#allocation2 + $0x1f0] sm:$0xff]  ;;  %v2533_v37 = vsel %vm550_vm0, %v2530_v28, %v2532_v25  ;;  %v2544_v28 = vrot.slane %v12659_v19, 1  ;;  %v2540_v25 = vrot.slane %v12670_v24, 1 }
 0x305   : > { %v2428_v1 = vrot.slane %v12793_v50, 7  ;;  %v2570_v11 = vrot.slane %v12793_v50, 1 }
 0x306   : > { %2720 = vrot.lane.b32.xlu0 %v2531_v54, %s11164_s15  ;;  %v12802_v34 = vsel %vm2349_vm9, %v18494_v22, %v2433_v57  ;;  %v2266_v54 = vld [vmem:[#allocation2 + $0x158] sm:$0xff]  ;;  %v2546_v57 = vsel %vm550_vm0, %v2544_v28, %v2545_v16  ;;  %v2554_v28 = vrot.slane %v12706_v58, 1 }
 0x307   : > { %v12808_v9 = vsel %vm2349_vm9, %v18493_v29, %v2428_v1  ;;  %v2547_v31 = vrot.slane %v2266_v54, 1  ;;  %v2262_v1 = vld [vmem:[#allocation2 + $0x138] sm:$0xff]  ;;  %v2571_v3 = vsel %vm550_vm0, %v2569_v56, %v2570_v11 }
 0x308   : > { %2722 = vrot.lane.b32.xlu1 %v2533_v37, %s11164_s15  ;;  %v2539_v37 = vrot.slane %v12663_v63, 1  ;;  %v2542_v29 = vrot.slane %v2262_v1, 1 }
 0x30a   : > { %2624 = vrot.lane.b32.xlu0 %v12659_v19, %s11163_s14  ;;  %v2541_v22 = vsel %vm550_vm0, %v2539_v37, %v2540_v25  ;;  %v2543_v54 = vsel %vm550_vm0, %v2540_v25, %v2542_v29  ;;  %v2550_v29 = vrot.slane %v12716_v40, 1  ;;  %v2549_v25 = vrot.slane %v12710_v59, 1 }
 0x30c   : > { %2626 = vrot.lane.b32.xlu1 %v12661_v53, %s11163_s14  ;;  %v2548_v53 = vsel %vm550_vm0, %v2545_v16, %v2547_v31  ;;  %v2555_v16 = vrot.slane %v12708_v43, 1  ;;  %v2551_v37 = vsel %vm550_vm0, %v2549_v25, %v2550_v29  ;;  %v2560_v25 = vrot.slane %v12758_v49, 1 }
 0x30e   : > { %2620 = vrot.lane.b32.xlu0 %v12663_v63, %s11163_s14  ;;  %v2556_v1 = vsel %vm550_vm0, %v2554_v28, %v2555_v16  ;;  %v2565_v28 = vrot.slane %v12751_v32, 1 }
 0x310   : > { %2622 = vrot.lane.b32.xlu1 %v12670_v24, %s11163_s14  ;;  %v2274_v24 = vld [vmem:[#allocation2 + $0x198] sm:$0xff] }
 0x311   : > { %v2557_v31 = vrot.slane %v2274_v24, 1 }
 0x312   : > { %2732 = vrot.lane.b32.xlu0 %v2546_v57, %s11164_s15 }
 0x314   : > { %2734 = vrot.lane.b32.xlu1 %v2548_v53, %s11164_s15  ;;  %v12849_v53 = vpop.permute.xlu0 %2584 }
 0x316   : > { %2728 = vrot.lane.b32.xlu0 %v2541_v22, %s11164_s15  ;;  %v2270_v22 = vld [vmem:[#allocation2 + $0x178] sm:$0xff] }
 0x317   : > { %v2552_v57 = vrot.slane %v2270_v22, 1  ;;  %v2564_v22 = vrot.slane %v12743_v10, 1 }
 0x318   : > { %2730 = vrot.lane.b32.xlu1 %v2543_v54, %s11164_s15  ;;  %v12857_v24 = vpop.permute.xlu0 %2652 }
 0x319   : > { %v2553_v54 = vsel %vm550_vm0, %v2550_v29, %v2552_v57 }
 0x31a   : > { %2632 = vrot.lane.b32.xlu0 %v12706_v58, %s11163_s14 }
 0x31c   : > { %2634 = vrot.lane.b32.xlu1 %v12708_v43, %s11163_s14  ;;  %v2558_v43 = vsel %vm550_vm0, %v2555_v16, %v2557_v31  ;;  %v2282_v16 = vld [vmem:[#allocation2 + $0x1d8] sm:$0xff]  ;;  %v12871_v57 = vpop.permute.xlu0 %2692 }
 0x31d   : > { %v2567_v29 = vrot.slane %v2282_v16, 1 }
 0x31e   : > { %2628 = vrot.lane.b32.xlu0 %v12710_v59, %s11163_s14 }
 0x320   : > { %2630 = vrot.lane.b32.xlu1 %v12716_v40, %s11163_s14  ;;  %v12852_v40 = vpop.permute.xlu1 %2586 }
 0x322   : > { %2740 = vrot.lane.b32.xlu0 %v2556_v1, %s11164_s15  ;;  %v2278_v1 = vld [vmem:[#allocation2 + $0x1b8] sm:$0xff] }
 0x324   : > { %2742 = vrot.lane.b32.xlu1 %v2558_v43, %s11164_s15  ;;  %v12862_v31 = vpop.permute.xlu1 %2654  ;;  %v2566_v43 = vsel %vm550_vm0, %v2564_v22, %v2565_v28  ;;  %v12882_v22 = vpop.permute.xlu0 %2760 }
 0x326   : > { %2736 = vrot.lane.b32.xlu0 %v2551_v37, %s11164_s15  ;;  %v2568_v37 = vsel %vm550_vm0, %v2565_v28, %v2567_v29  ;;  %v2290_v29 = vld [vmem:[#allocation2 + $0x218] sm:$0xff] }
 0x328   : > { %2738 = vrot.lane.b32.xlu1 %v2553_v54, %s11164_s15  ;;  %v2562_v54 = vrot.slane %v2278_v1, 1  ;;  %v12876_v5 = vpop.permute.xlu1 %2694  ;;  %v2575_v1 = vrot.slane %v12788_v17, 1 }
 0x32a   : > { %2640 = vrot.lane.b32.xlu0 %v12743_v10, %s11163_s14 }
 0x32c   : > { %2642 = vrot.lane.b32.xlu1 %v12751_v32, %s11163_s14  ;;  %v2559_v32 = vrot.slane %v12748_v45, 1 }
 0x32e   : > { %2636 = vrot.lane.b32.xlu0 %v12748_v45, %s11163_s14  ;;  %v2561_v16 = vsel %vm550_vm0, %v2559_v32, %v2560_v25 }
 0x330   : > { %2638 = vrot.lane.b32.xlu1 %v12758_v49, %s11163_s14  ;;  %v2563_v49 = vsel %vm550_vm0, %v2560_v25, %v2562_v54  ;;  %v2574_v25 = vrot.slane %v12781_v4, 1  ;;  %v2231_v54 = vld [vmem:[#allocation2 + $0x40] sm:$0xff] }
 0x332   : > { %2748 = vrot.lane.b32.xlu0 %v2566_v43, %s11164_s15  ;;  %v12885_v43 = vpop.permute.xlu1 %2762  ;;  %v2576_v52 = vsel %vm550_vm0, %v2574_v25, %v2575_v1 }
 0x334   : > { %2750 = vrot.lane.b32.xlu1 %v2568_v37, %s11164_s15  ;;  %v2577_v37 = vrot.slane %v2290_v29, 1 }
 0x336   : > { %2744 = vrot.lane.b32.xlu0 %v2561_v16, %s11164_s15  ;;  %v2578_v15 = vsel %vm550_vm0, %v2575_v1, %v2577_v37  ;;  %v2227_v1 = vld [vmem:[#allocation2 + $0x20] sm:$0xff] }
 0x338   : > { %2746 = vrot.lane.b32.xlu1 %v2563_v49, %s11164_s15  ;;  %v2286_v49 = vld [vmem:[#allocation2 + $0x1f8] sm:$0xff] }
 0x339   : > { %v2572_v13 = vrot.slane %v2286_v49, 1 }
 0x33a   : > { %2648 = vrot.lane.b32.xlu0 %v12781_v4, %s11163_s14 }
 0x33c   : > { %2650 = vrot.lane.b32.xlu1 %v12788_v17, %s11163_s14  ;;  %v2593_v28 = vpop.permute.xlu0 %2592  ;;  %v2360_v17 = vrot.slane %v2231_v54, 7  ;;  %v12912_v54 = vld [vmem:[%s18433_s4] sm:$0xff] }
 0x33e   : > { %v2595_v32 = vpop.permute.xlu1 %2594  ;;  %2644 = vrot.lane.b32.xlu0 %v12784_v60, %s11163_s14 }
 0x340   : > { %2646 = vrot.lane.b32.xlu1 %v12793_v50, %s11163_s14  ;;  %v2589_v16 = vpop.permute.xlu0 %2588  ;;  %v18679_v50 = vrot.slane %v12489_v62, 7 }
 0x342   : > { %v2591_v14 = vpop.permute.xlu1 %2590  ;;  %2756 = vrot.lane.b32.xlu0 %v2576_v52, %s11164_s15  ;;  %v2362_v25 = vsel %vm2349_vm9, %v2360_v17, %v18679_v50  ;;  %v2573_v52 = vsel %vm550_vm0, %v2570_v11, %v2572_v13  ;;  %v2805_v11 = vsel %vm948_vm2, %v12516_v46, %v2595_v32  ;;  %v12940_v17 = vld [vmem:[%s18433_s4 + $0x10] sm:$0xff]  ;;  %v12945_v46 = vld [vmem:[%s18433_s4 + $0x18] sm:$0xff]  ;;  %v2239_v32 = vld [vmem:[#allocation2 + $0x80] sm:$0xff] }
 0x343   : > { %v2804_v56 = vsel %vm948_vm2, %v2362_v25, %v2593_v28  ;;  %v2355_v28 = vrot.slane %v2227_v1, 7  ;;  %18681 = vst [vmem:[#allocation37_spill] sm:$0xff] %v12940_v17  ;;  %18682 = vst [vmem:[#allocation38_spill] sm:$0xff] %v12945_v46  ;;  %v12959_v25 = vld [vmem:[%s18433_s4 + $0x20] sm:$0xff] }
 0x344   : > { %2758 = vrot.lane.b32.xlu1 %v2578_v15, %s11164_s15  ;;  %v2701_v29 = vpop.permute.xlu0 %2700  ;;  %v12917_v15 = vld [vmem:[%s18433_s4 + $0x8] sm:$0xff] }
 0x345   : > { %v12923_v62 = vpack.c.bf16 %v12917_v15, %v12912_v54  ;;  %v12926_v13 = vsel %vm985_vm3, %v2804_v56, %v2701_v29  ;;  %v18683_v56 = vrot.slane %v12495_v30, 7  ;;  %v2803_v30 = vsel %vm948_vm2, %v12521_v20, %v2591_v14  ;;  %v13000_v14 = vld [vmem:[%s18433_s4 + $0x38] sm:$0xff] }
 0x346   : > { %v2703_v48 = vpop.permute.xlu1 %2702  ;;  %2752 = vrot.lane.b32.xlu0 %v2571_v3, %s11164_s15  ;;  %18680 = vst [vmem:[#allocation8_spill] sm:$0xff] %v12926_v13  ;;  %18686 = vst [vmem:[#allocation40_spill] sm:$0xff] %v13000_v14 }
 0x347   : > { %10216 = vmatprep.subr.bf16.mxu1 %v12923_v62  ;;  %v12934_v49 = vsel %vm985_vm3, %v2805_v11, %v2703_v48  ;;  %v12951_v48 = vpack.c.bf16 %v12945_v46, %v12940_v17  ;;  %v2357_v1 = vsel %vm2349_vm9, %v2355_v28, %v18683_v56  ;;  %v2370_v11 = vrot.slane %v2239_v32, 7 }
 0x348   : > { %2754 = vrot.lane.b32.xlu1 %v2573_v52, %s11164_s15  ;;  %v2697_v3 = vpop.permute.xlu0 %2696  ;;  %10217 = vmatpush3.bf16.msra.mxu1 %v12923_v62  ;;  %v12964_v52 = vld [vmem:[%s18433_s4 + $0x28] sm:$0xff]  ;;  %v2802_v46 = vsel %vm948_vm2, %v2357_v1, %v2589_v16  ;;  %v18684_v16 = vrot.slane %v12530_v7, 7  ;;  %s11172_s15 = smov 10  }
 0x349   : > { %10218 = vmatprep.subr.bf16.mxu1 %v12951_v48  ;;  %v12972_v38 = vpack.c.bf16 %v12964_v52, %v12959_v25 }
 0x34a   : > { %v2699_v37 = vpop.permute.xlu1 %2698  ;;  %2908 = vrot.lane.b32.xlu0 %v12926_v13, %s11165_s19  ;;  %v2372_v56 = vsel %vm2349_vm9, %v2370_v11, %v18684_v16 }
 0x34b   : > { %v12986_v32 = vsel %vm985_vm3, %v2803_v30, %v2699_v37  ;;  %v2235_v37 = vld [vmem:[#allocation2 + $0x60] sm:$0xff] }
 0x34c   : > { %2910 = vrot.lane.b32.xlu1 %v12934_v49, %s11165_s19  ;;  %v2601_v29 = vpop.permute.xlu0 %2600  ;;  %10219 = vmatpush3.bf16.msra.mxu1 %v12951_v48 }
 0x34d   : > { %10220 = vmatprep.subr.bf16.mxu1 %v12972_v38  ;;  %v2808_v20 = vsel %vm948_vm2, %v2372_v56, %v2601_v29  ;;  %v2365_v29 = vrot.slane %v2235_v37, 7  ;;  %v13024_v56 = vld [vmem:[%s18433_s4 + $0x40] sm:$0xff] }
 0x34e   : > { %v2603_v50 = vpop.permute.xlu1 %2602  ;;  %3002 = vrot.lane.b32.xlu0 %v12926_v13, %s11166_s22  ;;  %v12978_v13 = vsel %vm985_vm3, %v2802_v46, %v2697_v3  ;;  %v12995_v3 = vld [vmem:[%s18433_s4 + $0x30] sm:$0xff]  ;;  %18688 = vst [vmem:[#allocation42_spill] sm:$0xff] %v13024_v56 }
 0x34f   : > { %18685 = vst [vmem:[#allocation39_spill] sm:$0xff] %v12995_v3  ;;  %v13007_v46 = vpack.c.bf16 %v13000_v14, %v12995_v3  ;;  %v2809_v11 = vsel %vm948_vm2, %v12559_v26, %v2603_v50  ;;  %v13030_v50 = vpack.c.bf16 %v13024_v56, %v13024_v56  ;;  %v2247_v56 = vld [vmem:[#allocation2 + $0xc0] sm:$0xff] }
 0x350   : > { %3004 = vrot.lane.b32.xlu1 %v12934_v49, %s11166_s22  ;;  %v2597_v17 = vpop.permute.xlu0 %2596  ;;  %10221 = vmatpush3.bf16.msra.mxu1 %v12972_v38 }
 0x351   : > { %10222 = vmatprep.subr.bf16.mxu1 %v13007_v46  ;;  %18689 = vst [vmem:[#allocation43_spill] sm:$0xff] %v13030_v50  ;;  %v13038_v37 = vsel %vm1496_vm4, %v13030_v50, 0 }
 0x352   : > { %v2599_v28 = vpop.permute.xlu1 %2598  ;;  %2904 = vrot.lane.b32.xlu0 %v12978_v13, %s11165_s19  ;;  %18690 = vst [vmem:[#allocation44_spill] sm:$0xff] %v13038_v37 }
 0x354   : > { %2906 = vrot.lane.b32.xlu1 %v12986_v32, %s11165_s19  ;;  %v2709_v7 = vpop.permute.xlu0 %2708  ;;  %10223 = vmatpush3.bf16.msra.mxu1 %v13007_v46 }
 0x355   : > { %v13010_v1 = vsel %vm985_vm3, %v2808_v20, %v2709_v7  ;;  %10929 = vmatprep.subr.msk.bf16.mxu1 %vm1496_vm4, %v13030_v50  ;;  %v18691_v7 = vrot.slane %v12534_v2, 7  ;;  %v2807_v50 = vsel %vm948_vm2, %v12564_v36, %v2599_v28 }
 0x356   : > { %18687 = vst [vmem:[#allocation41_spill] sm:$0xff] %v13010_v1  ;;  %v2711_v30 = vpop.permute.xlu1 %2710  ;;  %2916 = vrot.lane.b32.xlu0 %v13010_v1, %s11165_s19 }
 0x357   : > { %v13018_v16 = vsel %vm985_vm3, %v2809_v11, %v2711_v30  ;;  %v2367_v11 = vsel %vm2349_vm9, %v2365_v29, %v18691_v7  ;;  %v2380_v29 = vrot.slane %v2247_v56, 7 }
 0x358   : > { %2918 = vrot.lane.b32.xlu1 %v13018_v16, %s11165_s19  ;;  %v2705_v26 = vpop.permute.xlu0 %2704  ;;  %10225 = vmatpush3.bf16.msra.mxu1 %v13038_v37  ;;  %v2806_v30 = vsel %vm948_vm2, %v2367_v11, %v2597_v17  ;;  %v2243_v11 = vld [vmem:[#allocation2 + $0xa0] sm:$0xff] }
 0x359   : > { %v13048_v14 = vsel %vm985_vm3, %v2806_v30, %v2705_v26  ;;  %v18692_v26 = vrot.slane %v12571_v44, 7  ;;  %v2375_v44 = vrot.slane %v2243_v11, 7  ;;  %v2267_v37 = vld [vmem:[#allocation2 + $0x160] sm:$0xff] }
 0x35a   : > { %v2707_v20 = vpop.permute.xlu1 %2706  ;;  %3010 = vrot.lane.b32.xlu0 %v13010_v1, %s11166_s22 }
 0x35b   : > { %v13055_v2 = vsel %vm985_vm3, %v2807_v50, %v2707_v20  ;;  %v2382_v36 = vsel %vm2349_vm9, %v2380_v29, %v18692_v26 }
 0x35c   : > { %3012 = vrot.lane.b32.xlu1 %v13018_v16, %s11166_s22  ;;  %v2609_v1 = vpop.permute.xlu0 %2608 }
 0x35d   : > { %v2812_v28 = vsel %vm948_vm2, %v2382_v36, %v2609_v1  ;;  %v18693_v36 = vrot.slane %v12575_v42, 7 }
 0x35e   : > { %v2611_v3 = vpop.permute.xlu1 %2610  ;;  %3006 = vrot.lane.b32.xlu0 %v13048_v14, %s11166_s22 }
 0x35f   : > { %v2813_v20 = vsel %vm948_vm2, %v12603_v55, %v2611_v3  ;;  %v2377_v55 = vsel %vm2349_vm9, %v2375_v44, %v18693_v36 }
 0x360   : > { %3008 = vrot.lane.b32.xlu1 %v13055_v2, %s11166_s22  ;;  %v2605_v17 = vpop.permute.xlu0 %2604 }
 0x361   : > { %v2810_v3 = vsel %vm948_vm2, %v2377_v55, %v2605_v17  ;;  %v2251_v55 = vld [vmem:[#allocation2 + $0xe0] sm:$0xff] }
 0x362   : > { %v2607_v7 = vpop.permute.xlu1 %2606  ;;  %2912 = vrot.lane.b32.xlu0 %v13048_v14, %s11165_s19 }
 0x364   : > { %2914 = vrot.lane.b32.xlu1 %v13055_v2, %s11165_s19  ;;  %v2717_v50 = vpop.permute.xlu0 %2716 }
 0x365   : > { %v13068_v56 = vsel %vm985_vm3, %v2812_v28, %v2717_v50  ;;  %v2255_v28 = vld [vmem:[#allocation2 + $0x100] sm:$0xff] }
 0x366   : > { %v2719_v30 = vpop.permute.xlu1 %2718  ;;  %2924 = vrot.lane.b32.xlu0 %v13068_v56, %s11165_s19  ;;  %v2390_v44 = vrot.slane %v2255_v28, 7 }
 0x367   : > { %v13075_v29 = vsel %vm985_vm3, %v2813_v20, %v2719_v30  ;;  %v2811_v20 = vsel %vm948_vm2, %v12608_v23, %v2607_v7 }
 0x368   : > { %2926 = vrot.lane.b32.xlu1 %v13075_v29, %s11165_s19  ;;  %v2713_v1 = vpop.permute.xlu0 %2712 }
 0x369   : > { %v13088_v50 = vsel %vm985_vm3, %v2810_v3, %v2713_v1  ;;  %v18694_v1 = vrot.slane %v12618_v0, 7  ;;  %v2385_v0 = vrot.slane %v2251_v55, 7 }
 0x36a   : > { %v2715_v26 = vpop.permute.xlu1 %2714  ;;  %3018 = vrot.lane.b32.xlu0 %v13068_v56, %s11166_s22 }
 0x36b   : > { %v13095_v42 = vsel %vm985_vm3, %v2811_v20, %v2715_v26  ;;  %v2392_v23 = vsel %vm2349_vm9, %v2390_v44, %v18694_v1 }
 0x36c   : > { %3020 = vrot.lane.b32.xlu1 %v13075_v29, %s11166_s22  ;;  %v2617_v11 = vpop.permute.xlu0 %2616 }
 0x36d   : > { %v2816_v7 = vsel %vm948_vm2, %v2392_v23, %v2617_v11  ;;  %v18695_v23 = vrot.slane %v12622_v6, 7 }
 0x36e   : > { %v2619_v30 = vpop.permute.xlu1 %2618  ;;  %3014 = vrot.lane.b32.xlu0 %v13088_v50, %s11166_s22 }
 0x36f   : > { %v2817_v28 = vsel %vm948_vm2, %v12647_v8, %v2619_v30  ;;  %v2387_v8 = vsel %vm2349_vm9, %v2385_v0, %v18695_v23 }
 0x370   : > { %3016 = vrot.lane.b32.xlu1 %v13095_v42, %s11166_s22  ;;  %v2613_v17 = vpop.permute.xlu0 %2612 }
 0x371   : > { %v2814_v30 = vsel %vm948_vm2, %v2387_v8, %v2613_v17  ;;  %v2259_v8 = vld [vmem:[#allocation2 + $0x120] sm:$0xff] }
 0x372   : > { %v2615_v36 = vpop.permute.xlu1 %2614  ;;  %2920 = vrot.lane.b32.xlu0 %v13088_v50, %s11165_s19 }
 0x374   : > { %2922 = vrot.lane.b32.xlu1 %v13095_v42, %s11165_s19  ;;  %v2725_v26 = vpop.permute.xlu0 %2724 }
 0x375   : > { %v13108_v3 = vsel %vm985_vm3, %v2816_v7, %v2725_v26  ;;  %v2263_v7 = vld [vmem:[#allocation2 + $0x140] sm:$0xff] }
 0x376   : > { %v2727_v20 = vpop.permute.xlu1 %2726  ;;  %2932 = vrot.lane.b32.xlu0 %v13108_v3, %s11165_s19  ;;  %v2400_v0 = vrot.slane %v2263_v7, 7 }
 0x377   : > { %v13115_v44 = vsel %vm985_vm3, %v2817_v28, %v2727_v20  ;;  %v2815_v28 = vsel %vm948_vm2, %v12652_v35, %v2615_v36 }
 0x378   : > { %2934 = vrot.lane.b32.xlu1 %v13115_v44, %s11165_s19  ;;  %v2721_v11 = vpop.permute.xlu0 %2720 }
 0x379   : > { %v13128_v26 = vsel %vm985_vm3, %v2814_v30, %v2721_v11  ;;  %v18696_v11 = vrot.slane %v12659_v19, 7  ;;  %v2395_v19 = vrot.slane %v2259_v8, 7 }
 0x37a   : > { %v2723_v1 = vpop.permute.xlu1 %2722  ;;  %3026 = vrot.lane.b32.xlu0 %v13108_v3, %s11166_s22 }
 0x37b   : > { %v13135_v6 = vsel %vm985_vm3, %v2815_v28, %v2723_v1  ;;  %v2402_v35 = vsel %vm2349_vm9, %v2400_v0, %v18696_v11 }
 0x37c   : > { %3028 = vrot.lane.b32.xlu1 %v13115_v44, %s11166_s22  ;;  %v2625_v55 = vpop.permute.xlu0 %2624 }
 0x37d   : > { %v2820_v36 = vsel %vm948_vm2, %v2402_v35, %v2625_v55  ;;  %v18698_v35 = vrot.slane %v12663_v63, 7 }
 0x37e   : > { %v2627_v20 = vpop.permute.xlu1 %2626  ;;  %3022 = vrot.lane.b32.xlu0 %v13128_v26, %s11166_s22 }
 0x37f   : > { %v2821_v7 = vsel %vm948_vm2, %v12691_v33, %v2627_v20  ;;  %v2397_v33 = vsel %vm2349_vm9, %v2395_v19, %v18698_v35  ;;  %v3273_v35 = vunpack.c.h.bf16 %v12923_v62 }
 0x380   : > { %3024 = vrot.lane.b32.xlu1 %v13135_v6, %s11166_s22  ;;  %v2621_v17 = vpop.permute.xlu0 %2620 }
 0x381   : > { %v2818_v20 = vsel %vm948_vm2, %v2397_v33, %v2621_v17  ;;  %v3272_v17 = vunpack.c.l.bf16 %v12923_v62 }
 0x382   : > { %v2623_v23 = vpop.permute.xlu1 %2622  ;;  %2928 = vrot.lane.b32.xlu0 %v13128_v26, %s11165_s19 }
 0x383   : > { %v3281_v33 = vsub.f32 %v12912_v54, %v3272_v17 }
 0x384   : > { %2930 = vrot.lane.b32.xlu1 %v13135_v6, %s11165_s19  ;;  %v2733_v1 = vpop.permute.xlu0 %2732 }
 0x385   : > { %v13148_v30 = vsel %vm985_vm3, %v2820_v36, %v2733_v1  ;;  %v2271_v36 = vld [vmem:[#allocation2 + $0x180] sm:$0xff] }
 0x386   : > { %v2735_v28 = vpop.permute.xlu1 %2734  ;;  %2940 = vrot.lane.b32.xlu0 %v13148_v30, %s11165_s19  ;;  %v2410_v19 = vrot.slane %v2271_v36, 7 }
 0x387   : > { %v13155_v0 = vsel %vm985_vm3, %v2821_v7, %v2735_v28  ;;  %v2819_v7 = vsel %vm948_vm2, %v12696_v27, %v2623_v23  ;;  %v3282_v27 = vsub.f32 %v12917_v15, %v3273_v35 }
 0x388   : > { %18697 = vst [vmem:[#allocation45_spill] sm:$0xff] %v13155_v0  ;;  %2942 = vrot.lane.b32.xlu1 %v13155_v0, %s11165_s19  ;;  %v2729_v55 = vpop.permute.xlu0 %2728 }
 0x389   : > { %v13168_v1 = vsel %vm985_vm3, %v2818_v20, %v2729_v55  ;;  %v13188_v36 = vpack.c.bf16 %v3282_v27, %v3281_v33 }
 0x38a   : > { %v2731_v11 = vpop.permute.xlu1 %2730  ;;  %3034 = vrot.lane.b32.xlu0 %v13148_v30, %s11166_s22 }
 0x38b   : > { %v13175_v63 = vsel %vm985_vm3, %v2819_v7, %v2731_v11  ;;  %v18699_v11 = vrot.slane %v12706_v58, 7  ;;  %10258 = vmatprep.subr.bf16.mxu1 %v13188_v36 }
 0x38c   : > { %3036 = vrot.lane.b32.xlu1 %v13155_v0, %s11166_s22  ;;  %v2633_v8 = vpop.permute.xlu0 %2632 }
 0x38d   : > { %v2412_v20 = vsel %vm2349_vm9, %v2410_v19, %v18699_v11  ;;  %v2405_v19 = vrot.slane %v2267_v37, 7  ;;  %v2279_v37 = vld [vmem:[#allocation2 + $0x1c0] sm:$0xff] }
 0x38e   : > { %v2635_v28 = vpop.permute.xlu1 %2634  ;;  %3030 = vrot.lane.b32.xlu0 %v13168_v1, %s11166_s22  ;;  %v2824_v7 = vsel %vm948_vm2, %v2412_v20, %v2633_v8 }
 0x38f   : > { %v2825_v15 = vsel %vm948_vm2, %v12735_v18, %v2635_v28 }
 0x390   : > { %3032 = vrot.lane.b32.xlu1 %v13175_v63, %s11166_s22  ;;  %v2629_v55 = vpop.permute.xlu0 %2628 }
 0x392   : > { %v2631_v23 = vpop.permute.xlu1 %2630  ;;  %2936 = vrot.lane.b32.xlu0 %v13168_v1, %s11165_s19 }
 0x393   : > { %v2823_v11 = vsel %vm948_vm2, %v12740_v47, %v2631_v23 }
 0x394   : > { %2938 = vrot.lane.b32.xlu1 %v13175_v63, %s11165_s19  ;;  %v2741_v0 = vpop.permute.xlu0 %2740 }
 0x395   : > { %v13194_v54 = vsel %vm985_vm3, %v2824_v7, %v2741_v0  ;;  %v18700_v0 = vrot.slane %v12710_v59, 7  ;;  %v2420_v7 = vrot.slane %v2279_v37, 7 }
 0x396   : > { %v2743_v58 = vpop.permute.xlu1 %2742  ;;  %2948 = vrot.lane.b32.xlu0 %v13194_v54, %s11165_s19 }
 0x397   : > { %v13202_v8 = vsel %vm985_vm3, %v2825_v15, %v2743_v58  ;;  %v2407_v18 = vsel %vm2349_vm9, %v2405_v19, %v18700_v0  ;;  %v18701_v58 = vrot.slane %v12743_v10, 7  ;;  %v2275_v19 = vld [vmem:[#allocation2 + $0x1a0] sm:$0xff] }
 0x398   : > { %2950 = vrot.lane.b32.xlu1 %v13202_v8, %s11165_s19  ;;  %v2737_v17 = vpop.permute.xlu0 %2736  ;;  %v2822_v28 = vsel %vm948_vm2, %v2407_v18, %v2629_v55  ;;  %v2415_v10 = vrot.slane %v2275_v19, 7 }
 0x399   : > { %v13215_v27 = vsel %vm985_vm3, %v2822_v28, %v2737_v17  ;;  %v2422_v47 = vsel %vm2349_vm9, %v2420_v7, %v18701_v58  ;;  %v2287_v7 = vld [vmem:[#allocation2 + $0x200] sm:$0xff] }
 0x39a   : > { %v2739_v35 = vpop.permute.xlu1 %2738  ;;  %3042 = vrot.lane.b32.xlu0 %v13194_v54, %s11166_s22 }
 0x39b   : > { %v13222_v59 = vsel %vm985_vm3, %v2823_v11, %v2739_v35  ;;  %v18702_v11 = vrot.slane %v12748_v45, 7 }
 0x39c   : > { %3044 = vrot.lane.b32.xlu1 %v13202_v8, %s11166_s22  ;;  %v2641_v33 = vpop.permute.xlu0 %2640 }
 0x39d   : > { %v2828_v23 = vsel %vm948_vm2, %v2422_v47, %v2641_v33 }
 0x39e   : > { %v2643_v20 = vpop.permute.xlu1 %2642  ;;  %3038 = vrot.lane.b32.xlu0 %v13215_v27, %s11166_s22 }
 0x39f   : > { %v2829_v0 = vsel %vm948_vm2, %v12769_v61, %v2643_v20  ;;  %v2417_v61 = vsel %vm2349_vm9, %v2415_v10, %v18702_v11  ;;  %v2283_v10 = vld [vmem:[#allocation2 + $0x1e0] sm:$0xff] }
 0x3a0   : > { %3040 = vrot.lane.b32.xlu1 %v13222_v59, %s11166_s22  ;;  %v2637_v55 = vpop.permute.xlu0 %2636 }
 0x3a1   : > { %v2826_v20 = vsel %vm948_vm2, %v2417_v61, %v2637_v55 }
 0x3a2   : > { %v2639_v15 = vpop.permute.xlu1 %2638  ;;  %2944 = vrot.lane.b32.xlu0 %v13215_v27, %s11165_s19 }
 0x3a4   : > { %2946 = vrot.lane.b32.xlu1 %v13222_v59, %s11165_s19  ;;  %v2749_v17 = vpop.permute.xlu0 %2748 }
 0x3a5   : > { %v13235_v35 = vsel %vm985_vm3, %v2828_v23, %v2749_v17  ;;  %v2827_v23 = vsel %vm948_vm2, %v12775_v51, %v2639_v15  ;;  %v2430_v17 = vrot.slane %v2287_v7, 7  ;;  %v2425_v7 = vrot.slane %v2283_v10, 7 }
 0x3a6   : > { %v2751_v18 = vpop.permute.xlu1 %2750  ;;  %2956 = vrot.lane.b32.xlu0 %v13235_v35, %s11165_s19 }
 0x3a7   : > { %v13242_v28 = vsel %vm985_vm3, %v2829_v0, %v2751_v18  ;;  %v18703_v18 = vrot.slane %v12781_v4, 7 }
 0x3a8   : > { %2958 = vrot.lane.b32.xlu1 %v13242_v28, %s11165_s19  ;;  %v2745_v37 = vpop.permute.xlu0 %2744 }
 0x3a9   : > { %v13255_v47 = vsel %vm985_vm3, %v2826_v20, %v2745_v37  ;;  %v2432_v51 = vsel %vm2349_vm9, %v2430_v17, %v18703_v18  ;;  %v2223_v20 = vld [vmem:[#allocation2] sm:$0xff] }
 0x3aa   : > { %v2747_v33 = vpop.permute.xlu1 %2746  ;;  %3050 = vrot.lane.b32.xlu0 %v13235_v35, %s11166_s22  ;;  %v2350_v17 = vrot.slane %v2223_v20, 7 }
 0x3ab   : > { %v13262_v45 = vsel %vm985_vm3, %v2827_v23, %v2747_v33  ;;  %v2291_v23 = vld [vmem:[#allocation2 + $0x220] sm:$0xff] }
 0x3ac   : > { %3052 = vrot.lane.b32.xlu1 %v13242_v28, %s11166_s22  ;;  %v2649_v58 = vpop.permute.xlu0 %2648 }
 0x3ad   : > { %v2832_v15 = vsel %vm948_vm2, %v2432_v51, %v2649_v58  ;;  %v2435_v51 = vrot.slane %v2291_v23, 7  ;;  %v2835_v23 = vsel %vm948_vm2, %v12457_v39, %v12862_v31 }
 0x3ae   : > { %v2651_v19 = vpop.permute.xlu1 %2650  ;;  %3046 = vrot.lane.b32.xlu0 %v13255_v47, %s11166_s22  ;;  %v2871_v39 = vsel %vm985_vm3, %v2835_v23, %v12885_v43 }
 0x3af   : > { %v2833_v11 = vsel %vm948_vm2, %v12802_v34, %v2651_v19 }
 0x3b0   : > { %3048 = vrot.lane.b32.xlu1 %v13262_v45, %s11166_s22  ;;  %v2645_v55 = vpop.permute.xlu0 %2644 }
 0x3b2   : > { %v2647_v0 = vpop.permute.xlu1 %2646  ;;  %2952 = vrot.lane.b32.xlu0 %v13255_v47, %s11165_s19 }
 0x3b4   : > { %2954 = vrot.lane.b32.xlu1 %v13262_v45, %s11165_s19  ;;  %v2757_v37 = vpop.permute.xlu0 %2756 }
 0x3b5   : > { %v2868_v33 = vsel %vm985_vm3, %v2832_v15, %v2757_v37  ;;  %v18704_v15 = vrot.slane %v12784_v60, 7  ;;  %v18706_v60 = vrot.slane %v12288_v21, 7  ;;  %v2801_v21 = vsel %vm948_vm2, %v12452_v41, %v12852_v40 }
 0x3b6   : > { %v2759_v61 = vpop.permute.xlu1 %2758  ;;  %2964 = vrot.lane.b32.xlu0 %v2868_v33, %s11165_s19 }
 0x3b7   : > { %v2869_v4 = vsel %vm985_vm3, %v2833_v11, %v2759_v61  ;;  %v2427_v34 = vsel %vm2349_vm9, %v2425_v7, %v18704_v15  ;;  %v18705_v11 = vrot.slane %v12276_v12, 7 }
 0x3b8   : > { %2966 = vrot.lane.b32.xlu1 %v2869_v4, %s11165_s19  ;;  %v2753_v58 = vpop.permute.xlu0 %2752  ;;  %v2830_v19 = vsel %vm948_vm2, %v2427_v34, %v2645_v55  ;;  %v2437_v55 = vsel %vm2349_vm9, %v2435_v51, %v18706_v60 }
 0x3b9   : > { %v13287_v37 = vsel %vm985_vm3, %v2830_v19, %v2753_v58  ;;  %v2352_v61 = vsel %vm2349_vm9, %v2350_v17, %v18705_v11 }
 0x3ba   : > { %v2755_v18 = vpop.permute.xlu1 %2754  ;;  %3058 = vrot.lane.b32.xlu0 %v2868_v33, %s11166_s22  ;;  %v2831_v33 = vsel %vm948_vm2, %v12808_v9, %v2647_v0  ;;  %v2834_v9 = vsel %vm948_vm2, %v2437_v55, %v12857_v24  ;;  %v3274_v55 = vunpack.c.l.bf16 %v12951_v48 }
 0x3bb   : > { %v13300_v7 = vsel %vm985_vm3, %v2831_v33, %v2755_v18  ;;  %v2870_v24 = vsel %vm985_vm3, %v2834_v9, %v12882_v22  ;;  %v2837_v18 = vsel %vm985_vm3, %v2801_v21, %v12876_v5 }
 0x3bc   : > { %3060 = vrot.lane.b32.xlu1 %v2869_v4, %s11166_s22  ;;  %v2909_v10 = vpop.permute.xlu0 %2908  ;;  %v2800_v4 = vsel %vm948_vm2, %v2352_v61, %v12849_v53 }
 0x3bd   : > { %v2836_v58 = vsel %vm985_vm3, %v2800_v4, %v12871_v57  ;;  %v3100_v4 = vsel %vm1248_vm5, %v12978_v13, %v2909_v10  ;;  %v3276_v13 = vunpack.c.l.bf16 %v12972_v38  ;;  %vm6492_vm3 = vcmask 31744  }
 0x3be   : > { %v2911_v20 = vpop.permute.xlu1 %2910  ;;  %3054 = vrot.lane.b32.xlu0 %v13287_v37, %s11166_s22 }
 0x3bf   : > { %v3101_v9 = vsel %vm1248_vm5, %v12986_v32, %v2911_v20 }
 0x3c0   : > { %3056 = vrot.lane.b32.xlu1 %v13300_v7, %s11166_s22  ;;  %v3003_v12 = vpop.permute.xlu0 %3002 }
 0x3c2   : > { %v3005_v0 = vpop.permute.xlu1 %3004  ;;  %2960 = vrot.lane.b32.xlu0 %v13287_v37, %s11165_s19 }
 0x3c4   : > { %2962 = vrot.lane.b32.xlu1 %v13300_v7, %s11165_s19  ;;  %v2905_v53 = vpop.permute.xlu0 %2904  ;;  %s11174_s19 = smov 14  }
 0x3c5   : > { %v3098_v17 = vsel %vm1248_vm5, %v2836_v58, %v2905_v53 }
 0x3c6   : > { %v2907_v41 = vpop.permute.xlu1 %2906  ;;  %3062 = vrot.lane.b32.xlu0 %v2870_v24, %s11166_s22  ;;  %v3130_v31 = vsel %vm1281_vm6, %v3098_v17, %v3003_v12  ;;  %v3275_v12 = vunpack.c.h.bf16 %v12951_v48  ;;  %v18707_v24 = vld [vmem:[#allocation8_spill] sm:$0xff] }
 0x3c7   : > { %v3099_v40 = vsel %vm1248_vm5, %v2837_v18, %v2907_v41  ;;  %v18708_v18 = vld [vmem:[#allocation37_spill] sm:$0xff] }
 0x3c8   : > { %v3131_v57 = vsel %vm1281_vm6, %v3099_v40, %v3005_v0  ;;  %3064 = vrot.lane.b32.xlu1 %v2871_v39, %s11166_s22  ;;  %v2917_v22 = vpop.permute.xlu0 %2916  ;;  %v3283_v41 = vsub.f32 %v18708_v18, %v3274_v55  ;;  %v18709_v39 = vld [vmem:[#allocation38_spill] sm:$0xff]  ;;  %v18710_v18 = vld [vmem:[#allocation39_spill] sm:$0xff]  ;;  %s11175_s22 = smov 28  }
 0x3c9   : > { %v13332_v51 = vpack.c.bf16 %v3131_v57, %v3130_v31  ;;  %v3284_v40 = vsub.f32 %v18709_v39, %v3275_v12  ;;  %v3285_v12 = vsub.f32 %v12959_v25, %v3276_v13 }
 0x3ca   : > { %v2919_v15 = vpop.permute.xlu1 %2918 }
 0x3cb   : > { %v3187_v5 = vunpack.c.l.bf16 %v13332_v51  ;;  %v3188_v34 = vunpack.c.h.bf16 %v13332_v51  ;;  %v3291_v55 = vpack.c.bf16 %v3284_v40, %v3283_v41  ;;  %v18711_v41 = vld [vmem:[#allocation40_spill] sm:$0xff]  ;;  %v18712_v40 = vld [vmem:[#allocation43_spill] sm:$0xff] }
 0x3cc   : > { %v3011_v19 = vpop.permute.xlu0 %3010  ;;  %v3280_v13 = vunpack.c.l.bf16 %v18712_v40 }
 0x3cd   : > { %v3219_v11 = vsub.f32 %v3130_v31, %v3187_v5  ;;  %v3220_v61 = vsub.f32 %v3131_v57, %v3188_v34  ;;  %v3277_v31 = vunpack.c.h.bf16 %v12972_v38 }
 0x3ce   : > { %v3013_v43 = vpop.permute.xlu1 %3012 }
 0x3cf   : > { %v3251_v33 = vpack.c.bf16 %v3220_v61, %v3219_v11 }
 0x3d0   : > { %v3007_v60 = vpop.permute.xlu0 %3006 }
 0x3d1   : > { %10226 = vmatprep.mubr.msk.bf16.mxu1 %vm1447_vm7, %v3251_v33  ;;  %v3132_v21 = vsel %vm1281_vm6, %v3100_v4, %v3007_v60 }
 0x3d2   : > { %v3009_v0 = vpop.permute.xlu1 %3008 }
 0x3d3   : > { %v3133_v23 = vsel %vm1281_vm6, %v3101_v9, %v3009_v0  ;;  %v3286_v0 = vsub.f32 %v12964_v52, %v3277_v31 }
 0x3d4   : > { %v13345_v58 = vpack.c.bf16 %v3133_v23, %v3132_v21  ;;  %v2913_v53 = vpop.permute.xlu0 %2912 }
 0x3d5   : > { %v3102_v17 = vsel %vm1248_vm5, %v18707_v24, %v2913_v53 }
 0x3d6   : > { %v3189_v10 = vunpack.c.l.bf16 %v13345_v58  ;;  %v3190_v32 = vunpack.c.h.bf16 %v13345_v58  ;;  %v2915_v20 = vpop.permute.xlu1 %2914  ;;  %v3134_v11 = vsel %vm1281_vm6, %v3102_v17, %v3011_v19  ;;  %v3292_v17 = vpack.c.bf16 %v3286_v0, %v3285_v12  ;;  %v18714_v0 = vld [vmem:[#allocation41_spill] sm:$0xff] }
 0x3d7   : > { %v3103_v57 = vsel %vm1248_vm5, %v12934_v49, %v2915_v20  ;;  %v3278_v49 = vunpack.c.l.bf16 %v13007_v46  ;;  %v3104_v20 = vsel %vm1248_vm5, %v13048_v14, %v2917_v22 }
 0x3d8   : > { %v3221_v5 = vsub.f32 %v3132_v21, %v3189_v10  ;;  %v3222_v34 = vsub.f32 %v3133_v23, %v3190_v32  ;;  %v3135_v61 = vsel %vm1281_vm6, %v3103_v57, %v3013_v43  ;;  %v13359_v33 = vpop.permute.xlu0 %2924  ;;  %v3279_v21 = vunpack.c.h.bf16 %v13007_v46 }
 0x3d9   : > { %v13361_v60 = vpack.c.bf16 %v3135_v61, %v3134_v11  ;;  %v3287_v52 = vsub.f32 %v18710_v18, %v3278_v49 }
 0x3da   : > { %v3252_v4 = vpack.c.bf16 %v3222_v34, %v3221_v5  ;;  %v13364_v9 = vpop.permute.xlu1 %2926  ;;  %v3288_v39 = vsub.f32 %v18711_v41, %v3279_v21  ;;  %v18713_v5 = vld [vmem:[#allocation42_spill] sm:$0xff] }
 0x3db   : > { %v3191_v19 = vunpack.c.l.bf16 %v13361_v60  ;;  %v3192_v43 = vunpack.c.h.bf16 %v13361_v60  ;;  %v3289_v34 = vsub.f32 %v18713_v5, %v3280_v13 }
 0x3dc   : > { %10227 = vmatmul.mubr.msk.bf16.vlgmr.msra.gmra.mrb[0].mxu1 %vm1447_vm7, %v3252_v4  ;;  %v3019_v23 = vpop.permute.xlu0 %3018  ;;  %v3293_v57 = vpack.c.bf16 %v3288_v39, %v3287_v52 }
 0x3dd   : > { %v3223_v53 = vsub.f32 %v3134_v11, %v3191_v19  ;;  %v3224_v24 = vsub.f32 %v3135_v61, %v3192_v43  ;;  %10259 = vmatpush3.bf16.msra.mxu1 %v13188_v36  ;;  %v3105_v36 = vsel %vm1248_vm5, %v13055_v2, %v2919_v15  ;;  %v3294_v15 = vpack.c.bf16 %v3289_v34, %v3289_v34 }
 0x3de   : > { %v3021_v25 = vpop.permute.xlu1 %3020  ;;  %10260 = vmatprep.subr.bf16.mxu1 %v3291_v55 }
 0x3df   : > { %v3253_v10 = vpack.c.bf16 %v3224_v24, %v3223_v53  ;;  %v3556_v41 = vsel %vm1496_vm4, %v3294_v15, 0 }
 0x3e0   : > { %v3015_v32 = vpop.permute.xlu0 %3014 }
 0x3e1   : > { %10230 = vmatprep.mubr.msk.bf16.mxu1 %vm1447_vm7, %v3253_v10  ;;  %10261 = vmatpush3.bf16.msra.mxu1 %v3291_v55  ;;  %v3136_v11 = vsel %vm1281_vm6, %v3104_v20, %v3015_v32 }
 0x3e2   : > { %v3017_v31 = vpop.permute.xlu1 %3016  ;;  %10262 = vmatprep.subr.bf16.mxu1 %v3292_v17 }
 0x3e3   : > { %v3137_v61 = vsel %vm1281_vm6, %v3105_v36, %v3017_v31  ;;  %v3108_v36 = vsel %vm1248_vm5, %v13088_v50, %v13359_v33  ;;  %v3109_v31 = vsel %vm1248_vm5, %v13095_v42, %v13364_v9 }
 0x3e4   : > { %v13384_v12 = vpack.c.bf16 %v3137_v61, %v3136_v11  ;;  %v2921_v4 = vpop.permute.xlu0 %2920 }
 0x3e5   : > { %v3106_v55 = vsel %vm1248_vm5, %v18714_v0, %v2921_v4  ;;  %10263 = vmatpush3.bf16.msra.mxu1 %v3292_v17 }
 0x3e6   : > { %v3193_v14 = vunpack.c.l.bf16 %v13384_v12  ;;  %v3194_v2 = vunpack.c.h.bf16 %v13384_v12  ;;  %v2923_v22 = vpop.permute.xlu1 %2922  ;;  %10264 = vmatprep.subr.bf16.mxu1 %v3293_v57  ;;  %v3138_v43 = vsel %vm1281_vm6, %v3106_v55, %v3019_v23 }
 0x3e7   : > { %v3107_v49 = vsel %vm1248_vm5, %v13018_v16, %v2923_v22 }
 0x3e8   : > { %v3225_v21 = vsub.f32 %v3136_v11, %v3193_v14  ;;  %v3226_v19 = vsub.f32 %v3137_v61, %v3194_v2  ;;  %v3139_v53 = vsel %vm1281_vm6, %v3107_v49, %v3021_v25  ;;  %v2933_v24 = vpop.permute.xlu0 %2932 }
 0x3e9   : > { %v13394_v18 = vpack.c.bf16 %v3139_v53, %v3138_v43  ;;  %10265 = vmatpush3.bf16.msra.mxu1 %v3293_v57 }
 0x3ea   : > { %v3254_v17 = vpack.c.bf16 %v3226_v19, %v3225_v21  ;;  %v2935_v52 = vpop.permute.xlu1 %2934  ;;  %10930 = vmatprep.subr.msk.bf16.mxu1 %vm1496_vm4, %v3294_v15 }
 0x3eb   : > { %v3195_v39 = vunpack.c.l.bf16 %v13394_v18  ;;  %v3196_v16 = vunpack.c.h.bf16 %v13394_v18 }
 0x3ec   : > { %10231 = vmatmul.mubr.msk.bf16.gmra.mrb[4].mxu1 %vm1447_vm7, %v3254_v17  ;;  %v3027_v13 = vpop.permute.xlu0 %3026 }
 0x3ed   : > { %v3227_v23 = vsub.f32 %v3138_v43, %v3195_v39  ;;  %v3228_v10 = vsub.f32 %v3139_v53, %v3196_v16  ;;  %10267 = vmatpush3.bf16.msra.mxu1 %v3556_v41  ;;  %v3112_v16 = vsel %vm1248_vm5, %v13128_v26, %v2933_v24 }
 0x3ee   : > { %v3029_v25 = vpop.permute.xlu1 %3028  ;;  %10300 = vmatprep.subr.bf16.mxu1 %v12923_v62 }
 0x3ef   : > { %v3255_v32 = vpack.c.bf16 %v3228_v10, %v3227_v23 }
 0x3f0   : > { %v3023_v20 = vpop.permute.xlu0 %3022 }
 0x3f1   : > { %10234 = vmatprep.mubr.msk.bf16.mxu1 %vm1447_vm7, %v3255_v32  ;;  %v3140_v5 = vsel %vm1281_vm6, %v3108_v36, %v3023_v20 }
 0x3f2   : > { %v3025_v57 = vpop.permute.xlu1 %3024 }
 0x3f3   : > { %v3141_v34 = vsel %vm1281_vm6, %v3109_v31, %v3025_v57 }
 0x3f4   : > { %v13411_v11 = vpack.c.bf16 %v3141_v34, %v3140_v5  ;;  %v2929_v61 = vpop.permute.xlu0 %2928 }
 0x3f5   : > { %v3110_v4 = vsel %vm1248_vm5, %v13068_v56, %v2929_v61 }
 0x3f6   : > { %v3197_v0 = vunpack.c.l.bf16 %v13411_v11  ;;  %v3198_v55 = vunpack.c.h.bf16 %v13411_v11  ;;  %v2931_v50 = vpop.permute.xlu1 %2930  ;;  %v3142_v14 = vsel %vm1281_vm6, %v3110_v4, %v3027_v13  ;;  %v3113_v13 = vsel %vm1248_vm5, %v13135_v6, %v2935_v52 }
 0x3f7   : > { %v3111_v33 = vsel %vm1248_vm5, %v13075_v29, %v2931_v50 }
 0x3f8   : > { %v3229_v42 = vsub.f32 %v3140_v5, %v3197_v0  ;;  %v3230_v9 = vsub.f32 %v3141_v34, %v3198_v55  ;;  %v3143_v2 = vsel %vm1281_vm6, %v3111_v33, %v3029_v25  ;;  %v2941_v22 = vpop.permute.xlu0 %2940 }
 0x3f9   : > { %v13421_v15 = vpack.c.bf16 %v3143_v2, %v3142_v14 }
 0x3fa   : > { %v3256_v49 = vpack.c.bf16 %v3230_v9, %v3229_v42  ;;  %v2943_v21 = vpop.permute.xlu1 %2942 }
 0x3fb   : > { %v3199_v56 = vunpack.c.l.bf16 %v13421_v15  ;;  %v3200_v19 = vunpack.c.h.bf16 %v13421_v15 }
 0x3fc   : > { %10235 = vmatmul.mubr.msk.bf16.gmra.mrb[8].mxu1 %vm1447_vm7, %v3256_v49  ;;  %v3035_v43 = vpop.permute.xlu0 %3034  ;;  %v3116_v49 = vsel %vm1248_vm5, %v13168_v1, %v2941_v22  ;;  %v18715_v1 = vld [vmem:[#allocation45_spill] sm:$0xff] }
 0x3fd   : > { %v3231_v53 = vsub.f32 %v3142_v14, %v3199_v56  ;;  %v3232_v29 = vsub.f32 %v3143_v2, %v3200_v19  ;;  %v3117_v56 = vsel %vm1248_vm5, %v13175_v63, %v2943_v21 }
 0x3fe   : > { %v3037_v17 = vpop.permute.xlu1 %3036 }
 0x3ff   : > { %v3257_v41 = vpack.c.bf16 %v3232_v29, %v3231_v53 }
 0x400   : > { %v3031_v39 = vpop.permute.xlu0 %3030 }
 0x401   : > { %10238 = vmatprep.mubr.msk.bf16.mxu1 %vm1447_vm7, %v3257_v41  ;;  %v3144_v10 = vsel %vm1281_vm6, %v3112_v16, %v3031_v39 }
 0x402   : > { %v3033_v23 = vpop.permute.xlu1 %3032 }
 0x403   : > { %v3145_v25 = vsel %vm1281_vm6, %v3113_v13, %v3033_v23 }
 0x404   : > { %v13433_v32 = vpack.c.bf16 %v3145_v25, %v3144_v10  ;;  %v2937_v20 = vpop.permute.xlu0 %2936 }
 0x405   : > { %v3114_v36 = vsel %vm1248_vm5, %v13108_v3, %v2937_v20 }
 0x406   : > { %v3201_v31 = vunpack.c.l.bf16 %v13433_v32  ;;  %v3202_v57 = vunpack.c.h.bf16 %v13433_v32  ;;  %v2939_v5 = vpop.permute.xlu1 %2938  ;;  %v3146_v52 = vsel %vm1281_vm6, %v3114_v36, %v3035_v43 }
 0x407   : > { %v3115_v26 = vsel %vm1248_vm5, %v13115_v44, %v2939_v5 }
 0x408   : > { %v3233_v6 = vsub.f32 %v3144_v10, %v3201_v31  ;;  %v3234_v24 = vsub.f32 %v3145_v25, %v3202_v57  ;;  %v3147_v34 = vsel %vm1281_vm6, %v3115_v26, %v3037_v17  ;;  %v2949_v61 = vpop.permute.xlu0 %2948 }
 0x409   : > { %v13443_v4 = vpack.c.bf16 %v3147_v34, %v3146_v52 }
 0x40a   : > { %v3258_v0 = vpack.c.bf16 %v3234_v24, %v3233_v6  ;;  %v2951_v55 = vpop.permute.xlu1 %2950 }
 0x40b   : > { %v3203_v3 = vunpack.c.l.bf16 %v13443_v4  ;;  %v3204_v50 = vunpack.c.h.bf16 %v13443_v4 }
 0x40c   : > { %10239 = vmatmul.mubr.msk.bf16.gmra.mrb[12].mxu1 %vm1447_vm7, %v3258_v0  ;;  %v3043_v33 = vpop.permute.xlu0 %3042  ;;  %v3120_v0 = vsel %vm1248_vm5, %v13215_v27, %v2949_v61 }
 0x40d   : > { %v3235_v42 = vsub.f32 %v3146_v52, %v3203_v3  ;;  %v3236_v44 = vsub.f32 %v3147_v34, %v3204_v50  ;;  %v3121_v3 = vsel %vm1248_vm5, %v13222_v59, %v2951_v55 }
 0x40e   : > { %v3045_v9 = vpop.permute.xlu1 %3044 }
 0x40f   : > { %v3259_v14 = vpack.c.bf16 %v3236_v44, %v3235_v42 }
 0x410   : > { %v3039_v2 = vpop.permute.xlu0 %3038 }
 0x411   : > { %10242 = vmatprep.mubr.msk.bf16.mxu1 %vm1447_vm7, %v3259_v14  ;;  %v3148_v43 = vsel %vm1281_vm6, %v3116_v49, %v3039_v2 }
 0x412   : > { %v3041_v19 = vpop.permute.xlu1 %3040 }
 0x413   : > { %v3149_v53 = vsel %vm1281_vm6, %v3117_v56, %v3041_v19 }
 0x414   : > { %v13455_v29 = vpack.c.bf16 %v3149_v53, %v3148_v43  ;;  %v2945_v17 = vpop.permute.xlu0 %2944 }
 0x415   : > { %v3118_v41 = vsel %vm1248_vm5, %v13148_v30, %v2945_v17 }
 0x416   : > { %v3205_v39 = vunpack.c.l.bf16 %v13455_v29  ;;  %v3206_v16 = vunpack.c.h.bf16 %v13455_v29  ;;  %v2947_v13 = vpop.permute.xlu1 %2946  ;;  %v3150_v23 = vsel %vm1281_vm6, %v3118_v41, %v3043_v33 }
 0x417   : > { %v3119_v22 = vsel %vm1248_vm5, %v18715_v1, %v2947_v13 }
 0x418   : > { %v3237_v63 = vsub.f32 %v3148_v43, %v3205_v39  ;;  %v3238_v21 = vsub.f32 %v3149_v53, %v3206_v16  ;;  %v3151_v10 = vsel %vm1281_vm6, %v3119_v22, %v3045_v9  ;;  %v2957_v25 = vpop.permute.xlu0 %2956 }
 0x419   : > { %v13465_v20 = vpack.c.bf16 %v3151_v10, %v3150_v23 }
 0x41a   : > { %v3260_v36 = vpack.c.bf16 %v3238_v21, %v3237_v63  ;;  %v2959_v31 = vpop.permute.xlu1 %2958  ;;  %v3124_v21 = vsel %vm1248_vm5, %v13255_v47, %v2957_v25 }
 0x41b   : > { %v3207_v30 = vunpack.c.l.bf16 %v13465_v20  ;;  %v3208_v57 = vunpack.c.h.bf16 %v13465_v20 }
 0x41c   : > { %10243 = vmatmul.mubr.msk.bf16.gmra.mrb[16].mxu1 %vm1447_vm7, %v3260_v36  ;;  %v3051_v5 = vpop.permute.xlu0 %3050 }
 0x41d   : > { %v3239_v26 = vsub.f32 %v3150_v23, %v3207_v30  ;;  %v3240_v6 = vsub.f32 %v3151_v10, %v3208_v57  ;;  %v3125_v23 = vsel %vm1248_vm5, %v13262_v45, %v2959_v31 }
 0x41e   : > { %v3053_v24 = vpop.permute.xlu1 %3052 }
 0x41f   : > { %v3261_v52 = vpack.c.bf16 %v3240_v6, %v3239_v26 }
 0x420   : > { %v3047_v34 = vpop.permute.xlu0 %3046 }
 0x421   : > { %10246 = vmatprep.mubr.msk.bf16.mxu1 %vm1447_vm7, %v3261_v52  ;;  %v3152_v33 = vsel %vm1281_vm6, %v3120_v0, %v3047_v34 }
 0x422   : > { %v3049_v50 = vpop.permute.xlu1 %3048 }
 0x423   : > { %v3153_v42 = vsel %vm1281_vm6, %v3121_v3, %v3049_v50 }
 0x424   : > { %v13477_v44 = vpack.c.bf16 %v3153_v42, %v3152_v33  ;;  %v2953_v9 = vpop.permute.xlu0 %2952 }
 0x425   : > { %v3122_v14 = vsel %vm1248_vm5, %v13194_v54, %v2953_v9 }
 0x426   : > { %v3209_v2 = vunpack.c.l.bf16 %v13477_v44  ;;  %v3210_v49 = vunpack.c.h.bf16 %v13477_v44  ;;  %v2955_v56 = vpop.permute.xlu1 %2954  ;;  %v3154_v55 = vsel %vm1281_vm6, %v3122_v14, %v3051_v5 }
 0x427   : > { %v3123_v27 = vsel %vm1248_vm5, %v13202_v8, %v2955_v56 }
 0x428   : > { %v3241_v59 = vsub.f32 %v3152_v33, %v3209_v2  ;;  %v3242_v61 = vsub.f32 %v3153_v42, %v3210_v49  ;;  %v3155_v19 = vsel %vm1281_vm6, %v3123_v27, %v3053_v24  ;;  %v2965_v43 = vpop.permute.xlu0 %2964 }
 0x429   : > { %v13487_v53 = vpack.c.bf16 %v3155_v19, %v3154_v55  ;;  %v3128_v50 = vsel %vm1248_vm5, %v13287_v37, %v2965_v43 }
 0x42a   : > { %v3262_v17 = vpack.c.bf16 %v3242_v61, %v3241_v59  ;;  %v2967_v41 = vpop.permute.xlu1 %2966 }
 0x42b   : > { %v3211_v54 = vunpack.c.l.bf16 %v13487_v53  ;;  %v3212_v39 = vunpack.c.h.bf16 %v13487_v53 }
 0x42c   : > { %10247 = vmatmul.mubr.msk.bf16.gmra.mrb[20].mxu1 %vm1447_vm7, %v3262_v17  ;;  %v3059_v16 = vpop.permute.xlu0 %3058  ;;  %v4040_v17 = vld [vmem:[%s18436_s7 + $0x28] sm:$0xff] }
 0x42d   : > { %v3243_v13 = vsub.f32 %v3154_v55, %v3211_v54  ;;  %v3244_v8 = vsub.f32 %v3155_v19, %v3212_v39 }
 0x42e   : > { %v3061_v1 = vpop.permute.xlu1 %3060 }
 0x42f   : > { %v3263_v22 = vpack.c.bf16 %v3244_v8, %v3243_v13 }
 0x430   : > { %v3055_v63 = vpop.permute.xlu0 %3054 }
 0x431   : > { %10250 = vmatprep.mubr.msk.bf16.mxu1 %vm1447_vm7, %v3263_v22  ;;  %v3156_v36 = vsel %vm1281_vm6, %v3124_v21, %v3055_v63  ;;  %v4042_v22 = vld [vmem:[%s18436_s7 + $0x38] sm:$0xff] }
 0x432   : > { %v3057_v10 = vpop.permute.xlu1 %3056 }
 0x433   : > { %v3157_v30 = vsel %vm1281_vm6, %v3125_v23, %v3057_v10 }
 0x434   : > { %v13499_v57 = vpack.c.bf16 %v3157_v30, %v3156_v36  ;;  %v2961_v5 = vpop.permute.xlu0 %2960 }
 0x435   : > { %v3126_v26 = vsel %vm1248_vm5, %v13235_v35, %v2961_v5  ;;  %v3129_v35 = vsel %vm1248_vm5, %v13300_v7, %v2967_v41 }
 0x436   : > { %v3213_v6 = vunpack.c.l.bf16 %v13499_v57  ;;  %v3214_v24 = vunpack.c.h.bf16 %v13499_v57  ;;  %v2963_v52 = vpop.permute.xlu1 %2962  ;;  %v3158_v31 = vsel %vm1281_vm6, %v3126_v26, %v3059_v16 }
 0x437   : > { %v3127_v47 = vsel %vm1248_vm5, %v13242_v28, %v2963_v52  ;;  %v4044_v52 = vld [vmem:[%s18436_s7 + $0x48] sm:$0xff]  ;;  %vm6537_vm5 = vcmask 48128  }
 0x438   : > { %v3245_v45 = vsub.f32 %v3156_v36, %v3213_v6  ;;  %v3246_v25 = vsub.f32 %v3157_v30, %v3214_v24  ;;  %v3159_v34 = vsel %vm1281_vm6, %v3127_v47, %v3061_v1  ;;  %v3063_v0 = vpop.permute.xlu0 %3062  ;;  %v4041_v1 = vld [vmem:[%s18436_s7 + $0x30] sm:$0xff]  ;;  %v4043_v24 = vld [vmem:[%s18436_s7 + $0x40] sm:$0xff] }
 0x439   : > { %v3185_v3 = vpack.c.bf16 %v3159_v34, %v3158_v31  ;;  %v3160_v28 = vsel %vm1281_vm6, %v3128_v50, %v3063_v0  ;;  %v13775_v63 = vpack.c.bf16 %v4042_v22, %v4041_v1 }
 0x43a   : > { %v3264_v33 = vpack.c.bf16 %v3246_v25, %v3245_v45  ;;  %v3065_v42 = vpop.permute.xlu1 %3064  ;;  %v13797_v25 = vpack.c.bf16 %v4044_v52, %v4043_v24 }
 0x43b   : > { %v3215_v9 = vunpack.c.l.bf16 %v3185_v3  ;;  %v3216_v14 = vunpack.c.h.bf16 %v3185_v3  ;;  %v3161_v2 = vsel %vm1281_vm6, %v3129_v35, %v3065_v42  ;;  %v4069_v21 = vunpack.c.l.bf16 %v13775_v63 }
 0x43c   : > { %v3186_v49 = vpack.c.bf16 %v3161_v2, %v3160_v28  ;;  %10251 = vmatmul.mubr.msk.bf16.gmra.mrb[24].mxu1 %vm1447_vm7, %v3264_v33  ;;  %v4070_v23 = vunpack.c.h.bf16 %v13775_v63  ;;  %18718 = vst [vmem:[#allocation8_spill] sm:$0xff] %v13797_v25  ;;  %v4071_v35 = vunpack.c.l.bf16 %v13797_v25  ;;  %v4072_v33 = vunpack.c.h.bf16 %v13797_v25 }
 0x43d   : > { %v3247_v56 = vsub.f32 %v3158_v31, %v3215_v9  ;;  %v3248_v27 = vsub.f32 %v3159_v34, %v3216_v14  ;;  %v4085_v10 = vsub.f32 %v4041_v1, %v4069_v21  ;;  %vm6626_vm6 = vcmask 80896  }
 0x43e   : > { %v3217_v59 = vunpack.c.l.bf16 %v3186_v49  ;;  %v3218_v61 = vunpack.c.h.bf16 %v3186_v49  ;;  %v4086_v36 = vsub.f32 %v4042_v22, %v4070_v23 }
 0x43f   : > { %v3265_v55 = vpack.c.bf16 %v3248_v27, %v3247_v56 }
 0x440   : > { %v3249_v37 = vsub.f32 %v3160_v28, %v3217_v59  ;;  %v3250_v19 = vsub.f32 %v3161_v2, %v3218_v61  ;;  %v4098_v6 = vpack.c.bf16 %v4086_v36, %v4085_v10  ;;  %v4087_v2 = vsub.f32 %v4043_v24, %v4071_v35 }
 0x441   : > { %10254 = vmatprep.mubr.msk.bf16.mxu1 %vm1447_vm7, %v3265_v55 }
 0x442   : > { %v3266_v7 = vpack.c.bf16 %v3250_v19, %v3249_v37 }
 0x444   : > { %10255 = vmatmul.mubr.msk.bf16.gmra.mrb[28].mxu1 %vm1447_vm7, %v3266_v7 }
 0x445   : > { %10268 = vmatprep.mubr.msk.bf16.mxu1 %vm1447_vm7, %v13332_v51 }
 0x44c   : > { %10269 = vmatmul.mubr.msk.bf16.vlgmr.msra.gmra.mrb[0].mxu1 %vm1447_vm7, %v13345_v58 }
 0x44d   : > { %10301 = vmatpush3.bf16.msra.mxu1 %v12923_v62  ;;  %10272 = vmatprep.mubr.msk.bf16.mxu1 %vm1447_vm7, %v13361_v60  ;;  %v18716_v62 = vld [vmem:[#allocation44_spill] sm:$0xff] }
 0x44e   : > { %10302 = vmatprep.subr.bf16.mxu1 %v12951_v48 }
 0x451   : > { %10303 = vmatpush3.bf16.msra.mxu1 %v12951_v48  ;;  %v18717_v48 = vmov 0.0  }
 0x452   : > { %10304 = vmatprep.subr.bf16.mxu1 %v12972_v38  ;;  %4670 = vst.msk [vmem:[#allocation3] sm:$0xff] %vm4233_vm10, %v18717_v48  ;;  %4671 = vst.msk [vmem:[#allocation3 + $0x8] sm:$0xff] %vm4233_vm10, %v18717_v48  ;;  %10378 = vmatprep.mubr.msk.bf16.mxu0 %vm11169_vm13, %v18717_v48 }
 0x453   : > { %4672 = vst.msk [vmem:[#allocation3 + $0x10] sm:$0xff] %vm4233_vm10, %v18717_v48  ;;  %4673 = vst.msk [vmem:[#allocation3 + $0x18] sm:$0xff] %vm4233_vm10, %v18717_v48 }
 0x454   : > { %10273 = vmatmul.mubr.msk.bf16.gmra.mrb[4].mxu1 %vm1447_vm7, %v13384_v12  ;;  %4674 = vst.msk [vmem:[#allocation3 + $0x20] sm:$0xff] %vm4233_vm10, %v18717_v48  ;;  %4675 = vst.msk [vmem:[#allocation3 + $0x28] sm:$0xff] %vm4233_vm10, %v18717_v48 }
 0x455   : > { %10276 = vmatprep.mubr.msk.bf16.mxu1 %vm1447_vm7, %v13394_v18  ;;  %10305 = vmatpush3.bf16.msra.mxu1 %v12972_v38  ;;  %v4035_v38 = vld [vmem:[%s18436_s7] sm:$0xff]  ;;  %4676 = vst.msk [vmem:[#allocation3 + $0x30] sm:$0xff] %vm4233_vm10, %v18717_v48  ;;  %4677 = vst.msk [vmem:[#allocation3 + $0x38] sm:$0xff] %vm4233_vm10, %v18717_v48 }
 0x456   : > { %10306 = vmatprep.subr.bf16.mxu1 %v13007_v46  ;;  %4678 = vst.msk [vmem:[#allocation3 + $0x40] sm:$0xff] %vm4233_vm10, %v18717_v48  ;;  %4679 = vst.msk [vmem:[#allocation3 + $0x48] sm:$0xff] %vm4233_vm10, %v18717_v48 }
 0x457   : > { %4680 = vst.msk [vmem:[#allocation3 + $0x50] sm:$0xff] %vm4233_vm10, %v18717_v48  ;;  %4681 = vst.msk [vmem:[#allocation3 + $0x58] sm:$0xff] %vm4233_vm10, %v18717_v48 }
 0x458   : > { %4683 = vst.msk [vmem:[#allocation3 + $0x260] sm:$0xff] %vm4233_vm10, %v18717_v48  ;;  %4684 = vst.msk [vmem:[#allocation3 + $0x268] sm:$0xff] %vm4233_vm10, %v18717_v48 }
 0x459   : > { %10307 = vmatpush3.bf16.msra.mxu1 %v13007_v46  ;;  %v4036_v46 = vld [vmem:[%s18436_s7 + $0x8] sm:$0xff]  ;;  %4685 = vst.msk [vmem:[#allocation3 + $0x270] sm:$0xff] %vm4233_vm10, %v18717_v48  ;;  %4686 = vst.msk [vmem:[#allocation3 + $0x278] sm:$0xff] %vm4233_vm10, %v18717_v48 }
 0x45a   : > { %10931 = vmatprep.subr.msk.bf16.mxu1 %vm1496_vm4, %v18712_v40  ;;  %4687 = vst.msk [vmem:[#allocation3 + $0x280] sm:$0xff] %vm4233_vm10, %v18717_v48  ;;  %4688 = vst.msk [vmem:[#allocation3 + $0x288] sm:$0xff] %vm4233_vm10, %v18717_v48  ;;  %v13795_v45 = vld [vmem:[#allocation3 + $0x10] sm:$0xff] }
 0x45b   : > { %4689 = vst.msk [vmem:[#allocation3 + $0x290] sm:$0xff] %vm4233_vm10, %v18717_v48  ;;  %4690 = vst.msk [vmem:[#allocation3 + $0x298] sm:$0xff] %vm4233_vm10, %v18717_v48  ;;  %v5086_v31 = vrot.slane %v13795_v45, 6  ;;  %v13803_v0 = vld [vmem:[#allocation3 + $0x28] sm:$0xff] }
 0x45c   : > { %10277 = vmatmul.mubr.msk.bf16.gmra.mrb[8].mxu1 %vm1447_vm7, %v13411_v11  ;;  %4691 = vst.msk [vmem:[#allocation3 + $0x2a0] sm:$0xff] %vm4233_vm10, %v18717_v48  ;;  %4692 = vst.msk [vmem:[#allocation3 + $0x2a8] sm:$0xff] %vm4233_vm10, %v18717_v48  ;;  %v5089_v50 = vrot.slane %v13803_v0, 6  ;;  %v13822_v59 = vld [vmem:[#allocation3 + $0x30] sm:$0xff] }
 0x45d   : > { %10280 = vmatprep.mubr.msk.bf16.mxu1 %vm1447_vm7, %v13421_v15  ;;  %10309 = vmatpush3.bf16.msra.mxu1 %v18716_v62  ;;  %4693 = vst.msk [vmem:[#allocation3 + $0x2b0] sm:$0xff] %vm4233_vm10, %v18717_v48  ;;  %4694 = vst.msk [vmem:[#allocation3 + $0x2b8] sm:$0xff] %vm4233_vm10, %v18717_v48  ;;  %v13816_v28 = vld [vmem:[#allocation3 + $0x48] sm:$0xff]  ;;  %v5091_v61 = vrot.slane %v13822_v59, 6 }
 0x45e   : > { %10342 = vmatprep.subr.bf16.mxu1 %v18717_v48  ;;  %4696 = vst.msk [vmem:[#allocation3 + $0x5] sm:$0x7] %vm4695_vm11, %v18717_v48  ;;  %4699 = vst.msk [vmem:[#allocation3 + $0x65] sm:$0x7] %vm4695_vm11, %v18717_v48  ;;  %v5094_v27 = vrot.slane %v13816_v28, 6 }
 0x45f   : > { %4700 = vst.msk [vmem:[#allocation3 + $0x85] sm:$0x7] %vm4695_vm11, %v18717_v48  ;;  %4701 = vst.msk [vmem:[#allocation3 + $0xa5] sm:$0x7] %vm4695_vm11, %v18717_v48  ;;  %v5092_v19 = vsel %vm5082_vm12, %v5089_v50, %v5091_v61  ;;  %v13830_v62 = vld [vmem:[#allocation3 + $0x268] sm:$0xff] }
 0x460   : > { %4702 = vst.msk [vmem:[#allocation3 + $0xc5] sm:$0x7] %vm4695_vm11, %v18717_v48  ;;  %4703 = vst.msk [vmem:[#allocation3 + $0xe5] sm:$0x7] %vm4695_vm11, %v18717_v48 }
 0x461   : > { %4704 = vst.msk [vmem:[#allocation3 + $0x105] sm:$0x7] %vm4695_vm11, %v18717_v48  ;;  %4705 = vst.msk [vmem:[#allocation3 + $0x125] sm:$0x7] %vm4695_vm11, %v18717_v48 }
 0x462   : > { %4706 = vst.msk [vmem:[#allocation3 + $0x145] sm:$0x7] %vm4695_vm11, %v18717_v48  ;;  %4707 = vst.msk [vmem:[#allocation3 + $0x165] sm:$0x7] %vm4695_vm11, %v18717_v48  ;;  %v13883_v24 = vld [vmem:[#allocation3 + $0x290] sm:$0xff] }
 0x463   : > { %4708 = vst.msk [vmem:[#allocation3 + $0x185] sm:$0x7] %vm4695_vm11, %v18717_v48  ;;  %4709 = vst.msk [vmem:[#allocation3 + $0x1a5] sm:$0x7] %vm4695_vm11, %v18717_v48  ;;  %v13877_v10 = vld [vmem:[#allocation3 + $0x2a8] sm:$0xff] }
 0x464   : > { %10281 = vmatmul.mubr.msk.bf16.gmra.mrb[12].mxu1 %vm1447_vm7, %v13433_v32  ;;  %4710 = vst.msk [vmem:[#allocation3 + $0x1c5] sm:$0x7] %vm4695_vm11, %v18717_v48  ;;  %4711 = vst.msk [vmem:[#allocation3 + $0x1e5] sm:$0x7] %vm4695_vm11, %v18717_v48  ;;  %v13905_v61 = vld [vmem:[#allocation3 + $0x2b0] sm:$0xff] }
 0x465   : > { %10284 = vmatprep.mubr.msk.bf16.mxu1 %vm1447_vm7, %v13443_v4  ;;  %4712 = vst.msk [vmem:[#allocation3 + $0x205] sm:$0x7] %vm4695_vm11, %v18717_v48  ;;  %4713 = vst.msk [vmem:[#allocation3 + $0x225] sm:$0x7] %vm4695_vm11, %v18717_v48  ;;  %v13782_v30 = vld [vmem:[#allocation3] sm:$0xff] }
 0x466   : > { %4714 = vst.msk [vmem:[#allocation3 + $0x245] sm:$0x7] %vm4695_vm11, %v18717_v48  ;;  %4721 = vst.msk [vmem:[#allocation3 + $0x78] sm:$0x7] %vm4695_vm11, %v18717_v48  ;;  %v5083_v5 = vrot.slane %v13782_v30, 6 }
 0x467   : > { %4722 = vst.msk [vmem:[#allocation3 + $0x98] sm:$0x7] %vm4695_vm11, %v18717_v48  ;;  %4723 = vst.msk [vmem:[#allocation3 + $0xb8] sm:$0x7] %vm4695_vm11, %v18717_v48 }
 0x468   : > { %4724 = vst.msk [vmem:[#allocation3 + $0xd8] sm:$0x7] %vm4695_vm11, %v18717_v48  ;;  %4725 = vst.msk [vmem:[#allocation3 + $0xf8] sm:$0x7] %vm4695_vm11, %v18717_v48 }
 0x469   : > { %4726 = vst.msk [vmem:[#allocation3 + $0x118] sm:$0x7] %vm4695_vm11, %v18717_v48  ;;  %4727 = vst.msk [vmem:[#allocation3 + $0x138] sm:$0x7] %vm4695_vm11, %v18717_v48 }
 0x46a   : > { %4728 = vst.msk [vmem:[#allocation3 + $0x158] sm:$0x7] %vm4695_vm11, %v18717_v48  ;;  %4729 = vst.msk [vmem:[#allocation3 + $0x178] sm:$0x7] %vm4695_vm11, %v18717_v48 }
 0x46b   : > { %4730 = vst.msk [vmem:[#allocation3 + $0x198] sm:$0x7] %vm4695_vm11, %v18717_v48  ;;  %4731 = vst.msk [vmem:[#allocation3 + $0x1b8] sm:$0x7] %vm4695_vm11, %v18717_v48 }
 0x46c   : > { %10285 = vmatmul.mubr.msk.bf16.gmra.mrb[16].mxu1 %vm1447_vm7, %v13455_v29  ;;  %4732 = vst.msk [vmem:[#allocation3 + $0x1d8] sm:$0x7] %vm4695_vm11, %v18717_v48  ;;  %4733 = vst.msk [vmem:[#allocation3 + $0x1f8] sm:$0x7] %vm4695_vm11, %v18717_v48 }
 0x46d   : > { %10288 = vmatprep.mubr.msk.bf16.mxu1 %vm1447_vm7, %v13465_v20  ;;  %4734 = vst.msk [vmem:[#allocation3 + $0x218] sm:$0x7] %vm4695_vm11, %v18717_v48  ;;  %4735 = vst.msk [vmem:[#allocation3 + $0x238] sm:$0x7] %vm4695_vm11, %v18717_v48 }
 0x46e   : > { %4736 = vst.msk [vmem:[#allocation3 + $0x258] sm:$0x7] %vm4695_vm11, %v18717_v48  ;;  %4697 = vst.msk [vmem:[#allocation3 + $0x25] sm:$0x7] %vm4695_vm11, %v18717_v48 }
 0x46f   : > { %4698 = vst.msk [vmem:[#allocation3 + $0x45] sm:$0x7] %vm4695_vm11, %v18717_v48  ;;  %4715 = vst.msk [vmem:[#allocation3 + $0x265] sm:$0x7] %vm4695_vm11, %v18717_v48 }
 0x470   : > { %4716 = vst.msk [vmem:[#allocation3 + $0x285] sm:$0x7] %vm4695_vm11, %v18717_v48  ;;  %4717 = vst.msk [vmem:[#allocation3 + $0x2a5] sm:$0x7] %vm4695_vm11, %v18717_v48 }
 0x471   : > { %4718 = vst.msk [vmem:[#allocation3 + $0x18] sm:$0x7] %vm4695_vm11, %v18717_v48  ;;  %4719 = vst.msk [vmem:[#allocation3 + $0x38] sm:$0x7] %vm4695_vm11, %v18717_v48 }
 0x472   : > { %4720 = vst.msk [vmem:[#allocation3 + $0x58] sm:$0x7] %vm4695_vm11, %v18717_v48  ;;  %4737 = vst.msk [vmem:[#allocation3 + $0x278] sm:$0x7] %vm4695_vm11, %v18717_v48 }
 0x473   : > { %4738 = vst.msk [vmem:[#allocation3 + $0x298] sm:$0x7] %vm4695_vm11, %v18717_v48  ;;  %4739 = vst.msk [vmem:[#allocation3 + $0x2b8] sm:$0x7] %vm4695_vm11, %v18717_v48  ;;  %vm7400_vm11 = vcmask 343040  }
 0x474   : > { %10289 = vmatmul.mubr.msk.bf16.gmra.mrb[20].mxu1 %vm1447_vm7, %v13477_v44 }
 0x475   : > { %10292 = vmatprep.mubr.msk.bf16.mxu1 %vm1447_vm7, %v13487_v53  ;;  %v13801_v34 = vld [vmem:[#allocation3 + $0x20] sm:$0xff] }
 0x476   : > { %v13814_v14 = vld [vmem:[#allocation3 + $0x40] sm:$0xff] }
 0x477   : > { %v5093_v56 = vrot.slane %v13814_v14, 6  ;;  %v13828_v7 = vld [vmem:[#allocation3 + $0x260] sm:$0xff] }
 0x478   : > { %v13875_v23 = vld [vmem:[#allocation3 + $0x2a0] sm:$0xff] }
 0x479   : > { %v5095_v37 = vsel %vm5082_vm12, %v5093_v56, %v5094_v27 }
 0x47c   : > { %10293 = vmatmul.mubr.msk.bf16.gmra.mrb[24].mxu1 %vm1447_vm7, %v13499_v57 }
 0x47d   : > { %10296 = vmatprep.mubr.msk.bf16.mxu1 %vm1447_vm7, %v3185_v3 }
 0x484   : > { %10297 = vmatmul.mubr.msk.bf16.gmra.mrb[28].mxu1 %vm1447_vm7, %v3186_v49 }
 0x485   : > { %10310 = vmatprep.mubr.msk.bf16.mxu1 %vm1447_vm7, %v13332_v51  ;;  %v13595_v51 = vpack.c.bf16 %v4036_v46, %v4035_v38 }
 0x48c   : > { %10311 = vmatmul.mubr.msk.bf16.vlgmr.msra.gmra.mrb[0].mxu1 %vm1447_vm7, %v13345_v58  ;;  %v4063_v58 = vunpack.c.l.bf16 %v13595_v51 }
 0x48d   : > { %10314 = vmatprep.mubr.msk.bf16.mxu1 %vm1447_vm7, %v13361_v60  ;;  %v4064_v60 = vunpack.c.h.bf16 %v13595_v51  ;;  %10343 = vmatpush3.bf16.msra.mxu1 %v13595_v51 }
 0x48e   : > { %10344 = vmatprep.subr.bf16.mxu1 %v18717_v48  ;;  %v4079_v40 = vsub.f32 %v4035_v38, %v4063_v58  ;;  %v5178_v38 = vrot.slane %v13828_v7, 6  ;;  %v13835_v58 = vld [vmem:[#allocation3 + $0x50] sm:$0xff] }
 0x494   : > { %10315 = vmatmul.mubr.msk.bf16.gmra.mrb[4].mxu1 %vm1447_vm7, %v13384_v12  ;;  %v4080_v12 = vsub.f32 %v4036_v46, %v4064_v60  ;;  %v5179_v46 = vrot.slane %v13830_v62, 6  ;;  %v4045_v60 = vld [vmem:[%s18436_s7 + $0x50] sm:$0xff] }
 0x495   : > { %10318 = vmatprep.mubr.msk.bf16.mxu1 %vm1447_vm7, %v13394_v18 }
 0x496   : > { %v4095_v18 = vpack.c.bf16 %v4080_v12, %v4079_v40  ;;  %v4046_v40 = vld [vmem:[%s18436_s7 + $0x58] sm:$0xff]  ;;  %v5096_v12 = vrot.slane %v13835_v58, 6 }
 0x498   : > { %10363 = vmatpush3.bf16.msra.mxu0 %v4095_v18  ;;  %v13845_v18 = vpack.c.bf16 %v4046_v40, %v4045_v60 }
 0x499   : > { %10364 = vmatprep.subr.bf16.mxu0 %v18717_v48 }
 0x49a   : > { %18719 = vst [vmem:[#allocation37_spill] sm:$0xff] %v13845_v18 }
 0x49c   : > { %10319 = vmatmul.mubr.msk.bf16.gmra.mrb[8].mxu1 %vm1447_vm7, %v13411_v11  ;;  %v4037_v11 = vld [vmem:[%s18436_s7 + $0x10] sm:$0xff] }
 0x49d   : > { %10322 = vmatprep.mubr.msk.bf16.mxu1 %vm1447_vm7, %v13421_v15  ;;  %v4038_v15 = vld [vmem:[%s18436_s7 + $0x18] sm:$0xff] }
 0x4a4   : > { %10323 = vmatmul.mubr.msk.bf16.gmra.mrb[12].mxu1 %vm1447_vm7, %v13433_v32  ;;  %v13607_v32 = vpack.c.bf16 %v4038_v15, %v4037_v11 }
 0x4a5   : > { %10326 = vmatprep.mubr.msk.bf16.mxu1 %vm1447_vm7, %v13443_v4 }
 0x4a6   : > { %v4065_v4 = vunpack.c.l.bf16 %v13607_v32  ;;  %10345 = vmatpush3.bf16.msra.mxu1 %v13607_v32 }
 0x4a7   : > { %10346 = vmatprep.subr.bf16.mxu1 %v18717_v48 }
 0x4ac   : > { %10327 = vmatmul.mubr.msk.bf16.gmra.mrb[16].mxu1 %vm1447_vm7, %v13455_v29  ;;  %v4066_v29 = vunpack.c.h.bf16 %v13607_v32 }
 0x4ad   : > { %10330 = vmatprep.mubr.msk.bf16.mxu1 %vm1447_vm7, %v13465_v20  ;;  %v4081_v20 = vsub.f32 %v4037_v11, %v4065_v4  ;;  %v5180_v11 = vsel %vm5082_vm12, %v5178_v38, %v5179_v46  ;;  %v13850_v4 = vld [vmem:[#allocation3 + $0x280] sm:$0xff]  ;;  %v5199_v38 = vrot.slane %v13803_v0, 7 }
 0x4b4   : > { %10331 = vmatmul.mubr.msk.bf16.gmra.mrb[20].mxu1 %vm1447_vm7, %v13477_v44  ;;  %v4082_v44 = vsub.f32 %v4038_v15, %v4066_v29  ;;  %v5097_v15 = vsel %vm5082_vm12, %v5094_v27, %v5096_v12  ;;  %v13852_v29 = vld [vmem:[#allocation3 + $0x288] sm:$0xff]  ;;  %v5193_v27 = vrot.slane %v13782_v30, 7 }
 0x4b5   : > { %10334 = vmatprep.mubr.msk.bf16.mxu1 %vm1447_vm7, %v13487_v53  ;;  %v4039_v53 = vld [vmem:[%s18436_s7 + $0x20] sm:$0xff] }
 0x4b6   : > { %v4096_v43 = vpack.c.bf16 %v4082_v44, %v4081_v20  ;;  %v13620_v41 = vpack.c.bf16 %v4040_v17, %v4039_v53  ;;  %v4073_v20 = vunpack.c.l.bf16 %v13845_v18  ;;  %v4074_v44 = vunpack.c.h.bf16 %v13845_v18 }
 0x4b8   : > { %10365 = vmatpush3.bf16.msra.mxu0 %v4096_v43  ;;  %v4067_v54 = vunpack.c.l.bf16 %v13620_v41  ;;  %v4068_v39 = vunpack.c.h.bf16 %v13620_v41  ;;  %10347 = vmatpush3.bf16.msra.mxu1 %v13620_v41  ;;  %v5183_v43 = vrot.slane %v13850_v4, 6 }
 0x4b9   : > { %10366 = vmatprep.subr.bf16.mxu0 %v18717_v48  ;;  %10348 = vmatprep.subr.bf16.mxu1 %v18717_v48 }
 0x4ba   : > { %v13627_v16 = vsub.f32 %v4039_v53, %v4067_v54  ;;  %v13629_v13 = vsub.f32 %v4040_v17, %v4068_v39  ;;  %v5184_v53 = vrot.slane %v13852_v29, 6  ;;  %v13859_v17 = vld [vmem:[#allocation3 + $0x270] sm:$0xff]  ;;  %v4047_v54 = vld [vmem:[%s18436_s7 + $0x60] sm:$0xff]  ;;  %v4048_v39 = vld [vmem:[%s18436_s7 + $0x68] sm:$0xff] }
 0x4bb   : > { %v13870_v1 = vpack.c.bf16 %v4048_v39, %v4047_v54 }
 0x4bc   : > { %10335 = vmatmul.mubr.msk.bf16.gmra.mrb[24].mxu1 %vm1447_vm7, %v13499_v57  ;;  %v4097_v8 = vpack.c.bf16 %v13629_v13, %v13627_v16  ;;  %v13784_v57 = vld [vmem:[#allocation3 + $0x8] sm:$0xff]  ;;  %v5181_v16 = vrot.slane %v13859_v17, 6  ;;  %v4089_v13 = vsub.f32 %v4045_v60, %v4073_v20  ;;  %v5185_v22 = vsel %vm5082_vm12, %v5183_v43, %v5184_v53 }
 0x4bd   : > { %10338 = vmatprep.mubr.msk.bf16.mxu1 %vm1447_vm7, %v3185_v3  ;;  %10349 = vmatpush3.bf16.msra.mxu1 %v13775_v63  ;;  %v5084_v26 = vrot.slane %v13784_v57, 6  ;;  %v5088_v3 = vrot.slane %v13801_v34, 6  ;;  %18720 = vst [vmem:[#allocation38_spill] sm:$0xff] %v13870_v1  ;;  %v5203_v20 = vrot.slane %v13814_v14, 7  ;;  %v5201_v43 = vrot.slane %v13822_v59, 7 }
 0x4be   : > { %10367 = vmatpush3.bf16.msra.mxu0 %v4097_v8  ;;  %10350 = vmatprep.subr.bf16.mxu1 %v18717_v48  ;;  %v4090_v8 = vsub.f32 %v4046_v40, %v4074_v44  ;;  %v5182_v21 = vsel %vm5082_vm12, %v5179_v46, %v5181_v16  ;;  %v5196_v40 = vrot.slane %v13795_v45, 7  ;;  %v5204_v44 = vrot.slane %v13816_v28, 7 }
 0x4bf   : > { %10368 = vmatprep.subr.bf16.mxu0 %v18717_v48  ;;  %v5085_v47 = vsel %vm5082_vm12, %v5083_v5, %v5084_v26  ;;  %v5087_v42 = vsel %vm5082_vm12, %v5084_v26, %v5086_v31  ;;  %v5090_v9 = vsel %vm5082_vm12, %v5088_v3, %v5089_v50  ;;  %v4075_v5 = vunpack.c.l.bf16 %v13870_v1  ;;  %v4049_v31 = vld [vmem:[%s18436_s7 + $0x70] sm:$0xff]  ;;  %v4050_v3 = vld [vmem:[%s18436_s7 + $0x78] sm:$0xff] }
 0x4c0   : > { %5656 = vrot.lane.b32.xlu1 %v5085_v47, %s11168_s27  ;;  %5658 = vrot.lane.b32.xlu0 %v5087_v42, %s11168_s27  ;;  %v4100_v36 = vpack.c.bf16 %v4090_v8, %v4089_v13  ;;  %v4076_v26 = vunpack.c.h.bf16 %v13870_v1  ;;  %v5186_v47 = vrot.slane %v13883_v24, 6  ;;  %v5289_v16 = vrot.slane %v13830_v62, 7 }
 0x4c1   : > { %10351 = vmatpush3.bf16.msra.mxu1 %v13797_v25  ;;  %v4091_v50 = vsub.f32 %v4047_v54, %v4075_v5  ;;  %v5202_v54 = vsel %vm2349_vm9, %v5199_v38, %v5201_v43  ;;  %v5206_v13 = vrot.slane %v13835_v58, 7  ;;  %v5420_v43 = vrot.slane %v13830_v62, 1 }
 0x4c2   : > { %10369 = vmatpush3.bf16.msra.mxu0 %v4098_v6  ;;  %10352 = vmatprep.subr.bf16.mxu1 %v18717_v48  ;;  %v5188_v6 = vrot.slane %v13875_v23, 6  ;;  %v4092_v35 = vsub.f32 %v4048_v39, %v4076_v26  ;;  %v5288_v39 = vrot.slane %v13828_v7, 7  ;;  %v5298_v26 = vrot.slane %v13875_v23, 7 }
 0x4c3   : > { %10370 = vmatprep.subr.bf16.mxu0 %v18717_v48  ;;  %v5207_v8 = vsel %vm2349_vm9, %v5204_v44, %v5206_v13  ;;  %v5325_v23 = vrot.slane %v13784_v57, 1 }
 0x4c4   : > { %10339 = vmatmul.mubr.msk.bf16.gmra.mrb[28].mxu1 %vm1447_vm7, %v3186_v49  ;;  %v4088_v49 = vsub.f32 %v4044_v52, %v4072_v33  ;;  %5660 = vrot.lane.b32.xlu1 %v5090_v9, %s11168_s27  ;;  %v5189_v52 = vrot.slane %v13877_v10, 6  ;;  %v13895_v33 = vpack.c.bf16 %v4050_v3, %v4049_v31  ;;  %v5187_v9 = vsel %vm5082_vm12, %v5184_v53, %v5186_v47 }
 0x4c5   : > { %5664 = vrot.lane.b32.xlu0 %v5095_v37, %s11168_s27  ;;  %10353 = vmatpush3.bf16.msra.mxu1 %v13845_v18  ;;  %v5191_v37 = vrot.slane %v13905_v61, 6  ;;  %v5205_v53 = vsel %vm2349_vm9, %v5203_v20, %v5204_v44  ;;  %v5290_v14 = vsel %vm2349_vm9, %v5288_v39, %v5289_v16  ;;  %v14012_v44 = vld [vmem:[#allocation3 + $0x58] sm:$0xff]  ;;  %vm6671_vm7 = vcmask 97280  }
 0x4c6   : > { %v4099_v55 = vpack.c.bf16 %v4088_v49, %v4087_v2  ;;  %10354 = vmatprep.subr.bf16.mxu1 %v18717_v48  ;;  %18721 = vst [vmem:[#allocation39_spill] sm:$0xff] %v13895_v33  ;;  %v5190_v42 = vsel %vm5082_vm12, %v5188_v6, %v5189_v52  ;;  %v4101_v2 = vpack.c.bf16 %v4092_v35, %v4091_v50  ;;  %v4077_v49 = vunpack.c.l.bf16 %v13895_v33  ;;  %v13979_v35 = vld [vmem:[#allocation3 + $0x18] sm:$0xff] }
 0x4c7   : > { %v4078_v56 = vunpack.c.h.bf16 %v13895_v33  ;;  %v5192_v12 = vsel %vm5082_vm12, %v5189_v52, %v5191_v37  ;;  %10358 = vmatprep.mubr.msk.bf16.mxu1 %vm11169_vm13, %v18717_v48  ;;  %v5299_v6 = vrot.slane %v13877_v10, 7  ;;  %v5296_v52 = vrot.slane %v13883_v24, 7 }
 0x4c8   : > { %10371 = vmatpush3.bf16.msra.mxu0 %v4099_v55  ;;  %5662 = vrot.lane.b32.xlu1 %v5092_v19, %s11168_s27  ;;  %v5194_v55 = vrot.slane %v13784_v57, 7  ;;  %v5198_v19 = vrot.slane %v13801_v34, 7  ;;  %v4093_v46 = vsub.f32 %v4049_v31, %v4077_v49  ;;  %v5301_v31 = vrot.slane %v13905_v61, 7 }
 0x4c9   : > { %10372 = vmatprep.subr.bf16.mxu0 %v18717_v48  ;;  %5732 = vrot.lane.b32.xlu0 %v5180_v11, %s11168_s27  ;;  %v4094_v60 = vsub.f32 %v4050_v3, %v4078_v56  ;;  %v5326_v50 = vrot.slane %v13795_v45, 1  ;;  %v5330_v49 = vrot.slane %v13803_v0, 1  ;;  %v5331_v56 = vrot.slane %v13822_v59, 1 }
 0x4ca   : > { %10355 = vmatpush3.bf16.msra.mxu1 %v13870_v1  ;;  %v5195_v30 = vsel %vm2349_vm9, %v5193_v27, %v5194_v55  ;;  %v5200_v11 = vsel %vm2349_vm9, %v5198_v19, %v5199_v38  ;;  %v5302_v3 = vsel %vm2349_vm9, %v5299_v6, %v5301_v31  ;;  %v5328_v27 = vrot.slane %v13979_v35, 1 }
 0x4cb   : > { %10356 = vmatprep.subr.bf16.mxu1 %v18717_v48  ;;  %v4102_v34 = vpack.c.bf16 %v4094_v60, %v4093_v46  ;;  %v14000_v46 = vld [vmem:[%s18435_s6] ss:$0 sm:$0xff]  ;;  %v5338_v13 = vrot.slane %v14012_v44, 1 }
 0x4cc   : > { %5666 = vrot.lane.b32.xlu1 %v5097_v15, %s11168_s27  ;;  %10373 = vmatpush3.bf16.msra.mxu0 %v4100_v36  ;;  %v5197_v15 = vsel %vm2349_vm9, %v5194_v55, %v5196_v40  ;;  %v5291_v36 = vrot.slane %v13859_v17, 7  ;;  %v13994_v55 = vld [vmem:[#allocation3 + $0x38] sm:$0xff]  ;;  %v5335_v40 = vrot.slane %v13816_v28, 1  ;;  %v5329_v20 = vsel %vm550_vm0, %v5326_v50, %v5328_v27 }
 0x4cd   : > { %5736 = vrot.lane.b32.xlu0 %v5185_v22, %s11168_s27  ;;  %10374 = vmatprep.subr.bf16.mxu0 %v18717_v48  ;;  %v5293_v22 = vrot.slane %v13850_v4, 7  ;;  %v5300_v4 = vsel %vm2349_vm9, %v5298_v26, %v5299_v6 }
 0x4ce   : > { %10357 = vmatpush3.bf16.msra.mxu1 %v13895_v33  ;;  %v5292_v5 = vsel %vm2349_vm9, %v5289_v16, %v5291_v36  ;;  %v5421_v16 = vrot.slane %v13859_v17, 1 }
 0x4cf   : > { %10408 = vmatprep.subr.bf16.mxu1 %v18717_v48 }
 0x4d0   : > { %5734 = vrot.lane.b32.xlu1 %v5182_v21, %s11168_s27  ;;  %10375 = vmatpush3.bf16.msra.mxu0 %v4101_v2  ;;  %v5294_v21 = vrot.slane %v13852_v29, 7  ;;  %v5327_v2 = vsel %vm550_vm0, %v5325_v23, %v5326_v50  ;;  %v5425_v23 = vrot.slane %v13852_v29, 1  ;;  %v5426_v50 = vrot.slane %v13883_v24, 1 }
 0x4d1   : > { %5740 = vrot.lane.b32.xlu0 %v5190_v42, %s11168_s27  ;;  %10376 = vmatprep.subr.bf16.mxu0 %v18717_v48  ;;  %v13984_v42 = vld [vmem:[%s18434_s5] ss:$0 sm:$0xff] }
 0x4d2   : > { %v5295_v7 = vsel %vm2349_vm9, %v5293_v22, %v5294_v21  ;;  %v5297_v47 = vsel %vm2349_vm9, %v5294_v21, %v5296_v52 }
 0x4d4   : > { %5738 = vrot.lane.b32.xlu1 %v5187_v9, %s11168_s27  ;;  %10377 = vmatpush3.bf16.msra.mxu0 %v4102_v34 }
 0x4d5   : > { %5788 = vrot.lane.b32.xlu0 %v5195_v30, %s11170_s24  ;;  %10382 = vmatprep.subr.bf16.mxu0 %v18717_v48  ;;  %v5336_v30 = vrot.slane %v13835_v58, 1 }
 0x4d7   : > { %v5337_v21 = vsel %vm550_vm0, %v5335_v40, %v5336_v30  ;;  %v5430_v40 = vrot.slane %v13877_v10, 1 }
 0x4d8   : > { %5742 = vrot.lane.b32.xlu1 %v5192_v12, %s11168_s27  ;;  %v5333_v12 = vrot.slane %v13994_v55, 1 }
 0x4d9   : > { %5792 = vrot.lane.b32.xlu0 %v5200_v11, %s11170_s24 }
 0x4da   : > { %v5334_v36 = vsel %vm550_vm0, %v5331_v56, %v5333_v12 }
 0x4dc   : > { %5790 = vrot.lane.b32.xlu1 %v5197_v15, %s11170_s24  ;;  %v5332_v15 = vsel %vm550_vm0, %v5330_v49, %v5331_v56 }
 0x4dd   : > { %5796 = vrot.lane.b32.xlu0 %v5205_v53, %s11170_s24 }
 0x4e0   : > { %5794 = vrot.lane.b32.xlu1 %v5202_v54, %s11170_s24 }
 0x4e1   : > { %5864 = vrot.lane.b32.xlu0 %v5290_v14, %s11170_s24 }
 0x4e4   : > { %5798 = vrot.lane.b32.xlu1 %v5207_v8, %s11170_s24 }
 0x4e5   : > { %5868 = vrot.lane.b32.xlu0 %v5295_v7, %s11170_s24  ;;  %v14033_v7 = vld [vmem:[#allocation3 + $0x278] sm:$0xff] }
 0x4e8   : > { %5866 = vrot.lane.b32.xlu1 %v5292_v5, %s11170_s24 }
 0x4e9   : > { %5872 = vrot.lane.b32.xlu0 %v5300_v4, %s11170_s24 }
 0x4ec   : > { %5870 = vrot.lane.b32.xlu1 %v5297_v47, %s11170_s24  ;;  %v5422_v47 = vsel %vm550_vm0, %v5420_v43, %v5421_v16 }
 0x4ed   : > { %5920 = vrot.lane.b32.xlu0 %v13784_v57, %s11171_s28 }
 0x4f0   : > { %5874 = vrot.lane.b32.xlu1 %v5302_v3, %s11170_s24  ;;  %v5339_v3 = vsel %vm550_vm0, %v5336_v30, %v5338_v13  ;;  %v5431_v30 = vrot.slane %v13905_v61, 1 }
 0x4f1   : > { %5924 = vrot.lane.b32.xlu0 %v13803_v0, %s11171_s28 }
 0x4f4   : > { %5922 = vrot.lane.b32.xlu1 %v13795_v45, %s11171_s28 }
 0x4f5   : > { %5928 = vrot.lane.b32.xlu0 %v13816_v28, %s11171_s28 }
 0x4f8   : > { %5926 = vrot.lane.b32.xlu1 %v13822_v59, %s11171_s28 }
 0x4f9   : > { %5996 = vrot.lane.b32.xlu0 %v13830_v62, %s11171_s28 }
 0x4fc   : > { %5930 = vrot.lane.b32.xlu1 %v13835_v58, %s11171_s28 }
 0x4fd   : > { %6000 = vrot.lane.b32.xlu0 %v13852_v29, %s11171_s28 }
 0x500   : > { %5998 = vrot.lane.b32.xlu1 %v13859_v17, %s11171_s28 }
 0x501   : > { %6004 = vrot.lane.b32.xlu0 %v13877_v10, %s11171_s28 }
 0x504   : > { %6002 = vrot.lane.b32.xlu1 %v13883_v24, %s11171_s28 }
 0x505   : > { %6052 = vrot.lane.b32.xlu0 %v5327_v2, %s11163_s14 }
 0x508   : > { %6006 = vrot.lane.b32.xlu1 %v13905_v61, %s11171_s28 }
 0x509   : > { %6056 = vrot.lane.b32.xlu0 %v5332_v15, %s11163_s14 }
 0x50c   : > { %6054 = vrot.lane.b32.xlu1 %v5329_v20, %s11163_s14  ;;  %v5427_v20 = vsel %vm550_vm0, %v5425_v23, %v5426_v50 }
 0x50d   : > { %6060 = vrot.lane.b32.xlu0 %v5337_v21, %s11163_s14 }
 0x510   : > { %6058 = vrot.lane.b32.xlu1 %v5334_v36, %s11163_s14 }
 0x511   : > { %6128 = vrot.lane.b32.xlu0 %v5422_v47, %s11163_s14 }
 0x514   : > { %6062 = vrot.lane.b32.xlu1 %v5339_v3, %s11163_s14 }
 0x515   : > { %6132 = vrot.lane.b32.xlu0 %v5427_v20, %s11163_s14 }
 0x55f   : > { %v10312_v9 = vpop.f32.mrb[0].mxu1 }
 0x560   : > { %v3753_v37 = vpop.f32.mrb[1].mxu1  ;;  %v3889_v34 = vmul.f32 %v10312_v9, %v13984_v42  ;;  %v5423_v9 = vrot.slane %v14033_v7, 1 }
 0x561   : > { %v3887_v19 = vmul.f32 %v13984_v42, %v3753_v37  ;;  %v10313_v38 = vpop.f32.mrb[2].mxu1  ;;  %v14053_v37 = vld [vmem:[#allocation3 + $0x298] sm:$0xff] }
 0x562   : > { %v3756_v60 = vpop.f32.mrb[3].mxu1  ;;  %v3890_v54 = vmul.f32 %v10313_v38, %v13984_v42  ;;  %v14027_v14 = vadd.f32 %v14000_v46, %v3889_v34  ;;  %v5428_v12 = vrot.slane %v14053_v37, 1  ;;  %v5424_v43 = vsel %vm550_vm0, %v5421_v16, %v5423_v9 }
 0x563   : > { %v3888_v11 = vmul.f32 %v13984_v42, %v3756_v60  ;;  %v14016_v53 = vadd.f32 %v14000_v46, %v3887_v19  ;;  %6130 = vrot.lane.b32.xlu1 %v5424_v43, %s11163_s14  ;;  %v5432_v16 = vsel %vm550_vm0, %v5430_v40, %v5431_v30 }
 0x564   : > { %v14036_v26 = vadd.f32 %v14000_v46, %v3890_v54  ;;  %v14071_v54 = vld [vmem:[#allocation3 + $0x2b8] sm:$0xff]  ;;  %6136 = vrot.lane.b32.xlu0 %v5432_v16, %s11163_s14 }
 0x565   : > { %v14020_v39 = vadd.f32 %v14000_v46, %v3888_v11  ;;  %v5433_v47 = vrot.slane %v14071_v54, 1 }
 0x567   : > { %v3958_v8 = vadd.f32 %v14020_v39, %v14016_v53  ;;  %v10316_v22 = vpop.f32.mrb[4].mxu1  ;;  %v5434_v20 = vsel %vm550_vm0, %v5431_v30, %v5433_v47  ;;  %v5443_v47 = vrot.slane %v13994_v55, 2 }
 0x568   : > { %v3769_v5 = vpop.f32.mrb[5].mxu1  ;;  %v3893_v2 = vmul.f32 %v10316_v22, %v13984_v42 }
 0x569   : > { %v3959_v6 = vadd.f32 %v3958_v8, %v14027_v14  ;;  %v3891_v52 = vmul.f32 %v13984_v42, %v3769_v5  ;;  %v10317_v4 = vpop.f32.mrb[6].mxu1  ;;  %v5435_v5 = vrot.slane %v13784_v57, 2 }
 0x56a   : > { %v3772_v31 = vpop.f32.mrb[7].mxu1  ;;  %v3894_v38 = vmul.f32 %v10317_v4, %v13984_v42  ;;  %v14066_v34 = vadd.f32 %v14000_v46, %v3893_v2  ;;  %v5436_v4 = vrot.slane %v13795_v45, 2 }
 0x56b   : > { %v14049_v49 = vadd.f32 %v14000_v46, %v3891_v52  ;;  %v3960_v56 = vadd.f32 %v3959_v6, %v14036_v26  ;;  %v3892_v27 = vmul.f32 %v13984_v42, %v3772_v31  ;;  %v5429_v52 = vsel %vm550_vm0, %v5426_v50, %v5428_v12 }
 0x56c   : > { %18722 = vst [vmem:[#allocation40_spill] sm:$0xff] %v14066_v34  ;;  %v14074_v8 = vadd.f32 %v14000_v46, %v3894_v38  ;;  %6134 = vrot.lane.b32.xlu1 %v5429_v52, %s11163_s14  ;;  %v5440_v50 = vrot.slane %v13803_v0, 2  ;;  %v5438_v38 = vrot.slane %v13979_v35, 2  ;;  %v5446_v52 = vrot.slane %v13835_v58, 2 }
 0x56d   : > { %v3961_v19 = vadd.f32 %v3960_v56, %v14049_v49  ;;  %v14058_v60 = vadd.f32 %v14000_v46, %v3892_v27 }
 0x56e   : > { %18723 = vst [vmem:[#allocation43_spill] sm:$0xff] %v14074_v8  ;;  %v5439_v30 = vsel %vm641_vm1, %v5436_v4, %v5438_v38  ;;  %v5531_v38 = vrot.slane %v13859_v17, 2 }
 0x56f   : > { %v3962_v11 = vadd.f32 %v3961_v19, %v14058_v60  ;;  %v10320_v15 = vpop.f32.mrb[8].mxu1  ;;  %v5441_v19 = vrot.slane %v13822_v59, 2 }
 0x570   : > { %v3785_v13 = vpop.f32.mrb[9].mxu1  ;;  %v3897_v31 = vmul.f32 %v10320_v15, %v13984_v42  ;;  %v5437_v15 = vsel %vm641_vm1, %v5435_v5, %v5436_v4  ;;  %6138 = vrot.lane.b32.xlu1 %v5434_v20, %s11163_s14 }
 0x571   : > { %v3963_v22 = vadd.f32 %v3962_v11, %v14066_v34  ;;  %v3895_v21 = vmul.f32 %v13984_v42, %v3785_v13  ;;  %v10321_v36 = vpop.f32.mrb[10].mxu1  ;;  %6184 = vrot.lane.b32.xlu0 %v5437_v15, %s11172_s15  ;;  %v5442_v5 = vsel %vm641_vm1, %v5440_v50, %v5441_v19 }
 0x572   : > { %v3788_v6 = vpop.f32.mrb[11].mxu1  ;;  %v3898_v56 = vmul.f32 %v10321_v36, %v13984_v42  ;;  %v14102_v40 = vadd.f32 %v14000_v46, %v3897_v31 }
 0x573   : > { %v14087_v3 = vadd.f32 %v14000_v46, %v3895_v21  ;;  %v3964_v23 = vadd.f32 %v3963_v22, %v14074_v8  ;;  %v3896_v9 = vmul.f32 %v13984_v42, %v3788_v6  ;;  %v5445_v6 = vrot.slane %v13816_v28, 2 }
 0x574   : > { %v14108_v13 = vadd.f32 %v14000_v46, %v3898_v56  ;;  %v5530_v56 = vrot.slane %v13830_v62, 2  ;;  %6186 = vrot.lane.b32.xlu1 %v5439_v30, %s11172_s15 }
 0x575   : > { %v3965_v2 = vadd.f32 %v3964_v23, %v14087_v3  ;;  %v14094_v27 = vadd.f32 %v14000_v46, %v3896_v9  ;;  %6188 = vrot.lane.b32.xlu0 %v5442_v5, %s11172_s15 }
 0x576   : > { %18725 = vst [vmem:[#allocation41_spill] sm:$0xff] %v14108_v13 }
 0x577   : > { %18724 = vst [vmem:[#allocation42_spill] sm:$0xff] %v14094_v27  ;;  %v3966_v12 = vadd.f32 %v3965_v2, %v14094_v27  ;;  %v10324_v11 = vpop.f32.mrb[12].mxu1 }
 0x578   : > { %v3801_v43 = vpop.f32.mrb[13].mxu1  ;;  %v3901_v31 = vmul.f32 %v10324_v11, %v13984_v42  ;;  %v5448_v11 = vrot.slane %v14012_v44, 2 }
 0x579   : > { %v3967_v22 = vadd.f32 %v3966_v12, %v14102_v40  ;;  %v3899_v21 = vmul.f32 %v13984_v42, %v3801_v43  ;;  %v10325_v36 = vpop.f32.mrb[14].mxu1 }
 0x57a   : > { %v3804_v16 = vpop.f32.mrb[15].mxu1  ;;  %v3902_v50 = vmul.f32 %v10325_v36, %v13984_v42  ;;  %v14136_v15 = vadd.f32 %v14000_v46, %v3901_v31 }
 0x57b   : > { %v14121_v23 = vadd.f32 %v14000_v46, %v3899_v21  ;;  %v3968_v9 = vadd.f32 %v3967_v22, %v14108_v13  ;;  %v3900_v2 = vmul.f32 %v13984_v42, %v3804_v16  ;;  %v5447_v22 = vsel %vm641_vm1, %v5445_v6, %v5446_v52 }
 0x57c   : > { %v5444_v21 = vsel %vm641_vm1, %v5441_v19, %v5443_v47  ;;  %v14142_v16 = vadd.f32 %v14000_v46, %v3902_v50  ;;  %6192 = vrot.lane.b32.xlu0 %v5447_v22, %s11172_s15  ;;  %v5449_v6 = vsel %vm641_vm1, %v5446_v52, %v5448_v11  ;;  %v5535_v19 = vrot.slane %v13852_v29, 2 }
 0x57d   : > { %v3969_v12 = vadd.f32 %v3968_v9, %v14121_v23  ;;  %v14129_v4 = vadd.f32 %v14000_v46, %v3900_v2  ;;  %v5532_v2 = vsel %vm641_vm1, %v5530_v56, %v5531_v38  ;;  %6190 = vrot.lane.b32.xlu1 %v5444_v21, %s11172_s15  ;;  %v5536_v47 = vrot.slane %v13883_v24, 2 }
 0x57e   : > { %18726 = vst [vmem:[#allocation45_spill] sm:$0xff] %v14142_v16  ;;  %v5540_v22 = vrot.slane %v13877_v10, 2  ;;  %v5541_v21 = vrot.slane %v13905_v61, 2  ;;  %v5538_v52 = vrot.slane %v14053_v37, 2 }
 0x57f   : > { %v3970_v20 = vadd.f32 %v3969_v12, %v14129_v4  ;;  %v10328_v43 = vpop.f32.mrb[16].mxu1  ;;  %v5533_v12 = vrot.slane %v14033_v7, 2 }
 0x580   : > { %v3817_v36 = vpop.f32.mrb[17].mxu1  ;;  %v3905_v50 = vmul.f32 %v10328_v43, %v13984_v42  ;;  %6260 = vrot.lane.b32.xlu0 %v5532_v2, %s11172_s15  ;;  %v5537_v43 = vsel %vm641_vm1, %v5535_v19, %v5536_v47  ;;  %v5542_v2 = vsel %vm641_vm1, %v5540_v22, %v5541_v21  ;;  %v5543_v19 = vrot.slane %v14071_v54, 2 }
 0x581   : > { %v3971_v5 = vadd.f32 %v3970_v20, %v14136_v15  ;;  %v3903_v30 = vmul.f32 %v13984_v42, %v3817_v36  ;;  %v10329_v9 = vpop.f32.mrb[18].mxu1  ;;  %6194 = vrot.lane.b32.xlu1 %v5449_v6, %s11172_s15  ;;  %v5539_v6 = vsel %vm641_vm1, %v5536_v47, %v5538_v52  ;;  %v5552_v22 = vrot.slane %v13822_v59, 3 }
 0x582   : > { %v3820_v31 = vpop.f32.mrb[19].mxu1  ;;  %v3906_v33 = vmul.f32 %v10329_v9, %v13984_v42  ;;  %v5534_v9 = vsel %vm641_vm1, %v5531_v38, %v5533_v12  ;;  %v5551_v12 = vrot.slane %v13803_v0, 3  ;;  %v5549_v52 = vrot.slane %v13979_v35, 3  ;;  %v14203_v0 = vpop.permute.xlu1 %5656 }
 0x583   : > { %v14155_v20 = vadd.f32 %v14000_v46, %v3903_v30  ;;  %v3972_v56 = vadd.f32 %v3971_v5, %v14142_v16  ;;  %v3904_v36 = vmul.f32 %v13984_v42, %v3820_v31  ;;  %v5546_v5 = vrot.slane %v13784_v57, 3  ;;  %18731 = vst [vmem:[#allocation49_spill] sm:$0xff] %v14203_v0  ;;  %v14225_v0 = vpop.permute.xlu0 %5658 }
 0x584   : > { %v5547_v30 = vrot.slane %v13795_v45, 3  ;;  %v14173_v31 = vadd.f32 %v14000_v46, %v3905_v50  ;;  %v3999_v57 = vmax.f32 %v14027_v14, %v14066_v34  ;;  %v14183_v45 = vadd.f32 %v14000_v46, %v3906_v33  ;;  %6264 = vrot.lane.b32.xlu0 %v5537_v43, %s11172_s15  ;;  %18734 = vst [vmem:[#allocation52_spill] sm:$0xff] %v14225_v0 }
 0x585   : > { %v3973_v11 = vadd.f32 %v3972_v56, %v14155_v20  ;;  %v14165_v1 = vadd.f32 %v14000_v46, %v3904_v36  ;;  %6262 = vrot.lane.b32.xlu1 %v5534_v9, %s11172_s15  ;;  %v3997_v43 = vmax.f32 %v14016_v53, %v14049_v49  ;;  %v5544_v59 = vsel %vm641_vm1, %v5541_v21, %v5543_v19 }
 0x586   : > { %18728 = vst [vmem:[#allocation46_spill] sm:$0xff] %v14173_v31  ;;  %18729 = vst [vmem:[#allocation47_spill] sm:$0xff] %v14183_v45  ;;  %v5548_v47 = vsel %vm5545_vm14, %v5546_v5, %v5547_v30  ;;  %v4000_v5 = vmax.f32 %v14036_v26, %v14074_v8  ;;  %v5556_v35 = vrot.slane %v13816_v28, 3  ;;  %v5553_v21 = vsel %vm5545_vm14, %v5551_v12, %v5552_v22  ;;  %v14229_v12 = vpop.permute.xlu1 %5660 }
 0x587   : > { %18727 = vst [vmem:[#allocation44_spill] sm:$0xff] %v14165_v1  ;;  %v3974_v56 = vadd.f32 %v3973_v11, %v14165_v1  ;;  %v10332_v18 = vpop.f32.mrb[20].mxu1  ;;  %v5550_v28 = vsel %vm5545_vm14, %v5547_v30, %v5549_v52  ;;  %v4003_v19 = vmax.f32 %v3999_v57, %v14102_v40  ;;  %v5554_v30 = vrot.slane %v13994_v55, 3 }
 0x588   : > { %v3833_v36 = vpop.f32.mrb[21].mxu1  ;;  %v3909_v33 = vmul.f32 %v10332_v18, %v13984_v42  ;;  %6268 = vrot.lane.b32.xlu0 %v5542_v2, %s11172_s15  ;;  %v4004_v2 = vmax.f32 %v4000_v5, %v14108_v13  ;;  %v5559_v57 = vrot.slane %v14012_v44, 3  ;;  %v5641_v55 = vrot.slane %v13830_v62, 3 }
 0x589   : > { %v3975_v50 = vadd.f32 %v3974_v56, %v14173_v31  ;;  %v3907_v11 = vmul.f32 %v13984_v42, %v3833_v36  ;;  %v10333_v25 = vpop.f32.mrb[22].mxu1  ;;  %6266 = vrot.lane.b32.xlu1 %v5539_v6, %s11172_s15  ;;  %v5642_v44 = vrot.slane %v13859_v17, 3 }
 0x58a   : > { %v3836_v38 = vpop.f32.mrb[23].mxu1  ;;  %v3910_v9 = vmul.f32 %v10333_v25, %v13984_v42  ;;  %v4001_v25 = vmax.f32 %v3997_v43, %v14087_v3  ;;  %v14255_v17 = vpop.permute.xlu1 %5662 }
 0x58b   : > { %v14195_v56 = vadd.f32 %v14000_v46, %v3907_v11  ;;  %v3976_v36 = vadd.f32 %v3975_v50, %v14183_v45  ;;  %v3908_v34 = vmul.f32 %v13984_v42, %v3836_v38  ;;  %v5557_v11 = vrot.slane %v13835_v58, 3 }
 0x58c   : > { %v3998_v38 = vmax.f32 %v14020_v39, %v14058_v60  ;;  %v14234_v52 = vadd.f32 %v14000_v46, %v3910_v9  ;;  %6316 = vrot.lane.b32.xlu0 %v5548_v47, %s11173_s18  ;;  %v5646_v9 = vrot.slane %v13852_v29, 3  ;;  %v14251_v47 = vpop.permute.xlu0 %5664  ;;  %v5555_v29 = vsel %vm5545_vm14, %v5552_v22, %v5554_v30 }
 0x58d   : > { %18730 = vst [vmem:[#allocation48_spill] sm:$0xff] %v14195_v56  ;;  %v3977_v18 = vadd.f32 %v3976_v36, %v14195_v56  ;;  %v14210_v50 = vadd.f32 %v14000_v46, %v3908_v34  ;;  %v14222_v34 = vadd.f32 %v14000_v46, %v3909_v33  ;;  %v5558_v0 = vsel %vm5545_vm14, %v5556_v35, %v5557_v11 }
 0x58e   : > { %v4002_v6 = vmax.f32 %v3998_v38, %v14094_v27  ;;  %18735 = vst [vmem:[#allocation53_spill] sm:$0xff] %v14234_v52  ;;  %6270 = vrot.lane.b32.xlu1 %v5544_v59, %s11172_s15  ;;  %v4007_v59 = vmax.f32 %v4003_v19, %v14136_v15  ;;  %v5560_v38 = vsel %vm5545_vm14, %v5557_v11, %v5559_v57  ;;  %v5644_v11 = vrot.slane %v14033_v7, 3 }
 0x58f   : > { %18732 = vst [vmem:[#allocation50_spill] sm:$0xff] %v14210_v50  ;;  %18733 = vst [vmem:[#allocation51_spill] sm:$0xff] %v14222_v34  ;;  %v3978_v58 = vadd.f32 %v3977_v18, %v14210_v50  ;;  %v10336_v36 = vpop.f32.mrb[24].mxu1  ;;  %v5643_v22 = vsel %vm5545_vm14, %v5641_v55, %v5642_v44 }
 0x590   : > { %v3849_v8 = vpop.f32.mrb[25].mxu1  ;;  %v4006_v27 = vmax.f32 %v4002_v6, %v14129_v4  ;;  %v4011_v19 = vmax.f32 %v4007_v59, %v14173_v31  ;;  %6320 = vrot.lane.b32.xlu0 %v5553_v21, %s11173_s18  ;;  %v14276_v57 = vpop.permute.xlu0 %5732  ;;  %v18739_v6 = vrot.slane %v13883_v24, 3 }
 0x591   : > { %v3979_v33 = vadd.f32 %v3978_v58, %v14222_v34  ;;  %v3911_v43 = vmul.f32 %v13984_v42, %v3849_v8  ;;  %v10337_v18 = vpop.f32.mrb[26].mxu1  ;;  %v3913_v58 = vmul.f32 %v10336_v36, %v13984_v42  ;;  %v4005_v36 = vmax.f32 %v4001_v25, %v14121_v23 }
 0x592   : > { %v3852_v5 = vpop.f32.mrb[27].mxu1  ;;  %v3914_v62 = vmul.f32 %v10337_v18, %v13984_v42  ;;  %6318 = vrot.lane.b32.xlu1 %v5550_v28, %s11173_s18  ;;  %v5648_v21 = vsel %vm5545_vm14, %v5646_v9, %v18739_v6  ;;  %v4010_v18 = vmax.f32 %v4006_v27, %v14165_v1  ;;  %v4015_v59 = vmax.f32 %v4011_v19, %v14222_v34  ;;  %v11104_v1 = vld [vmem:[#allocation3 + $0x30] sm:$0xff] }
 0x593   : > { %v14247_v8 = vadd.f32 %v14000_v46, %v3911_v43  ;;  %v3980_v35 = vadd.f32 %v3979_v33, %v14234_v52  ;;  %v3912_v13 = vmul.f32 %v13984_v42, %v3852_v5  ;;  %v4008_v43 = vmax.f32 %v4004_v2, %v14142_v16  ;;  %v11105_v16 = vld [vmem:[#allocation3 + $0x50] sm:$0xff] }
 0x594   : > { %v4009_v25 = vmax.f32 %v4005_v36, %v14155_v20  ;;  %v14273_v2 = vadd.f32 %v14000_v46, %v3913_v58  ;;  %v14284_v7 = vadd.f32 %v14000_v46, %v3914_v62  ;;  %6324 = vrot.lane.b32.xlu0 %v5558_v0, %s11173_s18  ;;  %v4014_v19 = vmax.f32 %v4010_v18, %v14210_v50 }
 0x595   : > { %18736 = vst [vmem:[#allocation54_spill] sm:$0xff] %v14247_v8  ;;  %v3981_v33 = vadd.f32 %v3980_v35, %v14247_v8  ;;  %v14263_v5 = vadd.f32 %v14000_v46, %v3912_v13  ;;  %v4012_v28 = vmax.f32 %v4008_v43, %v14183_v45  ;;  %v14287_v35 = vpop.permute.xlu1 %5666  ;;  %v11103_v45 = vld [vmem:[#allocation3 + $0x48] sm:$0xff]  ;;  %v4941_v31 = vrot.slane %v11105_v16, 5 }
 0x596   : > { %18738 = vst [vmem:[#allocation56_spill] sm:$0xff] %v14273_v2  ;;  %18740 = vst [vmem:[#allocation57_spill] sm:$0xff] %v14284_v7  ;;  %v4013_v36 = vmax.f32 %v4009_v25, %v14195_v56  ;;  %6322 = vrot.lane.b32.xlu1 %v5555_v29, %s11173_s18  ;;  %v5645_v29 = vsel %vm5545_vm14, %v5642_v44, %v5644_v11  ;;  %v5652_v44 = vrot.slane %v13905_v61, 3  ;;  %v4939_v34 = vrot.slane %v11103_v45, 5 }
 0x597   : > { %18737 = vst [vmem:[#allocation55_spill] sm:$0xff] %v14263_v5  ;;  %v3982_v13 = vadd.f32 %v3981_v33, %v14263_v5  ;;  %v10340_v30 = vpop.f32.mrb[28].mxu1  ;;  %v4016_v43 = vmax.f32 %v4012_v28, %v14234_v52  ;;  %v14306_v28 = vpop.permute.xlu0 %5736 }
 0x598   : > { %v3917_v55 = vmul.f32 %v10340_v30, %v13984_v42  ;;  %v3865_v58 = vpop.f32.mrb[29].mxu1  ;;  %v4017_v18 = vmax.f32 %v4013_v36, %v14247_v8  ;;  %6392 = vrot.lane.b32.xlu0 %v5643_v22, %s11173_s18  ;;  %v11102_v8 = vld [vmem:[#allocation3 + $0x40] sm:$0xff] }
 0x599   : > { %v3983_v33 = vadd.f32 %v3982_v13, %v14273_v2  ;;  %v3915_v9 = vmul.f32 %v13984_v42, %v3865_v58  ;;  %v10341_v6 = vpop.f32.mrb[30].mxu1  ;;  %v14313_v0 = vpop.permute.xlu1 %5734 }
 0x59a   : > { %v14295_v27 = vadd.f32 %v14000_v46, %v3917_v55  ;;  %v3918_v62 = vmul.f32 %v10341_v6, %v13984_v42  ;;  %v3868_v30 = vpop.f32.mrb[31].mxu1  ;;  %v4019_v55 = vmax.f32 %v4015_v59, %v14273_v2  ;;  %v4020_v6 = vmax.f32 %v4016_v43, %v14284_v7  ;;  %6326 = vrot.lane.b32.xlu1 %v5560_v38, %s11173_s18 }
 0x59b   : > { %v14302_v25 = vadd.f32 %v14000_v46, %v3915_v9  ;;  %v3984_v13 = vadd.f32 %v3983_v33, %v14284_v7  ;;  %v3916_v58 = vmul.f32 %v13984_v42, %v3868_v30  ;;  %v4018_v9 = vmax.f32 %v4014_v19, %v14263_v5 }
 0x59c   : > { %18741 = vst [vmem:[#allocation58_spill] sm:$0xff] %v14295_v27  ;;  %v14311_v52 = vadd.f32 %v14000_v46, %v3918_v62  ;;  %v4023_v59 = vmax.f32 %v4019_v55, %v14295_v27  ;;  %v5651_v62 = vrot.slane %v13877_v10, 3  ;;  %6396 = vrot.lane.b32.xlu0 %v5648_v21, %s11173_s18 }
 0x59d   : > { %18742 = vst [vmem:[#allocation59_spill] sm:$0xff] %v14302_v25  ;;  %v3985_v33 = vadd.f32 %v3984_v13, %v14302_v25  ;;  %v14320_v42 = vadd.f32 %v14000_v46, %v3916_v58  ;;  %v4021_v11 = vmax.f32 %v4017_v18, %v14302_v25  ;;  %v5649_v46 = vrot.slane %v14053_v37, 3  ;;  %v14332_v13 = vpop.permute.xlu0 %5740  ;;  %v14334_v58 = vpop.permute.xlu1 %5738 }
 0x59e   : > { %18743 = vst [vmem:[#allocation60_spill] sm:$0xff] %v14311_v52  ;;  %v4024_v43 = vmax.f32 %v4020_v6, %v14311_v52  ;;  %18745 = vst [vmem:[#allocation62_spill] sm:$0xff] %v14332_v13  ;;  %6394 = vrot.lane.b32.xlu1 %v5645_v29, %s11173_s18  ;;  %v5653_v10 = vsel %vm5545_vm14, %v5651_v62, %v5652_v44  ;;  %v18746_v6 = vrot.slane %v13883_v24, 3  ;;  %v5654_v18 = vrot.slane %v14071_v54, 3 }
 0x59f   : > { %18744 = vst [vmem:[#allocation61_spill] sm:$0xff] %v14320_v42  ;;  %v3986_v36 = vadd.f32 %v3985_v33, %v14320_v42  ;;  %v4022_v30 = vmax.f32 %v4018_v9, %v14320_v42  ;;  %v11100_v42 = vld [vmem:[#allocation3 + $0x20] sm:$0xff] }
 0x5a0   : > { %v4026_v19 = vmax.f32 %v4023_v59, %v4024_v43  ;;  %v5650_v37 = vsel %vm5545_vm14, %v18746_v6, %v5649_v46  ;;  %6400 = vrot.lane.b32.xlu0 %v5653_v10, %s11173_s18  ;;  %v5655_v62 = vsel %vm5545_vm14, %v5652_v44, %v5654_v18  ;;  %v4933_v7 = vrot.slane %v11100_v42, 5 }
 0x5a1   : > { %v3987_v38 = vadd.f32 %v3986_v36, %v14295_v27  ;;  %v4025_v22 = vmax.f32 %v4021_v11, %v4022_v30  ;;  %v14345_v9 = vpop.permute.xlu0 %5788  ;;  %v14347_v33 = vpop.permute.xlu1 %5742  ;;  %v11101_v27 = vld [vmem:[#allocation3 + $0x28] sm:$0xff] }
 0x5a2   : > { %18747 = vst [vmem:[#allocation63_spill] sm:$0xff] %v14345_v9  ;;  %18748 = vst [vmem:[#allocation64_spill] sm:$0xff] %v14347_v33  ;;  %6398 = vrot.lane.b32.xlu1 %v5650_v37, %s11173_s18  ;;  %v4934_v5 = vrot.slane %v11101_v27, 5 }
 0x5a3   : > { %v3988_v61 = vadd.f32 %v3987_v38, %v14311_v52  ;;  %v4027_v55 = vmax.f32 %v4025_v22, %v4026_v19 }
 0x5a4   : > { %v4935_v50 = vsel %vm4927_vm15, %v4933_v7, %v4934_v5 }
 0x5a5   : > { %v3989_v59 = vrot.slane %v3988_v61, 4  ;;  %v4028_v43 = vrot.slane %v4027_v55, 4  ;;  %v14352_v11 = vpop.permute.xlu0 %5792  ;;  %v14354_v24 = vpop.permute.xlu1 %5790 }
 0x5a6   : > { %18749 = vst [vmem:[#allocation65_spill] sm:$0xff] %v14354_v24  ;;  %6402 = vrot.lane.b32.xlu1 %v5655_v62, %s11173_s18 }
 0x5a7   : > { %v3990_v21 = vadd.f32 %v3989_v59, %v3988_v61  ;;  %v4029_v29 = vmax.f32 %v4027_v55, %v4028_v43 }
 0x5a9   : > { %v3991_v36 = vrot.slane %v3990_v21, 2  ;;  %v4030_v54 = vrot.slane %v4029_v29, 2  ;;  %v14357_v19 = vpop.permute.xlu0 %5796  ;;  %v14359_v38 = vpop.permute.xlu1 %5794 }
 0x5ab   : > { %v3992_v30 = vadd.f32 %v3991_v36, %v3990_v21  ;;  %v4031_v46 = vmax.f32 %v4029_v29, %v4030_v54 }
 0x5ad   : > { %v3993_v22 = vrot.slane %v3992_v30, 1  ;;  %v4032_v10 = vrot.slane %v4031_v46, 1  ;;  %v14361_v55 = vpop.permute.xlu0 %5864  ;;  %v14363_v44 = vpop.permute.xlu1 %5798 }
 0x5af   : > { %v3994_v61 = vadd.f32 %v3993_v22, %v3992_v30  ;;  %v4033_v6 = vmax.f32 %v4031_v46, %v4032_v10 }
 0x5b1   : > { %v3996_v37 = vmul.f32 0.00390625, %v3994_v61  ;;  %v14366_v43 = vpop.permute.xlu0 %5868  ;;  %v14368_v21 = vpop.permute.xlu1 %5866 }
 0x5b3   : > { %v4034_v18 = vsel %vm2349_vm9, %v3996_v37, %v4033_v6  ;;  %v18754_v6 = vld [vmem:[#allocation8_spill] sm:$0xff] }
 0x5b4   : > { %v4051_v59 = vpack.c.bf16 %v4034_v18, %v4034_v18 }
 0x5b5   : > { %v14374_v36 = vpop.permute.xlu0 %5872  ;;  %v14376_v54 = vpop.permute.xlu1 %5870 }
 0x5b6   : > { %10379 = vmatmul.mubr.bf16.vlgmr.msra.gmra.mrb[32].mxu0 %v4051_v59  ;;  %v4052_v29 = vunpack.c.l.bf16 %v4051_v59  ;;  %18750 = vst [vmem:[#allocation66_spill] sm:$0xff] %v14374_v36 }
 0x5b7   : > { %10383 = vmatpush3.bf16.msra.mxu0 %v13595_v51  ;;  %10398 = vmatprep.mubr.msk.bf16.mxu0 %vm11169_vm13, %v18717_v48 }
 0x5b8   : > { %10384 = vmatprep.subr.bf16.mxu0 %v18717_v48  ;;  %v4053_v62 = vsub.f32 %v4034_v18, %v4052_v29  ;;  %v18755_v18 = vld [vmem:[#allocation37_spill] sm:$0xff] }
 0x5b9   : > { %v14380_v46 = vpop.permute.xlu0 %5920  ;;  %v14382_v22 = vpop.permute.xlu1 %5874 }
 0x5ba   : > { %v4054_v30 = vpack.c.bf16 %v4053_v62, %v4053_v62  ;;  %18751 = vst [vmem:[#allocation67_spill] sm:$0xff] %v14380_v46  ;;  %18752 = vst [vmem:[#allocation68_spill] sm:$0xff] %v14382_v22  ;;  %v18756_v62 = vld [vmem:[#allocation38_spill] sm:$0xff]  ;;  %v18758_v22 = vld [vmem:[#allocation39_spill] sm:$0xff] }
 0x5bb   : > { %10385 = vmatpush3.bf16.msra.mxu0 %v13607_v32 }
 0x5bc   : > { %10359 = vmatmul.mubr.bf16.vlgmr.msra.gmra.mrb[32].mxu1 %v4054_v30  ;;  %10386 = vmatprep.subr.bf16.mxu0 %v18717_v48 }
 0x5bd   : > { %10410 = vmatprep.mubr.msk.bf16.mxu1 %vm11169_vm13, %v18717_v48  ;;  %v14388_v51 = vpop.permute.xlu0 %5924  ;;  %v14390_v10 = vpop.permute.xlu1 %5922 }
 0x5be   : > { %18753 = vst [vmem:[#allocation69_spill] sm:$0xff] %v14390_v10 }
 0x5bf   : > { %10387 = vmatpush3.bf16.msra.mxu0 %v13620_v41 }
 0x5c0   : > { %10388 = vmatprep.subr.bf16.mxu0 %v18717_v48 }
 0x5c1   : > { %v14394_v32 = vpop.permute.xlu0 %5928  ;;  %v14396_v61 = vpop.permute.xlu1 %5926 }
 0x5c3   : > { %10389 = vmatpush3.bf16.msra.mxu0 %v13775_v63 }
 0x5c4   : > { %10390 = vmatprep.subr.bf16.mxu0 %v18717_v48 }
 0x5c5   : > { %v14400_v37 = vpop.permute.xlu0 %5996  ;;  %v14402_v41 = vpop.permute.xlu1 %5930 }
 0x5c7   : > { %10391 = vmatpush3.bf16.msra.mxu0 %v18754_v6 }
 0x5c8   : > { %10392 = vmatprep.subr.bf16.mxu0 %v18717_v48 }
 0x5c9   : > { %v14406_v29 = vpop.permute.xlu0 %6000  ;;  %v14408_v63 = vpop.permute.xlu1 %5998 }
 0x5cb   : > { %10393 = vmatpush3.bf16.msra.mxu0 %v18755_v18 }
 0x5cc   : > { %10394 = vmatprep.subr.bf16.mxu0 %v18717_v48 }
 0x5cd   : > { %v14412_v30 = vpop.permute.xlu0 %6004  ;;  %v14414_v6 = vpop.permute.xlu1 %6002 }
 0x5ce   : > { %18757 = vst [vmem:[#allocation8_spill] sm:$0xff] %v14412_v30 }
 0x5cf   : > { %10395 = vmatpush3.bf16.msra.mxu0 %v18756_v62 }
 0x5d0   : > { %10396 = vmatprep.subr.bf16.mxu0 %v18717_v48 }
 0x5d1   : > { %v14417_v33 = vpop.permute.xlu0 %6052  ;;  %v14419_v36 = vpop.permute.xlu1 %6006 }
 0x5d2   : > { %18759 = vst [vmem:[#allocation37_spill] sm:$0xff] %v14417_v33  ;;  %18760 = vst [vmem:[#allocation38_spill] sm:$0xff] %v14419_v36 }
 0x5d3   : > { %10397 = vmatpush3.bf16.msra.mxu0 %v18758_v22 }
 0x5d4   : > { %10402 = vmatprep.subr.bf16.mxu0 %v18717_v48 }
 0x5d5   : > { %v6057_v18 = vpop.permute.xlu0 %6056  ;;  %v14424_v62 = vpop.permute.xlu1 %6054 }
 0x5d6   : > { %10399 = vmatmul.mubr.bf16.vlgmr.msra.gmra.mrb[32].mxu0 %v4051_v59  ;;  %18761 = vst [vmem:[#allocation39_spill] sm:$0xff] %v14424_v62 }
 0x5d7   : > { %10404 = vmatprep.mubr.msk.bf16.mxu0 %vm11169_vm13, %v18717_v48 }
 0x5d9   : > { %v6061_v13 = vpop.permute.xlu0 %6060  ;;  %v6059_v10 = vpop.permute.xlu1 %6058 }
 0x5dd   : > { %v14426_v30 = vpop.permute.xlu0 %6128  ;;  %v14428_v46 = vpop.permute.xlu1 %6062 }
 0x5e1   : > { %v14430_v22 = vpop.permute.xlu0 %6132  ;;  %v14432_v33 = vpop.permute.xlu1 %6130 }
 0x5e5   : > { %v14434_v36 = vpop.permute.xlu0 %6136  ;;  %v14436_v24 = vpop.permute.xlu1 %6134 }
 0x5e6   : > { %18762 = vst [vmem:[#allocation70_spill] sm:$0xff] %v14434_v36  ;;  %v4938_v36 = vrot.slane %v11102_v8, 5 }
 0x5e8   : > { %v4940_v27 = vsel %vm4927_vm15, %v4938_v36, %v4939_v34 }
 0x5e9   : > { %v14438_v59 = vpop.permute.xlu0 %6184  ;;  %v14440_v9 = vpop.permute.xlu1 %6138  ;;  %v6452_v45 = vsel %vm4233_vm10, %v4940_v27, %v14251_v47 }
 0x5ea   : > { %18763 = vst [vmem:[#allocation71_spill] sm:$0xff] %v14438_v59  ;;  %18764 = vst [vmem:[#allocation72_spill] sm:$0xff] %v14440_v9  ;;  %v4936_v59 = vrot.slane %v11104_v1, 5 }
 0x5ec   : > { %v4937_v42 = vsel %vm4927_vm15, %v4934_v5, %v4936_v59  ;;  %v6497_v59 = vsel %vm6492_vm3, %v6452_v45, %v14357_v19 }
 0x5ed   : > { %v6189_v52 = vpop.permute.xlu0 %6188  ;;  %v14442_v62 = vpop.permute.xlu1 %6186 }
 0x5ee   : > { %18765 = vst [vmem:[#allocation73_spill] sm:$0xff] %v14442_v62  ;;  %v6450_v62 = vsel %vm4233_vm10, %v4935_v50, %v14229_v12  ;;  %v6451_v50 = vsel %vm4233_vm10, %v4937_v42, %v14255_v17  ;;  %v4942_v12 = vsel %vm4927_vm15, %v4939_v34, %v4941_v31  ;;  %v6542_v31 = vsel %vm6537_vm5, %v6497_v59, %v14394_v32 }
 0x5ef   : > { %v6495_v1 = vsel %vm6492_vm3, %v6450_v62, %v14352_v11  ;;  %v6496_v11 = vsel %vm6492_vm3, %v6451_v50, %v14359_v38  ;;  %v6453_v47 = vsel %vm4233_vm10, %v4942_v12, %v14287_v35  ;;  %v6586_v35 = vsel %vm948_vm2, %v6542_v31, %v6061_v13  ;;  %v11107_v31 = vld [vmem:[#allocation3 + $0x268] sm:$0xff] }
 0x5f0   : > { %v6540_v5 = vsel %vm6537_vm5, %v6495_v1, %v14388_v51  ;;  %v6541_v34 = vsel %vm6537_vm5, %v6496_v11, %v14396_v61  ;;  %v6498_v19 = vsel %vm6492_vm3, %v6453_v47, %v14363_v44  ;;  %v11106_v47 = vld [vmem:[#allocation3 + $0x260] sm:$0xff] }
 0x5f1   : > { %v6193_v25 = vpop.permute.xlu0 %6192  ;;  %v6191_v2 = vpop.permute.xlu1 %6190  ;;  %v6584_v17 = vsel %vm948_vm2, %v6540_v5, %v6057_v18  ;;  %v6585_v18 = vsel %vm948_vm2, %v6541_v34, %v6059_v10  ;;  %v6543_v32 = vsel %vm6537_vm5, %v6498_v19, %v14402_v41  ;;  %v5024_v34 = vrot.slane %v11107_v31, 5  ;;  %v11108_v19 = vld [vmem:[#allocation3 + $0x270] sm:$0xff] }
 0x5f2   : > { %v6629_v38 = vsel %vm6626_vm6, %v6584_v17, %v6189_v52  ;;  %v6631_v1 = vsel %vm6626_vm6, %v6586_v35, %v6193_v25  ;;  %v6630_v44 = vsel %vm6626_vm6, %v6585_v18, %v6191_v2  ;;  %v6587_v52 = vsel %vm948_vm2, %v6543_v32, %v14428_v46 }
 0x5f3   : > { %v5023_v17 = vrot.slane %v11106_v47, 5 }
 0x5f5   : > { %v14445_v56 = vpop.permute.xlu0 %6260  ;;  %v6195_v9 = vpop.permute.xlu1 %6194  ;;  %v5025_v35 = vsel %vm4927_vm15, %v5023_v17, %v5024_v34 }
 0x5f6   : > { %v6632_v50 = vsel %vm6626_vm6, %v6587_v52, %v6195_v9  ;;  %v4224_v9 = vld [vmem:[%s18437_s8] sm:$0x3]  ;;  %v6486_v32 = vsel %vm4233_vm10, %v5025_v35, %v14276_v57  ;;  %v11110_v52 = vld [vmem:[#allocation3 + $0x288] sm:$0xff] }
 0x5f7   : > { %v4229_v46 = vpack.c.bf16 %v4224_v9, %v4224_v9 }
 0x5f9   : > { %v14451_v7 = vpop.permute.xlu0 %6264  ;;  %v14453_v8 = vpop.permute.xlu1 %6262  ;;  %v4230_v12 = vunpack.c.l.bf16 %v4229_v46 }
 0x5fb   : > { %v4231_v5 = vsub.f32 %v4224_v9, %v4230_v12  ;;  %v4238_v12 = vsel %vm2349_vm9, %v4229_v46, 0 }
 0x5fc   : > { %10403 = vmatpush3.bf16.msra.mxu0 %v4238_v12 }
 0x5fd   : > { %v14464_v16 = vpop.permute.xlu0 %6268  ;;  %v14466_v36 = vpop.permute.xlu1 %6266  ;;  %v4232_v59 = vpack.c.bf16 %v4231_v5, %v4231_v5 }
 0x5fe   : > { %18766 = vst [vmem:[#allocation74_spill] sm:$0xff] %v14464_v16 }
 0x5ff   : > { %v4284_v11 = vsel %vm2349_vm9, %v4232_v59, 0 }
 0x600   : > { %10409 = vmatpush3.bf16.msra.mxu1 %v4284_v11 }
 0x601   : > { %v14479_v51 = vpop.permute.xlu0 %6316  ;;  %v14481_v62 = vpop.permute.xlu1 %6270  ;;  %10414 = vmatprep.subr.bf16.mxu1 %v18717_v48 }
 0x602   : > { %18767 = vst [vmem:[#allocation75_spill] sm:$0xff] %v14479_v51  ;;  %18768 = vst [vmem:[#allocation76_spill] sm:$0xff] %v14481_v62  ;;  %v15188_v51 = vld [vmem:[#allocation3 + $0x200] sm:$0xff] }
 0x605   : > { %v6321_v27 = vpop.permute.xlu0 %6320  ;;  %v14490_v42 = vpop.permute.xlu1 %6318 }
 0x606   : > { %18769 = vst [vmem:[#allocation77_spill] sm:$0xff] %v14490_v42  ;;  %v14493_v61 = vsel %vm6671_vm7, %v6629_v38, %v6321_v27  ;;  %v5026_v38 = vrot.slane %v11108_v19, 5 }
 0x607   : > { %18770 = vst [vmem:[#allocation78_spill] sm:$0xff] %v14493_v61  ;;  %6748 = vrot.lane.b32.xlu0 %v14493_v61, %s11174_s19 }
 0x608   : > { %v5027_v18 = vsel %vm4927_vm15, %v5024_v34, %v5026_v38 }
 0x609   : > { %v6325_v13 = vpop.permute.xlu0 %6324  ;;  %v6323_v10 = vpop.permute.xlu1 %6322  ;;  %v6487_v27 = vsel %vm4233_vm10, %v5027_v18, %v14313_v0 }
 0x60a   : > { %v14502_v41 = vsel %vm6671_vm7, %v6631_v1, %v6325_v13  ;;  %v14505_v45 = vsel %vm6671_vm7, %v6630_v44, %v6323_v10  ;;  %v11109_v1 = vld [vmem:[#allocation3 + $0x280] sm:$0xff]  ;;  %v5029_v13 = vrot.slane %v11110_v52, 5  ;;  %v11111_v10 = vld [vmem:[#allocation3 + $0x290] sm:$0xff]  ;;  %v6532_v9 = vsel %vm6492_vm3, %v6487_v27, %v14368_v21 }
 0x60b   : > { %18771 = vst [vmem:[#allocation79_spill] sm:$0xff] %v14502_v41  ;;  %18772 = vst [vmem:[#allocation80_spill] sm:$0xff] %v14505_v45  ;;  %6752 = vrot.lane.b32.xlu0 %v14502_v41, %s11174_s19  ;;  %6750 = vrot.lane.b32.xlu1 %v14505_v45, %s11174_s19  ;;  %v5028_v44 = vrot.slane %v11109_v1, 5  ;;  %v6577_v0 = vsel %vm6537_vm5, %v6532_v9, %v14408_v63 }
 0x60d   : > { %v6327_v2 = vpop.permute.xlu1 %6326  ;;  %v5030_v5 = vsel %vm4927_vm15, %v5028_v44, %v5029_v13  ;;  %v6393_v17 = vpop.permute.xlu0 %6392 }
 0x60e   : > { %v14513_v25 = vsel %vm6671_vm7, %v6632_v50, %v6327_v2  ;;  %v5031_v50 = vrot.slane %v11111_v10, 5  ;;  %v6531_v2 = vsel %vm6492_vm3, %v6486_v32, %v14361_v55  ;;  %v6621_v55 = vsel %vm948_vm2, %v6577_v0, %v14432_v33 }
 0x60f   : > { %18773 = vst [vmem:[#allocation81_spill] sm:$0xff] %v14513_v25  ;;  %6846 = vrot.lane.b32.xlu0 %v14502_v41, %s11175_s22  ;;  %6754 = vrot.lane.b32.xlu1 %v14513_v25, %s11174_s19  ;;  %v6576_v57 = vsel %vm6537_vm5, %v6531_v2, %v14400_v37  ;;  %v6488_v21 = vsel %vm4233_vm10, %v5030_v5, %v14306_v28 }
 0x610   : > { %v5032_v59 = vsel %vm4927_vm15, %v5029_v13, %v5031_v50  ;;  %v6620_v11 = vsel %vm948_vm2, %v6576_v57, %v14426_v30  ;;  %v6666_v46 = vsel %vm6626_vm6, %v6621_v55, %v14453_v8  ;;  %v6533_v47 = vsel %vm6492_vm3, %v6488_v21, %v14366_v43 }
 0x611   : > { %v6489_v37 = vsel %vm4233_vm10, %v5032_v59, %v14334_v58  ;;  %v6665_v63 = vsel %vm6626_vm6, %v6620_v11, %v14445_v56  ;;  %v6395_v33 = vpop.permute.xlu1 %6394  ;;  %v6578_v58 = vsel %vm6537_vm5, %v6533_v47, %v14406_v29  ;;  %v6397_v8 = vpop.permute.xlu0 %6396 }
 0x612   : > { %v6534_v30 = vsel %vm6492_vm3, %v6489_v37, %v14376_v54  ;;  %v6710_v31 = vsel %vm6671_vm7, %v6665_v63, %v6393_v17  ;;  %v6711_v28 = vsel %vm6671_vm7, %v6666_v46, %v6395_v33  ;;  %v6622_v43 = vsel %vm948_vm2, %v6578_v58, %v14430_v22 }
 0x613   : > { %6848 = vrot.lane.b32.xlu1 %v14513_v25, %s11175_s22  ;;  %v6579_v56 = vsel %vm6537_vm5, %v6534_v30, %v14414_v6  ;;  %7290 = vrot.lane.b32.xlu0 %v6710_v31, %s11176_s23  ;;  %v6667_v29 = vsel %vm6626_vm6, %v6622_v43, %v14451_v7 }
 0x614   : > { %v6623_v54 = vsel %vm948_vm2, %v6579_v56, %v14436_v24  ;;  %v6712_v24 = vsel %vm6671_vm7, %v6667_v29, %v6397_v8 }
 0x615   : > { %v6668_v6 = vsel %vm6626_vm6, %v6623_v54, %v14466_v36  ;;  %v6399_v34 = vpop.permute.xlu1 %6398 }
 0x616   : > { %v6713_v22 = vsel %vm6671_vm7, %v6668_v6, %v6399_v34  ;;  %v18778_v6 = vld [vmem:[#allocation40_spill] sm:$0xff] }
 0x617   : > { %7292 = vrot.lane.b32.xlu1 %v6711_v28, %s11176_s23  ;;  %7102 = vrot.lane.b32.xlu0 %v6710_v31, %s11177_s29 }
 0x61b   : > { %7104 = vrot.lane.b32.xlu1 %v6711_v28, %s11177_s29  ;;  %7196 = vrot.lane.b32.xlu0 %v6710_v31, %s11178_s30 }
 0x61f   : > { %7198 = vrot.lane.b32.xlu1 %v6711_v28, %s11178_s30  ;;  %7200 = vrot.lane.b32.xlu0 %v6712_v24, %s11178_s30 }
 0x623   : > { %7202 = vrot.lane.b32.xlu1 %v6713_v22, %s11178_s30  ;;  %7294 = vrot.lane.b32.xlu0 %v6712_v24, %s11176_s23 }
 0x627   : > { %7296 = vrot.lane.b32.xlu1 %v6713_v22, %s11176_s23 }
 0x68f   : > { %v4137_v7 = vpop.f32.mrb[32].mxu1 }
 0x690   : > { %v10360_v36 = vpop.f32.mrb[33].mxu1 }
 0x691   : > { %v4140_v19 = vpop.f32.mrb[34].mxu1 }
 0x692   : > { %v10361_v38 = vpop.f32.mrb[35].mxu1  ;;  %v18784_v19 = vld [vmem:[#allocation43_spill] sm:$0xff] }
 0x6a9   : > { %v4217_v35 = vpop.f32.mrb[32].mxu0 }
 0x6aa   : > { %v10660_v18 = vadd.f32 %v4217_v35, %v4137_v7  ;;  %v10400_v32 = vpop.f32.mrb[33].mxu0 }
 0x6ab   : > { %v4220_v27 = vpop.f32.mrb[34].mxu0 }
 0x6ac   : > { %v4223_v1 = vmax.f32 %v10660_v18, 0.0  ;;  %v10401_v44 = vpop.f32.mrb[35].mxu0  ;;  %v18787_v18 = vld [vmem:[#allocation42_spill] sm:$0xff] }
 0x6ad   : > { %v18790_v44 = vld [vmem:[#allocation41_spill] sm:$0xff] }
 0x6ae   : > { %v4225_v52 = vpack.c.bf16 %v4223_v1, %v4223_v1 }
 0x6b0   : > { %v4226_v13 = vunpack.c.l.bf16 %v4225_v52  ;;  %10411 = vmatmul.mubr.msk.bf16.vlgmr.msra.gmra.mrb[36].mxu1 %vm4233_vm10, %v4225_v52 }
 0x6b1   : > { %10415 = vmatpush3.bf16.msra.mxu1 %v4238_v12  ;;  %10416 = vmatprep.mubr.msk.bf16.mxu1 %vm11169_vm13, %v18717_v48  ;;  %v4376_v48 = vlaneseq  ;;  %vm7466_vm13 = vcmask 572416  }
 0x6b2   : > { %v4227_v10 = vsub.f32 %v4223_v1, %v4226_v13 }
 0x6b3   : > { %v4377_v46 = vshrl.u32 %v4376_v48, 7 }
 0x6b4   : > { %v4228_v50 = vpack.c.bf16 %v4227_v10, %v4227_v10 }
 0x6b5   : > { %v4378_v17 = vsub.s32 0, %v4377_v46  ;;  %v18804_v46 = vld [vmem:[#allocation47_spill] sm:$0xff] }
 0x6b6   : > { %10405 = vmatmul.mubr.msk.bf16.vlgmr.msra.gmra.mrb[36].mxu0 %vm4233_vm10, %v4228_v50 }
 0x6bc   : > { %10417 = vmatmul.mubr.msk.bf16.vlgmr.msra.gmra.mrb[36].mxu1 %vm4233_vm10, %v4225_v52 }
 0x789   : > { %v4274_v2 = vpop.f32.mrb[36].mxu0 }
 0x78a   : > { %v10406_v9 = vpop.f32.mrb[37].mxu0 }
 0x78b   : > { %v4277_v57 = vpop.f32.mrb[38].mxu0  ;;  %v18794_v9 = vld [vmem:[#allocation46_spill] sm:$0xff] }
 0x78c   : > { %v10407_v0 = vpop.f32.mrb[39].mxu0 }
 0x78d   : > { %v18796_v0 = vld [vmem:[#allocation45_spill] sm:$0xff] }
 0x78f   : > { %v4360_v5 = vpop.f32.mrb[36].mxu1 }
 0x790   : > { %v10661_v59 = vadd.f32 %v4360_v5, %v4274_v2  ;;  %v10418_v11 = vpop.f32.mrb[37].mxu1 }
 0x791   : > { %v4363_v55 = vpop.f32.mrb[38].mxu1 }
 0x792   : > { %v9677_v21 = vmul.f32 -1.442695, %v10661_v59  ;;  %v10419_v37 = vpop.f32.mrb[39].mxu1  ;;  %v18798_v59 = vld [vmem:[#allocation48_spill] sm:$0xff] }
 0x793   : > { %v18800_v55 = vld [vmem:[#allocation44_spill] sm:$0xff] }
 0x794   : > { %10968 = vpow2.f32 %v9677_v21 }
 0x79e   : > { %v10969_v12 = vpop.eup %10968 }
 0x79f   : > { %v4369_v63 = vadd.f32 1.0, %v10969_v12 }
 0x7a1   : > { %10970 = vrcp.f32 %v4369_v63  ;;  %v18802_v63 = vld [vmem:[#allocation51_spill] sm:$0xff] }
 0x7ab   : > { %v10971_v47 = vpop.eup %10970 }
 0x7ac   : > { %v4373_v30 = vrot.slane %v10971_v47, 1 }
 0x7ae   : > { %v4375_v33 = vadd.f32 %v10971_v47, %v4373_v30 }
 0x7b0   : > { %v14590_v31 = vrot.slane %v4375_v33, %v4378_v17  ;;  %v18806_v33 = vld [vmem:[#allocation54_spill] sm:$0xff] }
 0x7b2   : > { %v14594_v28 = vmul.f32 %v14590_v31, %v14020_v39  ;;  %v14598_v58 = vmul.f32 %v14590_v31, %v14016_v53  ;;  %v14606_v54 = vmul.f32 %v14590_v31, %v14049_v49  ;;  %v14610_v29 = vmul.f32 %v14590_v31, %v14027_v14 }
 0x7b3   : > { %v14618_v8 = vmul.f32 %v14590_v31, %v18778_v6  ;;  %v14622_v49 = vmul.f32 %v14590_v31, %v14036_v26  ;;  %v14630_v24 = vmul.f32 %v14590_v31, %v14087_v3  ;;  %v14634_v22 = vmul.f32 %v14590_v31, %v14058_v60 }
 0x7b4   : > { %18774 = vst [vmem:[#allocation82_spill] sm:$0xff] %v14594_v28  ;;  %18775 = vst [vmem:[#allocation83_spill] sm:$0xff] %v14598_v58  ;;  %v4415_v56 = vsel %vm948_vm2, %v14594_v28, 0.0  ;;  %v4412_v43 = vsel %vm948_vm2, %v14598_v58, 0.0  ;;  %v4424_v53 = vsel %vm948_vm2, %v14606_v54, 0.0  ;;  %v4418_v39 = vsel %vm948_vm2, %v14610_v29, 0.0 }
 0x7b5   : > { %18776 = vst [vmem:[#allocation84_spill] sm:$0xff] %v14606_v54  ;;  %18777 = vst [vmem:[#allocation85_spill] sm:$0xff] %v14610_v29  ;;  %4416 = vadd.xlane.f32.xlu1 %v4415_v56  ;;  %4413 = vadd.xlane.f32.xlu0 %v4412_v43  ;;  %v4430_v14 = vsel %vm948_vm2, %v14618_v8, 0.0  ;;  %v4421_v34 = vsel %vm948_vm2, %v14622_v49, 0.0  ;;  %v4436_v26 = vsel %vm948_vm2, %v14630_v24, 0.0  ;;  %v4427_v7 = vsel %vm948_vm2, %v14634_v22, 0.0 }
 0x7b6   : > { %18779 = vst [vmem:[#allocation40_spill] sm:$0xff] %v14618_v8  ;;  %18780 = vst [vmem:[#allocation86_spill] sm:$0xff] %v14622_v49  ;;  %v14642_v36 = vmul.f32 %v14590_v31, %v14102_v40  ;;  %v14646_v3 = vmul.f32 %v14590_v31, %v18784_v19  ;;  %v14654_v35 = vmul.f32 %v14590_v31, %v14121_v23  ;;  %v18808_v43 = vld [vmem:[#allocation50_spill] sm:$0xff] }
 0x7b7   : > { %18781 = vst [vmem:[#allocation87_spill] sm:$0xff] %v14630_v24  ;;  %18782 = vst [vmem:[#allocation88_spill] sm:$0xff] %v14634_v22  ;;  %v14658_v40 = vmul.f32 %v14590_v31, %v18787_v18  ;;  %v14666_v1 = vmul.f32 %v14590_v31, %v14136_v15  ;;  %v14670_v23 = vmul.f32 %v14590_v31, %v18790_v44 }
 0x7b8   : > { %18783 = vst [vmem:[#allocation89_spill] sm:$0xff] %v14642_v36  ;;  %18785 = vst [vmem:[#allocation43_spill] sm:$0xff] %v14646_v3  ;;  %v4442_v60 = vsel %vm948_vm2, %v14642_v36, 0.0  ;;  %v4433_v38 = vsel %vm948_vm2, %v14646_v3, 0.0  ;;  %v4448_v32 = vsel %vm948_vm2, %v14654_v35, 0.0  ;;  %v14678_v10 = vmul.f32 %v14590_v31, %v14155_v20 }
 0x7b9   : > { %4425 = vadd.xlane.f32.xlu1 %v4424_v53  ;;  %4419 = vadd.xlane.f32.xlu0 %v4418_v39  ;;  %18786 = vst [vmem:[#allocation90_spill] sm:$0xff] %v14654_v35  ;;  %18788 = vst [vmem:[#allocation42_spill] sm:$0xff] %v14658_v40  ;;  %v4439_v27 = vsel %vm948_vm2, %v14658_v40, 0.0  ;;  %v4454_v52 = vsel %vm948_vm2, %v14666_v1, 0.0  ;;  %v4445_v13 = vsel %vm948_vm2, %v14670_v23, 0.0  ;;  %v14682_v15 = vmul.f32 %v14590_v31, %v14129_v4 }
 0x7ba   : > { %18789 = vst [vmem:[#allocation91_spill] sm:$0xff] %v14666_v1  ;;  %18791 = vst [vmem:[#allocation41_spill] sm:$0xff] %v14670_v23  ;;  %v4460_v50 = vsel %vm948_vm2, %v14678_v10, 0.0  ;;  %v14690_v57 = vmul.f32 %v14590_v31, %v18794_v9  ;;  %v14694_v20 = vmul.f32 %v14590_v31, %v18796_v0  ;;  %v14702_v11 = vmul.f32 %v14590_v31, %v18798_v59 }
 0x7bb   : > { %18792 = vst [vmem:[#allocation92_spill] sm:$0xff] %v14678_v10  ;;  %18793 = vst [vmem:[#allocation93_spill] sm:$0xff] %v14682_v15  ;;  %v4451_v2 = vsel %vm948_vm2, %v14682_v15, 0.0  ;;  %v14706_v21 = vmul.f32 %v14590_v31, %v18800_v55  ;;  %v14714_v48 = vmul.f32 %v14590_v31, %v18802_v63  ;;  %v14718_v47 = vmul.f32 %v14590_v31, %v18804_v46 }
 0x7bc   : > { %18795 = vst [vmem:[#allocation46_spill] sm:$0xff] %v14690_v57  ;;  %18797 = vst [vmem:[#allocation45_spill] sm:$0xff] %v14694_v20  ;;  %v4466_v4 = vsel %vm948_vm2, %v14690_v57, 0.0  ;;  %v4457_v5 = vsel %vm948_vm2, %v14694_v20, 0.0  ;;  %v4472_v37 = vsel %vm948_vm2, %v14702_v11, 0.0  ;;  %v14726_v56 = vmul.f32 %v14590_v31, %v18806_v33 }
 0x7bd   : > { %4431 = vadd.xlane.f32.xlu1 %v4430_v14  ;;  %4422 = vadd.xlane.f32.xlu0 %v4421_v34  ;;  %18799 = vst [vmem:[#allocation48_spill] sm:$0xff] %v14702_v11  ;;  %18801 = vst [vmem:[#allocation44_spill] sm:$0xff] %v14706_v21  ;;  %v4463_v12 = vsel %vm948_vm2, %v14706_v21, 0.0  ;;  %v4478_v30 = vsel %vm948_vm2, %v14714_v48, 0.0  ;;  %v4469_v17 = vsel %vm948_vm2, %v14718_v47, 0.0  ;;  %v14730_v53 = vmul.f32 %v14590_v31, %v18808_v43  ;;  %v18810_v14 = vld [vmem:[#allocation56_spill] sm:$0xff] }
 0x7be   : > { %18803 = vst [vmem:[#allocation51_spill] sm:$0xff] %v14714_v48  ;;  %18805 = vst [vmem:[#allocation47_spill] sm:$0xff] %v14718_v47  ;;  %v4484_v39 = vsel %vm948_vm2, %v14726_v56, 0.0  ;;  %v14738_v34 = vmul.f32 %v14590_v31, %v18810_v14  ;;  %v4541_v55 = vsel %vm948_vm2, %v14598_v58, -inf  ;;  %v4547_v46 = vsel %vm948_vm2, %v14610_v29, -inf }
 0x7bf   : > { %18807 = vst [vmem:[#allocation54_spill] sm:$0xff] %v14726_v56  ;;  %18809 = vst [vmem:[#allocation50_spill] sm:$0xff] %v14730_v53  ;;  %v4475_v6 = vsel %vm948_vm2, %v14730_v53, 0.0  ;;  %v4544_v33 = vsel %vm948_vm2, %v14594_v28, -inf  ;;  %v4550_v43 = vsel %vm948_vm2, %v14622_v49, -inf  ;;  %v4571_v14 = vsel %vm948_vm2, %v14642_v36, -inf }
 0x7c0   : > { %18811 = vst [vmem:[#allocation56_spill] sm:$0xff] %v14738_v34  ;;  %v4490_v19 = vsel %vm948_vm2, %v14738_v34, 0.0 }
 0x7c1   : > { %4437 = vadd.xlane.f32.xlu1 %v4436_v26  ;;  %4428 = vadd.xlane.f32.xlu0 %v4427_v7  ;;  %v18812_v26 = vld [vmem:[#allocation53_spill] sm:$0xff] }
 0x7c2   : > { %v14742_v7 = vmul.f32 %v14590_v31, %v18812_v26  ;;  %v4562_v26 = vsel %vm948_vm2, %v14646_v3, -inf }
 0x7c4   : > { %18813 = vst [vmem:[#allocation53_spill] sm:$0xff] %v14742_v7 }
 0x7c5   : > { %4443 = vadd.xlane.f32.xlu1 %v4442_v60  ;;  %4434 = vadd.xlane.f32.xlu0 %v4433_v38  ;;  %v4481_v60 = vsel %vm948_vm2, %v14742_v7, 0.0  ;;  %v18814_v38 = vld [vmem:[#allocation59_spill] sm:$0xff] }
 0x7c6   : > { %v14750_v18 = vmul.f32 %v14590_v31, %v18814_v38  ;;  %v4583_v38 = vsel %vm948_vm2, %v14666_v1, -inf }
 0x7c8   : > { %18815 = vst [vmem:[#allocation59_spill] sm:$0xff] %v14750_v18  ;;  %v4496_v44 = vsel %vm948_vm2, %v14750_v18, 0.0 }
 0x7c9   : > { %4449 = vadd.xlane.f32.xlu1 %v4448_v32  ;;  %4440 = vadd.xlane.f32.xlu0 %v4439_v27  ;;  %v18816_v32 = vld [vmem:[#allocation55_spill] sm:$0xff] }
 0x7ca   : > { %v14754_v27 = vmul.f32 %v14590_v31, %v18816_v32  ;;  %v4574_v32 = vsel %vm948_vm2, %v14670_v23, -inf }
 0x7cc   : > { %18817 = vst [vmem:[#allocation55_spill] sm:$0xff] %v14754_v27 }
 0x7cd   : > { %4455 = vadd.xlane.f32.xlu1 %v4454_v52  ;;  %4446 = vadd.xlane.f32.xlu0 %v4445_v13  ;;  %v4487_v52 = vsel %vm948_vm2, %v14754_v27, 0.0  ;;  %v18818_v13 = vld [vmem:[#allocation58_spill] sm:$0xff] }
 0x7d1   : > { %4461 = vadd.xlane.f32.xlu1 %v4460_v50  ;;  %4452 = vadd.xlane.f32.xlu0 %v4451_v2  ;;  %v14762_v50 = vmul.f32 %v14590_v31, %v18818_v13  ;;  %v18820_v2 = vld [vmem:[#allocation57_spill] sm:$0xff]  ;;  %v4589_v13 = vsel %vm948_vm2, %v14678_v10, -inf }
 0x7d2   : > { %v14766_v9 = vmul.f32 %v14590_v31, %v18820_v2  ;;  %v4580_v2 = vsel %vm948_vm2, %v14682_v15, -inf }
 0x7d3   : > { %18819 = vst [vmem:[#allocation58_spill] sm:$0xff] %v14762_v50  ;;  %v4502_v0 = vsel %vm948_vm2, %v14762_v50, 0.0 }
 0x7d4   : > { %18821 = vst [vmem:[#allocation57_spill] sm:$0xff] %v14766_v9 }
 0x7d5   : > { %4467 = vadd.xlane.f32.xlu1 %v4466_v4  ;;  %4458 = vadd.xlane.f32.xlu0 %v4457_v5  ;;  %v4493_v4 = vsel %vm948_vm2, %v14766_v9, 0.0  ;;  %v18822_v5 = vld [vmem:[#allocation61_spill] sm:$0xff] }
 0x7d6   : > { %v14774_v59 = vmul.f32 %v14590_v31, %v18822_v5 }
 0x7d8   : > { %18823 = vst [vmem:[#allocation61_spill] sm:$0xff] %v14774_v59 }
 0x7d9   : > { %4473 = vadd.xlane.f32.xlu1 %v4472_v37  ;;  %4464 = vadd.xlane.f32.xlu0 %v4463_v12  ;;  %v4499_v37 = vsel %vm948_vm2, %v14774_v59, 0.0  ;;  %v18824_v12 = vld [vmem:[#allocation60_spill] sm:$0xff] }
 0x7da   : > { %v14782_v63 = vmul.f32 %v14590_v31, %v18824_v12  ;;  %v4559_v31 = vsel %vm948_vm2, %v14618_v8, -inf  ;;  %v4592_v12 = vsel %vm948_vm2, %v14706_v21, -inf }
 0x7dc   : > { %18825 = vst [vmem:[#allocation60_spill] sm:$0xff] %v14782_v63 }
 0x7dd   : > { %4479 = vadd.xlane.f32.xlu1 %v4478_v30  ;;  %4470 = vadd.xlane.f32.xlu0 %v4469_v17  ;;  %v4505_v30 = vsel %vm948_vm2, %v14782_v63, 0.0  ;;  %v4553_v17 = vsel %vm948_vm2, %v14606_v54, -inf }
 0x7e1   : > { %4485 = vadd.xlane.f32.xlu1 %v4484_v39  ;;  %4476 = vadd.xlane.f32.xlu0 %v4475_v6  ;;  %v4565_v39 = vsel %vm948_vm2, %v14630_v24, -inf  ;;  %v4556_v6 = vsel %vm948_vm2, %v14634_v22, -inf }
 0x7e5   : > { %4491 = vadd.xlane.f32.xlu1 %v4490_v19  ;;  %4482 = vadd.xlane.f32.xlu0 %v4481_v60  ;;  %v4577_v19 = vsel %vm948_vm2, %v14654_v35, -inf  ;;  %v4568_v60 = vsel %vm948_vm2, %v14658_v40, -inf }
 0x7e9   : > { %4497 = vadd.xlane.f32.xlu1 %v4496_v44  ;;  %4488 = vadd.xlane.f32.xlu0 %v4487_v52  ;;  %v14812_v44 = vpop.permute.xlu0 %6400  ;;  %v14814_v52 = vpop.permute.xlu1 %6402 }
 0x7ea   : > { %18826 = vst [vmem:[#allocation94_spill] sm:$0xff] %v14812_v44  ;;  %18827 = vst [vmem:[#allocation95_spill] sm:$0xff] %v14814_v52  ;;  %v15104_v52 = vld [vmem:[#allocation3 + $0x1a0] sm:$0xff] }
 0x7ed   : > { %4503 = vadd.xlane.f32.xlu1 %v4502_v0  ;;  %4494 = vadd.xlane.f32.xlu0 %v4493_v4  ;;  %v4595_v0 = vsel %vm948_vm2, %v14690_v57, -inf  ;;  %v4586_v4 = vsel %vm948_vm2, %v14694_v20, -inf  ;;  %v14824_v5 = vpop.permute.xlu0 %6748 }
 0x7ee   : > { %18828 = vst [vmem:[#allocation96_spill] sm:$0xff] %v14824_v5 }
 0x7f1   : > { %4542 = vmax.xlane.f32.xlu1 %v4541_v55  ;;  %4500 = vadd.xlane.f32.xlu0 %v4499_v37  ;;  %v14826_v55 = vpop.permute.xlu1 %6750  ;;  %v4601_v37 = vsel %vm948_vm2, %v14702_v11, -inf }
 0x7f2   : > { %18829 = vst [vmem:[#allocation97_spill] sm:$0xff] %v14826_v55 }
 0x7f5   : > { %4548 = vmax.xlane.f32.xlu1 %v4547_v46  ;;  %4506 = vadd.xlane.f32.xlu0 %v4505_v30  ;;  %v14832_v46 = vpop.permute.xlu0 %6752  ;;  %v14834_v30 = vpop.permute.xlu1 %6754 }
 0x7f6   : > { %18830 = vst [vmem:[#allocation98_spill] sm:$0xff] %v14832_v46  ;;  %18831 = vst [vmem:[#allocation99_spill] sm:$0xff] %v14834_v30 }
 0x7f9   : > { %4554 = vmax.xlane.f32.xlu1 %v4553_v17  ;;  %4545 = vmax.xlane.f32.xlu0 %v4544_v33  ;;  %v4607_v17 = vsel %vm948_vm2, %v14714_v48, -inf  ;;  %v4598_v33 = vsel %vm948_vm2, %v14718_v47, -inf }
 0x7fd   : > { %4560 = vmax.xlane.f32.xlu1 %v4559_v31  ;;  %4551 = vmax.xlane.f32.xlu0 %v4550_v43  ;;  %v4613_v31 = vsel %vm948_vm2, %v14726_v56, -inf  ;;  %v4604_v43 = vsel %vm948_vm2, %v14730_v53, -inf }
 0x801   : > { %4566 = vmax.xlane.f32.xlu1 %v4565_v39  ;;  %4557 = vmax.xlane.f32.xlu0 %v4556_v6  ;;  %v14844_v39 = vpop.permute.xlu0 %6846  ;;  %v14846_v6 = vpop.permute.xlu1 %6848 }
 0x802   : > { %18832 = vst [vmem:[#allocation100_spill] sm:$0xff] %v14844_v39  ;;  %18833 = vst [vmem:[#allocation101_spill] sm:$0xff] %v14846_v6 }
 0x805   : > { %4572 = vmax.xlane.f32.xlu1 %v4571_v14  ;;  %4563 = vmax.xlane.f32.xlu0 %v4562_v26  ;;  %v4619_v14 = vsel %vm948_vm2, %v14738_v34, -inf  ;;  %v4610_v26 = vsel %vm948_vm2, %v14742_v7, -inf }
 0x809   : > { %4578 = vmax.xlane.f32.xlu1 %v4577_v19  ;;  %4569 = vmax.xlane.f32.xlu0 %v4568_v60  ;;  %v14852_v19 = vpop.permute.xlu0 %7290  ;;  %v14854_v60 = vpop.permute.xlu1 %7292 }
 0x80a   : > { %18834 = vst [vmem:[#allocation102_spill] sm:$0xff] %v14852_v19  ;;  %18835 = vst [vmem:[#allocation103_spill] sm:$0xff] %v14854_v60 }
 0x80d   : > { %4584 = vmax.xlane.f32.xlu1 %v4583_v38  ;;  %4575 = vmax.xlane.f32.xlu0 %v4574_v32  ;;  %v4625_v38 = vsel %vm948_vm2, %v14750_v18, -inf  ;;  %v4616_v32 = vsel %vm948_vm2, %v14754_v27, -inf }
 0x811   : > { %4590 = vmax.xlane.f32.xlu1 %v4589_v13  ;;  %4581 = vmax.xlane.f32.xlu0 %v4580_v2  ;;  %v14860_v13 = vpop.permute.xlu0 %7102  ;;  %v14862_v2 = vpop.permute.xlu1 %7104 }
 0x812   : > { %18836 = vst [vmem:[#allocation104_spill] sm:$0xff] %v14860_v13  ;;  %18837 = vst [vmem:[#allocation105_spill] sm:$0xff] %v14862_v2  ;;  %v14948_v2 = vld [vmem:[#allocation3 + $0x80] sm:$0xff] }
 0x815   : > { %4596 = vmax.xlane.f32.xlu1 %v4595_v0  ;;  %4587 = vmax.xlane.f32.xlu0 %v4586_v4  ;;  %v4631_v0 = vsel %vm948_vm2, %v14762_v50, -inf  ;;  %v4622_v4 = vsel %vm948_vm2, %v14766_v9, -inf }
 0x819   : > { %4602 = vmax.xlane.f32.xlu1 %v4601_v37  ;;  %4593 = vmax.xlane.f32.xlu0 %v4592_v12  ;;  %v4628_v37 = vsel %vm948_vm2, %v14774_v59, -inf  ;;  %v14870_v12 = vpop.permute.xlu0 %7196 }
 0x81a   : > { %18838 = vst [vmem:[#allocation106_spill] sm:$0xff] %v14870_v12 }
 0x81d   : > { %4608 = vmax.xlane.f32.xlu1 %v4607_v17  ;;  %4599 = vmax.xlane.f32.xlu0 %v4598_v33  ;;  %v14872_v17 = vpop.permute.xlu1 %7198  ;;  %v4634_v33 = vsel %vm948_vm2, %v14782_v63, -inf }
 0x81e   : > { %18839 = vst [vmem:[#allocation107_spill] sm:$0xff] %v14872_v17 }
 0x821   : > { %4614 = vmax.xlane.f32.xlu1 %v4613_v31  ;;  %4605 = vmax.xlane.f32.xlu0 %v4604_v43  ;;  %v14876_v31 = vpop.permute.xlu0 %7200  ;;  %v14878_v43 = vpop.permute.xlu1 %7202 }
 0x822   : > { %18840 = vst [vmem:[#allocation108_spill] sm:$0xff] %v14876_v31  ;;  %18841 = vst [vmem:[#allocation109_spill] sm:$0xff] %v14878_v43  ;;  %v14939_v43 = vld [vmem:[#allocation3 + $0x60] sm:$0xff] }
 0x823   : > { %v5208_v17 = vrot.slane %v14939_v43, 7 }
 0x825   : > { %4620 = vmax.xlane.f32.xlu1 %v4619_v14  ;;  %4611 = vmax.xlane.f32.xlu0 %v4610_v26  ;;  %v14880_v14 = vpop.permute.xlu0 %7294  ;;  %v14882_v26 = vpop.permute.xlu1 %7296 }
 0x826   : > { %18842 = vst [vmem:[#allocation110_spill] sm:$0xff] %v14880_v14  ;;  %18843 = vst [vmem:[#allocation111_spill] sm:$0xff] %v14882_v26 }
 0x829   : > { %4626 = vmax.xlane.f32.xlu1 %v4625_v38  ;;  %4617 = vmax.xlane.f32.xlu0 %v4616_v32 }
 0x82d   : > { %4632 = vmax.xlane.f32.xlu1 %v4631_v0  ;;  %4623 = vmax.xlane.f32.xlu0 %v4622_v4 }
 0x831   : > { %4629 = vmax.xlane.f32.xlu0 %v4628_v37 }
 0x835   : > { %4635 = vmax.xlane.f32.xlu0 %v4634_v33 }
 0x842   : > { %v4417_v38 = vpop.xlane.xlu1 %4416  ;;  %v4414_v32 = vpop.xlane.xlu0 %4413 }
 0x843   : > { %v4509_v22 = vmul.f32 0.125, %v4414_v32  ;;  %v4510_v31 = vmul.f32 0.125, %v4417_v38 }
 0x846   : > { %v4426_v0 = vpop.xlane.xlu1 %4425  ;;  %v4420_v4 = vpop.xlane.xlu0 %4419 }
 0x847   : > { %v4511_v49 = vmul.f32 0.125, %v4420_v4  ;;  %v4513_v26 = vmul.f32 0.125, %v4426_v0 }
 0x84a   : > { %v4432_v37 = vpop.xlane.xlu1 %4431  ;;  %v4423_v50 = vpop.xlane.xlu0 %4422 }
 0x84b   : > { %v4512_v38 = vmul.f32 0.125, %v4423_v50 }
 0x84e   : > { %v14884_v59 = vpop.xlane.xlu1 %4437  ;;  %v14886_v18 = vpop.xlane.xlu0 %4428 }
 0x852   : > { %v14888_v63 = vpop.xlane.xlu1 %4443  ;;  %v14890_v33 = vpop.xlane.xlu0 %4434 }
 0x856   : > { %v14892_v27 = vpop.xlane.xlu1 %4449  ;;  %v14894_v56 = vpop.xlane.xlu0 %4440 }
 0x85a   : > { %v14896_v9 = vpop.xlane.xlu1 %4455  ;;  %v14898_v34 = vpop.xlane.xlu0 %4446 }
 0x85e   : > { %v14900_v53 = vpop.xlane.xlu1 %4461  ;;  %v14902_v11 = vpop.xlane.xlu0 %4452 }
 0x862   : > { %v14904_v7 = vpop.xlane.xlu1 %4467  ;;  %v14906_v48 = vpop.xlane.xlu0 %4458 }
 0x866   : > { %v14908_v21 = vpop.xlane.xlu1 %4473  ;;  %v14910_v10 = vpop.xlane.xlu0 %4464 }
 0x86a   : > { %v14912_v47 = vpop.xlane.xlu1 %4479  ;;  %v14914_v57 = vpop.xlane.xlu0 %4470 }
 0x86e   : > { %v14916_v15 = vpop.xlane.xlu1 %4485  ;;  %v14918_v35 = vpop.xlane.xlu0 %4476 }
 0x872   : > { %v14920_v20 = vpop.xlane.xlu1 %4491  ;;  %v14922_v1 = vpop.xlane.xlu0 %4482 }
 0x876   : > { %v14924_v40 = vpop.xlane.xlu1 %4497  ;;  %v14926_v24 = vpop.xlane.xlu0 %4488 }
 0x87a   : > { %v14928_v23 = vpop.xlane.xlu1 %4503  ;;  %v14930_v36 = vpop.xlane.xlu0 %4494 }
 0x87e   : > { %v4543_v54 = vpop.xlane.xlu1 %4542  ;;  %v14932_v3 = vpop.xlane.xlu0 %4500 }
 0x87f   : > { %v4638_v8 = vsel %vm4637_vm8, %v4509_v22, %v4543_v54  ;;  %v4943_v54 = vrot.slane %v14939_v43, 5 }
 0x880   : > { %4741 = vst.msk [vmem:[#allocation3 + $0x68] sm:$0xff] %vm4233_vm10, %v4638_v8 }
 0x882   : > { %v4549_v28 = vpop.xlane.xlu1 %4548  ;;  %v14936_v58 = vpop.xlane.xlu0 %4506 }
 0x883   : > { %v4640_v29 = vsel %vm4637_vm8, %v4511_v49, %v4549_v28  ;;  %v4515_v49 = vmul.f32 0.125, %v4432_v37 }
 0x884   : > { %4743 = vst.msk [vmem:[#allocation3 + $0x88] sm:$0xff] %vm4233_vm10, %v4640_v29 }
 0x886   : > { %v4555_v32 = vpop.xlane.xlu1 %4554  ;;  %v4546_v14 = vpop.xlane.xlu0 %4545 }
 0x887   : > { %v4642_v8 = vsel %vm4637_vm8, %v4513_v26, %v4555_v32  ;;  %v4639_v22 = vsel %vm4637_vm8, %v4510_v31, %v4546_v14  ;;  %v14946_v4 = vld [vmem:[#allocation3 + $0x68] sm:$0xff]  ;;  %v5213_v14 = vrot.slane %v14948_v2, 7 }
 0x888   : > { %18844 = vst [vmem:[#allocation112_spill] sm:$0xff] %v14946_v4  ;;  %4745 = vst.msk [vmem:[#allocation3 + $0xa8] sm:$0xff] %vm4233_vm10, %v4642_v8  ;;  %5932 = vrot.lane.b32.xlu0 %v14946_v4, %s11171_s28  ;;  %v18573_v28 = vrot.slane %v14946_v4, 7  ;;  %v18572_v29 = vrot.slane %v14946_v4, 5  ;;  %v4948_v8 = vrot.slane %v14948_v2, 5 }
 0x889   : > { %4742 = vst.msk [vmem:[#allocation3 + $0x70] sm:$0xff] %vm4233_vm10, %v4639_v22 }
 0x88a   : > { %v4561_v26 = vpop.xlane.xlu1 %4560  ;;  %v4552_v0 = vpop.xlane.xlu0 %4551  ;;  %v14959_v31 = vsel %vm2349_vm9, %v5208_v17, %v18573_v28  ;;  %v14965_v32 = vsel %vm4927_vm15, %v4943_v54, %v18572_v29  ;;  %v4517_v29 = vmul.f32 0.125, %v14884_v59  ;;  %v4514_v28 = vmul.f32 0.125, %v14886_v18 }
 0x88b   : > { %18845 = vst [vmem:[#allocation113_spill] sm:$0xff] %v14965_v32  ;;  %v4644_v22 = vsel %vm4637_vm8, %v4515_v49, %v4561_v26  ;;  %v4641_v50 = vsel %vm4637_vm8, %v4512_v38, %v4552_v0  ;;  %v14970_v37 = vld [vmem:[#allocation3 + $0x88] sm:$0xff]  ;;  %v4519_v18 = vmul.f32 0.125, %v14888_v63  ;;  %v4521_v63 = vmul.f32 0.125, %v14892_v27 }
 0x88c   : > { %18846 = vst [vmem:[#allocation114_spill] sm:$0xff] %v14970_v37  ;;  %4747 = vst.msk [vmem:[#allocation3 + $0xc8] sm:$0xff] %vm4233_vm10, %v4644_v22  ;;  %5936 = vrot.lane.b32.xlu0 %v14970_v37, %s11171_s28  ;;  %v18575_v17 = vrot.slane %v14970_v37, 7  ;;  %v18574_v54 = vrot.slane %v14970_v37, 5  ;;  %v4520_v27 = vmul.f32 0.125, %v14898_v34  ;;  %v4525_v34 = vmul.f32 0.125, %v14900_v53 }
 0x88d   : > { %4744 = vst.msk [vmem:[#allocation3 + $0x90] sm:$0xff] %vm4233_vm10, %v4641_v50  ;;  %v4524_v53 = vmul.f32 0.125, %v14906_v48  ;;  %v4529_v48 = vmul.f32 0.125, %v14908_v21  ;;  %v4531_v21 = vmul.f32 0.125, %v14912_v47 }
 0x88e   : > { %v4567_v49 = vpop.xlane.xlu1 %4566  ;;  %v4558_v26 = vpop.xlane.xlu0 %4557  ;;  %v14983_v38 = vsel %vm2349_vm9, %v5213_v14, %v18575_v17  ;;  %v14988_v0 = vsel %vm4927_vm15, %v4948_v8, %v18574_v54  ;;  %v15083_v17 = vld [vmem:[#allocation3 + $0x180] sm:$0xff] }
 0x88f   : > { %18847 = vst [vmem:[#allocation115_spill] sm:$0xff] %v14983_v38  ;;  %18848 = vst [vmem:[#allocation116_spill] sm:$0xff] %v14988_v0  ;;  %v4646_v22 = vsel %vm4637_vm8, %v4517_v29, %v4567_v49  ;;  %v4643_v50 = vsel %vm4637_vm8, %v4514_v28, %v4558_v26  ;;  %v14992_v13 = vld [vmem:[#allocation3 + $0xa8] sm:$0xff]  ;;  %v4516_v29 = vmul.f32 0.125, %v14890_v33  ;;  %v4518_v33 = vmul.f32 0.125, %v14894_v56 }
 0x890   : > { %v14994_v59 = vld [vmem:[#allocation3 + $0x70] sm:$0xff]  ;;  %4749 = vst.msk [vmem:[#allocation3 + $0xe8] sm:$0xff] %vm4233_vm10, %v4646_v22  ;;  %4746 = vst.msk [vmem:[#allocation3 + $0xb0] sm:$0xff] %vm4233_vm10, %v4643_v50  ;;  %5940 = vrot.lane.b32.xlu0 %v14992_v13, %s11171_s28  ;;  %v4523_v56 = vmul.f32 0.125, %v14896_v9  ;;  %v4522_v9 = vmul.f32 0.125, %v14902_v11  ;;  %v4527_v11 = vmul.f32 0.125, %v14904_v7 }
 0x891   : > { %5934 = vrot.lane.b32.xlu1 %v14994_v59, %s11171_s28  ;;  %v4526_v7 = vmul.f32 0.125, %v14910_v10  ;;  %v4988_v41 = vrot.slane %v15083_v17, 5 }
 0x892   : > { %v4573_v14 = vpop.xlane.xlu1 %4572  ;;  %v4564_v28 = vpop.xlane.xlu0 %4563 }
 0x893   : > { %v4648_v8 = vsel %vm4637_vm8, %v4519_v18, %v4573_v14  ;;  %v4645_v49 = vsel %vm4637_vm8, %v4516_v29, %v4564_v28  ;;  %v15006_v26 = vld [vmem:[#allocation3 + $0xc8] sm:$0xff] }
 0x894   : > { %v15008_v22 = vld [vmem:[#allocation3 + $0x90] sm:$0xff]  ;;  %4751 = vst.msk [vmem:[#allocation3 + $0x108] sm:$0xff] %vm4233_vm10, %v4648_v8  ;;  %4748 = vst.msk [vmem:[#allocation3 + $0xd0] sm:$0xff] %vm4233_vm10, %v4645_v49  ;;  %5944 = vrot.lane.b32.xlu0 %v15006_v26, %s11171_s28 }
 0x895   : > { %18849 = vst [vmem:[#allocation117_spill] sm:$0xff] %v15008_v22  ;;  %5938 = vrot.lane.b32.xlu1 %v15008_v22, %s11171_s28 }
 0x896   : > { %v4579_v50 = vpop.xlane.xlu1 %4578  ;;  %v4570_v18 = vpop.xlane.xlu0 %4569 }
 0x897   : > { %v4650_v29 = vsel %vm4637_vm8, %v4521_v63, %v4579_v50  ;;  %v4647_v14 = vsel %vm4637_vm8, %v4518_v33, %v4570_v18  ;;  %v15020_v28 = vld [vmem:[#allocation3 + $0xe8] sm:$0xff]  ;;  %v15022_v8 = vld [vmem:[#allocation3 + $0xb0] sm:$0xff] }
 0x898   : > { %18850 = vst [vmem:[#allocation118_spill] sm:$0xff] %v15020_v28  ;;  %18851 = vst [vmem:[#allocation119_spill] sm:$0xff] %v15022_v8  ;;  %5948 = vrot.lane.b32.xlu0 %v15020_v28, %s11171_s28 }
 0x899   : > { %4753 = vst.msk [vmem:[#allocation3 + $0x128] sm:$0xff] %vm4233_vm10, %v4650_v29  ;;  %4750 = vst.msk [vmem:[#allocation3 + $0xf0] sm:$0xff] %vm4233_vm10, %v4647_v14  ;;  %5942 = vrot.lane.b32.xlu1 %v15022_v8, %s11171_s28 }
 0x89a   : > { %v4585_v49 = vpop.xlane.xlu1 %4584  ;;  %v4576_v63 = vpop.xlane.xlu0 %4575 }
 0x89b   : > { %v4652_v33 = vsel %vm4637_vm8, %v4523_v56, %v4585_v49  ;;  %v4649_v50 = vsel %vm4637_vm8, %v4520_v27, %v4576_v63  ;;  %v15034_v18 = vld [vmem:[#allocation3 + $0x108] sm:$0xff]  ;;  %v15036_v29 = vld [vmem:[#allocation3 + $0xd0] sm:$0xff] }
 0x89c   : > { %18852 = vst [vmem:[#allocation120_spill] sm:$0xff] %v15036_v29  ;;  %4755 = vst.msk [vmem:[#allocation3 + $0x148] sm:$0xff] %vm4233_vm10, %v4652_v33  ;;  %5952 = vrot.lane.b32.xlu0 %v15034_v18, %s11171_s28 }
 0x89d   : > { %4752 = vst.msk [vmem:[#allocation3 + $0x110] sm:$0xff] %vm4233_vm10, %v4649_v50  ;;  %5946 = vrot.lane.b32.xlu1 %v15036_v29, %s11171_s28 }
 0x89e   : > { %v4591_v14 = vpop.xlane.xlu1 %4590  ;;  %v4582_v56 = vpop.xlane.xlu0 %4581 }
 0x89f   : > { %v4654_v27 = vsel %vm4637_vm8, %v4525_v34, %v4591_v14  ;;  %v4651_v49 = vsel %vm4637_vm8, %v4522_v9, %v4582_v56 }
 0x8a0   : > { %v15048_v63 = vld [vmem:[#allocation3 + $0x128] sm:$0xff]  ;;  %v15050_v33 = vld [vmem:[#allocation3 + $0xf0] sm:$0xff]  ;;  %4757 = vst.msk [vmem:[#allocation3 + $0x168] sm:$0xff] %vm4233_vm10, %v4654_v27  ;;  %4754 = vst.msk [vmem:[#allocation3 + $0x130] sm:$0xff] %vm4233_vm10, %v4651_v49 }
 0x8a1   : > { %18853 = vst [vmem:[#allocation121_spill] sm:$0xff] %v15050_v33  ;;  %5956 = vrot.lane.b32.xlu0 %v15048_v63, %s11171_s28  ;;  %5950 = vrot.lane.b32.xlu1 %v15050_v33, %s11171_s28  ;;  %v15066_v49 = vld [vmem:[#allocation3 + $0x160] sm:$0xff] }
 0x8a2   : > { %v4597_v50 = vpop.xlane.xlu1 %4596  ;;  %v4588_v34 = vpop.xlane.xlu0 %4587  ;;  %v4983_v47 = vrot.slane %v15066_v49, 5 }
 0x8a3   : > { %v4656_v9 = vsel %vm4637_vm8, %v4527_v11, %v4597_v50  ;;  %v4653_v14 = vsel %vm4637_vm8, %v4524_v53, %v4588_v34  ;;  %v15062_v56 = vld [vmem:[#allocation3 + $0x148] sm:$0xff]  ;;  %v5248_v50 = vrot.slane %v15066_v49, 7 }
 0x8a4   : > { %18854 = vst [vmem:[#allocation122_spill] sm:$0xff] %v15062_v56  ;;  %v15064_v27 = vld [vmem:[#allocation3 + $0x110] sm:$0xff]  ;;  %4759 = vst.msk [vmem:[#allocation3 + $0x188] sm:$0xff] %vm4233_vm10, %v4656_v9 }
 0x8a5   : > { %4756 = vst.msk [vmem:[#allocation3 + $0x150] sm:$0xff] %vm4233_vm10, %v4653_v14  ;;  %5960 = vrot.lane.b32.xlu0 %v15062_v56, %s11171_s28  ;;  %5954 = vrot.lane.b32.xlu1 %v15064_v27, %s11171_s28 }
 0x8a6   : > { %v4603_v11 = vpop.xlane.xlu1 %4602  ;;  %v4594_v53 = vpop.xlane.xlu0 %4593 }
 0x8a7   : > { %v4658_v34 = vsel %vm4637_vm8, %v4529_v48, %v4603_v11  ;;  %v4655_v9 = vsel %vm4637_vm8, %v4526_v7, %v4594_v53  ;;  %v15079_v54 = vld [vmem:[#allocation3 + $0x168] sm:$0xff]  ;;  %v15081_v14 = vld [vmem:[#allocation3 + $0x130] sm:$0xff]  ;;  %v4528_v48 = vmul.f32 0.125, %v14914_v57 }
 0x8a8   : > { %4761 = vst.msk [vmem:[#allocation3 + $0x1a8] sm:$0xff] %vm4233_vm10, %v4658_v34  ;;  %4758 = vst.msk [vmem:[#allocation3 + $0x170] sm:$0xff] %vm4233_vm10, %v4655_v9  ;;  %v5249_v10 = vrot.slane %v15079_v54, 7  ;;  %v5253_v34 = vrot.slane %v15083_v17, 7 }
 0x8a9   : > { %5964 = vrot.lane.b32.xlu0 %v15079_v54, %s11171_s28  ;;  %5958 = vrot.lane.b32.xlu1 %v15081_v14, %s11171_s28 }
 0x8aa   : > { %v4609_v7 = vpop.xlane.xlu1 %4608  ;;  %v4600_v11 = vpop.xlane.xlu0 %4599  ;;  %v15095_v53 = vsel %vm2349_vm9, %v5248_v50, %v5249_v10  ;;  %v4533_v50 = vmul.f32 0.125, %v14916_v15  ;;  %v15127_v15 = vld [vmem:[#allocation3 + $0x1c0] sm:$0xff] }
 0x8ab   : > { %18855 = vst [vmem:[#allocation123_spill] sm:$0xff] %v15095_v53  ;;  %v4660_v9 = vsel %vm4637_vm8, %v4531_v21, %v4609_v7  ;;  %v4657_v12 = vsel %vm4637_vm8, %v4528_v48, %v4600_v11  ;;  %v15100_v60 = vld [vmem:[#allocation3 + $0x188] sm:$0xff]  ;;  %v4530_v21 = vmul.f32 0.125, %v14918_v35  ;;  %v4984_v48 = vrot.slane %v15079_v54, 5 }
 0x8ac   : > { %v15102_v19 = vld [vmem:[#allocation3 + $0x150] sm:$0xff]  ;;  %4763 = vst.msk [vmem:[#allocation3 + $0x1c8] sm:$0xff] %vm4233_vm10, %v4660_v9  ;;  %4760 = vst.msk [vmem:[#allocation3 + $0x190] sm:$0xff] %vm4233_vm10, %v4657_v12  ;;  %v5254_v57 = vrot.slane %v15100_v60, 7  ;;  %v5258_v12 = vrot.slane %v15104_v52, 7  ;;  %v5263_v30 = vrot.slane %v15127_v15, 7 }
 0x8ad   : > { %5968 = vrot.lane.b32.xlu0 %v15100_v60, %s11171_s28  ;;  %5962 = vrot.lane.b32.xlu1 %v15102_v19, %s11171_s28  ;;  %v15130_v35 = vsel %vm4927_vm15, %v4983_v47, %v4984_v48  ;;  %v4532_v47 = vmul.f32 0.125, %v14922_v1  ;;  %v15157_v1 = vld [vmem:[#allocation3 + $0x1e0] sm:$0xff] }
 0x8ae   : > { %v4615_v7 = vpop.xlane.xlu1 %4614  ;;  %v4606_v11 = vpop.xlane.xlu0 %4605  ;;  %v15118_v9 = vsel %vm2349_vm9, %v5253_v34, %v5254_v57  ;;  %18857 = vst [vmem:[#allocation125_spill] sm:$0xff] %v15130_v35  ;;  %v5268_v55 = vrot.slane %v15157_v1, 7  ;;  %v5003_v0 = vrot.slane %v15157_v1, 5 }
 0x8af   : > { %18856 = vst [vmem:[#allocation124_spill] sm:$0xff] %v15118_v9  ;;  %v4662_v62 = vsel %vm4637_vm8, %v4533_v50, %v4615_v7  ;;  %v4659_v44 = vsel %vm4637_vm8, %v4530_v21, %v4606_v11  ;;  %v15123_v16 = vld [vmem:[#allocation3 + $0x1a8] sm:$0xff]  ;;  %v15125_v25 = vld [vmem:[#allocation3 + $0x170] sm:$0xff]  ;;  %v4535_v21 = vmul.f32 0.125, %v14920_v20  ;;  %v4989_v7 = vrot.slane %v15100_v60, 5 }
 0x8b0   : > { %4765 = vst.msk [vmem:[#allocation3 + $0x1e8] sm:$0xff] %vm4233_vm10, %v4662_v62  ;;  %4762 = vst.msk [vmem:[#allocation3 + $0x1b0] sm:$0xff] %vm4233_vm10, %v4659_v44  ;;  %v5259_v34 = vrot.slane %v15123_v16, 7  ;;  %v5251_v50 = vrot.slane %v15125_v25, 7 }
 0x8b1   : > { %5972 = vrot.lane.b32.xlu0 %v15123_v16, %s11171_s28  ;;  %5966 = vrot.lane.b32.xlu1 %v15125_v25, %s11171_s28  ;;  %v15160_v39 = vsel %vm4927_vm15, %v4988_v41, %v4989_v7  ;;  %v4534_v41 = vmul.f32 0.125, %v14926_v24 }
 0x8b2   : > { %v4621_v11 = vpop.xlane.xlu1 %4620  ;;  %v4612_v62 = vpop.xlane.xlu0 %4611  ;;  %v15145_v44 = vsel %vm2349_vm9, %v5258_v12, %v5259_v34  ;;  %v15148_v45 = vsel %vm2349_vm9, %v5249_v10, %v5251_v50  ;;  %18860 = vst [vmem:[#allocation128_spill] sm:$0xff] %v15160_v39  ;;  %v4993_v50 = vrot.slane %v15104_v52, 5 }
 0x8b3   : > { %18858 = vst [vmem:[#allocation126_spill] sm:$0xff] %v15145_v44  ;;  %18859 = vst [vmem:[#allocation127_spill] sm:$0xff] %v15148_v45  ;;  %v4664_v61 = vsel %vm4637_vm8, %v4535_v21, %v4621_v11  ;;  %v4661_v46 = vsel %vm4637_vm8, %v4532_v47, %v4612_v62  ;;  %v15153_v6 = vld [vmem:[#allocation3 + $0x1c8] sm:$0xff]  ;;  %v15155_v20 = vld [vmem:[#allocation3 + $0x190] sm:$0xff]  ;;  %v4537_v21 = vmul.f32 0.125, %v14924_v40 }
 0x8b4   : > { %4767 = vst.msk [vmem:[#allocation3 + $0x208] sm:$0xff] %vm4233_vm10, %v4664_v61  ;;  %4764 = vst.msk [vmem:[#allocation3 + $0x1d0] sm:$0xff] %vm4233_vm10, %v4661_v46  ;;  %v5264_v10 = vrot.slane %v15153_v6, 7  ;;  %v5256_v12 = vrot.slane %v15155_v20, 7  ;;  %v4986_v61 = vrot.slane %v15125_v25, 5 }
 0x8b5   : > { %5976 = vrot.lane.b32.xlu0 %v15153_v6, %s11171_s28  ;;  %5970 = vrot.lane.b32.xlu1 %v15155_v20, %s11171_s28 }
 0x8b6   : > { %v4627_v47 = vpop.xlane.xlu1 %4626  ;;  %v4618_v11 = vpop.xlane.xlu0 %4617  ;;  %v15176_v62 = vsel %vm2349_vm9, %v5263_v30, %v5264_v10  ;;  %v15179_v39 = vsel %vm2349_vm9, %v5254_v57, %v5256_v12  ;;  %v15191_v46 = vsel %vm4927_vm15, %v4984_v48, %v4986_v61  ;;  %v4539_v12 = vmul.f32 0.125, %v14928_v23 }
 0x8b7   : > { %18861 = vst [vmem:[#allocation129_spill] sm:$0xff] %v15176_v62  ;;  %18862 = vst [vmem:[#allocation130_spill] sm:$0xff] %v15179_v39  ;;  %v4666_v5 = vsel %vm4637_vm8, %v4537_v21, %v4627_v47  ;;  %v4663_v40 = vsel %vm4637_vm8, %v4534_v41, %v4618_v11  ;;  %v15184_v42 = vld [vmem:[#allocation3 + $0x1e8] sm:$0xff]  ;;  %v15186_v24 = vld [vmem:[#allocation3 + $0x1b0] sm:$0xff]  ;;  %v4536_v21 = vmul.f32 0.125, %v14930_v36  ;;  %v18864_v48 = vrot.slane %v15123_v16, 5 }
 0x8b8   : > { %18863 = vst [vmem:[#allocation131_spill] sm:$0xff] %v15191_v46  ;;  %4769 = vst.msk [vmem:[#allocation3 + $0x228] sm:$0xff] %vm4233_vm10, %v4666_v5  ;;  %v5269_v30 = vrot.slane %v15184_v42, 7  ;;  %v5261_v57 = vrot.slane %v15186_v24, 7  ;;  %v4991_v41 = vrot.slane %v15155_v20, 5  ;;  %v5273_v46 = vrot.slane %v15188_v51, 7 }
 0x8b9   : > { %4766 = vst.msk [vmem:[#allocation3 + $0x1f0] sm:$0xff] %vm4233_vm10, %v4663_v40  ;;  %5980 = vrot.lane.b32.xlu0 %v15184_v42, %s11171_s28  ;;  %5974 = vrot.lane.b32.xlu1 %v15186_v24, %s11171_s28  ;;  %v15206_v5 = vsel %vm4927_vm15, %v4993_v50, %v18864_v48  ;;  %v15222_v48 = vld [vmem:[#allocation3 + $0x220] sm:$0xff] }
 0x8ba   : > { %18865 = vst [vmem:[#allocation132_spill] sm:$0xff] %v15206_v5  ;;  %v4633_v61 = vpop.xlane.xlu1 %4632  ;;  %v4624_v47 = vpop.xlane.xlu0 %4623  ;;  %v15210_v11 = vsel %vm2349_vm9, %v5268_v55, %v5269_v30  ;;  %v15213_v40 = vsel %vm2349_vm9, %v5259_v34, %v5261_v57  ;;  %v15225_v5 = vsel %vm4927_vm15, %v4989_v7, %v4991_v41  ;;  %v4998_v55 = vrot.slane %v15127_v15, 5 }
 0x8bb   : > { %18866 = vst [vmem:[#allocation133_spill] sm:$0xff] %v15210_v11  ;;  %18867 = vst [vmem:[#allocation134_spill] sm:$0xff] %v15213_v40  ;;  %v4668_v23 = vsel %vm4637_vm8, %v4539_v12, %v4633_v61  ;;  %v4665_v36 = vsel %vm4637_vm8, %v4536_v21, %v4624_v47  ;;  %v15218_v35 = vld [vmem:[#allocation3 + $0x208] sm:$0xff]  ;;  %v15220_v50 = vld [vmem:[#allocation3 + $0x1d0] sm:$0xff]  ;;  %v4538_v12 = vmul.f32 0.125, %v14932_v3  ;;  %v4999_v7 = vrot.slane %v15153_v6, 5 }
 0x8bc   : > { %18868 = vst [vmem:[#allocation135_spill] sm:$0xff] %v15225_v5  ;;  %4771 = vst.msk [vmem:[#allocation3 + $0x248] sm:$0xff] %vm4233_vm10, %v4668_v23  ;;  %v5274_v34 = vrot.slane %v15218_v35, 7  ;;  %v5266_v57 = vrot.slane %v15220_v50, 7  ;;  %v5380_v21 = vrot.slane %v15079_v54, 1  ;;  %v15240_v47 = vld [vmem:[#allocation3 + $0x240] sm:$0xff] }
 0x8bd   : > { %4768 = vst.msk [vmem:[#allocation3 + $0x210] sm:$0xff] %vm4233_vm10, %v4665_v36  ;;  %5984 = vrot.lane.b32.xlu0 %v15218_v35, %s11171_s28  ;;  %5978 = vrot.lane.b32.xlu1 %v15220_v50, %s11171_s28  ;;  %v5278_v5 = vrot.slane %v15222_v48, 7  ;;  %v15256_v41 = vsel %vm4927_vm15, %v4998_v55, %v4999_v7  ;;  %v18872_v11 = vrot.slane %v15125_v25, 1 }
 0x8be   : > { %v4630_v61 = vpop.xlane.xlu0 %4629  ;;  %v15243_v23 = vsel %vm2349_vm9, %v5273_v46, %v5274_v34  ;;  %v15246_v36 = vsel %vm2349_vm9, %v5264_v10, %v5266_v57  ;;  %18871 = vst [vmem:[#allocation138_spill] sm:$0xff] %v15256_v41  ;;  %v4996_v10 = vrot.slane %v15186_v24, 5  ;;  %v5098_v57 = vrot.slane %v14939_v43, 6 }
 0x8bf   : > { %18869 = vst [vmem:[#allocation136_spill] sm:$0xff] %v15243_v23  ;;  %18870 = vst [vmem:[#allocation137_spill] sm:$0xff] %v15246_v36  ;;  %v4667_v3 = vsel %vm4637_vm8, %v4538_v12, %v4630_v61  ;;  %v15251_v32 = vld [vmem:[#allocation3 + $0x228] sm:$0xff]  ;;  %v15261_v46 = vsel %vm550_vm0, %v5380_v21, %v18872_v11  ;;  %v5008_v61 = vrot.slane %v15188_v51, 5  ;;  %v4540_v11 = vmul.f32 0.125, %v14936_v58  ;;  %v15274_v21 = vld [vmem:[#allocation3 + $0xa0] sm:$0xff] }
 0x8c0   : > { %v15253_v40 = vld [vmem:[#allocation3 + $0x1f0] sm:$0xff]  ;;  %18873 = vst [vmem:[#allocation139_spill] sm:$0xff] %v15261_v46  ;;  %4770 = vst.msk [vmem:[#allocation3 + $0x230] sm:$0xff] %vm4233_vm10, %v4667_v3  ;;  %v5279_v55 = vrot.slane %v15251_v32, 7  ;;  %v5283_v3 = vrot.slane %v15240_v47, 7  ;;  %v18874_v41 = vrot.slane %v15123_v16, 5 }
 0x8c1   : > { %5988 = vrot.lane.b32.xlu0 %v15251_v32, %s11171_s28  ;;  %5982 = vrot.lane.b32.xlu1 %v15253_v40, %s11171_s28  ;;  %v5271_v12 = vrot.slane %v15253_v40, 7  ;;  %v5004_v36 = vrot.slane %v15184_v42, 5  ;;  %v5385_v58 = vrot.slane %v15100_v60, 1  ;;  %v5001_v23 = vrot.slane %v15220_v50, 5 }
 0x8c2   : > { %v15280_v46 = vsel %vm4927_vm15, %v18874_v41, %v4996_v10  ;;  %v4636_v43 = vpop.xlane.xlu0 %4635  ;;  %v15285_v39 = vsel %vm2349_vm9, %v5278_v5, %v5279_v55  ;;  %v18580_v10 = vrot.slane %v15155_v20, 1  ;;  %v5108_v5 = vrot.slane %v15274_v21, 6 }
 0x8c3   : > { %18875 = vst [vmem:[#allocation140_spill] sm:$0xff] %v15280_v46  ;;  %18876 = vst [vmem:[#allocation141_spill] sm:$0xff] %v15285_v39  ;;  %v15288_v62 = vsel %vm2349_vm9, %v5269_v30, %v5271_v12  ;;  %v4669_v45 = vsel %vm4637_vm8, %v4540_v11, %v4636_v43  ;;  %v15292_v44 = vld [vmem:[#allocation3 + $0x248] sm:$0xff]  ;;  %v15297_v41 = vsel %vm4927_vm15, %v5003_v0, %v5004_v36  ;;  %v5103_v30 = vrot.slane %v14948_v2, 6  ;;  %v15310_v11 = vld [vmem:[#allocation3 + $0xc0] sm:$0xff] }
 0x8c4   : > { %18877 = vst [vmem:[#allocation142_spill] sm:$0xff] %v15288_v62  ;;  %v15294_v9 = vld [vmem:[#allocation3 + $0x210] sm:$0xff]  ;;  %18878 = vst [vmem:[#allocation143_spill] sm:$0xff] %v15297_v41  ;;  %v5284_v12 = vrot.slane %v15292_v44, 7  ;;  %v15318_v43 = vsel %vm4927_vm15, %v4999_v7, %v5001_v23  ;;  %v5009_v41 = vrot.slane %v15218_v35, 5  ;;  %v5013_v2 = vrot.slane %v15222_v48, 5 }
 0x8c5   : > { %4772 = vst.msk [vmem:[#allocation3 + $0x250] sm:$0xff] %vm4233_vm10, %v4669_v45  ;;  %5992 = vrot.lane.b32.xlu0 %v15292_v44, %s11171_s28  ;;  %5986 = vrot.lane.b32.xlu1 %v15294_v9, %s11171_s28  ;;  %v5276_v0 = vrot.slane %v15294_v9, 7  ;;  %18879 = vst [vmem:[#allocation144_spill] sm:$0xff] %v15310_v11  ;;  %v15315_v45 = vsel %vm550_vm0, %v5385_v58, %v18580_v10  ;;  %v18882_v46 = vrot.slane %v14946_v4, 6  ;;  %v5104_v39 = vrot.slane %v14970_v37, 6 }
 0x8c6   : > { %18880 = vst [vmem:[#allocation145_spill] sm:$0xff] %v15315_v45  ;;  %18881 = vst [vmem:[#allocation146_spill] sm:$0xff] %v15318_v43  ;;  %v15327_v53 = vsel %vm2349_vm9, %v5283_v3, %v5284_v12  ;;  %v15335_v7 = vsel %vm4927_vm15, %v5008_v61, %v5009_v41  ;;  %v5390_v23 = vrot.slane %v15123_v16, 1  ;;  %v18584_v10 = vrot.slane %v15186_v24, 1 }
 0x8c7   : > { %v5100_v62 = vsel %vm5082_vm12, %v5098_v57, %v18882_v46  ;;  %18883 = vst [vmem:[#allocation147_spill] sm:$0xff] %v15327_v53  ;;  %v15330_v38 = vsel %vm2349_vm9, %v5274_v34, %v5276_v0  ;;  %v15332_v58 = vld [vmem:[#allocation3 + $0x230] sm:$0xff]  ;;  %18885 = vst [vmem:[#allocation149_spill] sm:$0xff] %v15335_v7  ;;  %v5006_v43 = vrot.slane %v15253_v40, 5  ;;  %v5113_v46 = vrot.slane %v15310_v11, 6 }
 0x8c8   : > { %18884 = vst [vmem:[#allocation148_spill] sm:$0xff] %v15330_v38  ;;  %v5281_v34 = vrot.slane %v15332_v58, 7  ;;  %v5014_v57 = vrot.slane %v15251_v32, 5  ;;  %v5018_v61 = vrot.slane %v15240_v47, 5  ;;  %v15350_v3 = vsel %vm550_vm0, %v5390_v23, %v18584_v10 }
 0x8c9   : > { %5668 = vrot.lane.b32.xlu0 %v5100_v62, %s11168_s27  ;;  %5990 = vrot.lane.b32.xlu1 %v15332_v58, %s11171_s28  ;;  %18886 = vst [vmem:[#allocation150_spill] sm:$0xff] %v15350_v3  ;;  %v15353_v0 = vsel %vm4927_vm15, %v5004_v36, %v5006_v43  ;;  %v5395_v62 = vrot.slane %v15153_v6, 1  ;;  %v18585_v7 = vrot.slane %v15220_v50, 1  ;;  %v5105_v45 = vsel %vm5082_vm12, %v5103_v30, %v5104_v39 }
 0x8ca   : > { %18887 = vst [vmem:[#allocation151_spill] sm:$0xff] %v15353_v0  ;;  %v15359_v38 = vsel %vm2349_vm9, %v5279_v55, %v5281_v34  ;;  %v15362_v53 = vsel %vm4927_vm15, %v5013_v2, %v5014_v57  ;;  %v5011_v37 = vrot.slane %v15294_v9, 5  ;;  %v5101_v36 = vrot.slane %v14994_v59, 6 }
 0x8cb   : > { %18888 = vst [vmem:[#allocation152_spill] sm:$0xff] %v15359_v38  ;;  %18889 = vst [vmem:[#allocation153_spill] sm:$0xff] %v15362_v53  ;;  %v15372_v43 = vsel %vm550_vm0, %v5395_v62, %v18585_v7  ;;  %v5019_v30 = vrot.slane %v15292_v44, 5  ;;  %v5400_v34 = vrot.slane %v15184_v42, 1  ;;  %v18587_v10 = vrot.slane %v15253_v40, 1  ;;  %v15390_v53 = vld [vmem:[#allocation3 + $0xe0] sm:$0xff] }
 0x8cc   : > { %v15365_v11 = vld [vmem:[#allocation3 + $0x250] sm:$0xff]  ;;  %18890 = vst [vmem:[#allocation154_spill] sm:$0xff] %v15372_v43  ;;  %v15380_v2 = vsel %vm4927_vm15, %v5009_v41, %v5011_v37  ;;  %v5114_v23 = vrot.slane %v15006_v26, 6  ;;  %v5106_v62 = vrot.slane %v15008_v22, 6  ;;  %18893 = vst [vmem:[#allocation157_spill] sm:$0xff] %v15390_v53  ;;  %v5405_v41 = vrot.slane %v15218_v35, 1 }
 0x8cd   : > { %5672 = vrot.lane.b32.xlu0 %v5105_v45, %s11168_s27  ;;  %5994 = vrot.lane.b32.xlu1 %v15365_v11, %s11171_s28  ;;  %v5286_v55 = vrot.slane %v15365_v11, 7  ;;  %18891 = vst [vmem:[#allocation155_spill] sm:$0xff] %v15380_v2  ;;  %v15387_v7 = vsel %vm4927_vm15, %v5018_v61, %v5019_v30  ;;  %v5016_v45 = vrot.slane %v15332_v58, 5  ;;  %v15398_v37 = vsel %vm550_vm0, %v5400_v34, %v18587_v10  ;;  %v15408_v38 = vld [vmem:[#allocation3 + $0x100] sm:$0xff]  ;;  %s11180_s28 = smov 96  }
 0x8ce   : > { %18892 = vst [vmem:[#allocation156_spill] sm:$0xff] %v15387_v7  ;;  %18895 = vst [vmem:[#allocation159_spill] sm:$0xff] %v15398_v37  ;;  %v18586_v2 = vrot.slane %v15294_v9, 1  ;;  %v18896_v43 = vrot.slane %v14992_v13, 6  ;;  %v18897_v7 = vrot.slane %v14946_v4, 6  ;;  %v15434_v10 = vld [vmem:[#allocation3 + $0x140] sm:$0xff] }
 0x8cf   : > { %v15393_v0 = vsel %vm2349_vm9, %v5284_v12, %v5286_v55  ;;  %18898 = vst [vmem:[#allocation160_spill] sm:$0xff] %v15408_v38  ;;  %v15411_v12 = vsel %vm4927_vm15, %v5014_v57, %v5016_v45  ;;  %v5021_v55 = vrot.slane %v15365_v11, 5  ;;  %v5415_v45 = vrot.slane %v15292_v44, 1  ;;  %18903 = vst [vmem:[#allocation165_spill] sm:$0xff] %v15434_v10 }
 0x8d0   : > { %18894 = vst [vmem:[#allocation158_spill] sm:$0xff] %v15393_v0  ;;  %v5110_v61 = vsel %vm5082_vm12, %v5108_v5, %v18896_v43  ;;  %v5102_v3 = vsel %vm5082_vm12, %v18897_v7, %v5101_v36  ;;  %18899 = vst [vmem:[#allocation161_spill] sm:$0xff] %v15411_v12  ;;  %v15419_v34 = vsel %vm550_vm0, %v5405_v41, %v18586_v2  ;;  %v5410_v5 = vrot.slane %v15251_v32, 1  ;;  %v15424_v43 = vld [vmem:[#allocation3 + $0x120] sm:$0xff]  ;;  %v15436_v7 = vld [vmem:[#allocation3 + $0x138] sm:$0xff] }
 0x8d1   : > { %5676 = vrot.lane.b32.xlu0 %v5110_v61, %s11168_s27  ;;  %5670 = vrot.lane.b32.xlu1 %v5102_v3, %s11168_s27  ;;  %18900 = vst [vmem:[#allocation162_spill] sm:$0xff] %v15419_v34  ;;  %v5118_v36 = vrot.slane %v15390_v53, 6  ;;  %18901 = vst [vmem:[#allocation163_spill] sm:$0xff] %v15424_v43  ;;  %v15427_v57 = vsel %vm4927_vm15, %v5019_v30, %v5021_v55  ;;  %v5115_v61 = vsel %vm5082_vm12, %v5113_v46, %v5114_v23  ;;  %v15446_v46 = vld [vmem:[#allocation3 + $0x158] sm:$0xff]  ;;  %vm7681_vm8 = vcmask 801792  }
 0x8d2   : > { %18902 = vst [vmem:[#allocation164_spill] sm:$0xff] %v15427_v57  ;;  %v5107_v41 = vsel %vm5082_vm12, %v5104_v39, %v5106_v62  ;;  %v5123_v2 = vrot.slane %v15408_v38, 6  ;;  %v18904_v12 = vrot.slane %v15332_v58, 1  ;;  %v5119_v30 = vrot.slane %v15020_v28, 6  ;;  %v15448_v39 = vld [vmem:[#allocation3 + $0x178] sm:$0xff] }
 0x8d3   : > { %v5111_v55 = vrot.slane %v15022_v8, 6  ;;  %v15450_v62 = vld [vmem:[#allocation3 + $0x198] sm:$0xff]  ;;  %v18906_v57 = vrot.slane %v15365_v11, 1  ;;  %v5133_v38 = vrot.slane %v15434_v10, 6  ;;  %v18909_v10 = vrot.slane %v15034_v18, 6 }
 0x8d4   : > { %v15441_v34 = vsel %vm550_vm0, %v5410_v5, %v18904_v12  ;;  %v5116_v12 = vrot.slane %v15036_v29, 6  ;;  %v5128_v5 = vrot.slane %v15424_v43, 6  ;;  %v15463_v0 = vld [vmem:[#allocation3 + $0x1b8] sm:$0xff]  ;;  %v5120_v3 = vsel %vm5082_vm12, %v5118_v36, %v5119_v30 }
 0x8d5   : > { %18905 = vst [vmem:[#allocation166_spill] sm:$0xff] %v15441_v34  ;;  %v15455_v37 = vsel %vm550_vm0, %v5415_v45, %v18906_v57  ;;  %5680 = vrot.lane.b32.xlu0 %v5115_v61, %s11168_s27  ;;  %5674 = vrot.lane.b32.xlu1 %v5107_v41, %s11168_s27  ;;  %v5121_v34 = vrot.slane %v15050_v33, 6  ;;  %v15466_v8 = vld [vmem:[#allocation3 + $0x1d8] sm:$0xff]  ;;  %v5483_v57 = vrot.slane %v15436_v7, 2  ;;  %v5488_v61 = vrot.slane %v15446_v46, 2 }
 0x8d6   : > { %18907 = vst [vmem:[#allocation167_spill] sm:$0xff] %v15455_v37  ;;  %v5493_v41 = vrot.slane %v15448_v39, 2  ;;  %v5498_v37 = vrot.slane %v15450_v62, 2  ;;  %v18908_v33 = vrot.slane %v14992_v13, 6  ;;  %v5125_v29 = vsel %vm5082_vm12, %v5123_v2, %v18909_v10 }
 0x8d7   : > { %v5503_v28 = vrot.slane %v15463_v0, 2  ;;  %v5117_v45 = vsel %vm5082_vm12, %v5114_v23, %v5116_v12  ;;  %v18910_v53 = vrot.slane %v15048_v63, 6  ;;  %v5122_v22 = vsel %vm5082_vm12, %v5119_v30, %v5121_v34 }
 0x8d8   : > { %v5112_v43 = vsel %vm5082_vm12, %v18908_v33, %v5111_v55  ;;  %v5508_v33 = vrot.slane %v15466_v8, 2  ;;  %v18598_v55 = vrot.slane %v15102_v19, 2  ;;  %v18911_v10 = vrot.slane %v15081_v14, 2 }
 0x8d9   : > { %5684 = vrot.lane.b32.xlu0 %v5120_v3, %s11168_s27  ;;  %5678 = vrot.lane.b32.xlu1 %v5112_v43, %s11168_s27  ;;  %v5130_v36 = vsel %vm5082_vm12, %v5128_v5, %v18910_v53  ;;  %v5490_v3 = vrot.slane %v15079_v54, 2  ;;  %v5491_v43 = vrot.slane %v15125_v25, 2  ;;  %v5495_v23 = vrot.slane %v15100_v60, 2 }
 0x8da   : > { %v15493_v2 = vsel %vm641_vm1, %v18911_v10, %v5483_v57  ;;  %v5496_v12 = vrot.slane %v15155_v20, 2  ;;  %v5500_v53 = vrot.slane %v15123_v16, 2  ;;  %v5501_v34 = vrot.slane %v15186_v24, 2 }
 0x8db   : > { %18912 = vst [vmem:[#allocation168_spill] sm:$0xff] %v15493_v2  ;;  %v5134_v30 = vrot.slane %v15062_v56, 6  ;;  %v15503_v5 = vsel %vm641_vm1, %v5490_v3, %v5491_v43  ;;  %v15508_v57 = vsel %vm641_vm1, %v18598_v55, %v5488_v61  ;;  %v15511_v10 = vsel %vm641_vm1, %v5491_v43, %v5493_v41 }
 0x8dc   : > { %18913 = vst [vmem:[#allocation169_spill] sm:$0xff] %v15503_v5  ;;  %v15516_v2 = vsel %vm641_vm1, %v5495_v23, %v5496_v12  ;;  %v15519_v56 = vsel %vm641_vm1, %v5500_v53, %v5501_v34  ;;  %v15522_v3 = vsel %vm641_vm1, %v5496_v12, %v5498_v37  ;;  %v5505_v5 = vrot.slane %v15153_v6, 2 }
 0x8dd   : > { %5688 = vrot.lane.b32.xlu0 %v5125_v29, %s11168_s27  ;;  %5682 = vrot.lane.b32.xlu1 %v5117_v45, %s11168_s27  ;;  %18914 = vst [vmem:[#allocation170_spill] sm:$0xff] %v15519_v56  ;;  %18915 = vst [vmem:[#allocation171_spill] sm:$0xff] %v15522_v3  ;;  %v5506_v61 = vrot.slane %v15220_v50, 2  ;;  %v15527_v41 = vsel %vm641_vm1, %v5501_v34, %v5503_v28  ;;  %v5510_v29 = vrot.slane %v15184_v42, 2  ;;  %v18599_v45 = vrot.slane %v15253_v40, 2 }
 0x8de   : > { %18916 = vst [vmem:[#allocation172_spill] sm:$0xff] %v15527_v41  ;;  %v5515_v43 = vrot.slane %v15218_v35, 2  ;;  %v18600_v23 = vrot.slane %v15294_v9, 2  ;;  %v5520_v53 = vrot.slane %v15251_v32, 2  ;;  %v5126_v12 = vrot.slane %v15064_v27, 6 }
 0x8df   : > { %v15537_v55 = vsel %vm641_vm1, %v5505_v5, %v5506_v61  ;;  %v15542_v28 = vsel %vm641_vm1, %v5510_v29, %v18599_v45  ;;  %v15545_v34 = vsel %vm641_vm1, %v5506_v61, %v5508_v33  ;;  %v18921_v5 = vrot.slane %v15332_v58, 2 }
 0x8e0   : > { %18917 = vst [vmem:[#allocation173_spill] sm:$0xff] %v15537_v55  ;;  %18918 = vst [vmem:[#allocation174_spill] sm:$0xff] %v15542_v28  ;;  %v15552_v37 = vsel %vm641_vm1, %v5515_v43, %v18600_v23  ;;  %v5525_v29 = vrot.slane %v15292_v44, 2  ;;  %v18601_v45 = vrot.slane %v15365_v11, 2  ;;  %v5135_v33 = vsel %vm5082_vm12, %v5133_v38, %v5134_v30 }
 0x8e1   : > { %18919 = vst [vmem:[#allocation175_spill] sm:$0xff] %v15545_v34  ;;  %5692 = vrot.lane.b32.xlu0 %v5130_v36, %s11168_s27  ;;  %5686 = vrot.lane.b32.xlu1 %v5122_v22, %s11168_s27  ;;  %18920 = vst [vmem:[#allocation176_spill] sm:$0xff] %v15552_v37  ;;  %v15557_v41 = vsel %vm641_vm1, %v5520_v53, %v18921_v5  ;;  %v5138_v36 = vrot.slane %v15066_v49, 6  ;;  %v5143_v22 = vrot.slane %v15083_v17, 6  ;;  %v18923_v61 = vrot.slane %v15034_v18, 6 }
 0x8e2   : > { %18922 = vst [vmem:[#allocation177_spill] sm:$0xff] %v15557_v41  ;;  %v5139_v23 = vrot.slane %v15079_v54, 6  ;;  %v5131_v37 = vrot.slane %v15081_v14, 6  ;;  %v15572_v53 = vsel %vm641_vm1, %v5525_v29, %v18601_v45  ;;  %v5144_v38 = vrot.slane %v15100_v60, 6 }
 0x8e3   : > { %v5127_v43 = vsel %vm5082_vm12, %v18923_v61, %v5126_v12  ;;  %18924 = vst [vmem:[#allocation178_spill] sm:$0xff] %v15572_v53  ;;  %v5136_v17 = vrot.slane %v15102_v19, 6  ;;  %v5148_v49 = vrot.slane %v15104_v52, 6  ;;  %v5141_v5 = vrot.slane %v15125_v25, 6 }
 0x8e4   : > { %v5153_v61 = vrot.slane %v15127_v15, 6  ;;  %v5594_v41 = vrot.slane %v15436_v7, 3  ;;  %v5599_v29 = vrot.slane %v15446_v46, 3  ;;  %v5614_v45 = vrot.slane %v15463_v0, 3 }
 0x8e5   : > { %5696 = vrot.lane.b32.xlu0 %v5135_v33, %s11168_s27  ;;  %5690 = vrot.lane.b32.xlu1 %v5127_v43, %s11168_s27  ;;  %v5604_v33 = vrot.slane %v15448_v39, 3  ;;  %v5609_v43 = vrot.slane %v15450_v62, 3  ;;  %v5140_v53 = vsel %vm5082_vm12, %v5138_v36, %v5139_v23  ;;  %v18925_v52 = vrot.slane %v15048_v63, 6 }
 0x8e6   : > { %v18605_v34 = vrot.slane %v15081_v14, 3  ;;  %v5619_v15 = vrot.slane %v15466_v8, 3  ;;  %v5145_v28 = vsel %vm5082_vm12, %v5143_v22, %v5144_v38  ;;  %v5137_v55 = vsel %vm5082_vm12, %v5134_v30, %v5136_v17 }
 0x8e7   : > { %v5132_v12 = vsel %vm5082_vm12, %v18925_v52, %v5131_v37  ;;  %v18926_v3 = vrot.slane %v15123_v16, 6  ;;  %v18602_v56 = vrot.slane %v15102_v19, 3  ;;  %v5142_v37 = vsel %vm5082_vm12, %v5139_v23, %v5141_v5 }
 0x8e8   : > { %v15605_v52 = vsel %vm5545_vm14, %v18605_v34, %v5594_v41  ;;  %v5154_v22 = vrot.slane %v15153_v6, 6  ;;  %v5607_v23 = vrot.slane %v15155_v20, 3  ;;  %v5151_v34 = vrot.slane %v15186_v24, 6 }
 0x8e9   : > { %5700 = vrot.lane.b32.xlu0 %v5140_v53, %s11168_s27  ;;  %5694 = vrot.lane.b32.xlu1 %v5132_v12, %s11168_s27  ;;  %v5150_v36 = vsel %vm5082_vm12, %v5148_v49, %v18926_v3  ;;  %v5601_v53 = vrot.slane %v15079_v54, 3  ;;  %v5602_v12 = vrot.slane %v15125_v25, 3  ;;  %v15613_v30 = vsel %vm5545_vm14, %v18602_v56, %v5599_v29 }
 0x8ea   : > { %v5606_v3 = vrot.slane %v15100_v60, 3  ;;  %v5611_v54 = vrot.slane %v15123_v16, 3  ;;  %v5612_v49 = vrot.slane %v15186_v24, 3  ;;  %v15631_v60 = vsel %vm5545_vm14, %v5607_v23, %v5609_v43 }
 0x8eb   : > { %v15618_v17 = vsel %vm5545_vm14, %v5601_v53, %v5602_v12  ;;  %v15621_v41 = vsel %vm5545_vm14, %v5602_v12, %v5604_v33  ;;  %v5616_v29 = vrot.slane %v15153_v6, 3  ;;  %v5617_v53 = vrot.slane %v15220_v50, 3 }
 0x8ec   : > { %v15628_v5 = vsel %vm5545_vm14, %v5606_v3, %v5607_v23  ;;  %v15636_v33 = vsel %vm5545_vm14, %v5611_v54, %v5612_v49  ;;  %v15639_v12 = vsel %vm5545_vm14, %v5612_v49, %v5614_v45  ;;  %v5626_v6 = vrot.slane %v15218_v35, 3 }
 0x8ed   : > { %5704 = vrot.lane.b32.xlu0 %v5145_v28, %s11168_s27  ;;  %5698 = vrot.lane.b32.xlu1 %v5137_v55, %s11168_s27  ;;  %v5621_v28 = vrot.slane %v15184_v42, 3  ;;  %v18603_v55 = vrot.slane %v15253_v40, 3  ;;  %v15644_v3 = vsel %vm5545_vm14, %v5616_v29, %v5617_v53  ;;  %v15647_v43 = vsel %vm5545_vm14, %v5617_v53, %v5619_v15 }
 0x8ee   : > { %v18604_v23 = vrot.slane %v15294_v9, 3  ;;  %v5146_v54 = vrot.slane %v15155_v20, 6  ;;  %v5631_v49 = vrot.slane %v15251_v32, 3  ;;  %v18606_v56 = vrot.slane %v15332_v58, 3 }
 0x8ef   : > { %v15655_v45 = vsel %vm5545_vm14, %v5621_v28, %v18603_v55  ;;  %v5636_v29 = vrot.slane %v15292_v44, 3  ;;  %v18607_v53 = vrot.slane %v15365_v11, 3  ;;  %v5158_v55 = vrot.slane %v15157_v1, 6 }
 0x8f0   : > { %v15664_v15 = vsel %vm5545_vm14, %v5626_v6, %v18604_v23  ;;  %v15671_v28 = vsel %vm5545_vm14, %v5631_v49, %v18606_v56  ;;  %v5147_v6 = vsel %vm5082_vm12, %v5144_v38, %v5146_v54  ;;  %v5159_v23 = vrot.slane %v15184_v42, 6 }
 0x8f1   : > { %5708 = vrot.lane.b32.xlu0 %v5150_v36, %s11168_s27  ;;  %5702 = vrot.lane.b32.xlu1 %v5142_v37, %s11168_s27  ;;  %18927 = vst [vmem:[#allocation179_spill] sm:$0xff] %v15664_v15  ;;  %18928 = vst [vmem:[#allocation180_spill] sm:$0xff] %v15671_v28  ;;  %v15677_v36 = vsel %vm5545_vm14, %v5636_v29, %v18607_v53  ;;  %v5155_v37 = vsel %vm5082_vm12, %v5153_v61, %v5154_v22  ;;  %v5163_v49 = vrot.slane %v15188_v51, 6 }
 0x8f2   : > { %18929 = vst [vmem:[#allocation181_spill] sm:$0xff] %v15677_v36  ;;  %v5160_v1 = vsel %vm5082_vm12, %v5158_v55, %v5159_v23  ;;  %v18930_v56 = vrot.slane %v15123_v16, 6  ;;  %v5164_v61 = vrot.slane %v15218_v35, 6  ;;  %v5156_v38 = vrot.slane %v15220_v50, 6  ;;  %v11126_v36 = vld [vmem:[#allocation3 + $0x150] sm:$0xff] }
 0x8f3   : > { %v5168_v54 = vrot.slane %v15222_v48, 6  ;;  %v5169_v16 = vrot.slane %v15251_v32, 6 }
 0x8f4   : > { %v5152_v29 = vsel %vm5082_vm12, %v18930_v56, %v5151_v34  ;;  %v5165_v51 = vsel %vm5082_vm12, %v5163_v49, %v5164_v61  ;;  %v5157_v55 = vsel %vm5082_vm12, %v5154_v22, %v5156_v38  ;;  %v5161_v56 = vrot.slane %v15253_v40, 6 }
 0x8f5   : > { %5712 = vrot.lane.b32.xlu0 %v5155_v37, %s11168_s27  ;;  %5706 = vrot.lane.b32.xlu1 %v5147_v6, %s11168_s27  ;;  %v5173_v34 = vrot.slane %v15240_v47, 6  ;;  %v5170_v37 = vsel %vm5082_vm12, %v5168_v54, %v5169_v16  ;;  %v5174_v6 = vrot.slane %v15292_v44, 6  ;;  %v5166_v22 = vrot.slane %v15294_v9, 6 }
 0x8f6   : > { %v5162_v48 = vsel %vm5082_vm12, %v5159_v23, %v5161_v56  ;;  %v5176_v54 = vrot.slane %v15365_v11, 6  ;;  %v5218_v56 = vrot.slane %v15274_v21, 7 }
 0x8f7   : > { %v5167_v47 = vsel %vm5082_vm12, %v5164_v61, %v5166_v22  ;;  %v18942_v22 = vld [vmem:[#allocation144_spill] sm:$0xff] }
 0x8f9   : > { %5716 = vrot.lane.b32.xlu0 %v5160_v1, %s11168_s27  ;;  %5710 = vrot.lane.b32.xlu1 %v5152_v29, %s11168_s27  ;;  %v5175_v1 = vsel %vm5082_vm12, %v5173_v34, %v5174_v6  ;;  %v5171_v29 = vrot.slane %v15332_v58, 6  ;;  %v5219_v34 = vrot.slane %v14992_v13, 7  ;;  %v5224_v13 = vrot.slane %v15006_v26, 7 }
 0x8fa   : > { %v15694_v42 = vpop.permute.xlu0 %5932 }
 0x8fb   : > { %18931 = vst [vmem:[#allocation182_spill] sm:$0xff] %v15694_v42  ;;  %v5172_v38 = vsel %vm5082_vm12, %v5169_v16, %v5171_v29  ;;  %v18939_v16 = vld [vmem:[#allocation115_spill] sm:$0xff]  ;;  %v15971_v42 = vld [vmem:[#allocation3 + $0x130] sm:$0xff] }
 0x8fc   : > { %19010 = vst [vmem:[#allocation202_spill] sm:$0xff] %v15971_v42 }
 0x8fd   : > { %5720 = vrot.lane.b32.xlu0 %v5165_v51, %s11168_s27  ;;  %5714 = vrot.lane.b32.xlu1 %v5157_v55, %s11168_s27  ;;  %v5177_v55 = vsel %vm5082_vm12, %v5174_v6, %v5176_v54  ;;  %v18943_v6 = vrot.slane %v14946_v4, 7  ;;  %vm7433_vm12 = vcmask 457728  }
 0x8fe   : > { %v15703_v35 = vpop.permute.xlu0 %5936 }
 0x8ff   : > { %18932 = vst [vmem:[#allocation183_spill] sm:$0xff] %v15703_v35 }
 0x901   : > { %5724 = vrot.lane.b32.xlu0 %v5170_v37, %s11168_s27  ;;  %5718 = vrot.lane.b32.xlu1 %v5162_v48, %s11168_s27  ;;  %v5211_v37 = vrot.slane %v14994_v59, 7  ;;  %v18944_v59 = vld [vmem:[#allocation117_spill] sm:$0xff] }
 0x902   : > { %v15714_v49 = vpop.permute.xlu0 %5940  ;;  %v5216_v29 = vrot.slane %v18944_v59, 7 }
 0x903   : > { %v15712_v32 = vpop.permute.xlu1 %5934  ;;  %18934 = vst [vmem:[#allocation185_spill] sm:$0xff] %v15714_v49  ;;  %v5212_v21 = vsel %vm2349_vm9, %v18943_v6, %v5211_v37  ;;  %v18950_v6 = vld [vmem:[#allocation118_spill] sm:$0xff] }
 0x904   : > { %18933 = vst [vmem:[#allocation184_spill] sm:$0xff] %v15712_v32  ;;  %v5229_v26 = vrot.slane %v18950_v6, 7  ;;  %v15920_v49 = vld [vmem:[#allocation3 + $0xd0] sm:$0xff]  ;;  %v15944_v32 = vld [vmem:[#allocation3 + $0xe8] sm:$0xff] }
 0x905   : > { %5728 = vrot.lane.b32.xlu0 %v5175_v1, %s11168_s27  ;;  %5722 = vrot.lane.b32.xlu1 %v5167_v47, %s11168_s27  ;;  %v5223_v1 = vrot.slane %v18942_v22, 7  ;;  %v5220_v47 = vsel %vm2349_vm9, %v5218_v56, %v5219_v34  ;;  %v18948_v22 = vld [vmem:[#allocation114_spill] sm:$0xff] }
 0x906   : > { %v15723_v23 = vpop.permute.xlu0 %5944  ;;  %v18949_v53 = vrot.slane %v18948_v22, 7  ;;  %v15937_v22 = vld [vmem:[#allocation3 + $0xf0] sm:$0xff] }
 0x907   : > { %v15721_v44 = vpop.permute.xlu1 %5938  ;;  %18936 = vst [vmem:[#allocation187_spill] sm:$0xff] %v15723_v23  ;;  %v5225_v56 = vsel %vm2349_vm9, %v5223_v1, %v5224_v13 }
 0x908   : > { %18935 = vst [vmem:[#allocation186_spill] sm:$0xff] %v15721_v44  ;;  %v5217_v37 = vsel %vm2349_vm9, %v18949_v53, %v5216_v29  ;;  %v5234_v53 = vrot.slane %v15034_v18, 7  ;;  %v18955_v29 = vld [vmem:[#allocation120_spill] sm:$0xff] }
 0x909   : > { %5800 = vrot.lane.b32.xlu0 %v14959_v31, %s11170_s24  ;;  %5726 = vrot.lane.b32.xlu1 %v5172_v38, %s11168_s27  ;;  %v5226_v6 = vrot.slane %v18955_v29, 7  ;;  %v18962_v29 = vld [vmem:[#allocation165_spill] sm:$0xff] }
 0x90a   : > { %v15732_v51 = vpop.permute.xlu0 %5948 }
 0x90b   : > { %v15730_v61 = vpop.permute.xlu1 %5942  ;;  %18938 = vst [vmem:[#allocation189_spill] sm:$0xff] %v15732_v51  ;;  %v15908_v51 = vld [vmem:[#allocation3 + $0x98] sm:$0xff] }
 0x90c   : > { %18937 = vst [vmem:[#allocation188_spill] sm:$0xff] %v15730_v61  ;;  %v15910_v61 = vld [vmem:[#allocation3 + $0xa8] sm:$0xff]  ;;  %v5348_v44 = vrot.slane %v15908_v51, 1 }
 0x90d   : > { %5804 = vrot.lane.b32.xlu0 %v18939_v16, %s11170_s24  ;;  %5730 = vrot.lane.b32.xlu1 %v5177_v55, %s11168_s27  ;;  %v18947_v55 = vld [vmem:[#allocation157_spill] sm:$0xff]  ;;  %v5350_v23 = vrot.slane %v15910_v61, 1 }
 0x90e   : > { %v15743_v48 = vpop.permute.xlu0 %5952  ;;  %v5228_v16 = vrot.slane %v18947_v55, 7 }
 0x90f   : > { %v15741_v31 = vpop.permute.xlu1 %5946  ;;  %18941 = vst [vmem:[#allocation190_spill] sm:$0xff] %v15743_v48  ;;  %v18951_v48 = vld [vmem:[#allocation119_spill] sm:$0xff] }
 0x910   : > { %18940 = vst [vmem:[#allocation115_spill] sm:$0xff] %v15741_v31  ;;  %v5221_v59 = vrot.slane %v18951_v48, 7  ;;  %v5230_v1 = vsel %vm2349_vm9, %v5228_v16, %v5229_v26  ;;  %v5227_v16 = vsel %vm2349_vm9, %v5224_v13, %v5226_v6  ;;  %v15902_v31 = vld [vmem:[#allocation3 + $0xb0] sm:$0xff] }
 0x911   : > { %5808 = vrot.lane.b32.xlu0 %v5220_v47, %s11170_s24  ;;  %5802 = vrot.lane.b32.xlu1 %v5212_v21, %s11170_s24 }
 0x913   : > { %v15754_v38 = vpop.permute.xlu1 %5950  ;;  %v15756_v54 = vpop.permute.xlu0 %5956 }
 0x914   : > { %18945 = vst [vmem:[#allocation144_spill] sm:$0xff] %v15754_v38  ;;  %18946 = vst [vmem:[#allocation117_spill] sm:$0xff] %v15756_v54  ;;  %v18954_v54 = vld [vmem:[#allocation160_spill] sm:$0xff]  ;;  %v5222_v38 = vsel %vm2349_vm9, %v5219_v34, %v5221_v59  ;;  %v5239_v34 = vrot.slane %v15048_v63, 7  ;;  %v18959_v59 = vld [vmem:[#allocation121_spill] sm:$0xff]  ;;  %v5236_v63 = vrot.slane %v15064_v27, 7 }
 0x915   : > { %5812 = vrot.lane.b32.xlu0 %v5225_v56, %s11170_s24  ;;  %5806 = vrot.lane.b32.xlu1 %v5217_v37, %s11170_s24  ;;  %v5233_v55 = vrot.slane %v18954_v54, 7  ;;  %v18958_v37 = vld [vmem:[#allocation163_spill] sm:$0xff]  ;;  %v5231_v18 = vrot.slane %v18959_v59, 7 }
 0x916   : > { %v5237_v59 = vsel %vm2349_vm9, %v5234_v53, %v5236_v63 }
 0x917   : > { %v15767_v47 = vpop.permute.xlu1 %5954  ;;  %v15769_v21 = vpop.permute.xlu0 %5960  ;;  %v5235_v54 = vsel %vm2349_vm9, %v5233_v55, %v5234_v53  ;;  %v5232_v55 = vsel %vm2349_vm9, %v5229_v26, %v5231_v18  ;;  %v5246_v18 = vrot.slane %v15102_v19, 7 }
 0x918   : > { %18952 = vst [vmem:[#allocation157_spill] sm:$0xff] %v15767_v47  ;;  %18953 = vst [vmem:[#allocation118_spill] sm:$0xff] %v15769_v21  ;;  %v5238_v21 = vrot.slane %v18958_v37, 7 }
 0x919   : > { %5816 = vrot.lane.b32.xlu0 %v5230_v1, %s11170_s24  ;;  %5810 = vrot.lane.b32.xlu1 %v5222_v38, %s11170_s24 }
 0x91a   : > { %v5240_v37 = vsel %vm2349_vm9, %v5238_v21, %v5239_v34  ;;  %v5241_v21 = vrot.slane %v15081_v14, 7 }
 0x91b   : > { %v15778_v48 = vpop.permute.xlu1 %5958  ;;  %v15780_v56 = vpop.permute.xlu0 %5964 }
 0x91c   : > { %18956 = vst [vmem:[#allocation119_spill] sm:$0xff] %v15778_v48  ;;  %18957 = vst [vmem:[#allocation160_spill] sm:$0xff] %v15780_v56  ;;  %v5243_v56 = vrot.slane %v18962_v29, 7  ;;  %v18963_v48 = vld [vmem:[#allocation122_spill] sm:$0xff]  ;;  %v18968_v29 = vld [vmem:[#allocation123_spill] sm:$0xff] }
 0x91d   : > { %5820 = vrot.lane.b32.xlu0 %v5235_v54, %s11170_s24  ;;  %5814 = vrot.lane.b32.xlu1 %v5227_v16, %s11170_s24  ;;  %v5244_v13 = vrot.slane %v18963_v48, 7  ;;  %v5242_v48 = vsel %vm2349_vm9, %v5239_v34, %v5241_v21 }
 0x91f   : > { %v15789_v1 = vpop.permute.xlu1 %5962  ;;  %v15791_v38 = vpop.permute.xlu0 %5968  ;;  %v5245_v16 = vsel %vm2349_vm9, %v5243_v56, %v5244_v13 }
 0x920   : > { %18960 = vst [vmem:[#allocation120_spill] sm:$0xff] %v15789_v1  ;;  %18961 = vst [vmem:[#allocation163_spill] sm:$0xff] %v15791_v38 }
 0x921   : > { %5824 = vrot.lane.b32.xlu0 %v5240_v37, %s11170_s24  ;;  %5818 = vrot.lane.b32.xlu1 %v5232_v55, %s11170_s24  ;;  %v5247_v37 = vsel %vm2349_vm9, %v5244_v13, %v5246_v18  ;;  %v18971_v55 = vld [vmem:[#allocation124_spill] sm:$0xff]  ;;  %v18978_v13 = vld [vmem:[#allocation129_spill] sm:$0xff]  ;;  %v18979_v18 = vld [vmem:[#allocation130_spill] sm:$0xff] }
 0x923   : > { %v15800_v6 = vpop.permute.xlu1 %5966  ;;  %v15802_v54 = vpop.permute.xlu0 %5972 }
 0x924   : > { %18964 = vst [vmem:[#allocation121_spill] sm:$0xff] %v15800_v6  ;;  %18965 = vst [vmem:[#allocation165_spill] sm:$0xff] %v15802_v54  ;;  %v18998_v54 = vld [vmem:[#allocation152_spill] sm:$0xff] }
 0x925   : > { %5828 = vrot.lane.b32.xlu0 %v5245_v16, %s11170_s24  ;;  %5822 = vrot.lane.b32.xlu1 %v5237_v59, %s11170_s24  ;;  %v18974_v16 = vld [vmem:[#allocation126_spill] sm:$0xff]  ;;  %v18975_v59 = vld [vmem:[#allocation127_spill] sm:$0xff] }
 0x927   : > { %v15809_v26 = vpop.permute.xlu1 %5970  ;;  %v15811_v27 = vpop.permute.xlu0 %5976 }
 0x928   : > { %18966 = vst [vmem:[#allocation122_spill] sm:$0xff] %v15809_v26  ;;  %18967 = vst [vmem:[#allocation191_spill] sm:$0xff] %v15811_v27 }
 0x929   : > { %5832 = vrot.lane.b32.xlu0 %v18968_v29, %s11170_s24  ;;  %5826 = vrot.lane.b32.xlu1 %v5242_v48, %s11170_s24 }
 0x92b   : > { %v15818_v53 = vpop.permute.xlu1 %5974  ;;  %v15820_v56 = vpop.permute.xlu0 %5980 }
 0x92c   : > { %18969 = vst [vmem:[#allocation123_spill] sm:$0xff] %v15818_v53  ;;  %18970 = vst [vmem:[#allocation192_spill] sm:$0xff] %v15820_v56  ;;  %v15885_v53 = vld [vmem:[#allocation3 + $0x90] sm:$0xff] }
 0x92d   : > { %5836 = vrot.lane.b32.xlu0 %v18971_v55, %s11170_s24  ;;  %5830 = vrot.lane.b32.xlu1 %v5247_v37, %s11170_s24  ;;  %v18982_v55 = vld [vmem:[#allocation133_spill] sm:$0xff]  ;;  %v5346_v26 = vrot.slane %v15885_v53, 1 }
 0x92f   : > { %v15826_v63 = vpop.permute.xlu1 %5978  ;;  %v15828_v34 = vpop.permute.xlu0 %5984 }
 0x930   : > { %18972 = vst [vmem:[#allocation124_spill] sm:$0xff] %v15826_v63  ;;  %18973 = vst [vmem:[#allocation193_spill] sm:$0xff] %v15828_v34  ;;  %v15877_v63 = vld [vmem:[#allocation3 + $0x68] sm:$0xff] }
 0x931   : > { %5840 = vrot.lane.b32.xlu0 %v18974_v16, %s11170_s24  ;;  %5834 = vrot.lane.b32.xlu1 %v18975_v59, %s11170_s24  ;;  %v18983_v16 = vld [vmem:[#allocation134_spill] sm:$0xff] }
 0x933   : > { %v15834_v21 = vpop.permute.xlu1 %5982  ;;  %v15836_v48 = vpop.permute.xlu0 %5988 }
 0x934   : > { %18976 = vst [vmem:[#allocation126_spill] sm:$0xff] %v15834_v21  ;;  %18977 = vst [vmem:[#allocation127_spill] sm:$0xff] %v15836_v48  ;;  %v18986_v48 = vld [vmem:[#allocation136_spill] sm:$0xff]  ;;  %v15870_v21 = vld [vmem:[#allocation3 + $0x70] sm:$0xff] }
 0x935   : > { %5844 = vrot.lane.b32.xlu0 %v18978_v13, %s11170_s24  ;;  %5838 = vrot.lane.b32.xlu1 %v18979_v18, %s11170_s24  ;;  %v18987_v13 = vld [vmem:[#allocation137_spill] sm:$0xff] }
 0x937   : > { %v15842_v29 = vpop.permute.xlu1 %5986  ;;  %v15844_v37 = vpop.permute.xlu0 %5992 }
 0x938   : > { %18980 = vst [vmem:[#allocation129_spill] sm:$0xff] %v15842_v29  ;;  %18981 = vst [vmem:[#allocation130_spill] sm:$0xff] %v15844_v37  ;;  %v18990_v37 = vld [vmem:[#allocation141_spill] sm:$0xff] }
 0x939   : > { %5848 = vrot.lane.b32.xlu0 %v18982_v55, %s11170_s24  ;;  %5842 = vrot.lane.b32.xlu1 %v18983_v16, %s11170_s24  ;;  %v18991_v55 = vld [vmem:[#allocation142_spill] sm:$0xff] }
 0x93b   : > { %v15850_v59 = vpop.permute.xlu1 %5990  ;;  %v15852_v34 = vpop.permute.xlu0 %5668 }
 0x93c   : > { %18984 = vst [vmem:[#allocation133_spill] sm:$0xff] %v15850_v59  ;;  %18985 = vst [vmem:[#allocation134_spill] sm:$0xff] %v15852_v34  ;;  %v15978_v34 = vld [vmem:[#allocation3 + $0x128] sm:$0xff] }
 0x93d   : > { %5852 = vrot.lane.b32.xlu0 %v18986_v48, %s11170_s24  ;;  %5846 = vrot.lane.b32.xlu1 %v18987_v13, %s11170_s24  ;;  %v5341_v48 = vrot.slane %v15870_v21, 1  ;;  %v18994_v13 = vld [vmem:[#allocation147_spill] sm:$0xff] }
 0x93f   : > { %v15858_v18 = vpop.permute.xlu1 %5994  ;;  %v15860_v29 = vpop.permute.xlu0 %5672 }
 0x940   : > { %18988 = vst [vmem:[#allocation136_spill] sm:$0xff] %v15858_v18  ;;  %18989 = vst [vmem:[#allocation137_spill] sm:$0xff] %v15860_v29  ;;  %v18995_v18 = vld [vmem:[#allocation148_spill] sm:$0xff]  ;;  %v15961_v29 = vld [vmem:[#allocation3 + $0x108] sm:$0xff] }
 0x941   : > { %5856 = vrot.lane.b32.xlu0 %v18990_v37, %s11170_s24  ;;  %5850 = vrot.lane.b32.xlu1 %v18991_v55, %s11170_s24  ;;  %v5340_v37 = vrot.slane %v15877_v63, 1 }
 0x943   : > { %v15866_v16 = vpop.permute.xlu1 %5670  ;;  %v15868_v59 = vpop.permute.xlu0 %5676  ;;  %v5342_v27 = vsel %vm550_vm0, %v5340_v37, %v5341_v48 }
 0x944   : > { %18992 = vst [vmem:[#allocation141_spill] sm:$0xff] %v15866_v16  ;;  %18993 = vst [vmem:[#allocation142_spill] sm:$0xff] %v15868_v59  ;;  %v15954_v16 = vld [vmem:[#allocation3 + $0x110] sm:$0xff] }
 0x945   : > { %5860 = vrot.lane.b32.xlu0 %v18994_v13, %s11170_s24  ;;  %5854 = vrot.lane.b32.xlu1 %v18995_v18, %s11170_s24  ;;  %v15891_v18 = vld [vmem:[#allocation3 + $0x78] sm:$0xff]  ;;  %v15893_v13 = vld [vmem:[#allocation3 + $0x88] sm:$0xff] }
 0x946   : > { %v5345_v38 = vrot.slane %v15893_v13, 1  ;;  %v5343_v47 = vrot.slane %v15891_v18, 1 }
 0x947   : > { %v15880_v56 = vpop.permute.xlu1 %5674  ;;  %v15882_v55 = vpop.permute.xlu0 %5680 }
 0x948   : > { %18996 = vst [vmem:[#allocation147_spill] sm:$0xff] %v15880_v56  ;;  %18997 = vst [vmem:[#allocation148_spill] sm:$0xff] %v15882_v55  ;;  %v5347_v37 = vsel %vm550_vm0, %v5345_v38, %v5346_v26  ;;  %v15927_v56 = vld [vmem:[#allocation3 + $0xc8] sm:$0xff] }
 0x949   : > { %5858 = vrot.lane.b32.xlu1 %v18998_v54, %s11170_s24  ;;  %6064 = vrot.lane.b32.xlu0 %v5342_v27, %s11163_s14  ;;  %v5351_v54 = vrot.slane %v15902_v31, 1  ;;  %v19001_v27 = vld [vmem:[#allocation158_spill] sm:$0xff] }
 0x94b   : > { %v15896_v6 = vpop.permute.xlu1 %5678  ;;  %v15898_v1 = vpop.permute.xlu0 %5684  ;;  %v5352_v55 = vsel %vm550_vm0, %v5350_v23, %v5351_v54  ;;  %v5349_v23 = vsel %vm550_vm0, %v5346_v26, %v5348_v44 }
 0x94c   : > { %18999 = vst [vmem:[#allocation152_spill] sm:$0xff] %v15896_v6  ;;  %19000 = vst [vmem:[#allocation194_spill] sm:$0xff] %v15898_v1  ;;  %v5344_v6 = vsel %vm550_vm0, %v5341_v48, %v5343_v47 }
 0x94d   : > { %5862 = vrot.lane.b32.xlu1 %v19001_v27, %s11170_s24  ;;  %6068 = vrot.lane.b32.xlu0 %v5347_v37, %s11163_s14  ;;  %v5356_v37 = vrot.slane %v15920_v49, 1  ;;  %v15925_v27 = vld [vmem:[#allocation3 + $0xb8] sm:$0xff] }
 0x94e   : > { %v5353_v59 = vrot.slane %v15925_v27, 1 }
 0x94f   : > { %v15913_v1 = vpop.permute.xlu1 %5682  ;;  %v15915_v38 = vpop.permute.xlu0 %5688 }
 0x950   : > { %19002 = vst [vmem:[#allocation158_spill] sm:$0xff] %v15913_v1  ;;  %19003 = vst [vmem:[#allocation195_spill] sm:$0xff] %v15915_v38  ;;  %v5355_v38 = vrot.slane %v15927_v56, 1  ;;  %v5354_v26 = vsel %vm550_vm0, %v5351_v54, %v5353_v59 }
 0x951   : > { %6066 = vrot.lane.b32.xlu1 %v5344_v6, %s11163_s14  ;;  %6072 = vrot.lane.b32.xlu0 %v5352_v55, %s11163_s14  ;;  %v5361_v6 = vrot.slane %v15937_v22, 1  ;;  %v15942_v55 = vld [vmem:[#allocation3 + $0xd8] sm:$0xff] }
 0x952   : > { %v5357_v48 = vsel %vm550_vm0, %v5355_v38, %v5356_v37  ;;  %v5358_v35 = vrot.slane %v15942_v55, 1 }
 0x953   : > { %v15930_v1 = vpop.permute.xlu1 %5686  ;;  %v15932_v47 = vpop.permute.xlu0 %5692 }
 0x954   : > { %19004 = vst [vmem:[#allocation196_spill] sm:$0xff] %v15930_v1  ;;  %19005 = vst [vmem:[#allocation197_spill] sm:$0xff] %v15932_v47  ;;  %v5360_v47 = vrot.slane %v15944_v32, 1  ;;  %v5359_v54 = vsel %vm550_vm0, %v5356_v37, %v5358_v35 }
 0x955   : > { %6070 = vrot.lane.b32.xlu1 %v5349_v23, %s11163_s14  ;;  %6076 = vrot.lane.b32.xlu0 %v5357_v48, %s11163_s14  ;;  %v5366_v23 = vrot.slane %v15954_v16, 1  ;;  %v15959_v48 = vld [vmem:[#allocation3 + $0xf8] sm:$0xff] }
 0x956   : > { %v5362_v38 = vsel %vm550_vm0, %v5360_v47, %v5361_v6  ;;  %v5363_v4 = vrot.slane %v15959_v48, 1 }
 0x957   : > { %v15947_v1 = vpop.permute.xlu1 %5690  ;;  %v15949_v44 = vpop.permute.xlu0 %5696 }
 0x958   : > { %19006 = vst [vmem:[#allocation198_spill] sm:$0xff] %v15947_v1  ;;  %19007 = vst [vmem:[#allocation199_spill] sm:$0xff] %v15949_v44  ;;  %v5365_v44 = vrot.slane %v15961_v29, 1  ;;  %v5364_v37 = vsel %vm550_vm0, %v5361_v6, %v5363_v4 }
 0x959   : > { %6074 = vrot.lane.b32.xlu1 %v5354_v26, %s11163_s14  ;;  %6080 = vrot.lane.b32.xlu0 %v5362_v38, %s11163_s14  ;;  %v5371_v26 = vrot.slane %v15971_v42, 1  ;;  %v15976_v38 = vld [vmem:[#allocation3 + $0x118] sm:$0xff] }
 0x95a   : > { %v5367_v47 = vsel %vm550_vm0, %v5365_v44, %v5366_v23  ;;  %v5368_v42 = vrot.slane %v15976_v38, 1 }
 0x95b   : > { %v15964_v1 = vpop.permute.xlu1 %5694  ;;  %v15966_v59 = vpop.permute.xlu0 %5700 }
 0x95c   : > { %19008 = vst [vmem:[#allocation200_spill] sm:$0xff] %v15964_v1  ;;  %19009 = vst [vmem:[#allocation201_spill] sm:$0xff] %v15966_v59  ;;  %v5370_v59 = vrot.slane %v15978_v34, 1  ;;  %v5369_v4 = vsel %vm550_vm0, %v5366_v23, %v5368_v42  ;;  %v19017_v42 = vld [vmem:[#allocation139_spill] sm:$0xff] }
 0x95d   : > { %6078 = vrot.lane.b32.xlu1 %v5359_v54, %s11163_s14  ;;  %6084 = vrot.lane.b32.xlu0 %v5367_v47, %s11163_s14  ;;  %v5376_v54 = vrot.slane %v11126_v36, 1  ;;  %v15990_v47 = vld [vmem:[#allocation3 + $0x148] sm:$0xff] }
 0x95e   : > { %v5372_v44 = vsel %vm550_vm0, %v5370_v59, %v5371_v26  ;;  %v5375_v28 = vrot.slane %v15990_v47, 1  ;;  %v5373_v59 = vrot.slane %v15436_v7, 1 }
 0x95f   : > { %v15981_v1 = vpop.permute.xlu1 %5698  ;;  %v15983_v35 = vpop.permute.xlu0 %5704 }
 0x960   : > { %19011 = vst [vmem:[#allocation203_spill] sm:$0xff] %v15981_v1  ;;  %19012 = vst [vmem:[#allocation204_spill] sm:$0xff] %v15983_v35  ;;  %v5377_v6 = vsel %vm550_vm0, %v5375_v28, %v5376_v54  ;;  %v5378_v35 = vrot.slane %v15446_v46, 1 }
 0x961   : > { %6082 = vrot.lane.b32.xlu1 %v5364_v37, %s11163_s14  ;;  %6088 = vrot.lane.b32.xlu0 %v5372_v44, %s11163_s14  ;;  %v5374_v44 = vsel %vm550_vm0, %v5371_v26, %v5373_v59  ;;  %v19023_v59 = vrot.slane %v15125_v25, 1  ;;  %v19028_v25 = vld [vmem:[#allocation154_spill] sm:$0xff] }
 0x962   : > { %v5379_v23 = vsel %vm550_vm0, %v5376_v54, %v5378_v35  ;;  %v19024_v35 = vld [vmem:[#allocation150_spill] sm:$0xff] }
 0x963   : > { %v15993_v15 = vpop.permute.xlu1 %5702  ;;  %v15995_v1 = vpop.permute.xlu0 %5708 }
 0x964   : > { %19013 = vst [vmem:[#allocation205_spill] sm:$0xff] %v15993_v15  ;;  %19014 = vst [vmem:[#allocation206_spill] sm:$0xff] %v15995_v1  ;;  %v5461_v1 = vrot.slane %v15902_v31, 2 }
 0x965   : > { %6086 = vrot.lane.b32.xlu1 %v5369_v4, %s11163_s14  ;;  %6092 = vrot.lane.b32.xlu0 %v5377_v6, %s11163_s14  ;;  %v5383_v4 = vrot.slane %v15448_v39, 1  ;;  %v19020_v6 = vld [vmem:[#allocation145_spill] sm:$0xff] }
 0x967   : > { %v16002_v36 = vpop.permute.xlu1 %5706  ;;  %v16004_v37 = vpop.permute.xlu0 %5712 }
 0x968   : > { %19015 = vst [vmem:[#allocation207_spill] sm:$0xff] %v16002_v36  ;;  %19016 = vst [vmem:[#allocation208_spill] sm:$0xff] %v16004_v37  ;;  %v19044_v36 = vrot.slane %v15365_v11, 1 }
 0x969   : > { %6090 = vrot.lane.b32.xlu1 %v5374_v44, %s11163_s14  ;;  %6096 = vrot.lane.b32.xlu0 %v19017_v42, %s11163_s14  ;;  %v5384_v44 = vsel %vm550_vm0, %v19023_v59, %v5383_v4  ;;  %v5388_v42 = vrot.slane %v15450_v62, 1  ;;  %v19031_v59 = vrot.slane %v15186_v24, 1 }
 0x96b   : > { %v16011_v28 = vpop.permute.xlu1 %5710  ;;  %v16013_v7 = vpop.permute.xlu0 %5716 }
 0x96c   : > { %19018 = vst [vmem:[#allocation139_spill] sm:$0xff] %v16011_v28  ;;  %19019 = vst [vmem:[#allocation209_spill] sm:$0xff] %v16013_v7 }
 0x96d   : > { %6094 = vrot.lane.b32.xlu1 %v5379_v23, %s11163_s14  ;;  %6100 = vrot.lane.b32.xlu0 %v19020_v6, %s11163_s14  ;;  %v19027_v23 = vrot.slane %v15155_v20, 1  ;;  %v19032_v20 = vld [vmem:[#allocation159_spill] sm:$0xff] }
 0x96f   : > { %v16020_v26 = vpop.permute.xlu1 %5714  ;;  %v16022_v46 = vpop.permute.xlu0 %5720  ;;  %v5389_v6 = vsel %vm550_vm0, %v19027_v23, %v5388_v42 }
 0x970   : > { %19021 = vst [vmem:[#allocation145_spill] sm:$0xff] %v16020_v26  ;;  %19022 = vst [vmem:[#allocation210_spill] sm:$0xff] %v16022_v46  ;;  %v5393_v46 = vrot.slane %v15463_v0, 1  ;;  %v16053_v0 = vld [vmem:[#allocation3 + $0x1f8] sm:$0xff]  ;;  %v19041_v26 = vrot.slane %v15332_v58, 1 }
 0x971   : > { %6098 = vrot.lane.b32.xlu1 %v5384_v44, %s11163_s14  ;;  %6104 = vrot.lane.b32.xlu0 %v19024_v35, %s11163_s14  ;;  %v5398_v35 = vrot.slane %v15466_v8, 1  ;;  %v5403_v24 = vrot.slane %v16053_v0, 1  ;;  %v19035_v8 = vld [vmem:[#allocation162_spill] sm:$0xff] }
 0x972   : > { %v5394_v44 = vsel %vm550_vm0, %v19031_v59, %v5393_v46  ;;  %v16066_v46 = vld [vmem:[#allocation3 + $0x218] sm:$0xff] }
 0x973   : > { %v16031_v39 = vpop.permute.xlu1 %5718  ;;  %v16033_v54 = vpop.permute.xlu0 %5724 }
 0x974   : > { %19025 = vst [vmem:[#allocation150_spill] sm:$0xff] %v16031_v39  ;;  %19026 = vst [vmem:[#allocation211_spill] sm:$0xff] %v16033_v54 }
 0x975   : > { %6102 = vrot.lane.b32.xlu1 %v5389_v6, %s11163_s14  ;;  %6108 = vrot.lane.b32.xlu0 %v19028_v25, %s11163_s14  ;;  %v19034_v6 = vrot.slane %v15220_v50, 1  ;;  %v5408_v50 = vrot.slane %v16066_v46, 1 }
 0x977   : > { %v16042_v62 = vpop.permute.xlu1 %5722  ;;  %v16044_v4 = vpop.permute.xlu0 %5728  ;;  %v5399_v25 = vsel %vm550_vm0, %v19034_v6, %v5398_v35  ;;  %v19038_v35 = vld [vmem:[#allocation166_spill] sm:$0xff]  ;;  %v16079_v6 = vld [vmem:[#allocation3 + $0x238] sm:$0xff] }
 0x978   : > { %19029 = vst [vmem:[#allocation154_spill] sm:$0xff] %v16042_v62  ;;  %19030 = vst [vmem:[#allocation212_spill] sm:$0xff] %v16044_v4  ;;  %v5413_v62 = vrot.slane %v16079_v6, 1 }
 0x979   : > { %6106 = vrot.lane.b32.xlu1 %v5394_v44, %s11163_s14  ;;  %6112 = vrot.lane.b32.xlu0 %v19032_v20, %s11163_s14  ;;  %v19037_v20 = vrot.slane %v15253_v40, 1 }
 0x97b   : > { %v16055_v42 = vpop.permute.xlu1 %5726  ;;  %v16057_v23 = vpop.permute.xlu0 %5800  ;;  %v5404_v4 = vsel %vm550_vm0, %v19037_v20, %v5403_v24  ;;  %v5451_v24 = vrot.slane %v15870_v21, 2  ;;  %v16093_v20 = vld [vmem:[#allocation3 + $0x258] sm:$0xff] }
 0x97c   : > { %19033 = vst [vmem:[#allocation159_spill] sm:$0xff] %v16055_v42  ;;  %v5418_v7 = vrot.slane %v16093_v20, 1 }
 0x97d   : > { %6110 = vrot.lane.b32.xlu1 %v5399_v25, %s11163_s14  ;;  %6116 = vrot.lane.b32.xlu0 %v19035_v8, %s11163_s14 }
 0x97f   : > { %v16068_v59 = vpop.permute.xlu1 %5730  ;;  %v16070_v44 = vpop.permute.xlu0 %5804 }
 0x980   : > { %19036 = vst [vmem:[#allocation162_spill] sm:$0xff] %v16068_v59  ;;  %v19039_v59 = vrot.slane %v15294_v9, 1 }
 0x981   : > { %6114 = vrot.lane.b32.xlu1 %v5404_v4, %s11163_s14  ;;  %6120 = vrot.lane.b32.xlu0 %v19038_v35, %s11163_s14  ;;  %v19040_v4 = vld [vmem:[#allocation167_spill] sm:$0xff]  ;;  %v5450_v35 = vrot.slane %v15877_v63, 2 }
 0x982   : > { %v5409_v42 = vsel %vm550_vm0, %v19039_v59, %v5408_v50  ;;  %v5414_v59 = vsel %vm550_vm0, %v19041_v26, %v5413_v62  ;;  %v5419_v26 = vsel %vm550_vm0, %v19044_v36, %v5418_v7  ;;  %v5458_v7 = vrot.slane %v15908_v51, 2 }
 0x983   : > { %v16081_v25 = vpop.permute.xlu1 %5802  ;;  %v16083_v8 = vpop.permute.xlu0 %5808  ;;  %v5452_v50 = vsel %vm641_vm1, %v5450_v35, %v5451_v24  ;;  %v5453_v35 = vrot.slane %v15891_v18, 2  ;;  %vm7334_vm0 = vcmask 113664  }
 0x985   : > { %6118 = vrot.lane.b32.xlu1 %v5409_v42, %s11163_s14  ;;  %6124 = vrot.lane.b32.xlu0 %v19040_v4, %s11163_s14  ;;  %v5456_v42 = vrot.slane %v15885_v53, 2  ;;  %v5455_v4 = vrot.slane %v15893_v13, 2 }
 0x987   : > { %v16096_v54 = vpop.permute.xlu1 %5806  ;;  %v16098_v39 = vpop.permute.xlu0 %5812  ;;  %v5457_v62 = vsel %vm641_vm1, %v5455_v4, %v5456_v42  ;;  %v5466_v4 = vrot.slane %v15920_v49, 2 }
 0x989   : > { %6122 = vrot.lane.b32.xlu1 %v5414_v59, %s11163_s14  ;;  %6196 = vrot.lane.b32.xlu0 %v5452_v50, %s11172_s15  ;;  %v5460_v59 = vrot.slane %v15910_v61, 2 }
 0x98b   : > { %v16109_v37 = vpop.permute.xlu1 %5810  ;;  %v16111_v28 = vpop.permute.xlu0 %5816  ;;  %v5462_v36 = vsel %vm641_vm1, %v5460_v59, %v5461_v1  ;;  %v5471_v59 = vrot.slane %v15937_v22, 2 }
 0x98c   : > { %19042 = vst [vmem:[#allocation166_spill] sm:$0xff] %v16109_v37  ;;  %19043 = vst [vmem:[#allocation167_spill] sm:$0xff] %v16111_v28  ;;  %v5454_v28 = vsel %vm641_vm1, %v5451_v24, %v5453_v35  ;;  %v5463_v35 = vrot.slane %v15925_v27, 2 }
 0x98d   : > { %6126 = vrot.lane.b32.xlu1 %v5419_v26, %s11163_s14  ;;  %6200 = vrot.lane.b32.xlu0 %v5457_v62, %s11172_s15  ;;  %v5465_v26 = vrot.slane %v15927_v56, 2  ;;  %s11179_s14 = smov 42  }
 0x98f   : > { %v16122_v50 = vpop.permute.xlu1 %5814  ;;  %v16124_v15 = vpop.permute.xlu0 %5820  ;;  %v5467_v24 = vsel %vm641_vm1, %v5465_v26, %v5466_v4  ;;  %v5476_v26 = vrot.slane %v15954_v16, 2 }
 0x990   : > { %19045 = vst [vmem:[#allocation213_spill] sm:$0xff] %v16122_v50  ;;  %19046 = vst [vmem:[#allocation214_spill] sm:$0xff] %v16124_v15  ;;  %v5459_v15 = vsel %vm641_vm1, %v5456_v42, %v5458_v7  ;;  %v5468_v7 = vrot.slane %v15942_v55, 2 }
 0x991   : > { %6198 = vrot.lane.b32.xlu1 %v5454_v28, %s11172_s15  ;;  %6204 = vrot.lane.b32.xlu0 %v5462_v36, %s11172_s15  ;;  %v5470_v28 = vrot.slane %v15944_v32, 2 }
 0x993   : > { %v16133_v62 = vpop.permute.xlu1 %5818  ;;  %v16135_v37 = vpop.permute.xlu0 %5824  ;;  %v5472_v42 = vsel %vm641_vm1, %v5470_v28, %v5471_v59 }
 0x994   : > { %19047 = vst [vmem:[#allocation215_spill] sm:$0xff] %v16133_v62  ;;  %19048 = vst [vmem:[#allocation216_spill] sm:$0xff] %v16135_v37  ;;  %v5464_v37 = vsel %vm641_vm1, %v5461_v1, %v5463_v35  ;;  %v5473_v35 = vrot.slane %v15959_v48, 2 }
 0x995   : > { %6202 = vrot.lane.b32.xlu1 %v5459_v15, %s11172_s15  ;;  %6208 = vrot.lane.b32.xlu0 %v5467_v24, %s11172_s15  ;;  %v5475_v15 = vrot.slane %v15961_v29, 2 }
 0x997   : > { %v16144_v36 = vpop.permute.xlu1 %5822  ;;  %v16146_v50 = vpop.permute.xlu0 %5828  ;;  %v5477_v1 = vsel %vm641_vm1, %v5475_v15, %v5476_v26 }
 0x998   : > { %19049 = vst [vmem:[#allocation217_spill] sm:$0xff] %v16144_v36  ;;  %19050 = vst [vmem:[#allocation218_spill] sm:$0xff] %v16146_v50  ;;  %v5469_v50 = vsel %vm641_vm1, %v5466_v4, %v5468_v7  ;;  %v5478_v7 = vrot.slane %v15976_v38, 2  ;;  %v19087_v36 = vrot.slane %v15365_v11, 2 }
 0x999   : > { %6206 = vrot.lane.b32.xlu1 %v5464_v37, %s11172_s15  ;;  %6212 = vrot.lane.b32.xlu0 %v5472_v42, %s11172_s15  ;;  %v5480_v37 = vrot.slane %v15978_v34, 2 }
 0x99b   : > { %v16155_v24 = vpop.permute.xlu1 %5826  ;;  %v16157_v62 = vpop.permute.xlu0 %5832 }
 0x99c   : > { %19051 = vst [vmem:[#allocation219_spill] sm:$0xff] %v16155_v24  ;;  %19052 = vst [vmem:[#allocation220_spill] sm:$0xff] %v16157_v62  ;;  %v5474_v24 = vsel %vm641_vm1, %v5471_v59, %v5473_v35  ;;  %v19055_v62 = vrot.slane %v15081_v14, 2  ;;  %v19058_v59 = vrot.slane %v15102_v19, 2 }
 0x99d   : > { %6210 = vrot.lane.b32.xlu1 %v5469_v50, %s11172_s15  ;;  %6216 = vrot.lane.b32.xlu0 %v5477_v1, %s11172_s15  ;;  %v5485_v50 = vrot.slane %v15990_v47, 2 }
 0x99e   : > { %v5482_v4 = vsel %vm641_vm1, %v5480_v37, %v19055_v62  ;;  %v19061_v37 = vld [vmem:[#allocation168_spill] sm:$0xff] }
 0x99f   : > { %v16165_v28 = vpop.permute.xlu1 %5830  ;;  %v16167_v42 = vpop.permute.xlu0 %5836  ;;  %v5487_v35 = vsel %vm641_vm1, %v5485_v50, %v19058_v59  ;;  %v19067_v50 = vld [vmem:[#allocation170_spill] sm:$0xff] }
 0x9a0   : > { %19053 = vst [vmem:[#allocation221_spill] sm:$0xff] %v16165_v28  ;;  %19054 = vst [vmem:[#allocation222_spill] sm:$0xff] %v16167_v42  ;;  %v5479_v42 = vsel %vm641_vm1, %v5476_v26, %v5478_v7  ;;  %v5567_v28 = vrot.slane %v15885_v53, 3 }
 0x9a1   : > { %6214 = vrot.lane.b32.xlu1 %v5474_v24, %s11172_s15  ;;  %6220 = vrot.lane.b32.xlu0 %v5482_v4, %s11172_s15  ;;  %v19062_v4 = vld [vmem:[#allocation169_spill] sm:$0xff] }
 0x9a3   : > { %v16177_v15 = vpop.permute.xlu1 %5834  ;;  %v16179_v1 = vpop.permute.xlu0 %5840 }
 0x9a4   : > { %19056 = vst [vmem:[#allocation223_spill] sm:$0xff] %v16177_v15  ;;  %19057 = vst [vmem:[#allocation224_spill] sm:$0xff] %v16179_v1 }
 0x9a5   : > { %6218 = vrot.lane.b32.xlu1 %v5479_v42, %s11172_s15  ;;  %6224 = vrot.lane.b32.xlu0 %v5487_v35, %s11172_s15 }
 0x9a7   : > { %v16187_v62 = vpop.permute.xlu1 %5838  ;;  %v16189_v24 = vpop.permute.xlu0 %5844 }
 0x9a8   : > { %19059 = vst [vmem:[#allocation225_spill] sm:$0xff] %v16187_v62  ;;  %19060 = vst [vmem:[#allocation226_spill] sm:$0xff] %v16189_v24  ;;  %v5523_v24 = vrot.slane %v16079_v6, 2  ;;  %v19085_v62 = vrot.slane %v15332_v58, 2 }
 0x9a9   : > { %6222 = vrot.lane.b32.xlu1 %v19061_v37, %s11172_s15  ;;  %6228 = vrot.lane.b32.xlu0 %v19062_v4, %s11172_s15  ;;  %v19070_v37 = vld [vmem:[#allocation171_spill] sm:$0xff] }
 0x9aa   : > { %v5524_v15 = vsel %vm641_vm1, %v19085_v62, %v5523_v24 }
 0x9ab   : > { %v16195_v1 = vpop.permute.xlu1 %5842  ;;  %v16197_v26 = vpop.permute.xlu0 %5848 }
 0x9ac   : > { %19063 = vst [vmem:[#allocation168_spill] sm:$0xff] %v16195_v1  ;;  %19064 = vst [vmem:[#allocation169_spill] sm:$0xff] %v16197_v26  ;;  %v5562_v1 = vrot.slane %v15870_v21, 3 }
 0x9ad   : > { %6226 = vrot.lane.b32.xlu1 %v15508_v57, %s11172_s15  ;;  %6232 = vrot.lane.b32.xlu0 %v15516_v2, %s11172_s15  ;;  %v19071_v57 = vld [vmem:[#allocation173_spill] sm:$0xff] }
 0x9af   : > { %v16203_v42 = vpop.permute.xlu1 %5846  ;;  %v16205_v7 = vpop.permute.xlu0 %5852 }
 0x9b0   : > { %19065 = vst [vmem:[#allocation227_spill] sm:$0xff] %v16203_v42  ;;  %19066 = vst [vmem:[#allocation228_spill] sm:$0xff] %v16205_v7  ;;  %v19074_v7 = vld [vmem:[#allocation172_spill] sm:$0xff]  ;;  %v19081_v42 = vld [vmem:[#allocation177_spill] sm:$0xff] }
 0x9b1   : > { %6230 = vrot.lane.b32.xlu1 %v15511_v10, %s11172_s15  ;;  %6236 = vrot.lane.b32.xlu0 %v19067_v50, %s11172_s15  ;;  %v19075_v10 = vld [vmem:[#allocation174_spill] sm:$0xff] }
 0x9b3   : > { %v16211_v59 = vpop.permute.xlu1 %5850  ;;  %v16213_v35 = vpop.permute.xlu0 %5856 }
 0x9b4   : > { %19068 = vst [vmem:[#allocation170_spill] sm:$0xff] %v16211_v59  ;;  %19069 = vst [vmem:[#allocation229_spill] sm:$0xff] %v16213_v35  ;;  %v5513_v35 = vrot.slane %v16053_v0, 2 }
 0x9b5   : > { %6234 = vrot.lane.b32.xlu1 %v19070_v37, %s11172_s15  ;;  %6240 = vrot.lane.b32.xlu0 %v19071_v57, %s11172_s15  ;;  %v19077_v37 = vld [vmem:[#allocation175_spill] sm:$0xff]  ;;  %v19078_v57 = vld [vmem:[#allocation176_spill] sm:$0xff] }
 0x9b7   : > { %v16219_v2 = vpop.permute.xlu1 %5854  ;;  %v16221_v4 = vpop.permute.xlu0 %5860 }
 0x9b8   : > { %19072 = vst [vmem:[#allocation171_spill] sm:$0xff] %v16219_v2  ;;  %19073 = vst [vmem:[#allocation173_spill] sm:$0xff] %v16221_v4 }
 0x9b9   : > { %6238 = vrot.lane.b32.xlu1 %v19074_v7, %s11172_s15  ;;  %6244 = vrot.lane.b32.xlu0 %v19075_v10, %s11172_s15  ;;  %v19080_v7 = vrot.slane %v15253_v40, 2 }
 0x9bb   : > { %v16227_v50 = vpop.permute.xlu1 %5858  ;;  %v16229_v59 = vpop.permute.xlu0 %6064  ;;  %v5514_v10 = vsel %vm641_vm1, %v19080_v7, %v5513_v35  ;;  %v19083_v35 = vld [vmem:[#allocation178_spill] sm:$0xff]  ;;  %v5561_v7 = vrot.slane %v15877_v63, 3  ;;  %v5566_v63 = vrot.slane %v15893_v13, 3  ;;  %v5571_v13 = vrot.slane %v15910_v61, 3 }
 0x9bc   : > { %19076 = vst [vmem:[#allocation172_spill] sm:$0xff] %v16227_v50  ;;  %v5518_v50 = vrot.slane %v16066_v46, 2 }
 0x9bd   : > { %6242 = vrot.lane.b32.xlu1 %v19077_v37, %s11172_s15  ;;  %6248 = vrot.lane.b32.xlu0 %v19078_v57, %s11172_s15  ;;  %v19082_v57 = vrot.slane %v15294_v9, 2  ;;  %v5568_v24 = vsel %vm5545_vm14, %v5566_v63, %v5567_v28  ;;  %v5576_v63 = vrot.slane %v15927_v56, 3 }
 0x9bf   : > { %v16236_v2 = vpop.permute.xlu1 %5862  ;;  %v16238_v4 = vpop.permute.xlu0 %6068 }
 0x9c0   : > { %19079 = vst [vmem:[#allocation174_spill] sm:$0xff] %v16236_v2  ;;  %v5519_v2 = vsel %vm641_vm1, %v19082_v57, %v5518_v50  ;;  %v5563_v50 = vsel %vm5545_vm14, %v5561_v7, %v5562_v1  ;;  %v5528_v57 = vrot.slane %v16093_v20, 2  ;;  %v5564_v7 = vrot.slane %v15891_v18, 3 }
 0x9c1   : > { %6246 = vrot.lane.b32.xlu1 %v5514_v10, %s11172_s15  ;;  %6252 = vrot.lane.b32.xlu0 %v19081_v42, %s11172_s15  ;;  %v5577_v18 = vrot.slane %v15920_v49, 3 }
 0x9c2   : > { %v5529_v62 = vsel %vm641_vm1, %v19087_v36, %v5528_v57  ;;  %v5569_v57 = vrot.slane %v15908_v51, 3  ;;  %v5582_v51 = vrot.slane %v15937_v22, 3  ;;  %vm7367_vm1 = vcmask 228352  }
 0x9c3   : > { %v16247_v26 = vpop.permute.xlu1 %6066  ;;  %v16249_v37 = vpop.permute.xlu0 %6072 }
 0x9c5   : > { %6250 = vrot.lane.b32.xlu1 %v5519_v2, %s11172_s15  ;;  %6256 = vrot.lane.b32.xlu0 %v19083_v35, %s11172_s15 }
 0x9c7   : > { %v16260_v42 = vpop.permute.xlu1 %6070  ;;  %v16262_v10 = vpop.permute.xlu0 %6076 }
 0x9c8   : > { %19084 = vst [vmem:[#allocation175_spill] sm:$0xff] %v16262_v10  ;;  %v5572_v10 = vrot.slane %v15902_v31, 3 }
 0x9c9   : > { %6254 = vrot.lane.b32.xlu1 %v5524_v15, %s11172_s15  ;;  %6328 = vrot.lane.b32.xlu0 %v5563_v50, %s11173_s18 }
 0x9ca   : > { %v5573_v36 = vsel %vm5545_vm14, %v5571_v13, %v5572_v10 }
 0x9cb   : > { %v16273_v2 = vpop.permute.xlu1 %6074  ;;  %v16275_v35 = vpop.permute.xlu0 %6080 }
 0x9cc   : > { %19086 = vst [vmem:[#allocation176_spill] sm:$0xff] %v16275_v35  ;;  %v5565_v35 = vsel %vm5545_vm14, %v5562_v1, %v5564_v7  ;;  %v5578_v1 = vsel %vm5545_vm14, %v5576_v63, %v5577_v18  ;;  %v5574_v7 = vrot.slane %v15925_v27, 3  ;;  %v5587_v27 = vrot.slane %v15954_v16, 3 }
 0x9cd   : > { %6258 = vrot.lane.b32.xlu1 %v5529_v62, %s11172_s15  ;;  %6332 = vrot.lane.b32.xlu0 %v5568_v24, %s11173_s18 }
 0x9cf   : > { %v16286_v15 = vpop.permute.xlu1 %6078  ;;  %v16288_v50 = vpop.permute.xlu0 %6084 }
 0x9d0   : > { %19088 = vst [vmem:[#allocation177_spill] sm:$0xff] %v16288_v50  ;;  %v5570_v50 = vsel %vm5545_vm14, %v5567_v28, %v5569_v57  ;;  %v5579_v57 = vrot.slane %v15942_v55, 3  ;;  %v5591_v55 = vrot.slane %v15978_v34, 3 }
 0x9d1   : > { %6330 = vrot.lane.b32.xlu1 %v5565_v35, %s11173_s18  ;;  %6336 = vrot.lane.b32.xlu0 %v5573_v36, %s11173_s18  ;;  %v5581_v35 = vrot.slane %v15944_v32, 3 }
 0x9d3   : > { %v16297_v62 = vpop.permute.xlu1 %6082  ;;  %v16299_v24 = vpop.permute.xlu0 %6088  ;;  %v5583_v28 = vsel %vm5545_vm14, %v5581_v35, %v5582_v51 }
 0x9d4   : > { %19089 = vst [vmem:[#allocation178_spill] sm:$0xff] %v16299_v24  ;;  %v5575_v24 = vsel %vm5545_vm14, %v5572_v10, %v5574_v7  ;;  %v5584_v7 = vrot.slane %v15959_v48, 3  ;;  %v5596_v48 = vrot.slane %v15990_v47, 3 }
 0x9d5   : > { %6334 = vrot.lane.b32.xlu1 %v5570_v50, %s11173_s18  ;;  %6340 = vrot.lane.b32.xlu0 %v5578_v1, %s11173_s18  ;;  %v5586_v50 = vrot.slane %v15961_v29, 3 }
 0x9d7   : > { %v16308_v13 = vpop.permute.xlu1 %6086  ;;  %v16310_v36 = vpop.permute.xlu0 %6092  ;;  %v5588_v10 = vsel %vm5545_vm14, %v5586_v50, %v5587_v27 }
 0x9d8   : > { %19090 = vst [vmem:[#allocation230_spill] sm:$0xff] %v16310_v36  ;;  %v5580_v36 = vsel %vm5545_vm14, %v5577_v18, %v5579_v57  ;;  %v5589_v57 = vrot.slane %v15976_v38, 3 }
 0x9d9   : > { %6338 = vrot.lane.b32.xlu1 %v5575_v24, %s11173_s18  ;;  %6344 = vrot.lane.b32.xlu0 %v5583_v28, %s11173_s18  ;;  %v5585_v28 = vsel %vm5545_vm14, %v5582_v51, %v5584_v7  ;;  %v19093_v51 = vrot.slane %v15102_v19, 3 }
 0x9db   : > { %v16319_v63 = vpop.permute.xlu1 %6090  ;;  %v16321_v1 = vpop.permute.xlu0 %6096 }
 0x9dc   : > { %19091 = vst [vmem:[#allocation231_spill] sm:$0xff] %v16321_v1  ;;  %v19092_v1 = vrot.slane %v15081_v14, 3  ;;  %v5598_v14 = vsel %vm5545_vm14, %v5596_v48, %v19093_v51  ;;  %v19108_v48 = vrot.slane %v15294_v9, 3  ;;  %v5634_v51 = vrot.slane %v16079_v6, 3 }
 0x9dd   : > { %6342 = vrot.lane.b32.xlu1 %v5580_v36, %s11173_s18  ;;  %6348 = vrot.lane.b32.xlu0 %v5588_v10, %s11173_s18  ;;  %v5590_v10 = vsel %vm5545_vm14, %v5587_v27, %v5589_v57 }
 0x9de   : > { %v5593_v18 = vsel %vm5545_vm14, %v5591_v55, %v19092_v1  ;;  %v5624_v55 = vrot.slane %v16053_v0, 3  ;;  %v19107_v0 = vld [vmem:[#allocation180_spill] sm:$0xff] }
 0x9df   : > { %v16329_v24 = vpop.permute.xlu1 %6094  ;;  %v16331_v35 = vpop.permute.xlu0 %6100 }
 0x9e1   : > { %6346 = vrot.lane.b32.xlu1 %v5585_v28, %s11173_s18  ;;  %6352 = vrot.lane.b32.xlu0 %v5593_v18, %s11173_s18 }
 0x9e3   : > { %v16341_v36 = vpop.permute.xlu1 %6098  ;;  %v16343_v50 = vpop.permute.xlu0 %6104 }
 0x9e5   : > { %6350 = vrot.lane.b32.xlu1 %v5590_v10, %s11173_s18  ;;  %6356 = vrot.lane.b32.xlu0 %v5598_v14, %s11173_s18 }
 0x9e7   : > { %v16351_v38 = vpop.permute.xlu1 %6102  ;;  %v16353_v1 = vpop.permute.xlu0 %6108 }
 0x9e8   : > { %19094 = vst [vmem:[#allocation232_spill] sm:$0xff] %v16353_v1 }
 0x9e9   : > { %6354 = vrot.lane.b32.xlu1 %v15605_v52, %s11173_s18  ;;  %6360 = vrot.lane.b32.xlu0 %v15618_v17, %s11173_s18 }
 0x9eb   : > { %v16359_v47 = vpop.permute.xlu1 %6106  ;;  %v16361_v27 = vpop.permute.xlu0 %6112 }
 0x9ec   : > { %19095 = vst [vmem:[#allocation233_spill] sm:$0xff] %v16359_v47  ;;  %19096 = vst [vmem:[#allocation234_spill] sm:$0xff] %v16361_v27  ;;  %v19122_v27 = vld [vmem:[#allocation113_spill] sm:$0xff] }
 0x9ed   : > { %6358 = vrot.lane.b32.xlu1 %v15613_v30, %s11173_s18  ;;  %6364 = vrot.lane.b32.xlu0 %v15628_v5, %s11173_s18 }
 0x9ef   : > { %v16367_v19 = vpop.permute.xlu1 %6110  ;;  %v16369_v7 = vpop.permute.xlu0 %6116 }
 0x9f0   : > { %19097 = vst [vmem:[#allocation235_spill] sm:$0xff] %v16367_v19  ;;  %19098 = vst [vmem:[#allocation236_spill] sm:$0xff] %v16369_v7  ;;  %v19121_v19 = vld [vmem:[#allocation134_spill] sm:$0xff] }
 0x9f1   : > { %6362 = vrot.lane.b32.xlu1 %v15621_v41, %s11173_s18  ;;  %6368 = vrot.lane.b32.xlu0 %v15636_v33, %s11173_s18  ;;  %v6454_v1 = vsel %vm4233_vm10, %v19122_v27, %v19121_v19  ;;  %v19126_v19 = vld [vmem:[#allocation112_spill] sm:$0xff] }
 0x9f2   : > { %v6499_v47 = vsel %vm6492_vm3, %v6454_v1, %v16057_v23 }
 0x9f3   : > { %v16375_v52 = vpop.permute.xlu1 %6114  ;;  %v16377_v17 = vpop.permute.xlu0 %6120 }
 0x9f4   : > { %19099 = vst [vmem:[#allocation237_spill] sm:$0xff] %v16375_v52  ;;  %19100 = vst [vmem:[#allocation238_spill] sm:$0xff] %v16377_v17 }
 0x9f5   : > { %6366 = vrot.lane.b32.xlu1 %v15631_v60, %s11173_s18  ;;  %6372 = vrot.lane.b32.xlu0 %v15644_v3, %s11173_s18  ;;  %v19104_v60 = vld [vmem:[#allocation179_spill] sm:$0xff] }
 0x9f7   : > { %v16383_v30 = vpop.permute.xlu1 %6118  ;;  %v16385_v5 = vpop.permute.xlu0 %6124 }
 0x9f8   : > { %19101 = vst [vmem:[#allocation239_spill] sm:$0xff] %v16383_v30  ;;  %19102 = vst [vmem:[#allocation240_spill] sm:$0xff] %v16385_v5 }
 0x9f9   : > { %6370 = vrot.lane.b32.xlu1 %v15639_v12, %s11173_s18  ;;  %6376 = vrot.lane.b32.xlu0 %v15655_v45, %s11173_s18  ;;  %v19106_v12 = vrot.slane %v15253_v40, 3  ;;  %v5629_v45 = vrot.slane %v16066_v46, 3  ;;  %v19109_v40 = vld [vmem:[#allocation181_spill] sm:$0xff] }
 0x9fb   : > { %v16391_v41 = vpop.permute.xlu1 %6122  ;;  %v6197_v33 = vpop.permute.xlu0 %6196  ;;  %v5625_v18 = vsel %vm5545_vm14, %v19106_v12, %v5624_v55  ;;  %v5630_v10 = vsel %vm5545_vm14, %v19108_v48, %v5629_v45  ;;  %v19110_v55 = vrot.slane %v15332_v58, 3  ;;  %v5639_v12 = vrot.slane %v16093_v20, 3 }
 0x9fc   : > { %19103 = vst [vmem:[#allocation241_spill] sm:$0xff] %v16391_v41 }
 0x9fd   : > { %6374 = vrot.lane.b32.xlu1 %v15647_v43, %s11173_s18  ;;  %6380 = vrot.lane.b32.xlu0 %v19104_v60, %s11173_s18  ;;  %v5635_v60 = vsel %vm5545_vm14, %v19110_v55, %v5634_v51 }
 0x9ff   : > { %v16398_v3 = vpop.permute.xlu1 %6126  ;;  %v16400_v28 = vpop.permute.xlu0 %6200 }
 0xa00   : > { %19105 = vst [vmem:[#allocation179_spill] sm:$0xff] %v16398_v3 }
 0xa01   : > { %6378 = vrot.lane.b32.xlu1 %v5625_v18, %s11173_s18  ;;  %6384 = vrot.lane.b32.xlu0 %v19107_v0, %s11173_s18  ;;  %v19111_v18 = vrot.slane %v15365_v11, 3 }
 0xa03   : > { %v16409_v57 = vpop.permute.xlu1 %6198  ;;  %v16411_v43 = vpop.permute.xlu0 %6204  ;;  %v5640_v45 = vsel %vm5545_vm14, %v19111_v18, %v5639_v12  ;;  %vm7499_vm14 = vcmask 687104  }
 0xa05   : > { %6382 = vrot.lane.b32.xlu1 %v5630_v10, %s11173_s18  ;;  %6388 = vrot.lane.b32.xlu0 %v19109_v40, %s11173_s18 }
 0xa07   : > { %v16420_v46 = vpop.permute.xlu1 %6202  ;;  %v16422_v14 = vpop.permute.xlu0 %6208 }
 0xa09   : > { %6386 = vrot.lane.b32.xlu1 %v5635_v60, %s11173_s18 }
 0xa0b   : > { %v16429_v9 = vpop.permute.xlu1 %6206  ;;  %v16431_v6 = vpop.permute.xlu0 %6212 }
 0xa0d   : > { %6390 = vrot.lane.b32.xlu1 %v5640_v45, %s11173_s18 }
 0xa0f   : > { %v16437_v0 = vpop.permute.xlu1 %6210  ;;  %v16439_v48 = vpop.permute.xlu0 %6216 }
 0xa13   : > { %v16441_v58 = vpop.permute.xlu1 %6214  ;;  %v16443_v10 = vpop.permute.xlu0 %6220 }
 0xa17   : > { %v16445_v20 = vpop.permute.xlu1 %6218  ;;  %v16447_v51 = vpop.permute.xlu0 %6224 }
 0xa1b   : > { %v16449_v40 = vpop.permute.xlu1 %6222  ;;  %v16451_v55 = vpop.permute.xlu0 %6228 }
 0xa1f   : > { %v16453_v11 = vpop.permute.xlu1 %6226  ;;  %v16455_v60 = vpop.permute.xlu0 %6232 }
 0xa23   : > { %v16457_v12 = vpop.permute.xlu1 %6230  ;;  %v16459_v18 = vpop.permute.xlu0 %6236 }
 0xa24   : > { %19112 = vst [vmem:[#allocation180_spill] sm:$0xff] %v16459_v18  ;;  %v19127_v18 = vrot.slane %v19126_v19, 5  ;;  %v19133_v19 = vld [vmem:[#allocation184_spill] sm:$0xff] }
 0xa27   : > { %v16461_v45 = vpop.permute.xlu1 %6234  ;;  %v16463_v3 = vpop.permute.xlu0 %6240 }
 0xa28   : > { %19113 = vst [vmem:[#allocation181_spill] sm:$0xff] %v16461_v45  ;;  %19114 = vst [vmem:[#allocation242_spill] sm:$0xff] %v16463_v3 }
 0xa2b   : > { %v16465_v5 = vpop.permute.xlu1 %6238  ;;  %v16467_v41 = vpop.permute.xlu0 %6244 }
 0xa2c   : > { %19115 = vst [vmem:[#allocation243_spill] sm:$0xff] %v16465_v5  ;;  %19116 = vst [vmem:[#allocation244_spill] sm:$0xff] %v16467_v41  ;;  %v4946_v41 = vrot.slane %v15870_v21, 5  ;;  %v19129_v21 = vld [vmem:[#allocation116_spill] sm:$0xff] }
 0xa2e   : > { %v4947_v23 = vsel %vm4927_vm15, %v19127_v18, %v4946_v41  ;;  %v19132_v18 = vld [vmem:[#allocation183_spill] sm:$0xff] }
 0xa2f   : > { %v16469_v30 = vpop.permute.xlu1 %6242  ;;  %v16471_v17 = vpop.permute.xlu0 %6248 }
 0xa30   : > { %19117 = vst [vmem:[#allocation245_spill] sm:$0xff] %v16469_v30  ;;  %19118 = vst [vmem:[#allocation246_spill] sm:$0xff] %v16471_v17  ;;  %v19125_v30 = vld [vmem:[#allocation182_spill] sm:$0xff] }
 0xa31   : > { %v6544_v17 = vsel %vm6537_vm5, %v6499_v47, %v19125_v30  ;;  %v19130_v47 = vld [vmem:[#allocation141_spill] sm:$0xff] }
 0xa32   : > { %v6455_v30 = vsel %vm4233_vm10, %v4947_v23, %v19130_v47 }
 0xa33   : > { %v16473_v7 = vpop.permute.xlu1 %6246  ;;  %v16475_v52 = vpop.permute.xlu0 %6252 }
 0xa34   : > { %19119 = vst [vmem:[#allocation247_spill] sm:$0xff] %v16473_v7  ;;  %19120 = vst [vmem:[#allocation248_spill] sm:$0xff] %v16475_v52  ;;  %v6588_v7 = vsel %vm948_vm2, %v6544_v17, %v16229_v59 }
 0xa35   : > { %v6633_v52 = vsel %vm6626_vm6, %v6588_v7, %v6197_v33  ;;  %v6500_v7 = vsel %vm6492_vm3, %v6455_v30, %v16081_v25  ;;  %v4954_v33 = vrot.slane %v15910_v61, 5  ;;  %v19134_v30 = vld [vmem:[#allocation114_spill] sm:$0xff] }
 0xa36   : > { %v6545_v23 = vsel %vm6537_vm5, %v6500_v7, %v19133_v19 }
 0xa37   : > { %v16482_v3 = vpop.permute.xlu1 %6250  ;;  %v16484_v5 = vpop.permute.xlu0 %6256  ;;  %v6589_v25 = vsel %vm948_vm2, %v6545_v23, %v16247_v26  ;;  %v7532_v26 = vld [vmem:[%s18441_s12] sm:$0xff] }
 0xa38   : > { %19123 = vst [vmem:[#allocation134_spill] sm:$0xff] %v16482_v3  ;;  %19124 = vst [vmem:[#allocation113_spill] sm:$0xff] %v16484_v5  ;;  %v19128_v5 = vld [vmem:[#allocation137_spill] sm:$0xff] }
 0xa39   : > { %v6456_v3 = vsel %vm4233_vm10, %v19129_v21, %v19128_v5  ;;  %v4951_v5 = vrot.slane %v15885_v53, 5  ;;  %v6634_v53 = vsel %vm6626_vm6, %v6589_v25, %v16409_v57  ;;  %v19136_v57 = vld [vmem:[#allocation142_spill] sm:$0xff]  ;;  %v4959_v25 = vrot.slane %v15927_v56, 5 }
 0xa3a   : > { %v6501_v59 = vsel %vm6492_vm3, %v6456_v3, %v16070_v44 }
 0xa3b   : > { %v16492_v45 = vpop.permute.xlu1 %6254  ;;  %v6329_v27 = vpop.permute.xlu0 %6328 }
 0xa3c   : > { %v16498_v1 = vsel %vm6671_vm7, %v6633_v52, %v6329_v27  ;;  %v11128_v52 = vld [vmem:[#allocation3 + $0xa0] sm:$0xff]  ;;  %v6546_v27 = vsel %vm6537_vm5, %v6501_v59, %v19132_v18  ;;  %v19135_v59 = vrot.slane %v19134_v30, 5  ;;  %v19137_v18 = vld [vmem:[#allocation147_spill] sm:$0xff] }
 0xa3d   : > { %6850 = vrot.lane.b32.xlu0 %v16498_v1, %s11175_s22  ;;  %v4953_v41 = vrot.slane %v11128_v52, 5  ;;  %v6590_v44 = vsel %vm948_vm2, %v6546_v27, %v16238_v4 }
 0xa3e   : > { %v6635_v61 = vsel %vm6626_vm6, %v6590_v44, %v16400_v28  ;;  %v4952_v7 = vsel %vm4927_vm15, %v19135_v59, %v4951_v5  ;;  %v7533_v28 = vld [vmem:[%s18441_s12 + $0x8] sm:$0xff] }
 0xa3f   : > { %v16511_v17 = vpop.permute.xlu1 %6258  ;;  %v6333_v21 = vpop.permute.xlu0 %6332  ;;  %v4955_v47 = vsel %vm4927_vm15, %v4953_v41, %v4954_v33  ;;  %v6457_v5 = vsel %vm4233_vm10, %v4952_v7, %v19137_v18  ;;  %v16553_v27 = vpack.c.bf16 %v7533_v28, %v7532_v26 }
 0xa40   : > { %19131 = vst [vmem:[#allocation182_spill] sm:$0xff] %v16511_v17  ;;  %v16534_v52 = vsel %vm6671_vm7, %v6635_v61, %v6333_v21  ;;  %v6458_v41 = vsel %vm4233_vm10, %v4955_v47, %v19136_v57  ;;  %v6502_v23 = vsel %vm6492_vm3, %v6457_v5, %v16096_v54  ;;  %v11129_v21 = vld [vmem:[#allocation3 + $0xc0] sm:$0xff]  ;;  %v4956_v61 = vrot.slane %v15902_v31, 5  ;;  %v19139_v47 = vld [vmem:[#allocation186_spill] sm:$0xff] }
 0xa41   : > { %6944 = vrot.lane.b32.xlu0 %v16498_v1, %s11179_s14  ;;  %v6503_v19 = vsel %vm6492_vm3, %v6458_v41, %v16083_v8  ;;  %10420 = vmatprep.subr.bf16.mxu1 %v16553_v27  ;;  %v4958_v44 = vrot.slane %v11129_v21, 5  ;;  %v7535_v8 = vld [vmem:[%s18441_s12 + $0x18] sm:$0xff]  ;;  %v6547_v30 = vsel %vm6537_vm5, %v6502_v23, %v19139_v47  ;;  %v4961_v47 = vrot.slane %v15920_v49, 5  ;;  %v19215_v17 = vld [vmem:[#allocation80_spill] sm:$0xff] }
 0xa42   : > { %10421 = vmatpush3.bf16.msra.mxu1 %v16553_v27  ;;  %v6591_v26 = vsel %vm948_vm2, %v6547_v30, %v16260_v42  ;;  %v4957_v18 = vsel %vm4927_vm15, %v4954_v33, %v4956_v61  ;;  %v7536_v42 = vld [vmem:[%s18441_s12 + $0x20] sm:$0xff]  ;;  %v19143_v61 = vld [vmem:[#allocation166_spill] sm:$0xff] }
 0xa43   : > { %v6331_v3 = vpop.permute.xlu1 %6330  ;;  %v6337_v59 = vpop.permute.xlu0 %6336  ;;  %v6636_v57 = vsel %vm6626_vm6, %v6591_v26, %v16420_v46  ;;  %v4960_v41 = vsel %vm4927_vm15, %v4958_v44, %v4959_v25  ;;  %v19140_v46 = vld [vmem:[#allocation148_spill] sm:$0xff]  ;;  %v7538_v30 = vld [vmem:[%s18441_s12 + $0x30] sm:$0xff] }
 0xa44   : > { %v16537_v4 = vsel %vm6671_vm7, %v6634_v53, %v6331_v3  ;;  %v7534_v53 = vld [vmem:[%s18441_s12 + $0x10] sm:$0xff]  ;;  %v19138_v3 = vld [vmem:[#allocation185_spill] sm:$0xff]  ;;  %v19141_v33 = vld [vmem:[#allocation152_spill] sm:$0xff] }
 0xa45   : > { %6852 = vrot.lane.b32.xlu1 %v16537_v4, %s11175_s22  ;;  %6948 = vrot.lane.b32.xlu0 %v16534_v52, %s11179_s14  ;;  %v6548_v54 = vsel %vm6537_vm5, %v6503_v19, %v19138_v3  ;;  %v16577_v31 = vpack.c.bf16 %v7535_v8, %v7534_v53  ;;  %v6460_v19 = vsel %vm4233_vm10, %v4960_v41, %v19140_v46  ;;  %v11130_v8 = vld [vmem:[#allocation3 + $0xe0] sm:$0xff] }
 0xa46   : > { %v6592_v7 = vsel %vm948_vm2, %v6548_v54, %v16249_v37  ;;  %v6459_v23 = vsel %vm4233_vm10, %v4957_v18, %v19141_v33  ;;  %v6505_v44 = vsel %vm6492_vm3, %v6460_v19, %v16098_v39  ;;  %v4963_v3 = vrot.slane %v11130_v8, 5  ;;  %v7539_v39 = vld [vmem:[%s18441_s12 + $0x38] sm:$0xff] }
 0xa47   : > { %v6335_v56 = vpop.permute.xlu1 %6334  ;;  %v6637_v28 = vsel %vm6626_vm6, %v6592_v7, %v16411_v43  ;;  %10422 = vmatprep.subr.bf16.mxu1 %v16577_v31  ;;  %v7537_v43 = vld [vmem:[%s18441_s12 + $0x28] sm:$0xff]  ;;  %v6504_v53 = vsel %vm6492_vm3, %v6459_v23, %v19143_v61  ;;  %v4964_v54 = vrot.slane %v15944_v32, 5  ;;  %v19145_v7 = vld [vmem:[#allocation188_spill] sm:$0xff]  ;;  %v16635_v49 = vpack.c.bf16 %v7539_v39, %v7538_v30  ;;  %v19153_v39 = vld [vmem:[#allocation115_spill] sm:$0xff] }
 0xa48   : > { %v16591_v5 = vsel %vm6671_vm7, %v6637_v28, %v6337_v59  ;;  %v16594_v37 = vsel %vm6671_vm7, %v6636_v57, %v6335_v56  ;;  %10423 = vmatpush3.bf16.msra.mxu1 %v16577_v31  ;;  %v16611_v21 = vpack.c.bf16 %v7537_v43, %v7536_v42  ;;  %v19144_v59 = vld [vmem:[#allocation187_spill] sm:$0xff]  ;;  %v6549_v26 = vsel %vm6537_vm5, %v6504_v53, %v19145_v7  ;;  %v6341_v28 = vpop.permute.xlu0 %6340  ;;  %v19151_v53 = vld [vmem:[#allocation213_spill] sm:$0xff] }
 0xa49   : > { %6946 = vrot.lane.b32.xlu1 %v16537_v4, %s11179_s14  ;;  %7042 = vrot.lane.b32.xlu0 %v16534_v52, %s11177_s29  ;;  %v6550_v56 = vsel %vm6537_vm5, %v6505_v44, %v19144_v59  ;;  %19146 = vst [vmem:[#allocation137_spill] sm:$0xff] %v16635_v49  ;;  %v19147_v57 = vld [vmem:[#allocation175_spill] sm:$0xff]  ;;  %v6593_v18 = vsel %vm948_vm2, %v6549_v26, %v16273_v2  ;;  %v19148_v2 = vld [vmem:[#allocation194_spill] sm:$0xff]  ;;  %v19154_v26 = vld [vmem:[#allocation176_spill] sm:$0xff] }
 0xa4a   : > { %19142 = vst [vmem:[#allocation112_spill] sm:$0xff] %v16611_v21  ;;  %10424 = vmatprep.subr.bf16.mxu1 %v16611_v21  ;;  %v6594_v41 = vsel %vm948_vm2, %v6550_v56, %v19147_v57  ;;  %v6638_v43 = vsel %vm6626_vm6, %v6593_v18, %v16429_v9  ;;  %v4965_v46 = vsel %vm4927_vm15, %v4963_v3, %v4964_v54  ;;  %v19149_v44 = vld [vmem:[#allocation158_spill] sm:$0xff]  ;;  %v4966_v3 = vrot.slane %v15937_v22, 5  ;;  %v7541_v18 = vld [vmem:[%s18441_s12 + $0x48] sm:$0xff] }
 0xa4b   : > { %v6339_v32 = vpop.permute.xlu1 %6338  ;;  %v6639_v42 = vsel %vm6626_vm6, %v6594_v41, %v16422_v14  ;;  %v4962_v19 = vsel %vm4927_vm15, %v4959_v25, %v4961_v47  ;;  %v6462_v14 = vsel %vm4233_vm10, %v4965_v46, %v19148_v2  ;;  %v19150_v25 = vld [vmem:[#allocation167_spill] sm:$0xff]  ;;  %v19152_v47 = vld [vmem:[#allocation189_spill] sm:$0xff]  ;;  %v7540_v41 = vld [vmem:[%s18441_s12 + $0x40] sm:$0xff] }
 0xa4c   : > { %10425 = vmatpush3.bf16.msra.mxu1 %v16611_v21  ;;  %v16649_v33 = vsel %vm6671_vm7, %v6639_v42, %v6341_v28  ;;  %v16652_v23 = vsel %vm6671_vm7, %v6638_v43, %v6339_v32  ;;  %v6461_v9 = vsel %vm4233_vm10, %v4962_v19, %v19149_v44  ;;  %v6507_v61 = vsel %vm6492_vm3, %v6462_v14, %v19150_v25  ;;  %v6345_v56 = vpop.permute.xlu0 %6344  ;;  %v19156_v46 = vld [vmem:[#allocation196_spill] sm:$0xff]  ;;  %v19157_v19 = vld [vmem:[#allocation215_spill] sm:$0xff]  ;;  %v7542_v2 = vld [vmem:[%s18441_s12 + $0x50] sm:$0xff] }
 0xa4d   : > { %6950 = vrot.lane.b32.xlu1 %v16594_v37, %s11179_s14  ;;  %7046 = vrot.lane.b32.xlu0 %v16591_v5, %s11177_s29  ;;  %v6506_v8 = vsel %vm6492_vm3, %v6461_v9, %v19151_v53  ;;  %v6552_v30 = vsel %vm6537_vm5, %v6507_v61, %v19152_v47  ;;  %v4967_v42 = vsel %vm4927_vm15, %v4964_v54, %v4966_v3  ;;  %v7543_v14 = vld [vmem:[%s18441_s12 + $0x58] sm:$0xff]  ;;  %v7544_v44 = vld [vmem:[%s18441_s12 + $0x60] sm:$0x3] }
 0xa4e   : > { %10426 = vmatprep.subr.bf16.mxu1 %v16635_v49  ;;  %v6551_v59 = vsel %vm6537_vm5, %v6506_v8, %v19153_v39  ;;  %v6596_v28 = vsel %vm948_vm2, %v6552_v30, %v19154_v26  ;;  %v16718_v9 = vpack.c.bf16 %v7543_v14, %v7542_v2  ;;  %v16720_v25 = vpack.c.bf16 %v7544_v44, %v7544_v44  ;;  %v19160_v61 = vld [vmem:[#allocation144_spill] sm:$0xff]  ;;  %v19165_v44 = vld [vmem:[#allocation177_spill] sm:$0xff] }
 0xa4f   : > { %v6343_v7 = vpop.permute.xlu1 %6342  ;;  %v6595_v22 = vsel %vm948_vm2, %v6551_v59, %v16286_v15  ;;  %v6641_v32 = vsel %vm6626_vm6, %v6596_v28, %v16431_v6  ;;  %v16697_v6 = vpack.c.bf16 %v7541_v18, %v7540_v41  ;;  %v4969_v26 = vrot.slane %v15961_v29, 5  ;;  %v19163_v29 = vld [vmem:[#allocation214_spill] sm:$0xff] }
 0xa50   : > { %10427 = vmatpush3.bf16.msra.mxu1 %v16635_v49  ;;  %v6640_v57 = vsel %vm6626_vm6, %v6595_v22, %v16437_v0  ;;  %v16692_v43 = vsel %vm6671_vm7, %v6641_v32, %v6345_v56  ;;  %v6463_v0 = vsel %vm4233_vm10, %v4967_v42, %v19156_v46  ;;  %19158 = vst [vmem:[#allocation141_spill] sm:$0xff] %v16718_v9  ;;  %19159 = vst [vmem:[#allocation183_spill] sm:$0xff] %v16720_v25  ;;  %v11131_v56 = vld [vmem:[#allocation3 + $0x100] sm:$0xff]  ;;  %v19162_v32 = vld [vmem:[#allocation195_spill] sm:$0xff] }
 0xa51   : > { %7044 = vrot.lane.b32.xlu1 %v16594_v37, %s11177_s29  ;;  %7140 = vrot.lane.b32.xlu0 %v16591_v5, %s11178_s30  ;;  %v16695_v15 = vsel %vm6671_vm7, %v6640_v57, %v6343_v7  ;;  %19155 = vst [vmem:[#allocation116_spill] sm:$0xff] %v16697_v6  ;;  %v6508_v54 = vsel %vm6492_vm3, %v6463_v0, %v19157_v19  ;;  %v16741_v39 = vsel %vm2349_vm9, %v16720_v25, 0  ;;  %v4968_v7 = vrot.slane %v11131_v56, 5  ;;  %v11132_v42 = vld [vmem:[#allocation3 + $0x120] sm:$0xff]  ;;  %v19186_v49 = vld [vmem:[#allocation203_spill] sm:$0xff] }
 0xa52   : > { %10428 = vmatprep.subr.bf16.mxu1 %v16697_v6  ;;  %v6553_v53 = vsel %vm6537_vm5, %v6508_v54, %v19160_v61  ;;  %19161 = vst [vmem:[#allocation184_spill] sm:$0xff] %v16741_v39  ;;  %v4973_v46 = vrot.slane %v11132_v42, 5  ;;  %v4974_v0 = vrot.slane %v15978_v34, 5  ;;  %v4971_v19 = vrot.slane %v15954_v16, 5  ;;  %v19164_v54 = vld [vmem:[#allocation190_spill] sm:$0xff]  ;;  %v19172_v42 = vld [vmem:[#allocation117_spill] sm:$0xff] }
 0xa53   : > { %v6347_v8 = vpop.permute.xlu1 %6346  ;;  %v6597_v3 = vsel %vm948_vm2, %v6553_v53, %v16297_v62  ;;  %v6349_v62 = vpop.permute.xlu0 %6348  ;;  %v4970_v22 = vsel %vm4927_vm15, %v4968_v7, %v4969_v26  ;;  %v19168_v7 = vld [vmem:[#allocation198_spill] sm:$0xff] }
 0xa54   : > { %10429 = vmatpush3.bf16.msra.mxu1 %v16697_v6  ;;  %v6642_v47 = vsel %vm6626_vm6, %v6597_v3, %v16441_v58  ;;  %v6464_v57 = vsel %vm4233_vm10, %v4970_v22, %v19162_v32  ;;  %v4975_v16 = vsel %vm4927_vm15, %v4973_v46, %v4974_v0 }
 0xa55   : > { %7048 = vrot.lane.b32.xlu1 %v16652_v23, %s11177_s29  ;;  %7144 = vrot.lane.b32.xlu0 %v16649_v33, %s11178_s30  ;;  %v16735_v30 = vsel %vm6671_vm7, %v6642_v47, %v6347_v8  ;;  %v6509_v18 = vsel %vm6492_vm3, %v6464_v57, %v19163_v29  ;;  %v4972_v8 = vsel %vm4927_vm15, %v4969_v26, %v4971_v19  ;;  %v19167_v47 = vld [vmem:[#allocation197_spill] sm:$0xff]  ;;  %v19171_v29 = vld [vmem:[#allocation202_spill] sm:$0xff] }
 0xa56   : > { %10430 = vmatprep.subr.bf16.mxu1 %v16718_v9  ;;  %v6554_v2 = vsel %vm6537_vm5, %v6509_v18, %v19164_v54  ;;  %v6466_v56 = vsel %vm4233_vm10, %v4975_v16, %v19167_v47  ;;  %v6465_v22 = vsel %vm4233_vm10, %v4972_v8, %v19168_v7  ;;  %v19170_v57 = vld [vmem:[#allocation217_spill] sm:$0xff]  ;;  %v4976_v18 = vrot.slane %v19171_v29, 5 }
 0xa57   : > { %v6353_v58 = vpop.permute.xlu0 %6352  ;;  %v6351_v59 = vpop.permute.xlu1 %6350  ;;  %v6598_v61 = vsel %vm948_vm2, %v6554_v2, %v19165_v44  ;;  %v6510_v26 = vsel %vm6492_vm3, %v6465_v22, %v19170_v57  ;;  %v19173_v19 = vld [vmem:[#allocation157_spill] sm:$0xff]  ;;  %v19174_v44 = vld [vmem:[#allocation178_spill] sm:$0xff]  ;;  %v19176_v22 = vld [vmem:[#allocation200_spill] sm:$0xff] }
 0xa58   : > { %10431 = vmatpush3.bf16.msra.mxu1 %v16718_v9  ;;  %v6643_v53 = vsel %vm6626_vm6, %v6598_v61, %v16439_v48  ;;  %v19169_v48 = vld [vmem:[#allocation216_spill] sm:$0xff]  ;;  %v6555_v54 = vsel %vm6537_vm5, %v6510_v26, %v19173_v19  ;;  %v4977_v47 = vsel %vm4927_vm15, %v4974_v0, %v4976_v18 }
 0xa59   : > { %7142 = vrot.lane.b32.xlu1 %v16652_v23, %s11178_s30  ;;  %7238 = vrot.lane.b32.xlu0 %v16649_v33, %s11176_s23  ;;  %v16799_v3 = vsel %vm6671_vm7, %v6643_v53, %v6349_v62  ;;  %v6511_v32 = vsel %vm6492_vm3, %v6466_v56, %v19169_v48  ;;  %v6599_v53 = vsel %vm948_vm2, %v6555_v54, %v16308_v13  ;;  %v19177_v13 = vld [vmem:[#allocation219_spill] sm:$0xff]  ;;  %v11133_v54 = vld [vmem:[#allocation3 + $0x140] sm:$0xff] }
 0xa5a   : > { %10932 = vmatprep.subr.msk.bf16.mxu1 %vm2349_vm9, %v16720_v25  ;;  %19166 = vst [vmem:[#allocation114_spill] sm:$0xff] %v16799_v3  ;;  %v6556_v46 = vsel %vm6537_vm5, %v6511_v32, %v19172_v42  ;;  %v6644_v8 = vsel %vm6626_vm6, %v6599_v53, %v16445_v20  ;;  %v6467_v48 = vsel %vm4233_vm10, %v4977_v47, %v19176_v22  ;;  %v19179_v47 = vld [vmem:[#allocation199_spill] sm:$0xff] }
 0xa5b   : > { %v16769_v28 = vpop.permute.xlu0 %6356  ;;  %v6355_v41 = vpop.permute.xlu1 %6354  ;;  %v6600_v61 = vsel %vm948_vm2, %v6556_v46, %v19174_v44  ;;  %v16839_v7 = vsel %vm6671_vm7, %v6644_v8, %v6351_v59  ;;  %v4978_v44 = vrot.slane %v11133_v54, 5 }
 0xa5c   : > { %10433 = vmatpush3.bf16.msra.mxu1 %v16741_v39  ;;  %v6645_v16 = vsel %vm6626_vm6, %v6600_v61, %v16443_v10  ;;  %19175 = vst [vmem:[#allocation142_spill] sm:$0xff] %v16839_v7  ;;  %v6512_v10 = vsel %vm6492_vm3, %v6467_v48, %v19177_v13  ;;  %v11134_v61 = vld [vmem:[#allocation3 + $0x148] sm:$0xff]  ;;  %v19180_v13 = vld [vmem:[#allocation218_spill] sm:$0xff] }
 0xa5d   : > { %7146 = vrot.lane.b32.xlu1 %v16695_v15, %s11178_s30  ;;  %7242 = vrot.lane.b32.xlu0 %v16692_v43, %s11176_s23  ;;  %v16836_v56 = vsel %vm6671_vm7, %v6645_v16, %v6353_v58  ;;  %v19178_v58 = vld [vmem:[#allocation119_spill] sm:$0xff]  ;;  %v4979_v53 = vrot.slane %v11134_v61, 5  ;;  %v11137_v39 = vld [vmem:[#allocation3 + $0x8] sm:$0xff] }
 0xa5e   : > { %v6557_v59 = vsel %vm6537_vm5, %v6512_v10, %v19178_v58 }
 0xa5f   : > { %v16784_v14 = vpop.permute.xlu0 %6360  ;;  %v16794_v34 = vpop.permute.xlu1 %6358  ;;  %v6601_v0 = vsel %vm948_vm2, %v6557_v59, %v16319_v63  ;;  %v4980_v8 = vsel %vm4927_vm15, %v4978_v44, %v4979_v53  ;;  %v11135_v59 = vld [vmem:[#allocation3 + $0x150] sm:$0xff] }
 0xa60   : > { %v6646_v57 = vsel %vm6626_vm6, %v6601_v0, %v16449_v40  ;;  %v6468_v22 = vsel %vm4233_vm10, %v4980_v8, %v19179_v47  ;;  %v4981_v0 = vrot.slane %v11135_v59, 5  ;;  %v19182_v44 = vld [vmem:[#allocation230_spill] sm:$0xff]  ;;  %v11136_v8 = vld [vmem:[#allocation3] sm:$0xff] }
 0xa61   : > { %7240 = vrot.lane.b32.xlu1 %v16695_v15, %s11176_s23  ;;  %6756 = vrot.lane.b32.xlu0 %v16498_v1, %s11174_s19  ;;  %v16866_v29 = vsel %vm6671_vm7, %v6646_v57, %v6355_v41  ;;  %v6513_v10 = vsel %vm6492_vm3, %v6468_v22, %v19180_v13  ;;  %v19181_v57 = vld [vmem:[#allocation118_spill] sm:$0xff]  ;;  %v4928_v47 = vrot.slane %v11136_v8, 5 }
 0xa62   : > { %v6558_v54 = vsel %vm6537_vm5, %v6513_v10, %v19181_v57  ;;  %v4929_v10 = vrot.slane %v11137_v39, 5  ;;  %v11138_v57 = vld [vmem:[#allocation3 + $0x10] sm:$0xff]  ;;  %v4982_v9 = vsel %vm4927_vm15, %v4979_v53, %v4981_v0  ;;  %v19187_v39 = vld [vmem:[#allocation220_spill] sm:$0xff]  ;;  %v19188_v0 = vld [vmem:[#allocation221_spill] sm:$0xff] }
 0xa63   : > { %v16813_v62 = vpop.permute.xlu0 %6364  ;;  %v16820_v2 = vpop.permute.xlu1 %6362  ;;  %v6602_v61 = vsel %vm948_vm2, %v6558_v54, %v19182_v44  ;;  %v4931_v25 = vrot.slane %v11138_v57, 5  ;;  %v19184_v54 = vld [vmem:[#allocation201_spill] sm:$0xff] }
 0xa64   : > { %v6647_v22 = vsel %vm6626_vm6, %v6602_v61, %v16447_v51  ;;  %v19185_v44 = vld [vmem:[#allocation125_spill] sm:$0xff]  ;;  %v6469_v51 = vsel %vm4233_vm10, %v4982_v9, %v19186_v49  ;;  %v4930_v57 = vsel %vm4927_vm15, %v4928_v47, %v4929_v10  ;;  %v19189_v9 = vld [vmem:[#allocation160_spill] sm:$0xff] }
 0xa65   : > { %7244 = vrot.lane.b32.xlu1 %v16735_v30, %s11176_s23  ;;  %6760 = vrot.lane.b32.xlu0 %v16534_v52, %s11174_s19  ;;  %v16938_v6 = vsel %vm6671_vm7, %v6647_v22, %v16769_v28  ;;  %v6470_v8 = vsel %vm4233_vm10, %v19185_v44, %v19184_v54  ;;  %v6514_v28 = vsel %vm6492_vm3, %v6469_v51, %v19188_v0  ;;  %v19190_v44 = vld [vmem:[#allocation120_spill] sm:$0xff] }
 0xa66   : > { %v6515_v53 = vsel %vm6492_vm3, %v6470_v8, %v19187_v39  ;;  %v4932_v49 = vsel %vm4927_vm15, %v4929_v10, %v4931_v25  ;;  %v19191_v8 = vld [vmem:[#allocation231_spill] sm:$0xff]  ;;  %v19192_v39 = vld [vmem:[#allocation49_spill] sm:$0xff]  ;;  %v19193_v10 = vld [vmem:[#allocation52_spill] sm:$0xff] }
 0xa67   : > { %v16843_v32 = vpop.permute.xlu0 %6368  ;;  %v16851_v20 = vpop.permute.xlu1 %6366  ;;  %v6560_v54 = vsel %vm6537_vm5, %v6515_v53, %v19189_v9  ;;  %v6448_v25 = vsel %vm4233_vm10, %v4930_v57, %v19192_v39  ;;  %v6449_v53 = vsel %vm4233_vm10, %v4932_v49, %v19193_v10  ;;  %v19195_v57 = vld [vmem:[#allocation131_spill] sm:$0xff] }
 0xa68   : > { %v6604_v51 = vsel %vm948_vm2, %v6560_v54, %v19191_v8  ;;  %v19197_v8 = vld [vmem:[#allocation65_spill] sm:$0xff]  ;;  %v19199_v10 = vld [vmem:[#allocation67_spill] sm:$0xff] }
 0xa69   : > { %6758 = vrot.lane.b32.xlu1 %v16537_v4, %s11174_s19  ;;  %6854 = vrot.lane.b32.xlu0 %v16534_v52, %s11175_s22  ;;  %v6649_v0 = vsel %vm6626_vm6, %v6604_v51, %v16451_v55  ;;  %v19196_v55 = vld [vmem:[#allocation63_spill] sm:$0xff] }
 0xa6a   : > { %v16981_v54 = vsel %vm6671_vm7, %v6649_v0, %v16784_v14  ;;  %v6494_v14 = vsel %vm6492_vm3, %v6449_v53, %v19197_v8  ;;  %v19198_v51 = vld [vmem:[#allocation223_spill] sm:$0xff] }
 0xa6b   : > { %v16863_v26 = vpop.permute.xlu0 %6372  ;;  %v16868_v18 = vpop.permute.xlu1 %6370 }
 0xa6d   : > { %6762 = vrot.lane.b32.xlu1 %v16594_v37, %s11174_s19  ;;  %6858 = vrot.lane.b32.xlu0 %v16591_v5, %s11175_s22 }
 0xa6f   : > { %v16874_v42 = vpop.permute.xlu0 %6376  ;;  %v16880_v63 = vpop.permute.xlu1 %6374 }
 0xa71   : > { %6856 = vrot.lane.b32.xlu1 %v16594_v37, %s11175_s22  ;;  %6952 = vrot.lane.b32.xlu0 %v16591_v5, %s11179_s14 }
 0xa73   : > { %v16886_v40 = vpop.permute.xlu0 %6380  ;;  %v16888_v41 = vpop.permute.xlu1 %6378 }
 0xa75   : > { %6860 = vrot.lane.b32.xlu1 %v16652_v23, %s11175_s22  ;;  %6956 = vrot.lane.b32.xlu0 %v16649_v33, %s11179_s14 }
 0xa77   : > { %v16894_v46 = vpop.permute.xlu0 %6384  ;;  %v16900_v19 = vpop.permute.xlu1 %6382 }
 0xa79   : > { %6954 = vrot.lane.b32.xlu1 %v16652_v23, %s11179_s14  ;;  %7050 = vrot.lane.b32.xlu0 %v16649_v33, %s11177_s29 }
 0xa7b   : > { %v16906_v16 = vpop.permute.xlu0 %6388  ;;  %v16911_v48 = vpop.permute.xlu1 %6386 }
 0xa7d   : > { %6958 = vrot.lane.b32.xlu1 %v16695_v15, %s11179_s14  ;;  %7054 = vrot.lane.b32.xlu0 %v16692_v43, %s11177_s29 }
 0xa7f   : > { %v16931_v13 = vpop.permute.xlu1 %6390 }
 0xa80   : > { %19183 = vst [vmem:[#allocation147_spill] sm:$0xff] %v16931_v13  ;;  %v6559_v13 = vsel %vm6537_vm5, %v6514_v28, %v19190_v44 }
 0xa81   : > { %7052 = vrot.lane.b32.xlu1 %v16695_v15, %s11177_s29  ;;  %7148 = vrot.lane.b32.xlu0 %v16692_v43, %s11178_s30  ;;  %v6603_v47 = vsel %vm948_vm2, %v6559_v13, %v16329_v24  ;;  %v19194_v13 = vld [vmem:[#allocation205_spill] sm:$0xff] }
 0xa82   : > { %v6648_v28 = vsel %vm6626_vm6, %v6603_v47, %v16453_v11  ;;  %v6471_v49 = vsel %vm4233_vm10, %v19195_v57, %v19194_v13  ;;  %v6493_v11 = vsel %vm6492_vm3, %v6448_v25, %v19196_v55  ;;  %v19201_v57 = vld [vmem:[#allocation121_spill] sm:$0xff] }
 0xa83   : > { %v16985_v24 = vsel %vm6671_vm7, %v6648_v28, %v16794_v34  ;;  %v6516_v34 = vsel %vm6492_vm3, %v6471_v49, %v19198_v51  ;;  %v6538_v0 = vsel %vm6537_vm5, %v6493_v11, %v19199_v10  ;;  %v19200_v28 = vld [vmem:[#allocation69_spill] sm:$0xff] }
 0xa84   : > { %v6539_v13 = vsel %vm6537_vm5, %v6494_v14, %v19200_v28  ;;  %v6561_v21 = vsel %vm6537_vm5, %v6516_v34, %v19201_v57  ;;  %v19202_v11 = vld [vmem:[#allocation37_spill] sm:$0xff]  ;;  %v19203_v14 = vld [vmem:[#allocation39_spill] sm:$0xff] }
 0xa85   : > { %7056 = vrot.lane.b32.xlu1 %v16735_v30, %s11177_s29  ;;  %7152 = vrot.lane.b32.xlu0 %v16799_v3, %s11178_s30  ;;  %v6605_v25 = vsel %vm948_vm2, %v6561_v21, %v16341_v36  ;;  %v6582_v8 = vsel %vm948_vm2, %v6538_v0, %v19202_v11  ;;  %v6583_v51 = vsel %vm948_vm2, %v6539_v13, %v19203_v14  ;;  %v19204_v36 = vld [vmem:[#allocation71_spill] sm:$0xff]  ;;  %v19205_v21 = vld [vmem:[#allocation73_spill] sm:$0xff] }
 0xa86   : > { %v6650_v53 = vsel %vm6626_vm6, %v6605_v25, %v16457_v12  ;;  %v6627_v12 = vsel %vm6626_vm6, %v6582_v8, %v19204_v36  ;;  %v6628_v10 = vsel %vm6626_vm6, %v6583_v51, %v19205_v21  ;;  %v19207_v57 = vld [vmem:[#allocation77_spill] sm:$0xff]  ;;  %v19208_v8 = vld [vmem:[#allocation96_spill] sm:$0xff] }
 0xa87   : > { %v17020_v34 = vsel %vm6671_vm7, %v6650_v53, %v16820_v2  ;;  %v19206_v2 = vld [vmem:[#allocation75_spill] sm:$0xff]  ;;  %v6673_v25 = vsel %vm6671_vm7, %v6628_v10, %v19207_v57  ;;  %v19209_v51 = vld [vmem:[#allocation97_spill] sm:$0xff]  ;;  %v19210_v10 = vld [vmem:[#allocation100_spill] sm:$0xff] }
 0xa88   : > { %v6672_v13 = vsel %vm6671_vm7, %v6627_v12, %v19206_v2  ;;  %v7336_v36 = vsel %vm7334_vm0, %v6673_v25, %v19209_v51  ;;  %v19211_v57 = vld [vmem:[#allocation101_spill] sm:$0xff] }
 0xa89   : > { %7150 = vrot.lane.b32.xlu1 %v16735_v30, %s11178_s30  ;;  %7246 = vrot.lane.b32.xlu0 %v16799_v3, %s11176_s23  ;;  %v7335_v14 = vsel %vm7334_vm0, %v6672_v13, %v19208_v8  ;;  %v7369_v13 = vsel %vm7367_vm1, %v7336_v36, %v19211_v57  ;;  %v19214_v57 = vld [vmem:[#allocation99_spill] sm:$0xff] }
 0xa8a   : > { %v7368_v2 = vsel %vm7367_vm1, %v7335_v14, %v19210_v10  ;;  %v19212_v10 = vld [vmem:[#allocation98_spill] sm:$0xff] }
 0xa8d   : > { %7154 = vrot.lane.b32.xlu1 %v16839_v7, %s11178_s30  ;;  %7250 = vrot.lane.b32.xlu0 %v16836_v56, %s11176_s23 }
 0xa91   : > { %7248 = vrot.lane.b32.xlu1 %v16839_v7, %s11176_s23  ;;  %6764 = vrot.lane.b32.xlu0 %v16591_v5, %s11174_s19 }
 0xa95   : > { %7252 = vrot.lane.b32.xlu1 %v16866_v29, %s11176_s23  ;;  %6768 = vrot.lane.b32.xlu0 %v16649_v33, %s11174_s19 }
 0xa99   : > { %6766 = vrot.lane.b32.xlu1 %v16652_v23, %s11174_s19  ;;  %6862 = vrot.lane.b32.xlu0 %v16649_v33, %s11175_s22 }
 0xa9d   : > { %6770 = vrot.lane.b32.xlu1 %v16695_v15, %s11174_s19  ;;  %6866 = vrot.lane.b32.xlu0 %v16692_v43, %s11175_s22 }
 0xaa1   : > { %6864 = vrot.lane.b32.xlu1 %v16695_v15, %s11175_s22  ;;  %6960 = vrot.lane.b32.xlu0 %v16692_v43, %s11179_s14 }
 0xaa5   : > { %6868 = vrot.lane.b32.xlu1 %v16735_v30, %s11175_s22  ;;  %6964 = vrot.lane.b32.xlu0 %v16799_v3, %s11179_s14 }
 0xaa9   : > { %6962 = vrot.lane.b32.xlu1 %v16735_v30, %s11179_s14  ;;  %7058 = vrot.lane.b32.xlu0 %v16799_v3, %s11177_s29 }
 0xaad   : > { %6966 = vrot.lane.b32.xlu1 %v16839_v7, %s11179_s14  ;;  %7062 = vrot.lane.b32.xlu0 %v16836_v56, %s11177_s29 }
 0xaaf   : > { %v16919_v58 = vpop.permute.xlu0 %6850 }
 0xab1   : > { %7060 = vrot.lane.b32.xlu1 %v16839_v7, %s11177_s29  ;;  %7156 = vrot.lane.b32.xlu0 %v16836_v56, %s11178_s30 }
 0xab3   : > { %v16933_v59 = vpop.permute.xlu0 %6944 }
 0xab4   : > { %v7401_v25 = vsel %vm7400_vm11, %v7368_v2, %v16933_v59  ;;  %v7338_v59 = vsel %vm7334_vm0, %v19215_v17, %v19214_v57 }
 0xab5   : > { %7064 = vrot.lane.b32.xlu1 %v16866_v29, %s11177_s29  ;;  %7160 = vrot.lane.b32.xlu0 %v16938_v6, %s11178_s30 }
 0xab7   : > { %v16953_v61 = vpop.permute.xlu1 %6852  ;;  %v16955_v22 = vpop.permute.xlu0 %6948 }
 0xab9   : > { %7158 = vrot.lane.b32.xlu1 %v16866_v29, %s11178_s30  ;;  %7254 = vrot.lane.b32.xlu0 %v16938_v6, %s11176_s23 }
 0xabb   : > { %v6947_v9 = vpop.permute.xlu1 %6946  ;;  %v7043_v44 = vpop.permute.xlu0 %7042 }
 0xabc   : > { %v7402_v8 = vsel %vm7400_vm11, %v7369_v13, %v6947_v9  ;;  %v7434_v51 = vsel %vm7433_vm12, %v7401_v25, %v7043_v44 }
 0xabd   : > { %7162 = vrot.lane.b32.xlu1 %v16985_v24, %s11178_s30  ;;  %7258 = vrot.lane.b32.xlu0 %v16981_v54, %s11176_s23 }
 0xabf   : > { %v6951_v47 = vpop.permute.xlu1 %6950  ;;  %v7047_v39 = vpop.permute.xlu0 %7046 }
 0xac1   : > { %7256 = vrot.lane.b32.xlu1 %v16985_v24, %s11176_s23  ;;  %6772 = vrot.lane.b32.xlu0 %v16692_v43, %s11174_s19 }
 0xac3   : > { %v7045_v49 = vpop.permute.xlu1 %7044  ;;  %v7141_v55 = vpop.permute.xlu0 %7140 }
 0xac4   : > { %v7435_v14 = vsel %vm7433_vm12, %v7402_v8, %v7045_v49  ;;  %v7467_v9 = vsel %vm7466_vm13, %v7434_v51, %v7141_v55  ;;  %v7371_v49 = vsel %vm7367_vm1, %v7338_v59, %v16953_v61 }
 0xac5   : > { %7260 = vrot.lane.b32.xlu1 %v17020_v34, %s11176_s23  ;;  %6776 = vrot.lane.b32.xlu0 %v16799_v3, %s11174_s19  ;;  %v7404_v55 = vsel %vm7400_vm11, %v7371_v49, %v6951_v47 }
 0xac7   : > { %v7049_v0 = vpop.permute.xlu1 %7048  ;;  %v7145_v28 = vpop.permute.xlu0 %7144 }
 0xac8   : > { %v7437_v61 = vsel %vm7433_vm12, %v7404_v55, %v7049_v0 }
 0xac9   : > { %6774 = vrot.lane.b32.xlu1 %v16735_v30, %s11174_s19  ;;  %6870 = vrot.lane.b32.xlu0 %v16799_v3, %s11175_s22  ;;  %v19213_v3 = vld [vmem:[#allocation78_spill] sm:$0xff] }
 0xaca   : > { %v7337_v36 = vsel %vm7334_vm0, %v19213_v3, %v19212_v10 }
 0xacb   : > { %v7143_v53 = vpop.permute.xlu1 %7142  ;;  %v7239_v11 = vpop.permute.xlu0 %7238  ;;  %v7370_v44 = vsel %vm7367_vm1, %v7337_v36, %v16919_v58 }
 0xacc   : > { %v7468_v2 = vsel %vm7466_vm13, %v7435_v14, %v7143_v53  ;;  %v7500_v25 = vsel %vm7499_vm14, %v7467_v9, %v7239_v11  ;;  %v7403_v17 = vsel %vm7400_vm11, %v7370_v44, %v16955_v22 }
 0xacd   : > { %6778 = vrot.lane.b32.xlu1 %v16839_v7, %s11174_s19  ;;  %6874 = vrot.lane.b32.xlu0 %v16836_v56, %s11175_s22  ;;  %v7436_v58 = vsel %vm7433_vm12, %v7403_v17, %v7047_v39 }
 0xace   : > { %v7469_v53 = vsel %vm7466_vm13, %v7436_v58, %v7145_v28 }
 0xacf   : > { %v7147_v12 = vpop.permute.xlu1 %7146  ;;  %v7243_v21 = vpop.permute.xlu0 %7242 }
 0xad0   : > { %v7470_v11 = vsel %vm7466_vm13, %v7437_v61, %v7147_v12  ;;  %v7502_v10 = vsel %vm7499_vm14, %v7469_v53, %v7243_v21  ;;  %v19219_v53 = vld [vmem:[#allocation163_spill] sm:$0xff] }
 0xad1   : > { %6872 = vrot.lane.b32.xlu1 %v16839_v7, %s11175_s22  ;;  %6968 = vrot.lane.b32.xlu0 %v16836_v56, %s11179_s14 }
 0xad3   : > { %v7241_v13 = vpop.permute.xlu1 %7240  ;;  %v17067_v7 = vpop.permute.xlu0 %6756 }
 0xad4   : > { %v7501_v3 = vsel %vm7499_vm14, %v7468_v2, %v7241_v13  ;;  %v19216_v2 = vld [vmem:[#allocation204_spill] sm:$0xff] }
 0xad5   : > { %v17078_v8 = vpack.c.bf16 %v7501_v3, %v7500_v25  ;;  %6876 = vrot.lane.b32.xlu1 %v16866_v29, %s11175_s22  ;;  %6972 = vrot.lane.b32.xlu0 %v16938_v6, %s11179_s14  ;;  %v19217_v13 = vld [vmem:[#allocation128_spill] sm:$0xff] }
 0xad6   : > { %v6472_v44 = vsel %vm4233_vm10, %v19217_v13, %v19216_v2  ;;  %v19225_v13 = vld [vmem:[#allocation225_spill] sm:$0xff] }
 0xad7   : > { %v7561_v22 = vunpack.c.l.bf16 %v17078_v8  ;;  %v7562_v47 = vunpack.c.h.bf16 %v17078_v8  ;;  %v7245_v51 = vpop.permute.xlu1 %7244  ;;  %v17090_v14 = vpop.permute.xlu0 %6760 }
 0xad8   : > { %v7503_v36 = vsel %vm7499_vm14, %v7470_v11, %v7245_v51 }
 0xad9   : > { %v7593_v57 = vsub.f32 %v7500_v25, %v7561_v22  ;;  %v7594_v59 = vsub.f32 %v7501_v3, %v7562_v47  ;;  %v17094_v39 = vpack.c.bf16 %v7503_v36, %v7502_v10  ;;  %6970 = vrot.lane.b32.xlu1 %v16866_v29, %s11179_s14  ;;  %7066 = vrot.lane.b32.xlu0 %v16938_v6, %s11177_s29  ;;  %v19218_v3 = vld [vmem:[#allocation222_spill] sm:$0xff] }
 0xada   : > { %v6517_v17 = vsel %vm6492_vm3, %v6472_v44, %v19218_v3 }
 0xadb   : > { %v7625_v0 = vpack.c.bf16 %v7594_v59, %v7593_v57  ;;  %v7563_v28 = vunpack.c.l.bf16 %v17094_v39  ;;  %v7564_v12 = vunpack.c.h.bf16 %v17094_v39  ;;  %v17102_v9 = vpop.permute.xlu1 %6758  ;;  %v17104_v21 = vpop.permute.xlu0 %6854  ;;  %v6562_v11 = vsel %vm6537_vm5, %v6517_v17, %v19219_v53  ;;  %v19220_v57 = vld [vmem:[#allocation206_spill] sm:$0xff]  ;;  %v19221_v59 = vld [vmem:[#allocation132_spill] sm:$0xff] }
 0xadc   : > { %v6606_v22 = vsel %vm948_vm2, %v6562_v11, %v16331_v35  ;;  %v19224_v35 = vld [vmem:[#allocation224_spill] sm:$0xff]  ;;  %v19227_v17 = vld [vmem:[#allocation122_spill] sm:$0xff] }
 0xadd   : > { %v7595_v49 = vsub.f32 %v7502_v10, %v7563_v28  ;;  %v7596_v25 = vsub.f32 %v7503_v36, %v7564_v12  ;;  %6974 = vrot.lane.b32.xlu1 %v16985_v24, %s11179_s14  ;;  %7070 = vrot.lane.b32.xlu0 %v16981_v54, %s11177_s29  ;;  %v6651_v47 = vsel %vm6626_vm6, %v6606_v22, %v16455_v60  ;;  %v19222_v28 = vld [vmem:[#allocation207_spill] sm:$0xff]  ;;  %v19228_v22 = vld [vmem:[#allocation180_spill] sm:$0xff] }
 0xade   : > { %10434 = vmatprep.mubr.msk.bf16.mxu1 %vm7681_vm8, %v7625_v0  ;;  %v17133_v36 = vsel %vm6671_vm7, %v6651_v47, %v16813_v62  ;;  %v6474_v0 = vsel %vm4233_vm10, %v19221_v59, %v19220_v57  ;;  %v19223_v12 = vld [vmem:[#allocation135_spill] sm:$0xff]  ;;  %v19229_v57 = vld [vmem:[#allocation181_spill] sm:$0xff] }
 0xadf   : > { %v7626_v55 = vpack.c.bf16 %v7596_v25, %v7595_v49  ;;  %v17116_v58 = vpop.permute.xlu1 %6762  ;;  %v17118_v61 = vpop.permute.xlu0 %6858  ;;  %v6473_v2 = vsel %vm4233_vm10, %v19223_v12, %v19222_v28  ;;  %v6519_v60 = vsel %vm6492_vm3, %v6474_v0, %v19224_v35  ;;  %v19226_v25 = vld [vmem:[#allocation165_spill] sm:$0xff]  ;;  %v19231_v35 = vld [vmem:[#allocation140_spill] sm:$0xff] }
 0xae0   : > { %v6518_v62 = vsel %vm6492_vm3, %v6473_v2, %v19225_v13  ;;  %v6564_v3 = vsel %vm6537_vm5, %v6519_v60, %v19226_v25  ;;  %v19232_v60 = vld [vmem:[#allocation168_spill] sm:$0xff]  ;;  %v19233_v25 = vld [vmem:[#allocation123_spill] sm:$0xff] }
 0xae1   : > { %7068 = vrot.lane.b32.xlu1 %v16985_v24, %s11177_s29  ;;  %7164 = vrot.lane.b32.xlu0 %v16981_v54, %s11178_s30  ;;  %v6608_v53 = vsel %vm948_vm2, %v6564_v3, %v16343_v50  ;;  %v19230_v50 = vld [vmem:[#allocation139_spill] sm:$0xff] }
 0xae2   : > { %10435 = vmatmul.mubr.msk.bf16.vlgmr.msra.gmra.mrb[40].mxu1 %vm7681_vm8, %v7626_v55  ;;  %v6563_v55 = vsel %vm6537_vm5, %v6518_v62, %v19227_v17  ;;  %v6653_v47 = vsel %vm6626_vm6, %v6608_v53, %v19228_v22 }
 0xae3   : > { %v6857_v51 = vpop.permute.xlu1 %6856  ;;  %v6953_v10 = vpop.permute.xlu0 %6952  ;;  %v6607_v11 = vsel %vm948_vm2, %v6563_v55, %v16351_v38  ;;  %v17167_v12 = vsel %vm6671_vm7, %v6653_v47, %v16843_v32  ;;  %v6475_v38 = vsel %vm4233_vm10, %v19231_v35, %v19230_v50  ;;  %v19235_v55 = vld [vmem:[#allocation243_spill] sm:$0xff] }
 0xae4   : > { %v6652_v59 = vsel %vm6626_vm6, %v6607_v11, %v19229_v57  ;;  %v6520_v13 = vsel %vm6492_vm3, %v6475_v38, %v19232_v60  ;;  %v19237_v60 = vld [vmem:[#allocation81_spill] sm:$0xff] }
 0xae5   : > { %7072 = vrot.lane.b32.xlu1 %v17020_v34, %s11177_s29  ;;  %7168 = vrot.lane.b32.xlu0 %v17133_v36, %s11178_s30  ;;  %v17171_v2 = vsel %vm6671_vm7, %v6652_v59, %v16851_v20  ;;  %v6565_v3 = vsel %vm6537_vm5, %v6520_v13, %v19233_v25  ;;  %v19234_v20 = vld [vmem:[#allocation233_spill] sm:$0xff]  ;;  %v7340_v13 = vsel %vm7334_vm0, %v19237_v60, %v17102_v9 }
 0xae6   : > { %v6609_v17 = vsel %vm948_vm2, %v6565_v3, %v19234_v20 }
 0xae7   : > { %v6861_v44 = vpop.permute.xlu1 %6860  ;;  %v6957_v49 = vpop.permute.xlu0 %6956  ;;  %v6654_v53 = vsel %vm6626_vm6, %v6609_v17, %v19235_v55  ;;  %v7373_v17 = vsel %vm7367_vm1, %v7340_v13, %v6857_v51  ;;  %v7342_v51 = vsel %vm7334_vm0, %v16537_v4, %v17116_v58 }
 0xae8   : > { %v17194_v47 = vsel %vm6671_vm7, %v6654_v53, %v16868_v18  ;;  %v19236_v18 = vld [vmem:[#allocation79_spill] sm:$0xff] }
 0xae9   : > { %7166 = vrot.lane.b32.xlu1 %v17020_v34, %s11178_s30  ;;  %7262 = vrot.lane.b32.xlu0 %v17133_v36, %s11176_s23  ;;  %v7339_v38 = vsel %vm7334_vm0, %v19236_v18, %v17067_v7 }
 0xaea   : > { %v7372_v20 = vsel %vm7367_vm1, %v7339_v38, %v17104_v21  ;;  %v7341_v21 = vsel %vm7334_vm0, %v16498_v1, %v17090_v14 }
 0xaeb   : > { %v6955_v0 = vpop.permute.xlu1 %6954  ;;  %v7051_v28 = vpop.permute.xlu0 %7050  ;;  %v7405_v55 = vsel %vm7400_vm11, %v7372_v20, %v6953_v10 }
 0xaec   : > { %v7406_v53 = vsel %vm7400_vm11, %v7373_v17, %v6955_v0  ;;  %v7438_v7 = vsel %vm7433_vm12, %v7405_v55, %v7051_v28  ;;  %v7374_v28 = vsel %vm7367_vm1, %v7341_v21, %v17118_v61  ;;  %v19239_v21 = vld [vmem:[#allocation138_spill] sm:$0xff] }
 0xaed   : > { %7170 = vrot.lane.b32.xlu1 %v17171_v2, %s11178_s30  ;;  %7266 = vrot.lane.b32.xlu0 %v17167_v12, %s11176_s23  ;;  %v7407_v14 = vsel %vm7400_vm11, %v7374_v28, %v6957_v49 }
 0xaef   : > { %v6959_v62 = vpop.permute.xlu1 %6958  ;;  %v7055_v32 = vpop.permute.xlu0 %7054 }
 0xaf0   : > { %v7440_v61 = vsel %vm7433_vm12, %v7407_v14, %v7055_v32  ;;  %v19241_v14 = vld [vmem:[#allocation191_spill] sm:$0xff] }
 0xaf1   : > { %7264 = vrot.lane.b32.xlu1 %v17171_v2, %s11176_s23  ;;  %6780 = vrot.lane.b32.xlu0 %v16836_v56, %s11174_s19 }
 0xaf3   : > { %v7053_v11 = vpop.permute.xlu1 %7052  ;;  %v7149_v22 = vpop.permute.xlu0 %7148 }
 0xaf4   : > { %v7439_v9 = vsel %vm7433_vm12, %v7406_v53, %v7053_v11  ;;  %v7471_v10 = vsel %vm7466_vm13, %v7438_v7, %v7149_v22  ;;  %v7375_v11 = vsel %vm7367_vm1, %v7342_v51, %v6861_v44 }
 0xaf5   : > { %7268 = vrot.lane.b32.xlu1 %v17194_v47, %s11176_s23  ;;  %6784 = vrot.lane.b32.xlu0 %v16938_v6, %s11174_s19  ;;  %v7408_v4 = vsel %vm7400_vm11, %v7375_v11, %v6959_v62 }
 0xaf7   : > { %v7057_v57 = vpop.permute.xlu1 %7056  ;;  %v7153_v59 = vpop.permute.xlu0 %7152 }
 0xaf8   : > { %v7441_v44 = vsel %vm7433_vm12, %v7408_v4, %v7057_v57  ;;  %v7473_v22 = vsel %vm7466_vm13, %v7440_v61, %v7153_v59  ;;  %v19242_v61 = vld [vmem:[#allocation232_spill] sm:$0xff] }
 0xaf9   : > { %6782 = vrot.lane.b32.xlu1 %v16866_v29, %s11174_s19  ;;  %6878 = vrot.lane.b32.xlu0 %v16938_v6, %s11175_s22 }
 0xafb   : > { %v7151_v50 = vpop.permute.xlu1 %7150  ;;  %v7247_v35 = vpop.permute.xlu0 %7246 }
 0xafc   : > { %v7472_v0 = vsel %vm7466_vm13, %v7439_v9, %v7151_v50  ;;  %v7504_v60 = vsel %vm7499_vm14, %v7471_v10, %v7247_v35  ;;  %v19238_v9 = vld [vmem:[#allocation208_spill] sm:$0xff] }
 0xafd   : > { %6786 = vrot.lane.b32.xlu1 %v16985_v24, %s11174_s19  ;;  %6882 = vrot.lane.b32.xlu0 %v16981_v54, %s11175_s22  ;;  %v6476_v51 = vsel %vm4233_vm10, %v19239_v21, %v19238_v9  ;;  %v19249_v21 = vld [vmem:[#allocation227_spill] sm:$0xff] }
 0xaff   : > { %v7155_v25 = vpop.permute.xlu1 %7154  ;;  %v7251_v3 = vpop.permute.xlu0 %7250 }
 0xb00   : > { %v7474_v50 = vsel %vm7466_vm13, %v7441_v44, %v7155_v25  ;;  %v7506_v20 = vsel %vm7499_vm14, %v7473_v22, %v7251_v3  ;;  %v19243_v22 = vld [vmem:[#allocation242_spill] sm:$0xff] }
 0xb01   : > { %6880 = vrot.lane.b32.xlu1 %v16985_v24, %s11175_s22  ;;  %6976 = vrot.lane.b32.xlu0 %v16981_v54, %s11179_s14 }
 0xb03   : > { %v7249_v18 = vpop.permute.xlu1 %7248  ;;  %v17233_v38 = vpop.permute.xlu0 %6764 }
 0xb04   : > { %v7505_v1 = vsel %vm7499_vm14, %v7472_v0, %v7249_v18  ;;  %v19240_v18 = vld [vmem:[#allocation226_spill] sm:$0xff] }
 0xb05   : > { %v17242_v58 = vpack.c.bf16 %v7505_v1, %v7504_v60  ;;  %6884 = vrot.lane.b32.xlu1 %v17020_v34, %s11175_s22  ;;  %6980 = vrot.lane.b32.xlu0 %v17133_v36, %s11179_s14  ;;  %v6521_v28 = vsel %vm6492_vm3, %v6476_v51, %v19240_v18 }
 0xb06   : > { %v6566_v4 = vsel %vm6537_vm5, %v6521_v28, %v19241_v14  ;;  %v19251_v28 = vld [vmem:[#allocation124_spill] sm:$0xff]  ;;  %v19252_v14 = vld [vmem:[#allocation234_spill] sm:$0xff] }
 0xb07   : > { %v7565_v49 = vunpack.c.l.bf16 %v17242_v58  ;;  %v7566_v62 = vunpack.c.h.bf16 %v17242_v58  ;;  %v7253_v35 = vpop.permute.xlu1 %7252  ;;  %v17254_v13 = vpop.permute.xlu0 %6768  ;;  %v6610_v44 = vsel %vm948_vm2, %v6566_v4, %v19242_v61  ;;  %v19253_v61 = vld [vmem:[#allocation235_spill] sm:$0xff] }
 0xb08   : > { %v7507_v17 = vsel %vm7499_vm14, %v7474_v50, %v7253_v35  ;;  %v6655_v50 = vsel %vm6626_vm6, %v6610_v44, %v19243_v22  ;;  %v19254_v22 = vld [vmem:[#allocation244_spill] sm:$0xff] }
 0xb09   : > { %v7597_v55 = vsub.f32 %v7504_v60, %v7565_v49  ;;  %v7598_v53 = vsub.f32 %v7505_v1, %v7566_v62  ;;  %v17258_v32 = vpack.c.bf16 %v7507_v17, %v7506_v20  ;;  %6978 = vrot.lane.b32.xlu1 %v17020_v34, %s11179_s14  ;;  %7074 = vrot.lane.b32.xlu0 %v17133_v36, %s11177_s29 }
 0xb0a   : > { %v17297_v35 = vsel %vm6671_vm7, %v6655_v50, %v16863_v26 }
 0xb0b   : > { %v7627_v57 = vpack.c.bf16 %v7598_v53, %v7597_v55  ;;  %v7567_v59 = vunpack.c.l.bf16 %v17258_v32  ;;  %v7568_v25 = vunpack.c.h.bf16 %v17258_v32  ;;  %v17266_v7 = vpop.permute.xlu1 %6766  ;;  %v17268_v3 = vpop.permute.xlu0 %6862  ;;  %v19246_v53 = vld [vmem:[#allocation145_spill] sm:$0xff] }
 0xb0d   : > { %v7599_v10 = vsub.f32 %v7506_v20, %v7567_v59  ;;  %v7600_v0 = vsub.f32 %v7507_v17, %v7568_v25  ;;  %6982 = vrot.lane.b32.xlu1 %v17171_v2, %s11179_s14  ;;  %7078 = vrot.lane.b32.xlu0 %v17167_v12, %s11177_s29  ;;  %v19244_v20 = vld [vmem:[#allocation209_spill] sm:$0xff]  ;;  %v19245_v17 = vld [vmem:[#allocation143_spill] sm:$0xff] }
 0xb0e   : > { %10438 = vmatprep.mubr.msk.bf16.mxu1 %vm7681_vm8, %v7627_v57  ;;  %v6478_v55 = vsel %vm4233_vm10, %v19245_v17, %v19244_v20  ;;  %v19247_v57 = vld [vmem:[#allocation146_spill] sm:$0xff]  ;;  %v19248_v25 = vld [vmem:[#allocation169_spill] sm:$0xff] }
 0xb0f   : > { %v7628_v11 = vpack.c.bf16 %v7600_v0, %v7599_v10  ;;  %v17280_v60 = vpop.permute.xlu1 %6770  ;;  %v17282_v1 = vpop.permute.xlu0 %6866  ;;  %v6477_v59 = vsel %vm4233_vm10, %v19247_v57, %v19246_v53  ;;  %v6523_v9 = vsel %vm6492_vm3, %v6478_v55, %v19248_v25  ;;  %v19250_v0 = vld [vmem:[#allocation192_spill] sm:$0xff]  ;;  %v19255_v20 = vld [vmem:[#allocation245_spill] sm:$0xff]  ;;  %v19256_v25 = vld [vmem:[#allocation150_spill] sm:$0xff] }
 0xb10   : > { %v6522_v26 = vsel %vm6492_vm3, %v6477_v59, %v19249_v21  ;;  %v6568_v18 = vsel %vm6537_vm5, %v6523_v9, %v19250_v0  ;;  %v19257_v9 = vld [vmem:[#allocation151_spill] sm:$0xff] }
 0xb11   : > { %7076 = vrot.lane.b32.xlu1 %v17171_v2, %s11177_s29  ;;  %7172 = vrot.lane.b32.xlu0 %v17167_v12, %s11178_s30  ;;  %v6612_v4 = vsel %vm948_vm2, %v6568_v18, %v19252_v14  ;;  %v6479_v21 = vsel %vm4233_vm10, %v19257_v9, %v19256_v25 }
 0xb12   : > { %10439 = vmatmul.mubr.msk.bf16.gmra.mrb[44].mxu1 %vm7681_vm8, %v7628_v11  ;;  %v6567_v11 = vsel %vm6537_vm5, %v6522_v26, %v19251_v28  ;;  %v6657_v50 = vsel %vm6626_vm6, %v6612_v4, %v19254_v22  ;;  %v19258_v26 = vld [vmem:[#allocation170_spill] sm:$0xff]  ;;  %v19261_v4 = vld [vmem:[#allocation247_spill] sm:$0xff] }
 0xb13   : > { %v6865_v49 = vpop.permute.xlu1 %6864  ;;  %v6961_v62 = vpop.permute.xlu0 %6960  ;;  %v6611_v44 = vsel %vm948_vm2, %v6567_v11, %v19253_v61  ;;  %v17331_v57 = vsel %vm6671_vm7, %v6657_v50, %v16874_v42  ;;  %v6524_v0 = vsel %vm6492_vm3, %v6479_v21, %v19258_v26  ;;  %v19259_v28 = vld [vmem:[#allocation126_spill] sm:$0xff]  ;;  %v7344_v21 = vsel %vm7334_vm0, %v16594_v37, %v17266_v7 }
 0xb14   : > { %v6656_v17 = vsel %vm6626_vm6, %v6611_v44, %v19255_v20  ;;  %v6569_v11 = vsel %vm6537_vm5, %v6524_v0, %v19259_v28  ;;  %v7346_v7 = vsel %vm7334_vm0, %v16652_v23, %v17280_v60 }
 0xb15   : > { %7080 = vrot.lane.b32.xlu1 %v17194_v47, %s11177_s29  ;;  %7176 = vrot.lane.b32.xlu0 %v17297_v35, %s11178_s30  ;;  %v17335_v59 = vsel %vm6671_vm7, %v6656_v17, %v16880_v63  ;;  %v19260_v63 = vld [vmem:[#allocation237_spill] sm:$0xff] }
 0xb16   : > { %v6613_v14 = vsel %vm948_vm2, %v6569_v11, %v19260_v63  ;;  %v7377_v11 = vsel %vm7367_vm1, %v7344_v21, %v6865_v49 }
 0xb17   : > { %v6869_v51 = vpop.permute.xlu1 %6868  ;;  %v6965_v10 = vpop.permute.xlu0 %6964  ;;  %v6658_v61 = vsel %vm6626_vm6, %v6613_v14, %v19261_v4 }
 0xb18   : > { %v17358_v50 = vsel %vm6671_vm7, %v6658_v61, %v16888_v41  ;;  %v7343_v41 = vsel %vm7334_vm0, %v16534_v52, %v17233_v38  ;;  %v7345_v38 = vsel %vm7334_vm0, %v16591_v5, %v17254_v13  ;;  %v7379_v4 = vsel %vm7367_vm1, %v7346_v7, %v6869_v51 }
 0xb19   : > { %7174 = vrot.lane.b32.xlu1 %v17194_v47, %s11178_s30  ;;  %7270 = vrot.lane.b32.xlu0 %v17297_v35, %s11176_s23  ;;  %v7376_v28 = vsel %vm7367_vm1, %v7343_v41, %v17268_v3 }
 0xb1a   : > { %v7409_v63 = vsel %vm7400_vm11, %v7376_v28, %v6961_v62 }
 0xb1b   : > { %v6963_v55 = vpop.permute.xlu1 %6962  ;;  %v7059_v53 = vpop.permute.xlu0 %7058 }
 0xb1c   : > { %v7410_v14 = vsel %vm7400_vm11, %v7377_v11, %v6963_v55  ;;  %v7442_v52 = vsel %vm7433_vm12, %v7409_v63, %v7059_v53  ;;  %v7378_v53 = vsel %vm7367_vm1, %v7345_v38, %v17282_v1 }
 0xb1d   : > { %7178 = vrot.lane.b32.xlu1 %v17335_v59, %s11178_s30  ;;  %7274 = vrot.lane.b32.xlu0 %v17331_v57, %s11176_s23  ;;  %v7411_v13 = vsel %vm7400_vm11, %v7378_v53, %v6965_v10 }
 0xb1f   : > { %v6967_v18 = vpop.permute.xlu1 %6966  ;;  %v7063_v42 = vpop.permute.xlu0 %7062 }
 0xb20   : > { %v7412_v23 = vsel %vm7400_vm11, %v7379_v4, %v6967_v18  ;;  %v7444_v1 = vsel %vm7433_vm12, %v7411_v13, %v7063_v42  ;;  %v19266_v13 = vld [vmem:[#allocation236_spill] sm:$0xff] }
 0xb21   : > { %7272 = vrot.lane.b32.xlu1 %v17335_v59, %s11176_s23  ;;  %6788 = vrot.lane.b32.xlu0 %v16981_v54, %s11174_s19 }
 0xb23   : > { %v7061_v44 = vpop.permute.xlu1 %7060  ;;  %v7157_v22 = vpop.permute.xlu0 %7156 }
 0xb24   : > { %v7443_v37 = vsel %vm7433_vm12, %v7410_v14, %v7061_v44  ;;  %v7475_v3 = vsel %vm7466_vm13, %v7442_v52, %v7157_v22  ;;  %v19262_v14 = vld [vmem:[#allocation210_spill] sm:$0xff]  ;;  %v19263_v52 = vld [vmem:[#allocation149_spill] sm:$0xff] }
 0xb25   : > { %7276 = vrot.lane.b32.xlu1 %v17358_v50, %s11176_s23  ;;  %6792 = vrot.lane.b32.xlu0 %v17133_v36, %s11174_s19 }
 0xb27   : > { %v7065_v20 = vpop.permute.xlu1 %7064  ;;  %v7161_v17 = vpop.permute.xlu0 %7160 }
 0xb28   : > { %v7445_v51 = vsel %vm7433_vm12, %v7412_v23, %v7065_v20  ;;  %v7477_v44 = vsel %vm7466_vm13, %v7444_v1, %v7161_v17  ;;  %v19267_v1 = vld [vmem:[#allocation246_spill] sm:$0xff] }
 0xb29   : > { %6790 = vrot.lane.b32.xlu1 %v17020_v34, %s11174_s19  ;;  %6886 = vrot.lane.b32.xlu0 %v17133_v36, %s11175_s22 }
 0xb2b   : > { %v7159_v25 = vpop.permute.xlu1 %7158  ;;  %v7255_v9 = vpop.permute.xlu0 %7254 }
 0xb2c   : > { %v7476_v49 = vsel %vm7466_vm13, %v7443_v37, %v7159_v25  ;;  %v7508_v61 = vsel %vm7499_vm14, %v7475_v3, %v7255_v9  ;;  %v6480_v37 = vsel %vm4233_vm10, %v19263_v52, %v19262_v14  ;;  %v19264_v3 = vld [vmem:[#allocation228_spill] sm:$0xff] }
 0xb2d   : > { %6794 = vrot.lane.b32.xlu1 %v17171_v2, %s11174_s19  ;;  %6890 = vrot.lane.b32.xlu0 %v17167_v12, %s11175_s22 }
 0xb2f   : > { %v7163_v26 = vpop.permute.xlu1 %7162  ;;  %v7259_v0 = vpop.permute.xlu0 %7258 }
 0xb30   : > { %v7478_v22 = vsel %vm7466_vm13, %v7445_v51, %v7163_v26  ;;  %v7510_v41 = vsel %vm7499_vm14, %v7477_v44, %v7259_v0 }
 0xb31   : > { %6888 = vrot.lane.b32.xlu1 %v17171_v2, %s11175_s22  ;;  %6984 = vrot.lane.b32.xlu0 %v17167_v12, %s11179_s14 }
 0xb33   : > { %v7257_v62 = vpop.permute.xlu1 %7256  ;;  %v17397_v55 = vpop.permute.xlu0 %6772 }
 0xb34   : > { %v7509_v5 = vsel %vm7499_vm14, %v7476_v49, %v7257_v62  ;;  %v6525_v49 = vsel %vm6492_vm3, %v6480_v37, %v19264_v3  ;;  %v19274_v37 = vld [vmem:[#allocation127_spill] sm:$0xff] }
 0xb35   : > { %v17406_v60 = vpack.c.bf16 %v7509_v5, %v7508_v61  ;;  %6892 = vrot.lane.b32.xlu1 %v17194_v47, %s11175_s22  ;;  %6988 = vrot.lane.b32.xlu0 %v17297_v35, %s11179_s14 }
 0xb37   : > { %v7569_v10 = vunpack.c.l.bf16 %v17406_v60  ;;  %v7570_v18 = vunpack.c.h.bf16 %v17406_v60  ;;  %v7261_v25 = vpop.permute.xlu1 %7260  ;;  %v17418_v9 = vpop.permute.xlu0 %6776 }
 0xb38   : > { %v7511_v21 = vsel %vm7499_vm14, %v7478_v22, %v7261_v25  ;;  %v19269_v25 = vld [vmem:[#allocation153_spill] sm:$0xff] }
 0xb39   : > { %v7601_v28 = vsub.f32 %v7508_v61, %v7569_v10  ;;  %v7602_v11 = vsub.f32 %v7509_v5, %v7570_v18  ;;  %v17422_v42 = vpack.c.bf16 %v7511_v21, %v7510_v41  ;;  %6986 = vrot.lane.b32.xlu1 %v17194_v47, %s11179_s14  ;;  %7082 = vrot.lane.b32.xlu0 %v17297_v35, %s11177_s29  ;;  %v19265_v61 = vld [vmem:[#allocation193_spill] sm:$0xff]  ;;  %v19268_v18 = vld [vmem:[#allocation211_spill] sm:$0xff] }
 0xb3a   : > { %v6570_v5 = vsel %vm6537_vm5, %v6525_v49, %v19265_v61  ;;  %v19276_v49 = vld [vmem:[#allocation238_spill] sm:$0xff]  ;;  %v19277_v61 = vld [vmem:[#allocation239_spill] sm:$0xff] }
 0xb3b   : > { %v7629_v20 = vpack.c.bf16 %v7602_v11, %v7601_v28  ;;  %v7571_v17 = vunpack.c.l.bf16 %v17422_v42  ;;  %v7572_v26 = vunpack.c.h.bf16 %v17422_v42  ;;  %v17430_v63 = vpop.permute.xlu1 %6774  ;;  %v17432_v0 = vpop.permute.xlu0 %6870  ;;  %v6614_v23 = vsel %vm948_vm2, %v6570_v5, %v19266_v13  ;;  %v19271_v28 = vld [vmem:[#allocation155_spill] sm:$0xff]  ;;  %v19278_v13 = vld [vmem:[#allocation248_spill] sm:$0xff] }
 0xb3c   : > { %v6659_v51 = vsel %vm6626_vm6, %v6614_v23, %v19267_v1  ;;  %v19279_v1 = vld [vmem:[#allocation134_spill] sm:$0xff] }
 0xb3d   : > { %v7603_v38 = vsub.f32 %v7510_v41, %v7571_v17  ;;  %v7604_v7 = vsub.f32 %v7511_v21, %v7572_v26  ;;  %6990 = vrot.lane.b32.xlu1 %v17335_v59, %s11179_s14  ;;  %7086 = vrot.lane.b32.xlu0 %v17331_v57, %s11177_s29  ;;  %v17461_v10 = vsel %vm6671_vm7, %v6659_v51, %v16886_v40  ;;  %v19270_v21 = vld [vmem:[#allocation154_spill] sm:$0xff]  ;;  %v19273_v26 = vld [vmem:[#allocation171_spill] sm:$0xff] }
 0xb3e   : > { %10442 = vmatprep.mubr.msk.bf16.mxu1 %vm7681_vm8, %v7629_v20  ;;  %v6482_v41 = vsel %vm4233_vm10, %v19269_v25, %v19268_v18  ;;  %v6481_v11 = vsel %vm4233_vm10, %v19271_v28, %v19270_v21  ;;  %v19272_v20 = vld [vmem:[#allocation229_spill] sm:$0xff]  ;;  %v19280_v28 = vld [vmem:[#allocation159_spill] sm:$0xff] }
 0xb3f   : > { %v7630_v62 = vpack.c.bf16 %v7604_v7, %v7603_v38  ;;  %v17444_v53 = vpop.permute.xlu1 %6778  ;;  %v17446_v4 = vpop.permute.xlu0 %6874  ;;  %v6527_v17 = vsel %vm6492_vm3, %v6482_v41, %v19272_v20  ;;  %v6526_v40 = vsel %vm6492_vm3, %v6481_v11, %v19273_v26  ;;  %v19275_v7 = vld [vmem:[#allocation129_spill] sm:$0xff] }
 0xb40   : > { %v6572_v38 = vsel %vm6537_vm5, %v6527_v17, %v19274_v37  ;;  %v6571_v3 = vsel %vm6537_vm5, %v6526_v40, %v19275_v7  ;;  %v19281_v11 = vld [vmem:[#allocation161_spill] sm:$0xff]  ;;  %v19282_v17 = vld [vmem:[#allocation172_spill] sm:$0xff] }
 0xb41   : > { %7084 = vrot.lane.b32.xlu1 %v17335_v59, %s11177_s29  ;;  %7180 = vrot.lane.b32.xlu0 %v17331_v57, %s11178_s30  ;;  %v6615_v5 = vsel %vm948_vm2, %v6571_v3, %v19277_v61  ;;  %v6483_v20 = vsel %vm4233_vm10, %v19281_v11, %v19280_v28  ;;  %v19283_v37 = vld [vmem:[#allocation133_spill] sm:$0xff] }
 0xb42   : > { %10443 = vmatmul.mubr.msk.bf16.gmra.mrb[48].mxu1 %vm7681_vm8, %v7630_v62  ;;  %v6616_v62 = vsel %vm948_vm2, %v6572_v38, %v19276_v49  ;;  %v6660_v51 = vsel %vm6626_vm6, %v6615_v5, %v19279_v1  ;;  %v6528_v26 = vsel %vm6492_vm3, %v6483_v20, %v19282_v17  ;;  %v7348_v1 = vsel %vm7334_vm0, %v16695_v15, %v17430_v63 }
 0xb43   : > { %v6873_v44 = vpop.permute.xlu1 %6872  ;;  %v6969_v22 = vpop.permute.xlu0 %6968  ;;  %v6661_v23 = vsel %vm6626_vm6, %v6616_v62, %v19278_v13  ;;  %v17499_v21 = vsel %vm6671_vm7, %v6660_v51, %v16900_v19  ;;  %v6573_v38 = vsel %vm6537_vm5, %v6528_v26, %v19283_v37  ;;  %v19284_v19 = vld [vmem:[#allocation241_spill] sm:$0xff]  ;;  %v7350_v15 = vsel %vm7334_vm0, %v16735_v30, %v17444_v53 }
 0xb44   : > { %v17495_v41 = vsel %vm6671_vm7, %v6661_v23, %v16894_v46  ;;  %v6617_v7 = vsel %vm948_vm2, %v6573_v38, %v19284_v19  ;;  %v7381_v20 = vsel %vm7367_vm1, %v7348_v1, %v6873_v44  ;;  %v7649_v53 = vunpack.c.h.bf16 %v16553_v27 }
 0xb45   : > { %7088 = vrot.lane.b32.xlu1 %v17358_v50, %s11177_s29  ;;  %7184 = vrot.lane.b32.xlu0 %v17461_v10, %s11178_s30  ;;  %v6662_v3 = vsel %vm6626_vm6, %v6617_v7, %v16492_v45 }
 0xb46   : > { %v17522_v61 = vsel %vm6671_vm7, %v6662_v3, %v16911_v48  ;;  %v7347_v48 = vsel %vm7334_vm0, %v16649_v33, %v17397_v55  ;;  %v7349_v33 = vsel %vm7334_vm0, %v16692_v43, %v17418_v9  ;;  %v7648_v9 = vunpack.c.l.bf16 %v16553_v27  ;;  %v11139_v3 = vld [vmem:[%s18441_s12] sm:$0xff] }
 0xb47   : > { %v6877_v14 = vpop.permute.xlu1 %6876  ;;  %v6973_v52 = vpop.permute.xlu0 %6972  ;;  %v7380_v11 = vsel %vm7367_vm1, %v7347_v48, %v17432_v0  ;;  %v7382_v0 = vsel %vm7367_vm1, %v7349_v33, %v17446_v4 }
 0xb48   : > { %v7413_v17 = vsel %vm7400_vm11, %v7380_v11, %v6969_v22  ;;  %v7383_v44 = vsel %vm7367_vm1, %v7350_v15, %v6877_v14 }
 0xb49   : > { %7182 = vrot.lane.b32.xlu1 %v17358_v50, %s11178_s30  ;;  %7278 = vrot.lane.b32.xlu0 %v17461_v10, %s11176_s23 }
 0xb4b   : > { %v6971_v18 = vpop.permute.xlu1 %6970  ;;  %v7067_v25 = vpop.permute.xlu0 %7066 }
 0xb4c   : > { %v7414_v26 = vsel %vm7400_vm11, %v7381_v20, %v6971_v18  ;;  %v7446_v55 = vsel %vm7433_vm12, %v7413_v17, %v7067_v25  ;;  %v7415_v25 = vsel %vm7400_vm11, %v7382_v0, %v6973_v52  ;;  %v11140_v52 = vld [vmem:[%s18441_s12 + $0x8] sm:$0xff]  ;;  %v7651_v0 = vunpack.c.h.bf16 %v16577_v31 }
 0xb4d   : > { %7186 = vrot.lane.b32.xlu1 %v17499_v21, %s11178_s30  ;;  %7282 = vrot.lane.b32.xlu0 %v17495_v41, %s11176_s23 }
 0xb4f   : > { %v6975_v40 = vpop.permute.xlu1 %6974  ;;  %v7071_v46 = vpop.permute.xlu0 %7070 }
 0xb50   : > { %v7416_v4 = vsel %vm7400_vm11, %v7383_v44, %v6975_v40  ;;  %v7448_v19 = vsel %vm7433_vm12, %v7415_v25, %v7071_v46  ;;  %v7662_v40 = vsub.f32 %v11140_v52, %v7649_v53  ;;  %v19287_v44 = vld [vmem:[#allocation212_spill] sm:$0xff]  ;;  %v11141_v53 = vld [vmem:[%s18441_s12 + $0x10] sm:$0xff] }
 0xb51   : > { %7280 = vrot.lane.b32.xlu1 %v17499_v21, %s11176_s23  ;;  %6796 = vrot.lane.b32.xlu0 %v17167_v12, %s11174_s19 }
 0xb53   : > { %v7069_v49 = vpop.permute.xlu1 %7068  ;;  %v7165_v62 = vpop.permute.xlu0 %7164 }
 0xb54   : > { %v7447_v63 = vsel %vm7433_vm12, %v7414_v26, %v7069_v49  ;;  %v7479_v22 = vsel %vm7466_vm13, %v7446_v55, %v7165_v62  ;;  %v7661_v49 = vsub.f32 %v11139_v3, %v7648_v9 }
 0xb55   : > { %7284 = vrot.lane.b32.xlu1 %v17522_v61, %s11176_s23  ;;  %6800 = vrot.lane.b32.xlu0 %v17297_v35, %s11174_s19 }
 0xb56   : > { %v7674_v20 = vpack.c.bf16 %v7662_v40, %v7661_v49  ;;  %v19290_v40 = vld [vmem:[#allocation130_spill] sm:$0xff] }
 0xb57   : > { %v7073_v5 = vpop.permute.xlu1 %7072  ;;  %v7169_v13 = vpop.permute.xlu0 %7168 }
 0xb58   : > { %v7449_v7 = vsel %vm7433_vm12, %v7416_v4, %v7073_v5  ;;  %v7481_v62 = vsel %vm7466_vm13, %v7448_v19, %v7169_v13  ;;  %10466 = vmatprep.subr.bf16.mxu1 %v7674_v20  ;;  %v11142_v4 = vld [vmem:[%s18441_s12 + $0x18] sm:$0xff] }
 0xb59   : > { %6798 = vrot.lane.b32.xlu1 %v17194_v47, %s11174_s19  ;;  %6894 = vrot.lane.b32.xlu0 %v17297_v35, %s11175_s22  ;;  %v7664_v19 = vsub.f32 %v11142_v4, %v7651_v0 }
 0xb5a   : > { %10467 = vmatpush3.bf16.msra.mxu1 %v7674_v20 }
 0xb5b   : > { %v7167_v45 = vpop.permute.xlu1 %7166  ;;  %v7263_v23 = vpop.permute.xlu0 %7262 }
 0xb5c   : > { %v7480_v18 = vsel %vm7466_vm13, %v7447_v63, %v7167_v45  ;;  %v7512_v43 = vsel %vm7499_vm14, %v7479_v22, %v7263_v23  ;;  %v7650_v63 = vunpack.c.l.bf16 %v16577_v31  ;;  %v19288_v22 = vld [vmem:[#allocation156_spill] sm:$0xff] }
 0xb5d   : > { %6802 = vrot.lane.b32.xlu1 %v17335_v59, %s11174_s19  ;;  %6898 = vrot.lane.b32.xlu0 %v17331_v57, %s11175_s22 }
 0xb5e   : > { %v7663_v25 = vsub.f32 %v11141_v53, %v7650_v63  ;;  %v19299_v53 = vld [vmem:[#allocation112_spill] sm:$0xff] }
 0xb5f   : > { %v7171_v51 = vpop.permute.xlu1 %7170  ;;  %v7267_v28 = vpop.permute.xlu0 %7266  ;;  %v7653_v4 = vunpack.c.h.bf16 %v19299_v53 }
 0xb60   : > { %v7482_v45 = vsel %vm7466_vm13, %v7449_v7, %v7171_v51  ;;  %v7514_v1 = vsel %vm7499_vm14, %v7481_v62, %v7267_v28  ;;  %v7675_v52 = vpack.c.bf16 %v7664_v19, %v7663_v25  ;;  %v7652_v25 = vunpack.c.l.bf16 %v19299_v53  ;;  %v19300_v19 = vld [vmem:[#allocation147_spill] sm:$0xff] }
 0xb61   : > { %6896 = vrot.lane.b32.xlu1 %v17335_v59, %s11175_s22  ;;  %6992 = vrot.lane.b32.xlu0 %v17331_v57, %s11179_s14 }
 0xb62   : > { %10468 = vmatprep.subr.bf16.mxu1 %v7675_v52 }
 0xb63   : > { %v7265_v37 = vpop.permute.xlu1 %7264  ;;  %v17564_v38 = vpop.permute.xlu0 %6780  ;;  %10469 = vmatpush3.bf16.msra.mxu1 %v7675_v52  ;;  %v11143_v52 = vld [vmem:[%s18441_s12 + $0x20] sm:$0xff] }
 0xb64   : > { %v7513_v30 = vsel %vm7499_vm14, %v7480_v18, %v7265_v37  ;;  %v6484_v18 = vsel %vm4233_vm10, %v19288_v22, %v19287_v44  ;;  %v19296_v44 = vld [vmem:[#allocation136_spill] sm:$0xff]  ;;  %v19297_v22 = vld [vmem:[#allocation179_spill] sm:$0xff] }
 0xb65   : > { %v17572_v14 = vpack.c.bf16 %v7513_v30, %v7512_v43  ;;  %6900 = vrot.lane.b32.xlu1 %v17358_v50, %s11175_s22  ;;  %6996 = vrot.lane.b32.xlu0 %v17461_v10, %s11179_s14 }
 0xb67   : > { %19285 = vst [vmem:[#allocation185_spill] sm:$0xff] %v17572_v14  ;;  %v7573_v23 = vunpack.c.l.bf16 %v17572_v14  ;;  %v7574_v46 = vunpack.c.h.bf16 %v17572_v14  ;;  %v7269_v48 = vpop.permute.xlu1 %7268  ;;  %v17590_v5 = vpop.permute.xlu0 %6784  ;;  %v19310_v14 = vld [vmem:[#allocation142_spill] sm:$0xff] }
 0xb68   : > { %v7515_v11 = vsel %vm7499_vm14, %v7482_v45, %v7269_v48  ;;  %v19291_v45 = vld [vmem:[#allocation240_spill] sm:$0xff] }
 0xb69   : > { %v7605_v17 = vsub.f32 %v7512_v43, %v7573_v23  ;;  %v7606_v26 = vsub.f32 %v7513_v30, %v7574_v46  ;;  %v17594_v33 = vpack.c.bf16 %v7515_v11, %v7514_v1  ;;  %6994 = vrot.lane.b32.xlu1 %v17358_v50, %s11179_s14  ;;  %7090 = vrot.lane.b32.xlu0 %v17461_v10, %s11177_s29  ;;  %v19289_v30 = vld [vmem:[#allocation173_spill] sm:$0xff] }
 0xb6a   : > { %v6529_v9 = vsel %vm6492_vm3, %v6484_v18, %v19289_v30  ;;  %v19292_v46 = vld [vmem:[#allocation113_spill] sm:$0xff] }
 0xb6b   : > { %19286 = vst [vmem:[#allocation186_spill] sm:$0xff] %v17594_v33  ;;  %v7631_v13 = vpack.c.bf16 %v7606_v26, %v7605_v17  ;;  %v7575_v51 = vunpack.c.l.bf16 %v17594_v33  ;;  %v7576_v15 = vunpack.c.h.bf16 %v17594_v33  ;;  %v17602_v28 = vpop.permute.xlu1 %6782  ;;  %v17604_v55 = vpop.permute.xlu0 %6878  ;;  %v6574_v62 = vsel %vm6537_vm5, %v6529_v9, %v19290_v40  ;;  %v19293_v17 = vld [vmem:[#allocation162_spill] sm:$0xff]  ;;  %v19294_v26 = vld [vmem:[#allocation164_spill] sm:$0xff] }
 0xb6c   : > { %v6618_v23 = vsel %vm948_vm2, %v6574_v62, %v19291_v45  ;;  %v7665_v40 = vsub.f32 %v11143_v52, %v7652_v25  ;;  %v11144_v62 = vld [vmem:[%s18441_s12 + $0x28] sm:$0xff] }
 0xb6d   : > { %v7607_v37 = vsub.f32 %v7514_v1, %v7575_v51  ;;  %v7608_v43 = vsub.f32 %v7515_v11, %v7576_v15  ;;  %6998 = vrot.lane.b32.xlu1 %v17499_v21, %s11179_s14  ;;  %7094 = vrot.lane.b32.xlu0 %v17495_v41, %s11177_s29  ;;  %v6663_v48 = vsel %vm6626_vm6, %v6618_v23, %v19292_v46  ;;  %v19295_v51 = vld [vmem:[#allocation174_spill] sm:$0xff]  ;;  %v11145_v23 = vld [vmem:[#allocation3 + $0x2a0] sm:$0xff] }
 0xb6e   : > { %10446 = vmatprep.mubr.msk.bf16.mxu1 %vm7681_vm8, %v7631_v13  ;;  %v17645_v20 = vsel %vm6671_vm7, %v6663_v48, %v16906_v16  ;;  %v6485_v13 = vsel %vm4233_vm10, %v19294_v26, %v19293_v17  ;;  %v7666_v45 = vsub.f32 %v11144_v62, %v7653_v4  ;;  %v5033_v46 = vrot.slane %v11145_v23, 5  ;;  %v11146_v48 = vld [vmem:[#allocation3 + $0x2a8] sm:$0xff]  ;;  %v11149_v4 = vld [vmem:[#allocation3 + $0x2b0] sm:$0xff] }
 0xb6f   : > { %v7632_v7 = vpack.c.bf16 %v7608_v43, %v7607_v37  ;;  %v17624_v3 = vpop.permute.xlu1 %6786  ;;  %v17626_v49 = vpop.permute.xlu0 %6882  ;;  %v6530_v15 = vsel %vm6492_vm3, %v6485_v13, %v19295_v51  ;;  %v19298_v37 = vld [vmem:[#allocation182_spill] sm:$0xff]  ;;  %v5034_v17 = vrot.slane %v11146_v48, 5 }
 0xb70   : > { %v6575_v16 = vsel %vm6537_vm5, %v6530_v15, %v19296_v44  ;;  %v7676_v51 = vpack.c.bf16 %v7666_v45, %v7665_v40  ;;  %v19301_v15 = vld [vmem:[#allocation137_spill] sm:$0xff]  ;;  %v19302_v45 = vld [vmem:[#allocation62_spill] sm:$0xff] }
 0xb71   : > { %7092 = vrot.lane.b32.xlu1 %v17499_v21, %s11177_s29  ;;  %7188 = vrot.lane.b32.xlu0 %v17495_v41, %s11178_s30  ;;  %v6619_v18 = vsel %vm948_vm2, %v6575_v16, %v19297_v22  ;;  %v7654_v44 = vunpack.c.l.bf16 %v19301_v15  ;;  %v7655_v16 = vunpack.c.h.bf16 %v19301_v15  ;;  %v5035_v22 = vsel %vm4927_vm15, %v5033_v46, %v5034_v17 }
 0xb72   : > { %10447 = vmatmul.mubr.msk.bf16.gmra.mrb[52].mxu1 %vm7681_vm8, %v7632_v7  ;;  %v6664_v43 = vsel %vm6626_vm6, %v6619_v18, %v19298_v37  ;;  %10470 = vmatprep.subr.bf16.mxu1 %v7676_v51  ;;  %v11147_v18 = vld [vmem:[%s18441_s12 + $0x30] sm:$0xff]  ;;  %v6490_v23 = vsel %vm4233_vm10, %v5035_v22, %v19302_v45 }
 0xb73   : > { %v17639_v1 = vpop.permute.xlu1 %6880  ;;  %v17641_v11 = vpop.permute.xlu0 %6976  ;;  %v17678_v7 = vsel %vm6671_vm7, %v6664_v43, %v19300_v19  ;;  %v7667_v37 = vsub.f32 %v11147_v18, %v7654_v44  ;;  %v11148_v43 = vld [vmem:[%s18441_s12 + $0x38] sm:$0xff]  ;;  %v5036_v19 = vrot.slane %v11149_v4, 5  ;;  %10471 = vmatpush3.bf16.msra.mxu1 %v7676_v51  ;;  %v19304_v51 = vld [vmem:[#allocation64_spill] sm:$0xff] }
 0xb74   : > { %v7668_v25 = vsub.f32 %v11148_v43, %v7655_v16  ;;  %v19303_v16 = vld [vmem:[#allocation66_spill] sm:$0xff] }
 0xb75   : > { %7096 = vrot.lane.b32.xlu1 %v17522_v61, %s11177_s29  ;;  %7192 = vrot.lane.b32.xlu0 %v17645_v20, %s11178_s30  ;;  %v5037_v46 = vsel %vm4927_vm15, %v5034_v17, %v5036_v19  ;;  %v6535_v18 = vsel %vm6492_vm3, %v6490_v23, %v19303_v16  ;;  %v19306_v17 = vld [vmem:[#allocation8_spill] sm:$0xff]  ;;  %v11151_v23 = vld [vmem:[%s18441_s12 + $0x48] sm:$0xff] }
 0xb76   : > { %v7677_v62 = vpack.c.bf16 %v7668_v25, %v7667_v37  ;;  %v6491_v22 = vsel %vm4233_vm10, %v5037_v46, %v19304_v51  ;;  %v19305_v37 = vld [vmem:[#allocation116_spill] sm:$0xff]  ;;  %v6580_v25 = vsel %vm6537_vm5, %v6535_v18, %v19306_v17  ;;  %v19308_v18 = vld [vmem:[#allocation70_spill] sm:$0xff] }
 0xb77   : > { %v17656_v63 = vpop.permute.xlu1 %6884  ;;  %v17658_v0 = vpop.permute.xlu0 %6980  ;;  %v7657_v43 = vunpack.c.h.bf16 %v19305_v37  ;;  %v19307_v46 = vld [vmem:[#allocation68_spill] sm:$0xff]  ;;  %v6624_v17 = vsel %vm948_vm2, %v6580_v25, %v19308_v18 }
 0xb78   : > { %10472 = vmatprep.subr.bf16.mxu1 %v7677_v62  ;;  %v6536_v51 = vsel %vm6492_vm3, %v6491_v22, %v19307_v46  ;;  %v19311_v46 = vld [vmem:[#allocation38_spill] sm:$0xff] }
 0xb79   : > { %7190 = vrot.lane.b32.xlu1 %v17522_v61, %s11178_s30  ;;  %7286 = vrot.lane.b32.xlu0 %v17645_v20, %s11176_s23  ;;  %v7670_v16 = vsub.f32 %v11151_v23, %v7657_v43  ;;  %v7352_v43 = vsel %vm7334_vm0, %v19310_v14, %v17602_v28  ;;  %v7353_v28 = vsel %vm7334_vm0, %v16836_v56, %v17590_v5 }
 0xb7a   : > { %10473 = vmatpush3.bf16.msra.mxu1 %v7677_v62  ;;  %v11150_v62 = vld [vmem:[%s18441_s12 + $0x40] sm:$0xff]  ;;  %v7385_v25 = vsel %vm7367_vm1, %v7352_v43, %v17639_v1 }
 0xb7b   : > { %v17670_v30 = vpop.permute.xlu1 %6978  ;;  %v17672_v9 = vpop.permute.xlu0 %7074  ;;  %v19314_v43 = vld [vmem:[#allocation72_spill] sm:$0xff] }
 0xb7c   : > { %v7418_v14 = vsel %vm7400_vm11, %v7385_v25, %v17670_v30  ;;  %v7386_v30 = vsel %vm7367_vm1, %v7353_v28, %v17626_v49 }
 0xb7d   : > { %7194 = vrot.lane.b32.xlu1 %v17678_v7, %s11178_s30  ;;  %6804 = vrot.lane.b32.xlu0 %v17331_v57, %s11174_s19 }
 0xb7f   : > { %v17690_v26 = vpop.permute.xlu1 %6982  ;;  %v17692_v13 = vpop.permute.xlu0 %7078 }
 0xb81   : > { %7288 = vrot.lane.b32.xlu1 %v17678_v7, %s11176_s23  ;;  %6808 = vrot.lane.b32.xlu0 %v17461_v10, %s11174_s19 }
 0xb83   : > { %v7077_v52 = vpop.permute.xlu1 %7076  ;;  %v7173_v40 = vpop.permute.xlu0 %7172 }
 0xb85   : > { %6806 = vrot.lane.b32.xlu1 %v17358_v50, %s11174_s19  ;;  %6902 = vrot.lane.b32.xlu0 %v17461_v10, %s11175_s22  ;;  %v7656_v10 = vunpack.c.l.bf16 %v19305_v37 }
 0xb87   : > { %v7081_v48 = vpop.permute.xlu1 %7080  ;;  %v7177_v44 = vpop.permute.xlu0 %7176  ;;  %v7669_v45 = vsub.f32 %v11150_v62, %v7656_v10  ;;  %v19309_v10 = vld [vmem:[#allocation114_spill] sm:$0xff] }
 0xb88   : > { %v7351_v62 = vsel %vm7334_vm0, %v19309_v10, %v17564_v38 }
 0xb89   : > { %6810 = vrot.lane.b32.xlu1 %v17499_v21, %s11174_s19  ;;  %6906 = vrot.lane.b32.xlu0 %v17495_v41, %s11175_s22  ;;  %v7678_v33 = vpack.c.bf16 %v7670_v16, %v7669_v45  ;;  %v19312_v45 = vld [vmem:[#allocation74_spill] sm:$0xff]  ;;  %s9810_s19 = sshll.u32 %s19397_s26, 8 }
 0xb8a   : > { %v6669_v16 = vsel %vm6626_vm6, %v6624_v17, %v19312_v45  ;;  %s18280_s21 = scalar_lea.vmem %s18442_s13, %s9810_s19 }
 0xb8b   : > { %v7175_v4 = vpop.permute.xlu1 %7174  ;;  %v7271_v19 = vpop.permute.xlu0 %7270  ;;  %10474 = vmatprep.subr.bf16.mxu1 %v7678_v33 }
 0xb8c   : > { %10475 = vmatpush3.bf16.msra.mxu1 %v7678_v33 }
 0xb8d   : > { %6904 = vrot.lane.b32.xlu1 %v17499_v21, %s11175_s22  ;;  %7000 = vrot.lane.b32.xlu0 %v17495_v41, %s11179_s14  ;;  %v6581_v21 = vsel %vm6537_vm5, %v6536_v51, %v19311_v46  ;;  %v7384_v41 = vsel %vm7367_vm1, %v7351_v62, %v17604_v55  ;;  %v7354_v55 = vsel %vm7334_vm0, %v16866_v29, %v17624_v3  ;;  %v19315_v46 = vld [vmem:[#allocation94_spill] sm:$0xff] }
 0xb8e   : > { %v7417_v38 = vsel %vm7400_vm11, %v7384_v41, %v17641_v11  ;;  %v7451_v11 = vsel %vm7433_vm12, %v7418_v14, %v7077_v52  ;;  %v7387_v51 = vsel %vm7367_vm1, %v7354_v55, %v17656_v63  ;;  %v7419_v29 = vsel %vm7400_vm11, %v7386_v30, %v17658_v0  ;;  %v17826_v30 = vld [vmem:[%s18438_s9] sm:$0xff] }
 0xb8f   : > { %v7179_v23 = vpop.permute.xlu1 %7178  ;;  %v7275_v22 = vpop.permute.xlu0 %7274  ;;  %v7450_v1 = vsel %vm7433_vm12, %v7417_v38, %v17672_v9  ;;  %v7484_v56 = vsel %vm7466_vm13, %v7451_v11, %v7175_v4  ;;  %v7420_v3 = vsel %vm7400_vm11, %v7387_v51, %v17690_v26  ;;  %v7452_v63 = vsel %vm7433_vm12, %v7419_v29, %v17692_v13  ;;  %v19316_v51 = vld [vmem:[#allocation183_spill] sm:$0xff] }
 0xb90   : > { %v7483_v18 = vsel %vm7466_vm13, %v7450_v1, %v7173_v40  ;;  %v7453_v9 = vsel %vm7433_vm12, %v7420_v3, %v7081_v48  ;;  %v7485_v0 = vsel %vm7466_vm13, %v7452_v63, %v7177_v44  ;;  %v19313_v48 = vld [vmem:[#allocation141_spill] sm:$0xff]  ;;  %v17833_v3 = vpack.c.bf16 %v17826_v30, %v17826_v30  ;;  %v19318_v63 = vld [vmem:[#allocation16_spill] sm:$0xff] }
 0xb91   : > { %6908 = vrot.lane.b32.xlu1 %v17522_v61, %s11175_s22  ;;  %7004 = vrot.lane.b32.xlu0 %v17645_v20, %s11179_s14  ;;  %v7516_v33 = vsel %vm7499_vm14, %v7483_v18, %v7271_v19  ;;  %v7486_v26 = vsel %vm7466_vm13, %v7453_v9, %v7179_v23  ;;  %v7658_v10 = vunpack.c.l.bf16 %v19313_v48  ;;  %v7659_v62 = vunpack.c.h.bf16 %v19313_v48  ;;  %v11154_v9 = vld [vmem:[%s18441_s12 + $0x60] sm:$0x3] }
 0xb92   : > { %v7518_v44 = vsel %vm7499_vm14, %v7485_v0, %v7275_v22  ;;  %v11153_v22 = vld [vmem:[%s18441_s12 + $0x58] sm:$0xff]  ;;  %v7660_v18 = vunpack.c.l.bf16 %v19316_v51  ;;  %10935 = vmatprep.subr.msk.bf16.mxu0 %vm1496_vm4, %v17833_v3 }
 0xb93   : > { %v7273_v5 = vpop.permute.xlu1 %7272  ;;  %v17777_v17 = vpop.permute.xlu0 %6788 }
 0xb94   : > { %v7517_v49 = vsel %vm7499_vm14, %v7484_v56, %v7273_v5  ;;  %v19317_v56 = vld [vmem:[#allocation76_spill] sm:$0xff]  ;;  %v7673_v0 = vsub.f32 %v11154_v9, %v7660_v18 }
 0xb95   : > { %v17788_v52 = vpack.c.bf16 %v7517_v49, %v7516_v33  ;;  %7002 = vrot.lane.b32.xlu1 %v17522_v61, %s11179_s14  ;;  %7098 = vrot.lane.b32.xlu0 %v17645_v20, %s11177_s29  ;;  %v6625_v61 = vsel %vm948_vm2, %v6581_v21, %v19314_v43  ;;  %v6714_v20 = vsel %vm6671_vm7, %v6669_v16, %v19315_v46  ;;  %v11152_v21 = vld [vmem:[%s18441_s12 + $0x50] sm:$0xff] }
 0xb96   : > { %v7671_v38 = vsub.f32 %v11152_v21, %v7658_v10  ;;  %v7672_v16 = vsub.f32 %v11153_v22, %v7659_v62  ;;  %v6670_v5 = vsel %vm6626_vm6, %v6625_v61, %v19317_v56  ;;  %v19319_v10 = vld [vmem:[#allocation95_spill] sm:$0xff]  ;;  %v19320_v43 = vld [vmem:[#allocation6_spill] sm:$0xff]  ;;  %v19323_v21 = vld [vmem:[#allocation9_spill] sm:$0xff] }
 0xb97   : > { %v7577_v40 = vunpack.c.l.bf16 %v17788_v52  ;;  %v7578_v4 = vunpack.c.h.bf16 %v17788_v52  ;;  %v7277_v19 = vpop.permute.xlu1 %7276  ;;  %v17798_v13 = vpop.permute.xlu0 %6792  ;;  %v6715_v62 = vsel %vm6671_vm7, %v6670_v5, %v19319_v10  ;;  %v19327_v56 = vld [vmem:[#allocation23_spill] sm:$0xff] }
 0xb98   : > { %v7519_v23 = vsel %vm7499_vm14, %v7486_v26, %v7277_v19  ;;  %v7679_v29 = vpack.c.bf16 %v7672_v16, %v7671_v38  ;;  %v17845_v26 = vsel %vm1496_vm4, %v17833_v3, 0  ;;  %v19324_v38 = vld [vmem:[#allocation22_spill] sm:$0xff]  ;;  %v19328_v5 = vld [vmem:[#allocation27_spill] sm:$0xff] }
 0xb99   : > { %v7609_v41 = vsub.f32 %v7516_v33, %v7577_v40  ;;  %v7610_v25 = vsub.f32 %v7517_v49, %v7578_v4  ;;  %v17808_v45 = vpack.c.bf16 %v7519_v23, %v7518_v44  ;;  %7006 = vrot.lane.b32.xlu1 %v17678_v7, %s11179_s14  ;;  %7298 = vrot.lane.b32.xlu0 %v6714_v20, %s11176_s23 }
 0xb9a   : > { %10476 = vmatprep.subr.bf16.mxu1 %v7679_v29  ;;  %10559 = vmatpush3.bf16.msra.mxu0 %v17845_v26 }
 0xb9b   : > { %v7633_v14 = vpack.c.bf16 %v7610_v25, %v7609_v41  ;;  %v7579_v28 = vunpack.c.l.bf16 %v17808_v45  ;;  %v7580_v55 = vunpack.c.h.bf16 %v17808_v45  ;;  %v6791_v1 = vpop.permute.xlu1 %6790  ;;  %v17821_v11 = vpop.permute.xlu0 %6886  ;;  %10477 = vmatpush3.bf16.msra.mxu1 %v7679_v29 }
 0xb9d   : > { %v7611_v33 = vsub.f32 %v7518_v44, %v7579_v28  ;;  %v7612_v49 = vsub.f32 %v7519_v23, %v7580_v55  ;;  %7100 = vrot.lane.b32.xlu1 %v17678_v7, %s11177_s29  ;;  %8480 = vrot.lane.b32.xlu0 %v19318_v63, %s11180_s28  ;;  %v7680_v7 = vpack.c.bf16 %v7673_v0, %v7673_v0  ;;  %v19321_v44 = vld [vmem:[#allocation17_spill] sm:$0xff]  ;;  %v19322_v23 = vld [vmem:[#allocation18_spill] sm:$0xff]  ;;  %v19326_v28 = vld [vmem:[#allocation12_spill] sm:$0xff] }
 0xb9e   : > { %10450 = vmatprep.mubr.msk.bf16.mxu1 %vm7681_vm8, %v7633_v14  ;;  %v19325_v14 = vld [vmem:[#allocation19_spill] sm:$0xff] }
 0xb9f   : > { %v7634_v40 = vpack.c.bf16 %v7612_v49, %v7611_v33  ;;  %v6795_v4 = vpop.permute.xlu1 %6794  ;;  %v6891_v19 = vpop.permute.xlu0 %6890  ;;  %v7943_v61 = vsel %vm2349_vm9, %v7680_v7, 0  ;;  %10933 = vmatprep.subr.msk.bf16.mxu1 %vm2349_vm9, %v7680_v7  ;;  %v19329_v49 = vld [vmem:[#allocation25_spill] sm:$0xff]  ;;  %v19330_v63 = vld [vmem:[#allocation31_spill] sm:$0xff] }
 0xba0   : > { %10479 = vmatpush3.bf16.msra.mxu1 %v7943_v61  ;;  %v19332_v7 = vld [vmem:[#allocation35_spill] sm:$0xff]  ;;  %v19334_v61 = vld [vmem:[#allocation14_spill] sm:$0xff] }
 0xba1   : > { %7300 = vrot.lane.b32.xlu1 %v6715_v62, %s11176_s23  ;;  %8484 = vrot.lane.b32.xlu0 %v19320_v43, %s11180_s28  ;;  %v19333_v43 = vld [vmem:[#allocation32_spill] sm:$0xff] }
 0xba2   : > { %10451 = vmatmul.mubr.msk.bf16.gmra.mrb[56].mxu1 %vm7681_vm8, %v7634_v40  ;;  %10512 = vmatprep.subr.bf16.mxu1 %v16553_v27  ;;  %v19331_v40 = vld [vmem:[#allocation28_spill] sm:$0xff] }
 0xba3   : > { %v6889_v46 = vpop.permute.xlu1 %6888  ;;  %v6985_v20 = vpop.permute.xlu0 %6984 }
 0xba5   : > { %8482 = vrot.lane.b32.xlu1 %v19321_v44, %s11180_s28  ;;  %8488 = vrot.lane.b32.xlu0 %v19322_v23, %s11180_s28  ;;  %v7355_v44 = vsel %vm7334_vm0, %v16938_v6, %v17777_v17  ;;  %v7356_v23 = vsel %vm7334_vm0, %v16985_v24, %v6791_v1  ;;  %v7357_v17 = vsel %vm7334_vm0, %v16981_v54, %v17798_v13 }
 0xba6   : > { %v7358_v1 = vsel %vm7334_vm0, %v17020_v34, %v6795_v4  ;;  %v19337_v4 = vld [vmem:[#allocation15_spill] sm:$0xff] }
 0xba7   : > { %v6893_v41 = vpop.permute.xlu1 %6892  ;;  %v6989_v25 = vpop.permute.xlu0 %6988 }
 0xba9   : > { %8486 = vrot.lane.b32.xlu1 %v19323_v21, %s11180_s28  ;;  %8492 = vrot.lane.b32.xlu0 %v19324_v38, %s11180_s28 }
 0xbab   : > { %v6987_v22 = vpop.permute.xlu1 %6986  ;;  %v7083_v16 = vpop.permute.xlu0 %7082 }
 0xbad   : > { %8490 = vrot.lane.b32.xlu1 %v19325_v14, %s11180_s28  ;;  %8496 = vrot.lane.b32.xlu0 %v19326_v28, %s11180_s28  ;;  %v7388_v14 = vsel %vm7367_vm1, %v7355_v44, %v17821_v11  ;;  %v7389_v28 = vsel %vm7367_vm1, %v7356_v23, %v6889_v46 }
 0xbaf   : > { %v6991_v55 = vpop.permute.xlu1 %6990  ;;  %v7087_v18 = vpop.permute.xlu0 %7086 }
 0xbb1   : > { %8494 = vrot.lane.b32.xlu1 %v19327_v56, %s11180_s28  ;;  %8500 = vrot.lane.b32.xlu0 %v19328_v5, %s11180_s28  ;;  %v7421_v56 = vsel %vm7400_vm11, %v7388_v14, %v6985_v20  ;;  %v7422_v5 = vsel %vm7400_vm11, %v7389_v28, %v6987_v22 }
 0xbb2   : > { %v7454_v6 = vsel %vm7433_vm12, %v7421_v56, %v7083_v16  ;;  %v7391_v16 = vsel %vm7367_vm1, %v7358_v1, %v6893_v41 }
 0xbb3   : > { %v7085_v29 = vpop.permute.xlu1 %7084  ;;  %v7181_v33 = vpop.permute.xlu0 %7180  ;;  %v7424_v13 = vsel %vm7400_vm11, %v7391_v16, %v6991_v55 }
 0xbb4   : > { %v7455_v24 = vsel %vm7433_vm12, %v7422_v5, %v7085_v29  ;;  %v7487_v11 = vsel %vm7466_vm13, %v7454_v6, %v7181_v33  ;;  %v19338_v33 = vld [vmem:[#allocation7_spill] sm:$0xff] }
 0xbb5   : > { %8498 = vrot.lane.b32.xlu1 %v19329_v49, %s11180_s28  ;;  %8504 = vrot.lane.b32.xlu0 %v19330_v63, %s11180_s28  ;;  %v19335_v49 = vld [vmem:[#allocation36_spill] sm:$0xff] }
 0xbb6   : > { %v19336_v63 = vld [vmem:[#allocation4_spill] sm:$0xff] }
 0xbb7   : > { %v7089_v9 = vpop.permute.xlu1 %7088  ;;  %v7185_v0 = vpop.permute.xlu0 %7184 }
 0xbb8   : > { %v7457_v41 = vsel %vm7433_vm12, %v7424_v13, %v7089_v9  ;;  %v19340_v9 = vld [vmem:[#allocation20_spill] sm:$0xff]  ;;  %v19346_v13 = vld [vmem:[#allocation29_spill] sm:$0xff] }
 0xbb9   : > { %8502 = vrot.lane.b32.xlu1 %v19331_v40, %s11180_s28  ;;  %8508 = vrot.lane.b32.xlu0 %v19332_v7, %s11180_s28  ;;  %v7390_v40 = vsel %vm7367_vm1, %v7357_v17, %v6891_v19  ;;  %v19342_v17 = vld [vmem:[#allocation24_spill] sm:$0xff] }
 0xbba   : > { %v7423_v54 = vsel %vm7400_vm11, %v7390_v40, %v6989_v25  ;;  %v19344_v40 = vld [vmem:[#allocation13_spill] sm:$0xff] }
 0xbbb   : > { %v7183_v10 = vpop.permute.xlu1 %7182  ;;  %v7279_v62 = vpop.permute.xlu0 %7278  ;;  %v7456_v19 = vsel %vm7433_vm12, %v7423_v54, %v7087_v18  ;;  %v19339_v18 = vld [vmem:[#allocation5_spill] sm:$0xff]  ;;  %v19345_v54 = vld [vmem:[#allocation11_spill] sm:$0xff] }
 0xbbc   : > { %v7488_v46 = vsel %vm7466_vm13, %v7455_v24, %v7183_v10  ;;  %v7520_v29 = vsel %vm7499_vm14, %v7487_v11, %v7279_v62  ;;  %v7489_v10 = vsel %vm7466_vm13, %v7456_v19, %v7185_v0  ;;  %v19341_v24 = vld [vmem:[#allocation10_spill] sm:$0xff] }
 0xbbd   : > { %8506 = vrot.lane.b32.xlu1 %v19333_v43, %s11180_s28  ;;  %8740 = vrot.lane.b32.xlu0 %v19334_v61, %s11180_s28 }
 0xbbf   : > { %v7187_v21 = vpop.permute.xlu1 %7186  ;;  %v7283_v38 = vpop.permute.xlu0 %7282 }
 0xbc0   : > { %v7490_v62 = vsel %vm7466_vm13, %v7457_v41, %v7187_v21  ;;  %v7522_v44 = vsel %vm7499_vm14, %v7489_v10, %v7283_v38  ;;  %v19347_v10 = vld [vmem:[#allocation26_spill] sm:$0xff] }
 0xbc1   : > { %8510 = vrot.lane.b32.xlu1 %v19335_v49, %s11180_s28  ;;  %8744 = vrot.lane.b32.xlu0 %v19336_v63, %s11180_s28 }
 0xbc3   : > { %v7281_v20 = vpop.permute.xlu1 %7280  ;;  %v17910_v22 = vpop.permute.xlu0 %6796 }
 0xbc4   : > { %v7521_v7 = vsel %vm7499_vm14, %v7488_v46, %v7281_v20  ;;  %v19343_v20 = vld [vmem:[#allocation21_spill] sm:$0xff] }
 0xbc5   : > { %v17918_v34 = vpack.c.bf16 %v7521_v7, %v7520_v29  ;;  %8742 = vrot.lane.b32.xlu1 %v19337_v4, %s11180_s28  ;;  %8748 = vrot.lane.b32.xlu0 %v19338_v33, %s11180_s28 }
 0xbc7   : > { %v7581_v25 = vunpack.c.l.bf16 %v17918_v34  ;;  %v7582_v55 = vunpack.c.h.bf16 %v17918_v34  ;;  %v7285_v43 = vpop.permute.xlu1 %7284  ;;  %v6801_v61 = vpop.permute.xlu0 %6800 }
 0xbc8   : > { %v7523_v23 = vsel %vm7499_vm14, %v7490_v62, %v7285_v43  ;;  %v19348_v62 = vld [vmem:[#allocation33_spill] sm:$0xff]  ;;  %v19349_v43 = vld [vmem:[#allocation30_spill] sm:$0xff] }
 0xbc9   : > { %v7613_v14 = vsub.f32 %v7520_v29, %v7581_v25  ;;  %v7614_v28 = vsub.f32 %v7521_v7, %v7582_v55  ;;  %v17932_v56 = vpack.c.bf16 %v7523_v23, %v7522_v44  ;;  %8746 = vrot.lane.b32.xlu1 %v19339_v18, %s11180_s28  ;;  %8752 = vrot.lane.b32.xlu0 %v19340_v9, %s11180_s28  ;;  %v8461_v7 = vunpack.c.l.bf16 %v17833_v3 }
 0xbcb   : > { %v7635_v0 = vpack.c.bf16 %v7614_v28, %v7613_v14  ;;  %v7583_v21 = vunpack.c.l.bf16 %v17932_v56  ;;  %v7584_v5 = vunpack.c.h.bf16 %v17932_v56  ;;  %v6799_v49 = vpop.permute.xlu1 %6798  ;;  %v6895_v63 = vpop.permute.xlu0 %6894  ;;  %v8462_v4 = vsub.f32 %v17826_v30, %v8461_v7 }
 0xbcd   : > { %v7615_v38 = vsub.f32 %v7522_v44, %v7583_v21  ;;  %v7616_v6 = vsub.f32 %v7523_v23, %v7584_v5  ;;  %8750 = vrot.lane.b32.xlu1 %v19341_v24, %s11180_s28  ;;  %8756 = vrot.lane.b32.xlu0 %v19342_v17, %s11180_s28  ;;  %v17956_v41 = vpack.c.bf16 %v8462_v4, %v8462_v4  ;;  %v19350_v23 = vld [vmem:[#allocation34_spill] sm:$0xff] }
 0xbce   : > { %10454 = vmatprep.mubr.msk.bf16.mxu1 %vm7681_vm8, %v7635_v0  ;;  %v7361_v0 = vsel %vm7334_vm0, %v17167_v12, %v6801_v61  ;;  %v7359_v12 = vsel %vm7334_vm0, %v17133_v36, %v17910_v22  ;;  %v7360_v61 = vsel %vm7334_vm0, %v17171_v2, %v6799_v49  ;;  %v19352_v22 = vld [vmem:[#allocation103_spill] sm:$0xff] }
 0xbcf   : > { %v7636_v1 = vpack.c.bf16 %v7616_v6, %v7615_v38  ;;  %v6803_v11 = vpop.permute.xlu1 %6802  ;;  %v6899_v46 = vpop.permute.xlu0 %6898  ;;  %10936 = vmatprep.subr.msk.bf16.mxu0 %vm1496_vm4, %v17956_v41  ;;  %v7392_v7 = vsel %vm7367_vm1, %v7359_v12, %v6895_v63 }
 0xbd0   : > { %v7394_v21 = vsel %vm7367_vm1, %v7361_v0, %v6899_v46  ;;  %v7362_v6 = vsel %vm7334_vm0, %v17194_v47, %v6803_v11 }
 0xbd1   : > { %8754 = vrot.lane.b32.xlu1 %v19343_v20, %s11180_s28  ;;  %8760 = vrot.lane.b32.xlu0 %v19344_v40, %s11180_s28 }
 0xbd2   : > { %10455 = vmatmul.mubr.msk.bf16.gmra.mrb[60].mxu1 %vm7681_vm8, %v7636_v1 }
 0xbd3   : > { %v6897_v16 = vpop.permute.xlu1 %6896  ;;  %v6993_v29 = vpop.permute.xlu0 %6992 }
 0xbd4   : > { %v7425_v4 = vsel %vm7400_vm11, %v7392_v7, %v6993_v29 }
 0xbd5   : > { %8758 = vrot.lane.b32.xlu1 %v19345_v54, %s11180_s28  ;;  %8764 = vrot.lane.b32.xlu0 %v19346_v13, %s11180_s28  ;;  %v7393_v54 = vsel %vm7367_vm1, %v7360_v61, %v6897_v16 }
 0xbd7   : > { %v6901_v33 = vpop.permute.xlu1 %6900  ;;  %v6997_v19 = vpop.permute.xlu0 %6996 }
 0xbd8   : > { %v7427_v24 = vsel %vm7400_vm11, %v7394_v21, %v6997_v19  ;;  %v7395_v17 = vsel %vm7367_vm1, %v7362_v6, %v6901_v33  ;;  %v19351_v19 = vld [vmem:[#allocation102_spill] sm:$0xff] }
 0xbd9   : > { %8762 = vrot.lane.b32.xlu1 %v19347_v10, %s11180_s28  ;;  %8768 = vrot.lane.b32.xlu0 %v19348_v62, %s11180_s28 }
 0xbdb   : > { %v6995_v25 = vpop.permute.xlu1 %6994  ;;  %v7091_v55 = vpop.permute.xlu0 %7090 }
 0xbdc   : > { %v7426_v33 = vsel %vm7400_vm11, %v7393_v54, %v6995_v25  ;;  %v7458_v49 = vsel %vm7433_vm12, %v7425_v4, %v7091_v55 }
 0xbdd   : > { %8766 = vrot.lane.b32.xlu1 %v19349_v43, %s11180_s28 }
 0xbdf   : > { %v6999_v44 = vpop.permute.xlu1 %6998  ;;  %v7095_v30 = vpop.permute.xlu0 %7094 }
 0xbe0   : > { %v7460_v1 = vsel %vm7433_vm12, %v7427_v24, %v7095_v30  ;;  %v7428_v20 = vsel %vm7400_vm11, %v7395_v17, %v6999_v44 }
 0xbe1   : > { %8770 = vrot.lane.b32.xlu1 %v19350_v23, %s11180_s28 }
 0xbe3   : > { %v7093_v14 = vpop.permute.xlu1 %7092  ;;  %v7189_v28 = vpop.permute.xlu0 %7188 }
 0xbe4   : > { %v7459_v10 = vsel %vm7433_vm12, %v7426_v33, %v7093_v14  ;;  %v7491_v63 = vsel %vm7466_vm13, %v7458_v49, %v7189_v28 }
 0xbe7   : > { %v7097_v18 = vpop.permute.xlu1 %7096  ;;  %v7193_v9 = vpop.permute.xlu0 %7192 }
 0xbe8   : > { %v7493_v40 = vsel %vm7466_vm13, %v7460_v1, %v7193_v9  ;;  %v7461_v46 = vsel %vm7433_vm12, %v7428_v20, %v7097_v18 }
 0xbe9   : > { %v7526_v36 = vsel %vm7499_vm14, %v7493_v40, %v19351_v19 }
 0xbeb   : > { %v7191_v5 = vpop.permute.xlu1 %7190  ;;  %v7287_v38 = vpop.permute.xlu0 %7286 }
 0xbec   : > { %v7492_v16 = vsel %vm7466_vm13, %v7459_v10, %v7191_v5  ;;  %v7524_v25 = vsel %vm7499_vm14, %v7491_v63, %v7287_v38  ;;  %v19353_v63 = vld [vmem:[#allocation106_spill] sm:$0xff] }
 0xbef   : > { %v7195_v47 = vpop.permute.xlu1 %7194  ;;  %v6805_v11 = vpop.permute.xlu0 %6804 }
 0xbf0   : > { %v7494_v13 = vsel %vm7466_vm13, %v7461_v46, %v7195_v47  ;;  %v7363_v7 = vsel %vm7334_vm0, %v17297_v35, %v6805_v11 }
 0xbf1   : > { %v7527_v2 = vsel %vm7499_vm14, %v7494_v13, %v19352_v22 }
 0xbf2   : > { %v17995_v62 = vpack.c.bf16 %v7527_v2, %v7526_v36 }
 0xbf3   : > { %v7289_v43 = vpop.permute.xlu1 %7288  ;;  %v6809_v29 = vpop.permute.xlu0 %6808 }
 0xbf4   : > { %v7587_v44 = vunpack.c.l.bf16 %v17995_v62  ;;  %v7588_v30 = vunpack.c.h.bf16 %v17995_v62  ;;  %v7525_v23 = vsel %vm7499_vm14, %v7492_v16, %v7289_v43  ;;  %v7365_v13 = vsel %vm7334_vm0, %v17331_v57, %v6809_v29 }
 0xbf5   : > { %v18003_v18 = vpack.c.bf16 %v7525_v23, %v7524_v25 }
 0xbf6   : > { %v7619_v0 = vsub.f32 %v7526_v36, %v7587_v44  ;;  %v7620_v21 = vsub.f32 %v7527_v2, %v7588_v30  ;;  %v19355_v30 = vld [vmem:[#allocation105_spill] sm:$0xff] }
 0xbf7   : > { %v7585_v55 = vunpack.c.l.bf16 %v18003_v18  ;;  %v7586_v14 = vunpack.c.h.bf16 %v18003_v18  ;;  %v6807_v9 = vpop.permute.xlu1 %6806  ;;  %v6903_v28 = vpop.permute.xlu0 %6902 }
 0xbf8   : > { %v7638_v1 = vpack.c.bf16 %v7620_v21, %v7619_v0  ;;  %v7396_v54 = vsel %vm7367_vm1, %v7363_v7, %v6903_v28  ;;  %v7364_v35 = vsel %vm7334_vm0, %v17335_v59, %v6807_v9  ;;  %v19357_v9 = vld [vmem:[#allocation110_spill] sm:$0xff]  ;;  %v19358_v0 = vld [vmem:[#allocation111_spill] sm:$0xff] }
 0xbf9   : > { %v7617_v5 = vsub.f32 %v7524_v25, %v7585_v55  ;;  %v7618_v6 = vsub.f32 %v7525_v23, %v7586_v14  ;;  %v19354_v25 = vld [vmem:[#allocation104_spill] sm:$0xff]  ;;  %v19356_v55 = vld [vmem:[#allocation107_spill] sm:$0xff] }
 0xbfb   : > { %v7637_v24 = vpack.c.bf16 %v7618_v6, %v7617_v5  ;;  %v6811_v38 = vpop.permute.xlu1 %6810  ;;  %v6907_v17 = vpop.permute.xlu0 %6906  ;;  %v19359_v5 = vld [vmem:[#allocation108_spill] sm:$0xff] }
 0xbfc   : > { %v7366_v4 = vsel %vm7334_vm0, %v17358_v50, %v6811_v38  ;;  %v7398_v22 = vsel %vm7367_vm1, %v7365_v13, %v6907_v17  ;;  %v19360_v38 = vld [vmem:[#allocation109_spill] sm:$0xff] }
 0xbfd   : > { %10458 = vmatprep.mubr.msk.bf16.mxu1 %vm7681_vm8, %v7637_v24 }
 0xbfe   : > { %10459 = vmatmul.mubr.msk.bf16.gmra.mrb[64].mxu1 %vm7681_vm8, %v7638_v1 }
 0xbff   : > { %v6905_v20 = vpop.permute.xlu1 %6904  ;;  %v7001_v40 = vpop.permute.xlu0 %7000 }
 0xc00   : > { %v7429_v33 = vsel %vm7400_vm11, %v7396_v54, %v7001_v40  ;;  %v7397_v10 = vsel %vm7367_vm1, %v7364_v35, %v6905_v20 }
 0xc03   : > { %v6909_v12 = vpop.permute.xlu1 %6908  ;;  %v7005_v61 = vpop.permute.xlu0 %7004 }
 0xc04   : > { %v7399_v2 = vsel %vm7367_vm1, %v7366_v4, %v6909_v12  ;;  %v7431_v11 = vsel %vm7400_vm11, %v7398_v22, %v7005_v61 }
 0xc05   : > { %v7464_v44 = vsel %vm7433_vm12, %v7431_v11, %v19354_v25 }
 0xc06   : > { %v7497_v6 = vsel %vm7466_vm13, %v7464_v44, %v19359_v5 }
 0xc07   : > { %v7003_v46 = vpop.permute.xlu1 %7002  ;;  %v7099_v47 = vpop.permute.xlu0 %7098 }
 0xc08   : > { %v7462_v49 = vsel %vm7433_vm12, %v7429_v33, %v7099_v47  ;;  %v7430_v50 = vsel %vm7400_vm11, %v7397_v10, %v7003_v46  ;;  %v8821_v47 = vsel %vm1496_vm4, %v17956_v41, 0 }
 0xc09   : > { %v7495_v16 = vsel %vm7466_vm13, %v7462_v49, %v19353_v63 }
 0xc0a   : > { %v7528_v28 = vsel %vm7499_vm14, %v7495_v16, %v19357_v9 }
 0xc0b   : > { %v7007_v19 = vpop.permute.xlu1 %7006  ;;  %v7299_v36 = vpop.permute.xlu0 %7298 }
 0xc0c   : > { %v7432_v57 = vsel %vm7400_vm11, %v7399_v2, %v7007_v19  ;;  %v7530_v20 = vsel %vm7499_vm14, %v7497_v6, %v7299_v36 }
 0xc0d   : > { %v7465_v23 = vsel %vm7433_vm12, %v7432_v57, %v19355_v30 }
 0xc0e   : > { %v7498_v17 = vsel %vm7466_vm13, %v7465_v23, %v19360_v38 }
 0xc0f   : > { %v7101_v43 = vpop.permute.xlu1 %7100  ;;  %v8481_v29 = vpop.permute.xlu0 %8480 }
 0xc10   : > { %v7463_v59 = vsel %vm7433_vm12, %v7430_v50, %v7101_v43  ;;  %10560 = vmatprep.mubr.msk.bf16.mxu0 %vm948_vm2, %v8481_v29 }
 0xc11   : > { %v7496_v14 = vsel %vm7466_vm13, %v7463_v59, %v19356_v55 }
 0xc12   : > { %v7529_v21 = vsel %vm7499_vm14, %v7496_v14, %v19358_v0 }
 0xc13   : > { %v18042_v24 = vpack.c.bf16 %v7529_v21, %v7528_v28  ;;  %v7301_v1 = vpop.permute.xlu1 %7300  ;;  %v8485_v19 = vpop.permute.xlu0 %8484 }
 0xc14   : > { %v7531_v40 = vsel %vm7499_vm14, %v7498_v17, %v7301_v1 }
 0xc15   : > { %v7590_v12 = vunpack.c.h.bf16 %v18042_v24  ;;  %v18049_v61 = vpack.c.bf16 %v7531_v40, %v7530_v20  ;;  %v7589_v46 = vunpack.c.l.bf16 %v18042_v24 }
 0xc17   : > { %v7622_v7 = vsub.f32 %v7529_v21, %v7590_v12  ;;  %v7591_v54 = vunpack.c.l.bf16 %v18049_v61  ;;  %v7592_v13 = vunpack.c.h.bf16 %v18049_v61  ;;  %v8483_v4 = vpop.permute.xlu1 %8482  ;;  %v7621_v33 = vsub.f32 %v7528_v28, %v7589_v46  ;;  %v8489_v35 = vpop.permute.xlu0 %8488 }
 0xc18   : > { %10561 = vmatmul.mubr.msk.bf16.vlgmr.msra.gmra.mrb[40].mxu0 %vm948_vm2, %v8483_v4 }
 0xc19   : > { %v7623_v36 = vsub.f32 %v7530_v20, %v7591_v54  ;;  %v7624_v22 = vsub.f32 %v7531_v40, %v7592_v13  ;;  %10564 = vmatprep.mubr.msk.bf16.mxu0 %vm948_vm2, %v8485_v19  ;;  %v7639_v2 = vpack.c.bf16 %v7622_v7, %v7621_v33  ;;  %10593 = vmatpush3.bf16.msra.mxu0 %v8821_v47 }
 0xc1a   : > { %10937 = vmatprep.subr.msk.bf16.mxu0 %vm1496_vm4, %v17833_v3 }
 0xc1b   : > { %v7640_v41 = vpack.c.bf16 %v7624_v22, %v7623_v36  ;;  %10462 = vmatprep.mubr.msk.bf16.mxu1 %vm7681_vm8, %v7639_v2  ;;  %v8487_v49 = vpop.permute.xlu1 %8486  ;;  %v8493_v11 = vpop.permute.xlu0 %8492 }
 0xc1d   : > { %10463 = vmatmul.mubr.msk.bf16.gmra.mrb[68].mxu1 %vm7681_vm8, %v7640_v41 }
 0xc1e   : > { %10480 = vmatprep.mubr.msk.bf16.mxu1 %vm7681_vm8, %v17078_v8 }
 0xc1f   : > { %v8491_v3 = vpop.permute.xlu1 %8490  ;;  %v8497_v57 = vpop.permute.xlu0 %8496 }
 0xc20   : > { %10565 = vmatmul.mubr.msk.bf16.gmra.mrb[44].mxu0 %vm948_vm2, %v8487_v49 }
 0xc21   : > { %10568 = vmatprep.mubr.msk.bf16.mxu0 %vm948_vm2, %v8489_v35 }
 0xc23   : > { %v8501_v10 = vpop.permute.xlu0 %8500 }
 0xc25   : > { %10481 = vmatmul.mubr.msk.bf16.vlgmr.msra.gmra.mrb[40].mxu1 %vm7681_vm8, %v17094_v39 }
 0xc26   : > { %10513 = vmatpush3.bf16.msra.mxu1 %v16553_v27  ;;  %10484 = vmatprep.mubr.msk.bf16.mxu1 %vm7681_vm8, %v17242_v58  ;;  %v8495_v27 = vpop.permute.xlu1 %8494 }
 0xc27   : > { %10514 = vmatprep.subr.bf16.mxu1 %v16577_v31  ;;  %v8505_v63 = vpop.permute.xlu0 %8504 }
 0xc28   : > { %10569 = vmatmul.mubr.msk.bf16.gmra.mrb[48].mxu0 %vm948_vm2, %v8491_v3 }
 0xc29   : > { %10572 = vmatprep.mubr.msk.bf16.mxu0 %vm948_vm2, %v8493_v11 }
 0xc2a   : > { %10515 = vmatpush3.bf16.msra.mxu1 %v16577_v31  ;;  %v19361_v31 = vld [vmem:[#allocation185_spill] sm:$0xff] }
 0xc2b   : > { %10516 = vmatprep.subr.bf16.mxu1 %v19299_v53 }
 0xc2d   : > { %10485 = vmatmul.mubr.msk.bf16.gmra.mrb[44].mxu1 %vm7681_vm8, %v17258_v32 }
 0xc2e   : > { %10488 = vmatprep.mubr.msk.bf16.mxu1 %vm7681_vm8, %v17406_v60  ;;  %10517 = vmatpush3.bf16.msra.mxu1 %v19299_v53  ;;  %v8499_v53 = vpop.permute.xlu1 %8498 }
 0xc2f   : > { %10518 = vmatprep.subr.bf16.mxu1 %v19301_v15 }
 0xc30   : > { %10573 = vmatmul.mubr.msk.bf16.gmra.mrb[52].mxu0 %vm948_vm2, %v8495_v27 }
 0xc31   : > { %10576 = vmatprep.mubr.msk.bf16.mxu0 %vm948_vm2, %v8497_v57 }
 0xc32   : > { %10519 = vmatpush3.bf16.msra.mxu1 %v19301_v15  ;;  %v19362_v15 = vld [vmem:[#allocation186_spill] sm:$0xff]  ;;  %v8503_v50 = vpop.permute.xlu1 %8502 }
 0xc33   : > { %10520 = vmatprep.subr.bf16.mxu1 %v19305_v37 }
 0xc35   : > { %10489 = vmatmul.mubr.msk.bf16.gmra.mrb[48].mxu1 %vm7681_vm8, %v17422_v42 }
 0xc36   : > { %10492 = vmatprep.mubr.msk.bf16.mxu1 %vm7681_vm8, %v19361_v31  ;;  %10521 = vmatpush3.bf16.msra.mxu1 %v19305_v37  ;;  %v19363_v37 = vld [vmem:[#allocation184_spill] sm:$0xff] }
 0xc37   : > { %10522 = vmatprep.subr.bf16.mxu1 %v19313_v48 }
 0xc38   : > { %10577 = vmatmul.mubr.msk.bf16.gmra.mrb[56].mxu0 %vm948_vm2, %v8499_v53 }
 0xc39   : > { %10580 = vmatprep.mubr.msk.bf16.mxu0 %vm948_vm2, %v8501_v10 }
 0xc3a   : > { %10523 = vmatpush3.bf16.msra.mxu1 %v19313_v48  ;;  %v8507_v48 = vpop.permute.xlu1 %8506 }
 0xc3b   : > { %10934 = vmatprep.subr.msk.bf16.mxu1 %vm2349_vm9, %v19316_v51  ;;  %v8509_v51 = vpop.permute.xlu0 %8508 }
 0xc3d   : > { %10493 = vmatmul.mubr.msk.bf16.gmra.mrb[52].mxu1 %vm7681_vm8, %v19362_v15 }
 0xc3e   : > { %10496 = vmatprep.mubr.msk.bf16.mxu1 %vm7681_vm8, %v17788_v52  ;;  %10525 = vmatpush3.bf16.msra.mxu1 %v19363_v37  ;;  %v8511_v16 = vpop.permute.xlu1 %8510 }
 0xc3f   : > { %v8741_v43 = vpop.permute.xlu0 %8740 }
 0xc40   : > { %10581 = vmatmul.mubr.msk.bf16.gmra.mrb[60].mxu0 %vm948_vm2, %v8503_v50 }
 0xc41   : > { %10584 = vmatprep.mubr.msk.bf16.mxu0 %vm948_vm2, %v8505_v63 }
 0xc42   : > { %v8743_v29 = vpop.permute.xlu1 %8742 }
 0xc43   : > { %v8745_v25 = vpop.permute.xlu0 %8744 }
 0xc45   : > { %10497 = vmatmul.mubr.msk.bf16.gmra.mrb[56].mxu1 %vm7681_vm8, %v17808_v45 }
 0xc46   : > { %10500 = vmatprep.mubr.msk.bf16.mxu1 %vm7681_vm8, %v17918_v34  ;;  %v8747_v44 = vpop.permute.xlu1 %8746 }
 0xc47   : > { %v8749_v30 = vpop.permute.xlu0 %8748 }
 0xc48   : > { %10585 = vmatmul.mubr.msk.bf16.gmra.mrb[64].mxu0 %vm948_vm2, %v8507_v48 }
 0xc49   : > { %10588 = vmatprep.mubr.msk.bf16.mxu0 %vm948_vm2, %v8509_v51 }
 0xc4a   : > { %v8751_v23 = vpop.permute.xlu1 %8750 }
 0xc4d   : > { %10501 = vmatmul.mubr.msk.bf16.gmra.mrb[60].mxu1 %vm7681_vm8, %v17932_v56 }
 0xc4e   : > { %10504 = vmatprep.mubr.msk.bf16.mxu1 %vm7681_vm8, %v18003_v18 }
 0xc50   : > { %10589 = vmatmul.mubr.msk.bf16.gmra.mrb[68].mxu0 %vm948_vm2, %v8511_v16 }
 0xc51   : > { %10594 = vmatprep.mubr.msk.bf16.mxu0 %vm948_vm2, %v8741_v43 }
 0xc55   : > { %10505 = vmatmul.mubr.msk.bf16.gmra.mrb[64].mxu1 %vm7681_vm8, %v17995_v62 }
 0xc56   : > { %10508 = vmatprep.mubr.msk.bf16.mxu1 %vm7681_vm8, %v18042_v24 }
 0xc58   : > { %10595 = vmatmul.mubr.msk.bf16.vlgmr.msra.gmra.mrb[40].mxu0 %vm948_vm2, %v8743_v29 }
 0xc59   : > { %10598 = vmatprep.mubr.msk.bf16.mxu0 %vm948_vm2, %v8745_v25  ;;  %10627 = vmatpush3.bf16.msra.mxu0 %v17845_v26  ;;  %v8753_v26 = vpop.permute.xlu0 %8752 }
 0xc5d   : > { %10509 = vmatmul.mubr.msk.bf16.gmra.mrb[68].mxu1 %vm7681_vm8, %v18049_v61  ;;  %v8757_v59 = vpop.permute.xlu0 %8756 }
 0xc5e   : > { %10526 = vmatprep.mubr.msk.bf16.mxu1 %vm7681_vm8, %v17078_v8  ;;  %v8755_v8 = vpop.permute.xlu1 %8754 }
 0xc60   : > { %10599 = vmatmul.mubr.msk.bf16.gmra.mrb[44].mxu0 %vm948_vm2, %v8747_v44 }
 0xc61   : > { %10602 = vmatprep.mubr.msk.bf16.mxu0 %vm948_vm2, %v8749_v30 }
 0xc65   : > { %10527 = vmatmul.mubr.msk.bf16.vlgmr.msra.gmra.mrb[40].mxu1 %vm7681_vm8, %v17094_v39  ;;  %v8759_v39 = vpop.permute.xlu1 %8758 }
 0xc66   : > { %10530 = vmatprep.mubr.msk.bf16.mxu1 %vm7681_vm8, %v17242_v58  ;;  %v8761_v58 = vpop.permute.xlu0 %8760 }
 0xc68   : > { %10603 = vmatmul.mubr.msk.bf16.gmra.mrb[48].mxu0 %vm948_vm2, %v8751_v23 }
 0xc69   : > { %10606 = vmatprep.mubr.msk.bf16.mxu0 %vm948_vm2, %v8753_v26 }
 0xc6d   : > { %10531 = vmatmul.mubr.msk.bf16.gmra.mrb[44].mxu1 %vm7681_vm8, %v17258_v32  ;;  %v8763_v32 = vpop.permute.xlu1 %8762 }
 0xc6e   : > { %10534 = vmatprep.mubr.msk.bf16.mxu1 %vm7681_vm8, %v17406_v60  ;;  %v8765_v60 = vpop.permute.xlu0 %8764 }
 0xc70   : > { %10607 = vmatmul.mubr.msk.bf16.gmra.mrb[52].mxu0 %vm948_vm2, %v8755_v8 }
 0xc71   : > { %10610 = vmatprep.mubr.msk.bf16.mxu0 %vm948_vm2, %v8757_v59 }
 0xc72   : > { %v8769_v55 = vpop.permute.xlu0 %8768 }
 0xc75   : > { %10535 = vmatmul.mubr.msk.bf16.gmra.mrb[48].mxu1 %vm7681_vm8, %v17422_v42  ;;  %v8767_v42 = vpop.permute.xlu1 %8766 }
 0xc76   : > { %10538 = vmatprep.mubr.msk.bf16.mxu1 %vm7681_vm8, %v19361_v31 }
 0xc78   : > { %10611 = vmatmul.mubr.msk.bf16.gmra.mrb[56].mxu0 %vm948_vm2, %v8759_v39 }
 0xc79   : > { %10614 = vmatprep.mubr.msk.bf16.mxu0 %vm948_vm2, %v8761_v58 }
 0xc7d   : > { %10539 = vmatmul.mubr.msk.bf16.gmra.mrb[52].mxu1 %vm7681_vm8, %v19362_v15 }
 0xc7e   : > { %10542 = vmatprep.mubr.msk.bf16.mxu1 %vm7681_vm8, %v17788_v52  ;;  %v8771_v52 = vpop.permute.xlu1 %8770 }
 0xc80   : > { %10615 = vmatmul.mubr.msk.bf16.gmra.mrb[60].mxu0 %vm948_vm2, %v8763_v32 }
 0xc81   : > { %10618 = vmatprep.mubr.msk.bf16.mxu0 %vm948_vm2, %v8765_v60 }
 0xc85   : > { %10543 = vmatmul.mubr.msk.bf16.gmra.mrb[56].mxu1 %vm7681_vm8, %v17808_v45  ;;  %v11181_v45 = vmov 0  }
 0xc86   : > { %10546 = vmatprep.mubr.msk.bf16.mxu1 %vm7681_vm8, %v17918_v34  ;;  %10966 = vset.pattern.permute.xlu1 %v11181_v45 }
 0xc87   : > { %10967 = vset.pattern.permute.xlu0 %v11181_v45 }
 0xc88   : > { %10619 = vmatmul.mubr.msk.bf16.gmra.mrb[64].mxu0 %vm948_vm2, %v8767_v42 }
 0xc89   : > { %10622 = vmatprep.mubr.msk.bf16.mxu0 %vm948_vm2, %v8769_v55 }
 0xc8d   : > { %10547 = vmatmul.mubr.msk.bf16.gmra.mrb[60].mxu1 %vm7681_vm8, %v17932_v56 }
 0xc8e   : > { %10550 = vmatprep.mubr.msk.bf16.mxu1 %vm7681_vm8, %v18003_v18 }
 0xc90   : > { %10623 = vmatmul.mubr.msk.bf16.gmra.mrb[68].mxu0 %vm948_vm2, %v8771_v52 }
 0xc91   : > { %10628 = vmatprep.mubr.msk.bf16.mxu0 %vm948_vm2, %v8741_v43 }
 0xc95   : > { %10551 = vmatmul.mubr.msk.bf16.gmra.mrb[64].mxu1 %vm7681_vm8, %v17995_v62 }
 0xc96   : > { %10554 = vmatprep.mubr.msk.bf16.mxu1 %vm7681_vm8, %v18042_v24 }
 0xc98   : > { %10629 = vmatmul.mubr.msk.bf16.vlgmr.msra.gmra.mrb[40].mxu0 %vm948_vm2, %v8743_v29 }
 0xc99   : > { %10632 = vmatprep.mubr.msk.bf16.mxu0 %vm948_vm2, %v8745_v25 }
 0xc9d   : > { %10555 = vmatmul.mubr.msk.bf16.gmra.mrb[68].mxu1 %vm7681_vm8, %v18049_v61 }
 0xca0   : > { %10633 = vmatmul.mubr.msk.bf16.gmra.mrb[44].mxu0 %vm948_vm2, %v8747_v44 }
 0xca1   : > { %10636 = vmatprep.mubr.msk.bf16.mxu0 %vm948_vm2, %v8749_v30 }
 0xca8   : > { %10637 = vmatmul.mubr.msk.bf16.gmra.mrb[48].mxu0 %vm948_vm2, %v8751_v23 }
 0xca9   : > { %10640 = vmatprep.mubr.msk.bf16.mxu0 %vm948_vm2, %v8753_v26 }
 0xcb0   : > { %10641 = vmatmul.mubr.msk.bf16.gmra.mrb[52].mxu0 %vm948_vm2, %v8755_v8 }
 0xcb1   : > { %10644 = vmatprep.mubr.msk.bf16.mxu0 %vm948_vm2, %v8757_v59 }
 0xcb8   : > { %10645 = vmatmul.mubr.msk.bf16.gmra.mrb[56].mxu0 %vm948_vm2, %v8759_v39 }
 0xcb9   : > { %10648 = vmatprep.mubr.msk.bf16.mxu0 %vm948_vm2, %v8761_v58 }
 0xcc0   : > { %10649 = vmatmul.mubr.msk.bf16.gmra.mrb[60].mxu0 %vm948_vm2, %v8763_v32 }
 0xcc1   : > { %10652 = vmatprep.mubr.msk.bf16.mxu0 %vm948_vm2, %v8765_v60 }
 0xcc8   : > { %10653 = vmatmul.mubr.msk.bf16.gmra.mrb[64].mxu0 %vm948_vm2, %v8767_v42 }
 0xcc9   : > { %10656 = vmatprep.mubr.msk.bf16.mxu0 %vm948_vm2, %v8769_v55 }
 0xcd0   : > { %10657 = vmatmul.mubr.msk.bf16.gmra.mrb[68].mxu0 %vm948_vm2, %v8771_v52 }
 0xd38   : > { %v10528_v34 = vpop.f32.mrb[40].mxu1 }
 0xd39   : > { %v9728_v56 = vmul.f32 -1.442695, %v10528_v34  ;;  %v8140_v62 = vpop.f32.mrb[41].mxu1 }
 0xd3a   : > { %v9726_v18 = vmul.f32 -1.442695, %v8140_v62  ;;  %v10529_v14 = vpop.f32.mrb[42].mxu1 }
 0xd3b   : > { %10972 = vpow2.f32 %v9728_v56  ;;  %v9729_v9 = vmul.f32 -1.442695, %v10529_v14  ;;  %v8143_v28 = vpop.f32.mrb[43].mxu1 }
 0xd3c   : > { %10974 = vpow2.f32 %v9726_v18  ;;  %v9727_v0 = vmul.f32 -1.442695, %v8143_v28 }
 0xd3d   : > { %10976 = vpow2.f32 %v9729_v9 }
 0xd3e   : > { %10978 = vpow2.f32 %v9727_v0 }
 0xd40   : > { %v10532_v21 = vpop.f32.mrb[44].mxu1 }
 0xd41   : > { %v9732_v5 = vmul.f32 -1.442695, %v10532_v21  ;;  %v8156_v6 = vpop.f32.mrb[45].mxu1 }
 0xd42   : > { %v9730_v24 = vmul.f32 -1.442695, %v8156_v6  ;;  %v10533_v38 = vpop.f32.mrb[46].mxu1 }
 0xd43   : > { %10980 = vpow2.f32 %v9732_v5  ;;  %v9733_v17 = vmul.f32 -1.442695, %v10533_v38  ;;  %v8159_v1 = vpop.f32.mrb[47].mxu1 }
 0xd44   : > { %10982 = vpow2.f32 %v9730_v24  ;;  %v9731_v20 = vmul.f32 -1.442695, %v8159_v1 }
 0xd45   : > { %v10973_v40 = vpop.eup %10972  ;;  %10984 = vpow2.f32 %v9733_v17 }
 0xd46   : > { %v10975_v12 = vpop.eup %10974  ;;  %v8365_v61 = vadd.f32 1.0, %v10973_v40  ;;  %10986 = vpow2.f32 %v9731_v20 }
 0xd47   : > { %v10977_v46 = vpop.eup %10976  ;;  %v8363_v47 = vadd.f32 1.0, %v10975_v12 }
 0xd48   : > { %v10979_v7 = vpop.eup %10978  ;;  %10988 = vrcp.f32 %v8365_v61  ;;  %v8366_v54 = vadd.f32 1.0, %v10977_v46  ;;  %v10536_v13 = vpop.f32.mrb[48].mxu1 }
 0xd49   : > { %10990 = vrcp.f32 %v8363_v47  ;;  %v8364_v4 = vadd.f32 1.0, %v10979_v7  ;;  %v9736_v33 = vmul.f32 -1.442695, %v10536_v13  ;;  %v8172_v19 = vpop.f32.mrb[49].mxu1 }
 0xd4a   : > { %10992 = vrcp.f32 %v8366_v54  ;;  %v9734_v36 = vmul.f32 -1.442695, %v8172_v19  ;;  %v10537_v22 = vpop.f32.mrb[50].mxu1 }
 0xd4b   : > { %10994 = vrcp.f32 %v8364_v4  ;;  %v9737_v2 = vmul.f32 -1.442695, %v10537_v22  ;;  %v8175_v41 = vpop.f32.mrb[51].mxu1 }
 0xd4c   : > { %10996 = vpow2.f32 %v9736_v33  ;;  %v9735_v49 = vmul.f32 -1.442695, %v8175_v41 }
 0xd4d   : > { %v10981_v35 = vpop.eup %10980  ;;  %10998 = vpow2.f32 %v9734_v36 }
 0xd4e   : > { %v10983_v3 = vpop.eup %10982  ;;  %v8369_v11 = vadd.f32 1.0, %v10981_v35  ;;  %11000 = vpow2.f32 %v9737_v2 }
 0xd4f   : > { %v10985_v27 = vpop.eup %10984  ;;  %v8367_v57 = vadd.f32 1.0, %v10983_v3  ;;  %11002 = vpow2.f32 %v9735_v49 }
 0xd50   : > { %v10987_v31 = vpop.eup %10986  ;;  %11004 = vrcp.f32 %v8369_v11  ;;  %v8370_v53 = vadd.f32 1.0, %v10985_v27  ;;  %v10540_v10 = vpop.f32.mrb[52].mxu1 }
 0xd51   : > { %11006 = vrcp.f32 %v8367_v57  ;;  %v8368_v15 = vadd.f32 1.0, %v10987_v31  ;;  %v9740_v37 = vmul.f32 -1.442695, %v10540_v10  ;;  %v8188_v50 = vpop.f32.mrb[53].mxu1 }
 0xd52   : > { %v10989_v63 = vpop.eup %10988  ;;  %11008 = vrcp.f32 %v8370_v53  ;;  %v9738_v48 = vmul.f32 -1.442695, %v8188_v50  ;;  %v10541_v51 = vpop.f32.mrb[54].mxu1 }
 0xd53   : > { %v10991_v16 = vpop.eup %10990  ;;  %11010 = vrcp.f32 %v8368_v15  ;;  %v9741_v43 = vmul.f32 -1.442695, %v10541_v51  ;;  %9235 = vperm.xlu1 %10966, %v10989_v63   ;;  %v8191_v29 = vpop.f32.mrb[55].mxu1 }
 0xd54   : > { %v10993_v25 = vpop.eup %10992  ;;  %11012 = vpow2.f32 %v9740_v37  ;;  %v9739_v44 = vmul.f32 -1.442695, %v8191_v29  ;;  %9225 = vperm.xlu0 %10967, %v10991_v16  }
 0xd55   : > { %v10995_v30 = vpop.eup %10994  ;;  %11014 = vpow2.f32 %v9738_v48 }
 0xd56   : > { %v10997_v23 = vpop.eup %10996  ;;  %11016 = vpow2.f32 %v9741_v43 }
 0xd57   : > { %v10999_v26 = vpop.eup %10998  ;;  %v8373_v8 = vadd.f32 1.0, %v10997_v23  ;;  %11018 = vpow2.f32 %v9739_v44  ;;  %9230 = vperm.xlu1 %10966, %v10995_v30  }
 0xd58   : > { %v11001_v59 = vpop.eup %11000  ;;  %v8371_v39 = vadd.f32 1.0, %v10999_v26  ;;  %9240 = vperm.xlu0 %10967, %v10993_v25   ;;  %v10544_v58 = vpop.f32.mrb[56].mxu1 }
 0xd59   : > { %v11003_v32 = vpop.eup %11002  ;;  %11020 = vrcp.f32 %v8373_v8  ;;  %v8374_v60 = vadd.f32 1.0, %v11001_v59  ;;  %v9744_v42 = vmul.f32 -1.442695, %v10544_v58  ;;  %v8204_v55 = vpop.f32.mrb[57].mxu1 }
 0xd5a   : > { %v11005_v52 = vpop.eup %11004  ;;  %11022 = vrcp.f32 %v8371_v39  ;;  %v8372_v45 = vadd.f32 1.0, %v11003_v32  ;;  %v9742_v34 = vmul.f32 -1.442695, %v8204_v55  ;;  %v10545_v56 = vpop.f32.mrb[58].mxu1 }
 0xd5b   : > { %v11007_v62 = vpop.eup %11006  ;;  %11024 = vrcp.f32 %v8374_v60  ;;  %v9745_v18 = vmul.f32 -1.442695, %v10545_v56  ;;  %9255 = vperm.xlu1 %10966, %v11005_v52   ;;  %v8207_v14 = vpop.f32.mrb[59].mxu1 }
 0xd5c   : > { %v11009_v9 = vpop.eup %11008  ;;  %11026 = vrcp.f32 %v8372_v45  ;;  %v9743_v28 = vmul.f32 -1.442695, %v8207_v14 }
 0xd5d   : > { %v11011_v0 = vpop.eup %11010  ;;  %11028 = vpow2.f32 %v9744_v42  ;;  %9260 = vperm.xlu0 %10967, %v11009_v9  }
 0xd5e   : > { %v11013_v21 = vpop.eup %11012  ;;  %11030 = vpow2.f32 %v9742_v34 }
 0xd5f   : > { %v11015_v5 = vpop.eup %11014  ;;  %v8377_v6 = vadd.f32 1.0, %v11013_v21  ;;  %11032 = vpow2.f32 %v9745_v18  ;;  %9245 = vperm.xlu1 %10966, %v11007_v62  }
 0xd60   : > { %v11017_v24 = vpop.eup %11016  ;;  %v8375_v38 = vadd.f32 1.0, %v11015_v5  ;;  %11034 = vpow2.f32 %v9743_v28  ;;  %v10548_v17 = vpop.f32.mrb[60].mxu1 }
 0xd61   : > { %v11019_v1 = vpop.eup %11018  ;;  %11036 = vrcp.f32 %v8377_v6  ;;  %v8378_v20 = vadd.f32 1.0, %v11017_v24  ;;  %v9748_v40 = vmul.f32 -1.442695, %v10548_v17  ;;  %9250 = vperm.xlu0 %10967, %v11011_v0   ;;  %v8220_v12 = vpop.f32.mrb[61].mxu1 }
 0xd62   : > { %11038 = vrcp.f32 %v8375_v38  ;;  %v8376_v61 = vadd.f32 1.0, %v11019_v1  ;;  %v9746_v46 = vmul.f32 -1.442695, %v8220_v12  ;;  %v10549_v47 = vpop.f32.mrb[62].mxu1 }
 0xd63   : > { %v11021_v7 = vpop.eup %11020  ;;  %11040 = vrcp.f32 %v8378_v20  ;;  %v9749_v54 = vmul.f32 -1.442695, %v10549_v47  ;;  %v8223_v13 = vpop.f32.mrb[63].mxu1 }
 0xd64   : > { %v11023_v4 = vpop.eup %11022  ;;  %11042 = vrcp.f32 %v8376_v61  ;;  %9275 = vperm.xlu1 %10966, %v11021_v7   ;;  %v9747_v33 = vmul.f32 -1.442695, %v8223_v13 }
 0xd65   : > { %v11025_v19 = vpop.eup %11024  ;;  %11044 = vpow2.f32 %v9748_v40 }
 0xd66   : > { %v11027_v36 = vpop.eup %11026  ;;  %11046 = vpow2.f32 %v9746_v46  ;;  %9280 = vperm.xlu0 %10967, %v11025_v19  }
 0xd67   : > { %v11029_v22 = vpop.eup %11028  ;;  %11048 = vpow2.f32 %v9749_v54 }
 0xd68   : > { %v11031_v2 = vpop.eup %11030  ;;  %v8381_v41 = vadd.f32 1.0, %v11029_v22  ;;  %11050 = vpow2.f32 %v9747_v33  ;;  %9265 = vperm.xlu1 %10966, %v11023_v4   ;;  %v10552_v49 = vpop.f32.mrb[64].mxu1 }
 0xd69   : > { %v11033_v35 = vpop.eup %11032  ;;  %v8379_v3 = vadd.f32 1.0, %v11031_v2  ;;  %v8236_v11 = vpop.f32.mrb[65].mxu1  ;;  %v9752_v31 = vmul.f32 -1.442695, %v10552_v49 }
 0xd6a   : > { %v11035_v27 = vpop.eup %11034  ;;  %11052 = vrcp.f32 %v8381_v41  ;;  %v8382_v57 = vadd.f32 1.0, %v11033_v35  ;;  %9270 = vperm.xlu0 %10967, %v11027_v36   ;;  %v10553_v53 = vpop.f32.mrb[66].mxu1  ;;  %v9750_v37 = vmul.f32 -1.442695, %v8236_v11 }
 0xd6b   : > { %v11037_v10 = vpop.eup %11036  ;;  %11054 = vrcp.f32 %v8379_v3  ;;  %v8380_v15 = vadd.f32 1.0, %v11035_v27  ;;  %v8239_v50 = vpop.f32.mrb[67].mxu1  ;;  %v9753_v51 = vmul.f32 -1.442695, %v10553_v53 }
 0xd6c   : > { %v18186_v63 = vpop.f32.mrb[40].mxu0  ;;  %v11039_v48 = vpop.eup %11038  ;;  %11056 = vrcp.f32 %v8382_v57  ;;  %9295 = vperm.xlu1 %10966, %v11037_v10   ;;  %v9751_v29 = vmul.f32 -1.442695, %v8239_v50 }
 0xd6d   : > { %v18188_v16 = vpop.f32.mrb[41].mxu0  ;;  %v11041_v43 = vpop.eup %11040  ;;  %11058 = vrcp.f32 %v8380_v15 }
 0xd6e   : > { %v18190_v25 = vpop.f32.mrb[42].mxu0  ;;  %v11043_v44 = vpop.eup %11042  ;;  %11060 = vpow2.f32 %v9752_v31  ;;  %9300 = vperm.xlu0 %10967, %v11041_v43  }
 0xd6f   : > { %v18192_v30 = vpop.f32.mrb[43].mxu0  ;;  %v11045_v23 = vpop.eup %11044  ;;  %11062 = vpow2.f32 %v9750_v37 }
 0xd70   : > { %v11047_v26 = vpop.eup %11046  ;;  %v8385_v8 = vadd.f32 1.0, %v11045_v23  ;;  %11064 = vpow2.f32 %v9753_v51  ;;  %9285 = vperm.xlu1 %10966, %v11039_v48   ;;  %v10556_v59 = vpop.f32.mrb[68].mxu1 }
 0xd71   : > { %v11049_v39 = vpop.eup %11048  ;;  %v8383_v58 = vadd.f32 1.0, %v11047_v26  ;;  %11066 = vpow2.f32 %v9751_v29  ;;  %v8252_v32 = vpop.f32.mrb[69].mxu1  ;;  %v9756_v55 = vmul.f32 -1.442695, %v10556_v59 }
 0xd72   : > { %v11051_v60 = vpop.eup %11050  ;;  %11068 = vrcp.f32 %v8385_v8  ;;  %v8386_v42 = vadd.f32 1.0, %v11049_v39  ;;  %9290 = vperm.xlu0 %10967, %v11043_v44   ;;  %v10557_v52 = vpop.f32.mrb[70].mxu1  ;;  %v9754_v34 = vmul.f32 -1.442695, %v8252_v32 }
 0xd73   : > { %11070 = vrcp.f32 %v8383_v58  ;;  %v8384_v45 = vadd.f32 1.0, %v11051_v60  ;;  %v8255_v56 = vpop.f32.mrb[71].mxu1  ;;  %v18194_v62 = vpop.f32.mrb[44].mxu0  ;;  %v9757_v14 = vmul.f32 -1.442695, %v10557_v52 }
 0xd74   : > { %v11053_v18 = vpop.eup %11052  ;;  %11072 = vrcp.f32 %v8386_v42  ;;  %v18196_v9 = vpop.f32.mrb[45].mxu0  ;;  %v9755_v0 = vmul.f32 -1.442695, %v8255_v56 }
 0xd75   : > { %v11055_v28 = vpop.eup %11054  ;;  %11074 = vrcp.f32 %v8384_v45  ;;  %9315 = vperm.xlu1 %10966, %v11053_v18   ;;  %v18198_v21 = vpop.f32.mrb[46].mxu0 }
 0xd76   : > { %v11057_v5 = vpop.eup %11056  ;;  %11076 = vpow2.f32 %v9756_v55  ;;  %v18200_v6 = vpop.f32.mrb[47].mxu0 }
 0xd77   : > { %v11059_v24 = vpop.eup %11058  ;;  %11078 = vpow2.f32 %v9754_v34  ;;  %9320 = vperm.xlu0 %10967, %v11057_v5   ;;  %v18245_v34 = vld [vmem:[%s18439_s10] ss:$0 sm:$0xff] }
 0xd78   : > { %v11061_v38 = vpop.eup %11060  ;;  %11080 = vpow2.f32 %v9757_v14 }
 0xd79   : > { %v11063_v17 = vpop.eup %11062  ;;  %v8389_v1 = vadd.f32 1.0, %v11061_v38  ;;  %11082 = vpow2.f32 %v9755_v0  ;;  %9305 = vperm.xlu1 %10966, %v11055_v28   ;;  %v18253_v28 = vld [vmem:[%s18440_s11] ss:$0 sm:$0xff] }
 0xd7a   : > { %v11065_v20 = vpop.eup %11064  ;;  %v8387_v12 = vadd.f32 1.0, %v11063_v17 }
 0xd7b   : > { %v11067_v40 = vpop.eup %11066  ;;  %11084 = vrcp.f32 %v8389_v1  ;;  %v8390_v61 = vadd.f32 1.0, %v11065_v20  ;;  %9310 = vperm.xlu0 %10967, %v11059_v24   ;;  %v18202_v46 = vpop.f32.mrb[48].mxu0  ;;  %v9154_v1 = vmul.f32 %v18186_v63, %v18245_v34  ;;  %v9152_v20 = vmul.f32 %v18245_v34, %v18188_v16 }
 0xd7c   : > { %v11069_v47 = vpop.eup %11068  ;;  %v18204_v7 = vpop.f32.mrb[49].mxu0  ;;  %v8388_v13 = vadd.f32 1.0, %v11067_v40 }
 0xd7d   : > { %v11071_v54 = vpop.eup %11070  ;;  %11086 = vrcp.f32 %v8390_v61  ;;  %9335 = vperm.xlu1 %10966, %v11069_v47   ;;  %v18206_v4 = vpop.f32.mrb[50].mxu0  ;;  %v9153_v61 = vmul.f32 %v18245_v34, %v18192_v30  ;;  %v19364_v47 = vld [vmem:[#allocation85_spill] sm:$0xff] }
 0xd7e   : > { %v11073_v33 = vpop.eup %11072  ;;  %v18208_v19 = vpop.f32.mrb[51].mxu0  ;;  %11088 = vrcp.f32 %v8387_v12  ;;  %v9193_v12 = vadd.f32 %v18253_v28, %v9154_v1 }
 0xd7f   : > { %v11075_v36 = vpop.eup %11074  ;;  %9340 = vperm.xlu0 %10967, %v11073_v33   ;;  %11090 = vrcp.f32 %v8388_v13  ;;  %v9191_v33 = vadd.f32 %v18253_v28, %v9152_v20 }
 0xd80   : > { %v11077_v22 = vpop.eup %11076 }
 0xd81   : > { %v11079_v2 = vpop.eup %11078  ;;  %9325 = vperm.xlu1 %10966, %v11071_v54   ;;  %v8393_v11 = vadd.f32 1.0, %v11077_v22  ;;  %v19365_v22 = vld [vmem:[#allocation83_spill] sm:$0xff] }
 0xd82   : > { %v11081_v41 = vpop.eup %11080  ;;  %v8391_v49 = vadd.f32 1.0, %v11079_v2 }
 0xd83   : > { %v11083_v35 = vpop.eup %11082  ;;  %9330 = vperm.xlu0 %10967, %v11075_v36   ;;  %v18210_v3 = vpop.f32.mrb[52].mxu0  ;;  %v8394_v10 = vadd.f32 1.0, %v11081_v41  ;;  %v9155_v36 = vmul.f32 %v18190_v25, %v18245_v34  ;;  %v9192_v41 = vadd.f32 %v18253_v28, %v9153_v61 }
 0xd84   : > { %11092 = vrcp.f32 %v8391_v49  ;;  %v8392_v27 = vadd.f32 1.0, %v11083_v35  ;;  %v18212_v57 = vpop.f32.mrb[53].mxu0  ;;  %v9158_v49 = vmul.f32 %v18194_v62, %v18245_v34 }
 0xd85   : > { %v11085_v31 = vpop.eup %11084  ;;  %v18214_v53 = vpop.f32.mrb[54].mxu0 }
 0xd86   : > { %11094 = vrcp.f32 %v8392_v27  ;;  %9355 = vperm.xlu1 %10966, %v11085_v31   ;;  %v18216_v15 = vpop.f32.mrb[55].mxu0  ;;  %v9194_v31 = vadd.f32 %v18253_v28, %v9155_v36  ;;  %v9197_v62 = vadd.f32 %v18253_v28, %v9158_v49  ;;  %v9163_v49 = vmul.f32 %v18206_v4, %v18245_v34 }
 0xd87   : > { %v11087_v37 = vpop.eup %11086  ;;  %11096 = vrcp.f32 %v8393_v11  ;;  %v19366_v11 = vld [vmem:[#allocation82_spill] sm:$0xff] }
 0xd88   : > { %9360 = vperm.xlu0 %10967, %v11087_v37   ;;  %v11089_v50 = vpop.eup %11088  ;;  %11098 = vrcp.f32 %v8394_v10  ;;  %v19367_v37 = vld [vmem:[#allocation86_spill] sm:$0xff]  ;;  %v9202_v4 = vadd.f32 %v18253_v28, %v9163_v49 }
 0xd89   : > { %v11091_v48 = vpop.eup %11090 }
 0xd8a   : > { %9345 = vperm.xlu1 %10966, %v11089_v50  }
 0xd8b   : > { %v18218_v51 = vpop.f32.mrb[56].mxu0 }
 0xd8c   : > { %9350 = vperm.xlu0 %10967, %v11091_v48   ;;  %v18220_v43 = vpop.f32.mrb[57].mxu0  ;;  %v9159_v48 = vmul.f32 %v18198_v21, %v18245_v34  ;;  %v9157_v21 = vmul.f32 %v18245_v34, %v18200_v6 }
 0xd8d   : > { %v18222_v29 = vpop.f32.mrb[58].mxu0 }
 0xd8e   : > { %v11093_v44 = vpop.eup %11092  ;;  %v18224_v23 = vpop.f32.mrb[59].mxu0  ;;  %v9198_v20 = vadd.f32 %v18253_v28, %v9159_v48  ;;  %v9196_v6 = vadd.f32 %v18253_v28, %v9157_v21 }
 0xd8f   : > { %9365 = vperm.xlu1 %10966, %v11093_v44  }
 0xd90   : > { %v11095_v26 = vpop.eup %11094 }
 0xd91   : > { %9370 = vperm.xlu0 %10967, %v11095_v26   ;;  %v11097_v8 = vpop.eup %11096 }
 0xd92   : > { %v11099_v39 = vpop.eup %11098 }
 0xd93   : > { %9375 = vperm.xlu1 %10966, %v11097_v8   ;;  %v18226_v59 = vpop.f32.mrb[60].mxu0 }
 0xd94   : > { %v18228_v58 = vpop.f32.mrb[61].mxu0 }
 0xd95   : > { %9380 = vperm.xlu0 %10967, %v11099_v39   ;;  %v18230_v32 = vpop.f32.mrb[62].mxu0  ;;  %v9156_v39 = vmul.f32 %v18245_v34, %v18196_v9 }
 0xd96   : > { %v18232_v60 = vpop.f32.mrb[63].mxu0 }
 0xd97   : > { %v9195_v9 = vadd.f32 %v18253_v28, %v9156_v39  ;;  %v9166_v39 = vmul.f32 %v18210_v3, %v18245_v34 }
 0xd9b   : > { %v18234_v42 = vpop.f32.mrb[64].mxu0 }
 0xd9c   : > { %v18236_v55 = vpop.f32.mrb[65].mxu0 }
 0xd9d   : > { %v18238_v52 = vpop.f32.mrb[66].mxu0 }
 0xd9e   : > { %v18240_v45 = vpop.f32.mrb[67].mxu0 }
 0xda3   : > { %v10658_v56 = vpop.f32.mrb[68].mxu0 }
 0xda4   : > { %v9182_v18 = vmul.f32 %v10658_v56, %v18245_v34  ;;  %v18248_v14 = vpop.f32.mrb[69].mxu0 }
 0xda5   : > { %v10659_v0 = vpop.f32.mrb[70].mxu0 }
 0xda6   : > { %v18256_v5 = vadd.f32 %v18253_v28, %v9182_v18  ;;  %v9183_v24 = vmul.f32 %v10659_v0, %v18245_v34  ;;  %v18259_v38 = vpop.f32.mrb[71].mxu0  ;;  %v19368_v18 = vld [vmem:[#allocation40_spill] sm:$0xff] }
 0xda8   : > { %v18262_v17 = vadd.f32 %v18253_v28, %v9183_v24 }
 0xdd2   : > { %v9236_v40 = vpop.permute.xlu1 %9235 }
 0xdd3   : > { %v9385_v54 = vmul.f32 %v9236_v40, %v19364_v47  ;;  %v9226_v13 = vpop.permute.xlu0 %9225 }
 0xdd4   : > { %v9383_v63 = vmul.f32 %v9226_v13, %v19365_v22  ;;  %v9162_v22 = vmul.f32 %v18202_v46, %v18245_v34 }
 0xdd5   : > { %v9417_v2 = vadd.f32 %v9385_v54, %v9193_v12  ;;  %v19369_v12 = vld [vmem:[#allocation43_spill] sm:$0xff] }
 0xdd6   : > { %v9415_v16 = vadd.f32 %v9383_v63, %v9191_v33  ;;  %v9231_v30 = vpop.permute.xlu1 %9230  ;;  %v19370_v33 = vld [vmem:[#allocation84_spill] sm:$0xff] }
 0xdd7   : > { %v9449_v35 = vmax.f32 %v9417_v2, 0.0  ;;  %v9384_v25 = vmul.f32 %v9231_v30, %v19366_v11  ;;  %v9241_v27 = vpop.permute.xlu0 %9240  ;;  %v19371_v30 = vld [vmem:[#allocation88_spill] sm:$0xff] }
 0xdd8   : > { %v9447_v10 = vmax.f32 %v9415_v16, 0.0  ;;  %v9386_v50 = vmul.f32 %v9241_v27, %v19367_v37  ;;  %v9201_v27 = vadd.f32 %v18253_v28, %v9162_v22  ;;  %v9161_v37 = vmul.f32 %v18245_v34, %v18208_v19  ;;  %v19374_v19 = vld [vmem:[#allocation87_spill] sm:$0xff] }
 0xdd9   : > { %9481 = vst [vmem:[%s18280_s21 + $0x10] sm:$0xff] %v9449_v35  ;;  %v9416_v44 = vadd.f32 %v9384_v25, %v9192_v41  ;;  %v9160_v35 = vmul.f32 %v18245_v34, %v18204_v7 }
 0xdda   : > { %9479 = vst [vmem:[%s18280_s21] sm:$0xff] %v9447_v10  ;;  %v9418_v26 = vadd.f32 %v9386_v50, %v9194_v31  ;;  %v9256_v8 = vpop.permute.xlu1 %9255  ;;  %v19372_v31 = vld [vmem:[#allocation89_spill] sm:$0xff] }
 0xddb   : > { %v9448_v56 = vmax.f32 %v9416_v44, 0.0  ;;  %v9389_v0 = vmul.f32 %v9256_v8, %v19368_v18  ;;  %v9199_v8 = vadd.f32 %v18253_v28, %v9160_v35 }
 0xddc   : > { %v9450_v24 = vmax.f32 %v9418_v26, 0.0  ;;  %v9261_v1 = vpop.permute.xlu0 %9260  ;;  %v19373_v26 = vld [vmem:[#allocation41_spill] sm:$0xff] }
 0xddd   : > { %9480 = vst [vmem:[%s18280_s21 + $0x8] sm:$0xff] %v9448_v56  ;;  %v9421_v40 = vadd.f32 %v9389_v0, %v9197_v62  ;;  %v9390_v61 = vmul.f32 %v9261_v1, %v19369_v12  ;;  %v19375_v12 = vld [vmem:[#allocation42_spill] sm:$0xff] }
 0xdde   : > { %9482 = vst [vmem:[%s18280_s21 + $0x18] sm:$0xff] %v9450_v24  ;;  %v9246_v47 = vpop.permute.xlu1 %9245  ;;  %v9200_v24 = vadd.f32 %v18253_v28, %v9161_v37  ;;  %v19379_v37 = vld [vmem:[#allocation93_spill] sm:$0xff] }
 0xddf   : > { %v9453_v54 = vmax.f32 %v9421_v40, 0.0  ;;  %v9422_v13 = vadd.f32 %v9390_v61, %v9198_v20  ;;  %v9387_v36 = vmul.f32 %v9246_v47, %v19370_v33  ;;  %v9167_v20 = vmul.f32 %v18214_v53, %v18245_v34  ;;  %v19376_v33 = vld [vmem:[#allocation91_spill] sm:$0xff] }
 0xde0   : > { %v9251_v63 = vpop.permute.xlu0 %9250  ;;  %v9164_v47 = vmul.f32 %v18245_v34, %v18212_v57  ;;  %v9165_v53 = vmul.f32 %v18245_v34, %v18216_v15  ;;  %v19377_v57 = vld [vmem:[#allocation45_spill] sm:$0xff]  ;;  %v9170_v15 = vmul.f32 %v18218_v51, %v18245_v34 }
 0xde1   : > { %9485 = vst [vmem:[%s18280_s21 + $0x30] sm:$0xff] %v9453_v54  ;;  %v9454_v2 = vmax.f32 %v9422_v13, 0.0  ;;  %v9419_v16 = vadd.f32 %v9387_v36, %v9195_v9  ;;  %v9388_v41 = vmul.f32 %v9251_v63, %v19371_v30  ;;  %v9205_v9 = vadd.f32 %v18253_v28, %v9166_v39 }
 0xde2   : > { %v9206_v63 = vadd.f32 %v18253_v28, %v9167_v20  ;;  %v9169_v39 = vmul.f32 %v18245_v34, %v18224_v23  ;;  %v9174_v20 = vmul.f32 %v18226_v59, %v18245_v34  ;;  %v19382_v23 = vld [vmem:[#allocation92_spill] sm:$0xff] }
 0xde3   : > { %9486 = vst [vmem:[%s18280_s21 + $0x38] sm:$0xff] %v9454_v2  ;;  %v9451_v11 = vmax.f32 %v9419_v16, 0.0  ;;  %v9420_v25 = vadd.f32 %v9388_v41, %v9196_v6  ;;  %v9276_v46 = vpop.permute.xlu1 %9275  ;;  %v9203_v41 = vadd.f32 %v18253_v28, %v9164_v47 }
 0xde4   : > { %v9393_v10 = vmul.f32 %v9276_v46, %v19372_v31 }
 0xde5   : > { %9483 = vst [vmem:[%s18280_s21 + $0x20] sm:$0xff] %v9451_v11  ;;  %v9452_v50 = vmax.f32 %v9420_v25, 0.0  ;;  %v9281_v48 = vpop.permute.xlu0 %9280  ;;  %v19378_v11 = vld [vmem:[#allocation90_spill] sm:$0xff] }
 0xde6   : > { %v9425_v44 = vadd.f32 %v9393_v10, %v9201_v27  ;;  %v9394_v7 = vmul.f32 %v9281_v48, %v19373_v26  ;;  %v9204_v27 = vadd.f32 %v18253_v28, %v9165_v53  ;;  %v9171_v48 = vmul.f32 %v18222_v29, %v18245_v34 }
 0xde7   : > { %9484 = vst [vmem:[%s18280_s21 + $0x28] sm:$0xff] %v9452_v50  ;;  %v9266_v62 = vpop.permute.xlu1 %9265  ;;  %v9213_v53 = vadd.f32 %v18253_v28, %v9174_v20 }
 0xde8   : > { %v9457_v56 = vmax.f32 %v9425_v44, 0.0  ;;  %v9426_v18 = vadd.f32 %v9394_v7, %v9202_v4  ;;  %v9391_v0 = vmul.f32 %v9266_v62, %v19374_v19  ;;  %v9168_v4 = vmul.f32 %v18245_v34, %v18220_v43 }
 0xde9   : > { %v9271_v1 = vpop.permute.xlu0 %9270  ;;  %v9209_v7 = vadd.f32 %v18253_v28, %v9170_v15  ;;  %v9210_v29 = vadd.f32 %v18253_v28, %v9171_v48  ;;  %v19387_v48 = vld [vmem:[#allocation50_spill] sm:$0xff] }
 0xdea   : > { %9489 = vst [vmem:[%s18280_s21 + $0x50] sm:$0xff] %v9457_v56  ;;  %v9458_v21 = vmax.f32 %v9426_v18, 0.0  ;;  %v9423_v40 = vadd.f32 %v9391_v0, %v9199_v8  ;;  %v9392_v61 = vmul.f32 %v9271_v1, %v19375_v12  ;;  %v19380_v8 = vld [vmem:[#allocation46_spill] sm:$0xff]  ;;  %v19381_v0 = vld [vmem:[#allocation47_spill] sm:$0xff] }
 0xdeb   : > { %v9296_v3 = vpop.permute.xlu1 %9295 }
 0xdec   : > { %9490 = vst [vmem:[%s18280_s21 + $0x58] sm:$0xff] %v9458_v21  ;;  %v9455_v54 = vmax.f32 %v9423_v40, 0.0  ;;  %v9424_v13 = vadd.f32 %v9392_v61, %v9200_v24  ;;  %v9397_v36 = vmul.f32 %v9296_v3, %v19376_v33  ;;  %v9207_v24 = vadd.f32 %v18253_v28, %v9168_v4 }
 0xded   : > { %v9301_v22 = vpop.permute.xlu0 %9300  ;;  %v9208_v61 = vadd.f32 %v18253_v28, %v9169_v39  ;;  %v9175_v3 = vmul.f32 %v18230_v32, %v18245_v34  ;;  %v9173_v32 = vmul.f32 %v18245_v34, %v18232_v60  ;;  %v9178_v60 = vmul.f32 %v18234_v42, %v18245_v34 }
 0xdee   : > { %9487 = vst [vmem:[%s18280_s21 + $0x40] sm:$0xff] %v9455_v54  ;;  %v9456_v6 = vmax.f32 %v9424_v13, 0.0  ;;  %v9429_v2 = vadd.f32 %v9397_v36, %v9205_v9  ;;  %v9398_v16 = vmul.f32 %v9301_v22, %v19377_v57  ;;  %v19383_v13 = vld [vmem:[#allocation44_spill] sm:$0xff]  ;;  %v9172_v36 = vmul.f32 %v18245_v34, %v18228_v58  ;;  %v19385_v58 = vld [vmem:[#allocation53_spill] sm:$0xff] }
 0xdef   : > { %v9286_v30 = vpop.permute.xlu1 %9285  ;;  %v9176_v42 = vmul.f32 %v18245_v34, %v18236_v55 }
 0xdf0   : > { %9488 = vst [vmem:[%s18280_s21 + $0x48] sm:$0xff] %v9456_v6  ;;  %v9461_v49 = vmax.f32 %v9429_v2, 0.0  ;;  %v9430_v35 = vadd.f32 %v9398_v16, %v9206_v63  ;;  %v9395_v25 = vmul.f32 %v9286_v30, %v19378_v11  ;;  %v19384_v6 = vld [vmem:[#allocation51_spill] sm:$0xff]  ;;  %v9214_v16 = vadd.f32 %v18253_v28, %v9175_v3 }
 0xdf1   : > { %v9291_v46 = vpop.permute.xlu0 %9290  ;;  %v9211_v11 = vadd.f32 %v18253_v28, %v9172_v36  ;;  %v19391_v3 = vld [vmem:[#allocation55_spill] sm:$0xff] }
 0xdf2   : > { %9493 = vst [vmem:[%s18280_s21 + $0x70] sm:$0xff] %v9461_v49  ;;  %v9462_v31 = vmax.f32 %v9430_v35, 0.0  ;;  %v9427_v10 = vadd.f32 %v9395_v25, %v9203_v41  ;;  %v9396_v50 = vmul.f32 %v9291_v46, %v19379_v37  ;;  %v19386_v46 = vld [vmem:[#allocation48_spill] sm:$0xff] }
 0xdf4   : > { %9494 = vst [vmem:[%s18280_s21 + $0x78] sm:$0xff] %v9462_v31  ;;  %v9459_v44 = vmax.f32 %v9427_v10, 0.0  ;;  %v9428_v26 = vadd.f32 %v9396_v50, %v9204_v27  ;;  %v9316_v51 = vpop.permute.xlu1 %9315  ;;  %v9212_v10 = vadd.f32 %v18253_v28, %v9173_v32  ;;  %v19393_v32 = vld [vmem:[#allocation61_spill] sm:$0xff] }
 0xdf5   : > { %v9401_v62 = vmul.f32 %v9316_v51, %v19380_v8  ;;  %v9217_v8 = vadd.f32 %v18253_v28, %v9178_v60 }
 0xdf6   : > { %9491 = vst [vmem:[%s18280_s21 + $0x60] sm:$0xff] %v9459_v44  ;;  %v9460_v56 = vmax.f32 %v9428_v26, 0.0  ;;  %v9321_v18 = vpop.permute.xlu0 %9320  ;;  %v9179_v44 = vmul.f32 %v18238_v52, %v18245_v34  ;;  %v9177_v52 = vmul.f32 %v18245_v34, %v18240_v45 }
 0xdf7   : > { %v9433_v19 = vadd.f32 %v9401_v62, %v9209_v7  ;;  %v9402_v43 = vmul.f32 %v9321_v18, %v19381_v0  ;;  %v19388_v62 = vld [vmem:[#allocation56_spill] sm:$0xff]  ;;  %v19389_v0 = vld [vmem:[#allocation57_spill] sm:$0xff] }
 0xdf8   : > { %9492 = vst [vmem:[%s18280_s21 + $0x68] sm:$0xff] %v9460_v56  ;;  %v9306_v1 = vpop.permute.xlu1 %9305 }
 0xdf9   : > { %v9465_v21 = vmax.f32 %v9433_v19, 0.0  ;;  %v9434_v40 = vadd.f32 %v9402_v43, %v9210_v29  ;;  %v9399_v12 = vmul.f32 %v9306_v1, %v19382_v23  ;;  %v9218_v29 = vadd.f32 %v18253_v28, %v9179_v44 }
 0xdfa   : > { %v9311_v47 = vpop.permute.xlu0 %9310  ;;  %v9215_v1 = vadd.f32 %v18253_v28, %v9176_v42  ;;  %v9180_v23 = vmul.f32 %v18245_v34, %v18248_v14  ;;  %v19392_v14 = vld [vmem:[#allocation59_spill] sm:$0xff] }
 0xdfb   : > { %9497 = vst [vmem:[%s18280_s21 + $0x90] sm:$0xff] %v9465_v21  ;;  %v9466_v9 = vmax.f32 %v9434_v40, 0.0  ;;  %v9431_v54 = vadd.f32 %v9399_v12, %v9207_v24  ;;  %v9400_v33 = vmul.f32 %v9311_v47, %v19383_v13  ;;  %v19390_v21 = vld [vmem:[#allocation54_spill] sm:$0xff] }
 0xdfc   : > { %v9336_v59 = vpop.permute.xlu1 %9335 }
 0xdfd   : > { %9498 = vst [vmem:[%s18280_s21 + $0x98] sm:$0xff] %v9466_v9  ;;  %v9463_v22 = vmax.f32 %v9431_v54, 0.0  ;;  %v9432_v63 = vadd.f32 %v9400_v33, %v9208_v61  ;;  %v9405_v2 = vmul.f32 %v9336_v59, %v19384_v6  ;;  %v9216_v61 = vadd.f32 %v18253_v28, %v9177_v52 }
 0xdfe   : > { %v9341_v57 = vpop.permute.xlu0 %9340  ;;  %v9181_v54 = vmul.f32 %v18245_v34, %v18259_v38  ;;  %v9219_v59 = vadd.f32 %v18253_v28, %v9180_v23 }
 0xdff   : > { %9495 = vst [vmem:[%s18280_s21 + $0x80] sm:$0xff] %v9463_v22  ;;  %v9464_v30 = vmax.f32 %v9432_v63, 0.0  ;;  %v9437_v41 = vadd.f32 %v9405_v2, %v9213_v53  ;;  %v9406_v49 = vmul.f32 %v9341_v57, %v19385_v58 }
 0xe00   : > { %v9326_v35 = vpop.permute.xlu1 %9325  ;;  %v9220_v6 = vadd.f32 %v18253_v28, %v9181_v54 }
 0xe01   : > { %9496 = vst [vmem:[%s18280_s21 + $0x88] sm:$0xff] %v9464_v30  ;;  %v9469_v25 = vmax.f32 %v9437_v41, 0.0  ;;  %v9438_v15 = vadd.f32 %v9406_v49, %v9214_v16  ;;  %v9403_v27 = vmul.f32 %v9326_v35, %v19386_v46  ;;  %v19394_v30 = vld [vmem:[#allocation58_spill] sm:$0xff] }
 0xe02   : > { %v9331_v31 = vpop.permute.xlu0 %9330 }
 0xe03   : > { %9501 = vst [vmem:[%s18280_s21 + $0xb0] sm:$0xff] %v9469_v25  ;;  %v9470_v37 = vmax.f32 %v9438_v15, 0.0  ;;  %v9435_v50 = vadd.f32 %v9403_v27, %v9211_v11  ;;  %v9404_v4 = vmul.f32 %v9331_v31, %v19387_v48  ;;  %v19395_v11 = vld [vmem:[#allocation60_spill] sm:$0xff] }
 0xe05   : > { %9502 = vst [vmem:[%s18280_s21 + $0xb8] sm:$0xff] %v9470_v37  ;;  %v9467_v26 = vmax.f32 %v9435_v50, 0.0  ;;  %v9436_v51 = vadd.f32 %v9404_v4, %v9212_v10  ;;  %v9356_v7 = vpop.permute.xlu1 %9355 }
 0xe06   : > { %v9409_v39 = vmul.f32 %v9356_v7, %v19388_v62 }
 0xe07   : > { %9499 = vst [vmem:[%s18280_s21 + $0xa0] sm:$0xff] %v9467_v26  ;;  %v9468_v56 = vmax.f32 %v9436_v51, 0.0  ;;  %v9361_v18 = vpop.permute.xlu0 %9360 }
 0xe08   : > { %v9441_v19 = vadd.f32 %v9409_v39, %v9217_v8  ;;  %v9410_v43 = vmul.f32 %v9361_v18, %v19389_v0 }
 0xe09   : > { %9500 = vst [vmem:[%s18280_s21 + $0xa8] sm:$0xff] %v9468_v56  ;;  %v9346_v24 = vpop.permute.xlu1 %9345 }
 0xe0a   : > { %v9473_v55 = vmax.f32 %v9441_v19, 0.0  ;;  %v9442_v20 = vadd.f32 %v9410_v43, %v9218_v29  ;;  %v9407_v40 = vmul.f32 %v9346_v24, %v19390_v21 }
 0xe0b   : > { %v9351_v12 = vpop.permute.xlu0 %9350 }
 0xe0c   : > { %9505 = vst [vmem:[%s18280_s21 + $0xd0] sm:$0xff] %v9473_v55  ;;  %v9474_v45 = vmax.f32 %v9442_v20, 0.0  ;;  %v9439_v47 = vadd.f32 %v9407_v40, %v9215_v1  ;;  %v9408_v9 = vmul.f32 %v9351_v12, %v19391_v3 }
 0xe0e   : > { %9506 = vst [vmem:[%s18280_s21 + $0xd8] sm:$0xff] %v9474_v45  ;;  %v9471_v13 = vmax.f32 %v9439_v47, 0.0  ;;  %v9440_v33 = vadd.f32 %v9408_v9, %v9216_v61  ;;  %v9366_v36 = vpop.permute.xlu1 %9365 }
 0xe0f   : > { %v9411_v53 = vmul.f32 %v9366_v36, %v19392_v14 }
 0xe10   : > { %9503 = vst [vmem:[%s18280_s21 + $0xc0] sm:$0xff] %v9471_v13  ;;  %v9472_v22 = vmax.f32 %v9440_v33, 0.0  ;;  %v9371_v63 = vpop.permute.xlu0 %9370 }
 0xe11   : > { %v9443_v2 = vadd.f32 %v9411_v53, %v9219_v59  ;;  %v9412_v57 = vmul.f32 %v9371_v63, %v19393_v32 }
 0xe12   : > { %9504 = vst [vmem:[%s18280_s21 + $0xc8] sm:$0xff] %v9472_v22  ;;  %v9376_v34 = vpop.permute.xlu1 %9375 }
 0xe13   : > { %v9475_v38 = vmax.f32 %v9443_v2, 0.0  ;;  %v9444_v16 = vadd.f32 %v9412_v57, %v9220_v6  ;;  %v9413_v41 = vmul.f32 %v9376_v34, %v19394_v30 }
 0xe14   : > { %v9381_v58 = vpop.permute.xlu0 %9380 }
 0xe15   : > { %9507 = vst [vmem:[%s18280_s21 + $0xe0] sm:$0xff] %v9475_v38  ;;  %v9476_v49 = vmax.f32 %v9444_v16, 0.0  ;;  %v9445_v35 = vadd.f32 %v9413_v41, %v18256_v5  ;;  %v9414_v25 = vmul.f32 %v9381_v58, %v19395_v11 }
 0xe17   : > { %9508 = vst [vmem:[%s18280_s21 + $0xe8] sm:$0xff] %v9476_v49  ;;  %v9477_v28 = vmax.f32 %v9445_v35, 0.0  ;;  %v9446_v15 = vadd.f32 %v9414_v25, %v18262_v17 }
 0xe19   : > { %9509 = vst [vmem:[%s18280_s21 + $0xf0] sm:$0xff] %v9477_v28  ;;  %v9478_v46 = vmax.f32 %v9446_v15, 0.0 }
 0xe1b   : > { %9510 = vst [vmem:[%s18280_s21 + $0xf8] sm:$0xff] %v9478_v46 }
 0xe1c PF: > { %s23_s25 = sadd.s32 1, %s11161_s25  }
 0xe1d   : > { %p20_p4 = scmp.ge.s32.totalorder %s23_s25, 4  }
 0xe1f   :  { %22 = sbr.rel (!%p20_p4) target bundleno = 1 (0x1), region = 106 }

</bundles_post_ra>
